<compile_context>
chip_gen: v7x
topology: tpu7x:2x2x1
jax: 0.10.0
libtpu: 0.0.40
codegen_flags: <defaults>
</compile_context>

<pallas_src>
import jax
import jax.numpy as jnp
from jax.experimental import pallas as pl
from jax.experimental.pallas import tpu as pltpu

OUT_DIM = 2048   # resnet50
EMBED   = 512    # embedding_size
BN_EPS  = 1e-5


def head_kernel(feat_ref, w_ref, b_ref, out_ref):
    # feat_ref: (TN, C, HW) f32   w_ref: (C, TE) bf16   b_ref: (1, TE) f32
    # Spatial sum-pool (the 1/HW is folded into w); keep the accumulation f32.
    pooled = jnp.sum(feat_ref[...], axis=-1)                      # (TN, C) f32
    # MXU matmul: bf16 operands, f32 accumulate. BN scale already folded in w.
    y = jnp.dot(pooled.astype(jnp.bfloat16), w_ref[...],
                preferred_element_type=jnp.float32)               # (TN, TE) f32
    out_ref[...] = y + b_ref[...]


def landmark_head(feat_nchw, w, b, gamma, beta, running_mean, running_var,
                  eps=BN_EPS):
    """feat_nchw: (N, C, H, W) backbone feature map (NCHW). Returns (N, E)."""
    N, C, H, W = feat_nchw.shape
    E = w.shape[1]
    HW = H * W

    # Free reshape (no HBM transpose round trip): NCHW -> (N, C, HW).
    feat = feat_nchw.reshape(N, C, HW).astype(jnp.float32)

    # Fold BatchNorm1d (eval mode) + fc bias + 1/HW pooling scale into (W', b').
    scale = (gamma * jax.lax.rsqrt(running_var + eps)).astype(jnp.float32)   # (E,)
    w_folded = (w.astype(jnp.float32) * scale[None, :] / HW).astype(jnp.bfloat16)
    b_folded = ((b - running_mean) * scale + beta).astype(jnp.float32).reshape(1, E)

    # Batch tile: multiple of 8 sublanes when possible, else the whole (small) batch.
    TN = 8 if N % 8 == 0 else N
    # Embedding tile: 256 lanes (2x128) splits E=512 across 2 parallel steps; else whole E.
    TE = 256 if E % 256 == 0 else E
    grid = (N // TN, E // TE)

    # VMEM need: double-buffered lane-padded feat tile + bf16 weight tile + outputs.
    lane_pad = ((HW + 127) // 128) * 128
    vmem_need = 2 * TN * C * lane_pad * 4 + 2 * C * TE * 2 + 2 * TN * TE * 4
    vmem_limit = int(min(max(vmem_need * 2, 16 << 20), 48 << 20))   # headroom, < v7x 64 MiB

    kernel = pl.pallas_call(
        head_kernel,
        out_shape=jax.ShapeDtypeStruct((N, E), jnp.float32),
        grid=grid,
        in_specs=[
            pl.BlockSpec((TN, C, HW), lambda i, j: (i, 0, 0)),   # features
            pl.BlockSpec((C, TE),     lambda i, j: (0, j)),      # folded fc weight (bf16)
            pl.BlockSpec((1, TE),     lambda i, j: (0, j)),      # folded bias (f32)
        ],
        out_specs=pl.BlockSpec((TN, TE), lambda i, j: (i, j)),
        compiler_params=pltpu.CompilerParams(
            dimension_semantics=("parallel", "parallel"),
            vmem_limit_bytes=vmem_limit,
        ),
    )
    return kernel(feat, w_folded, b_folded)


if __name__ == "__main__":
    key = jax.random.PRNGKey(0)
    k_feat, k_w, k_b = jax.random.split(key, 3)

    # batch=2, resnet50 final feature map 2048x7x7 (NCHW)
    N, C, H, W = 2, OUT_DIM, 7, 7
    feat = jax.random.normal(k_feat, (N, C, H, W), dtype=jnp.float32)

    # deterministic synthetic parameters (not a checkpoint)
    w_fc = jax.random.normal(k_w, (C, EMBED), dtype=jnp.float32) * 0.02  # = torch fc.weight.T
    b_fc = jax.random.normal(k_b, (EMBED,),   dtype=jnp.float32) * 0.01
    gamma = jnp.ones((EMBED,), jnp.float32)          # BatchNorm1d defaults (eval mode)
    beta  = jnp.zeros((EMBED,), jnp.float32)
    running_mean = jnp.zeros((EMBED,), jnp.float32)
    running_var  = jnp.ones((EMBED,), jnp.float32)

    out = landmark_head(feat, w_fc, b_fc, gamma, beta, running_mean, running_var)
    out = jax.block_until_ready(out)

    # pure-JAX f32 reference of the same head math (mean-pool -> fc -> eval-mode BN)
    pooled_ref = feat.mean(axis=(2, 3))                                   # (N, C)
    fc_ref = pooled_ref @ w_fc + b_fc
    ref = (fc_ref - running_mean) / jnp.sqrt(running_var + BN_EPS) * gamma + beta

    assert out.shape == (N, EMBED)
    # bf16 matmul operands -> slightly looser tolerance than pure f32
    assert jnp.allclose(out, ref, atol=1e-2, rtol=1e-2), "mismatch vs reference"

    print("KERNEL_OK")
</pallas_src>

<mosaic_0001>
module attributes {stable_mosaic.version = 11 : i64} {
  func.func @head_kernel(%arg0: i32, %arg1: i32, %arg2: memref<2x2048x49xf32, #tpu.memory_space<vmem>>, %arg3: memref<2048x256xbf16, #tpu.memory_space<vmem>>, %arg4: memref<1x256xf32, #tpu.memory_space<vmem>>, %arg5: memref<2x256xf32, #tpu.memory_space<vmem>>) attributes {dimension_semantics = [#tpu.dimension_semantics<parallel>, #tpu.dimension_semantics<parallel>], iteration_bounds = array<i64: 1, 2>, scalar_prefetch = 0 : i64, scratch_operands = 0 : i64, tpu.core_type = #tpu.core_type<tc>, window_params = [{transform_indices = @transform_0, window_bounds = array<i64: 2, 2048, 49>}, {transform_indices = @transform_1, window_bounds = array<i64: 2048, 256>}, {transform_indices = @transform_2, window_bounds = array<i64: 1, 256>}, {transform_indices = @transform_3, window_bounds = array<i64: 2, 256>}]} {
    %c0 = arith.constant 0 : index
    %c0_0 = arith.constant 0 : index
    %c0_1 = arith.constant 0 : index
    %0 = vector.load %arg2[%c0, %c0_0, %c0_1] : memref<2x2048x49xf32, #tpu.memory_space<vmem>>, vector<2x2048x49xf32>
    %cst = arith.constant dense<0.000000e+00> : vector<2x2048xf32>
    %1 = vector.multi_reduction <add>, %0, %cst [2] : vector<2x2048x49xf32> to vector<2x2048xf32>
    %2 = arith.truncf %1 : vector<2x2048xf32> to vector<2x2048xbf16>
    %c0_2 = arith.constant 0 : index
    %c0_3 = arith.constant 0 : index
    %3 = vector.load %arg3[%c0_2, %c0_3] : memref<2048x256xbf16, #tpu.memory_space<vmem>>, vector<2048x256xbf16>
    %cst_4 = arith.constant dense<0.000000e+00> : vector<2x256xf32>
    %4 = tpu.matmul %2, %3, %cst_4 {dimension_numbers = #tpu.dot_dimension_numbers<[1], [0], [0], [1], [0, 0, 1, 1], [], []>} : vector<2x2048xbf16>, vector<2048x256xbf16>, vector<2x256xf32> -> vector<2x256xf32>
    %c0_5 = arith.constant 0 : index
    %c0_6 = arith.constant 0 : index
    %5 = vector.load %arg4[%c0_5, %c0_6] : memref<1x256xf32, #tpu.memory_space<vmem>>, vector<1x256xf32>
    %6 = vector.broadcast %5 : vector<1x256xf32> to vector<2x256xf32>
    %7 = arith.addf %4, %6 : vector<2x256xf32>
    %c0_7 = arith.constant 0 : index
    %c0_8 = arith.constant 0 : index
    %8 = vector.load %arg5[%c0_7, %c0_8] : memref<2x256xf32, #tpu.memory_space<vmem>>, vector<2x256xf32>
    tpu.vector_store %arg5[%c0_7, %c0_8], %7 {strides = array<i32>} : memref<2x256xf32, #tpu.memory_space<vmem>>, vector<2x256xf32>,
    return
  }
  func.func @transform_0(%arg0: i32, %arg1: i32) -> (i32, i32, i32) {
    %c0_i32 = arith.constant 0 : i32
    %c0_i32_0 = arith.constant 0 : i32
    %c0_i32_1 = arith.constant 0 : i32
    return %arg0, %c0_i32, %c0_i32_0 : i32, i32, i32
  }
  func.func @transform_1(%arg0: i32, %arg1: i32) -> (i32, i32) {
    %c0_i32 = arith.constant 0 : i32
    %c0_i32_0 = arith.constant 0 : i32
    return %c0_i32, %arg1 : i32, i32
  }
  func.func @transform_2(%arg0: i32, %arg1: i32) -> (i32, i32) {
    %c0_i32 = arith.constant 0 : i32
    %c0_i32_0 = arith.constant 0 : i32
    return %c0_i32, %arg1 : i32, i32
  }
  func.func @transform_3(%arg0: i32, %arg1: i32) -> (i32, i32) {
    %c0_i32 = arith.constant 0 : i32
    return %arg0, %arg1 : i32, i32
  }
}

</mosaic_0001>

<bundles_post_ra>
// kernel: tpu_custom_call.1
= control target key start
LH: loop header
LB: loop body
LE: loop exit
PB: predicated region body
PF: predicated region fallthrough
CT: control target
= control target key end

     0   :  { %8 = vsyncpa [#allocation4], 0  ;;  %s14278_s0 = inlined_call_operand.vmem [shape: f32[2,2048,49], index: 0, kind: input, shape index: {}]   ;;  %s14279_s1 = inlined_call_operand.vmem [shape: bf16[2048,512], index: 1, kind: input, shape index: {}]   ;;  %s14280_s2 = inlined_call_operand.vmem [shape: f32[1,512], index: 2, kind: input, shape index: {}]   ;;  %s14281_s3 = inlined_call_operand.hbm [shape: f32[2,512], index: 3, kind: output, shape index: {}]  }
   0x1   :  { %10 = vsyncpa [#allocation4 + $0x1], 0  ;;  %s9815_s12 = smov 0   ;;  %s9817_s13 = smov 0  }
   0x2   :  { %s9819_s14 = smov 0   ;;  %s9821_s15 = smov 0  }
   0x3   :  { %s9823_s16 = smov 0   ;;  %s9825_s17 = smov 0  }
   0x4 LB: > { %s8971_s18 = sadd.s32 4294967295, %s9792_s17   ;;  %s8972_s19 = sadd.s32 4294967294, %s9792_s17   ;;  %s9792_s17 = sphi %s9825_s17, %s16_s17   ;;  %s9788_s16 = sphi %s9823_s16, %s14344_s16   ;;  %s9784_s15 = sphi %s9821_s15, %s14343_s15   ;;  %s9780_s14 = sphi %s9819_s14, %s14342_s14   ;;  %s9776_s13 = sphi %s9817_s13, %s14341_s13   ;;  %s9772_s12 = sphi %s9815_s12, %s14340_s12  }
   0x5   : > { %s25_s20 = sadd.s32 1, %s9788_s16  ;;  %s61_s21 = sadd.s32 1, %s9780_s14 }
   0x6   : > { %p26_p0 = scmp.ge.s32.totalorder %s25_s20, 2  ;;  %p68_p1 = scmp.ne.s32.totalorder %s9780_s14, %s9776_s13 }
   0x7   : > { %p69_p2 = scmp.eq.s32.totalorder %s9792_s17, 0  ;;  %p126_p3 = scmp.eq.s32.totalorder %s8971_s18, 1 }
   0x8   : > { %s14346_s20 = smov (%p26_p0, %s25_s20), 0  ;;  %p131_p6 = scmp.ne.s32.totalorder %s9776_s13, %s9772_s12 }
   0x9   : > { %p70_p4 = por %p69_p2, %p68_p1  ;;  %p9854_p5 = por %p126_p3, %p68_p1 }
   0xa   : > { %s58_s23 = ssub.s32 %s9788_s16, %s14346_s20  ;;  %p132_p8 = scmp.eq.s32.totalorder %s8972_s19, 1 }
   0xb   : > { %p59_p7 = scmp.eq.s32.totalorder %s58_s23, 0  ;;  %p8975_p10 = scmp.ge.s32.totalorder %s9792_s17, 2 }
   0xc   : > { %p9865_p9 = por %p132_p8, %p131_p6 }
   0xd   : > { %s9863_s24 = scalar_select %p59_p7, %s9780_s14, %s61_s21  }
   0xe   : > { %158 = sbr.rel (%p8975_p10) target bundleno = 153 (0x99), region = 20 }
  0x15   : > { %161 = sbr.rel (!%p70_p4) target bundleno = 153 (0x99), region = 24  ;;  %s163_s26 = sand.u32 (%p70_p4), 1, %s9780_s14  }
  0x16   : > { %s9245_s27 = sshll.u32 (%p70_p4), %s9788_s16, 3  ;;  %s8976_s28 = sshll.u32 (%p70_p4), %s163_s26, 11 }
  0x17   : > { %s9877_s4 = scalar_lea.vmem (%p70_p4), %s14279_s1, %s9245_s27  ;;  %s9882_s5 = scalar_lea.vmem (%p70_p4), [#allocation2], %s8976_s28 }
  0x18   : > { %v706_v0 = vld [vmem:[%s9877_s4] sm:$0xff] (%p70_p4)  ;;  %v708_v1 = vld [vmem:[%s9877_s4 + $0x10] sm:$0xff] (%p70_p4) }
  0x19   : > { %v710_v2 = vld [vmem:[%s9877_s4 + $0x20] sm:$0xff] (%p70_p4)  ;;  %707 = vst [vmem:[%s9882_s5] sm:$0xff] (%p70_p4), %v706_v0  ;;  %709 = vst [vmem:[%s9882_s5 + $0x8] sm:$0xff] (%p70_p4), %v708_v1  ;;  %v712_v3 = vld [vmem:[%s9877_s4 + $0x30] sm:$0xff] (%p70_p4) }
  0x1a   : > { %711 = vst [vmem:[%s9882_s5 + $0x10] sm:$0xff] (%p70_p4), %v710_v2  ;;  %v714_v4 = vld [vmem:[%s9877_s4 + $0x40] sm:$0xff] (%p70_p4)  ;;  %v716_v5 = vld [vmem:[%s9877_s4 + $0x50] sm:$0xff] (%p70_p4)  ;;  %713 = vst [vmem:[%s9882_s5 + $0x18] sm:$0xff] (%p70_p4), %v712_v3 }
  0x1b   : > { %715 = vst [vmem:[%s9882_s5 + $0x20] sm:$0xff] (%p70_p4), %v714_v4  ;;  %717 = vst [vmem:[%s9882_s5 + $0x28] sm:$0xff] (%p70_p4), %v716_v5  ;;  %v718_v6 = vld [vmem:[%s9877_s4 + $0x60] sm:$0xff] (%p70_p4)  ;;  %v720_v7 = vld [vmem:[%s9877_s4 + $0x70] sm:$0xff] (%p70_p4) }
  0x1c   : > { %v722_v8 = vld [vmem:[%s9877_s4 + $0x80] sm:$0xff]  ;;  %719 = vst [vmem:[%s9882_s5 + $0x30] sm:$0xff] %v718_v6  ;;  %721 = vst [vmem:[%s9882_s5 + $0x38] sm:$0xff] %v720_v7  ;;  %v724_v9 = vld [vmem:[%s9877_s4 + $0x90] sm:$0xff] }
  0x1d   : > { %723 = vst [vmem:[%s9882_s5 + $0x40] sm:$0xff] %v722_v8  ;;  %v726_v10 = vld [vmem:[%s9877_s4 + $0xa0] sm:$0xff]  ;;  %v728_v11 = vld [vmem:[%s9877_s4 + $0xb0] sm:$0xff]  ;;  %725 = vst [vmem:[%s9882_s5 + $0x48] sm:$0xff] %v724_v9 }
  0x1e   : > { %727 = vst [vmem:[%s9882_s5 + $0x50] sm:$0xff] %v726_v10  ;;  %729 = vst [vmem:[%s9882_s5 + $0x58] sm:$0xff] %v728_v11  ;;  %v730_v12 = vld [vmem:[%s9877_s4 + $0xc0] sm:$0xff]  ;;  %v732_v13 = vld [vmem:[%s9877_s4 + $0xd0] sm:$0xff] }
  0x1f   : > { %v734_v14 = vld [vmem:[%s9877_s4 + $0xe0] sm:$0xff]  ;;  %731 = vst [vmem:[%s9882_s5 + $0x60] sm:$0xff] %v730_v12  ;;  %733 = vst [vmem:[%s9882_s5 + $0x68] sm:$0xff] %v732_v13  ;;  %v736_v15 = vld [vmem:[%s9877_s4 + $0xf0] sm:$0xff] }
  0x20   : > { %735 = vst [vmem:[%s9882_s5 + $0x70] sm:$0xff] %v734_v14  ;;  %v738_v16 = vld [vmem:[%s9877_s4 + $0x100] sm:$0xff]  ;;  %v740_v17 = vld [vmem:[%s9877_s4 + $0x110] sm:$0xff]  ;;  %737 = vst [vmem:[%s9882_s5 + $0x78] sm:$0xff] %v736_v15 }
  0x21   : > { %739 = vst [vmem:[%s9882_s5 + $0x80] sm:$0xff] %v738_v16  ;;  %741 = vst [vmem:[%s9882_s5 + $0x88] sm:$0xff] %v740_v17  ;;  %v742_v18 = vld [vmem:[%s9877_s4 + $0x120] sm:$0xff]  ;;  %v744_v19 = vld [vmem:[%s9877_s4 + $0x130] sm:$0xff] }
  0x22   : > { %v746_v20 = vld [vmem:[%s9877_s4 + $0x140] sm:$0xff]  ;;  %743 = vst [vmem:[%s9882_s5 + $0x90] sm:$0xff] %v742_v18  ;;  %745 = vst [vmem:[%s9882_s5 + $0x98] sm:$0xff] %v744_v19  ;;  %v748_v21 = vld [vmem:[%s9877_s4 + $0x150] sm:$0xff] }
  0x23   : > { %747 = vst [vmem:[%s9882_s5 + $0xa0] sm:$0xff] %v746_v20  ;;  %v750_v22 = vld [vmem:[%s9877_s4 + $0x160] sm:$0xff]  ;;  %v752_v23 = vld [vmem:[%s9877_s4 + $0x170] sm:$0xff]  ;;  %749 = vst [vmem:[%s9882_s5 + $0xa8] sm:$0xff] %v748_v21 }
  0x24   : > { %751 = vst [vmem:[%s9882_s5 + $0xb0] sm:$0xff] %v750_v22  ;;  %753 = vst [vmem:[%s9882_s5 + $0xb8] sm:$0xff] %v752_v23  ;;  %v754_v24 = vld [vmem:[%s9877_s4 + $0x180] sm:$0xff]  ;;  %v756_v25 = vld [vmem:[%s9877_s4 + $0x190] sm:$0xff] }
  0x25   : > { %v758_v26 = vld [vmem:[%s9877_s4 + $0x1a0] sm:$0xff]  ;;  %755 = vst [vmem:[%s9882_s5 + $0xc0] sm:$0xff] %v754_v24  ;;  %757 = vst [vmem:[%s9882_s5 + $0xc8] sm:$0xff] %v756_v25  ;;  %v760_v27 = vld [vmem:[%s9877_s4 + $0x1b0] sm:$0xff] }
  0x26   : > { %759 = vst [vmem:[%s9882_s5 + $0xd0] sm:$0xff] %v758_v26  ;;  %v762_v28 = vld [vmem:[%s9877_s4 + $0x1c0] sm:$0xff]  ;;  %v764_v29 = vld [vmem:[%s9877_s4 + $0x1d0] sm:$0xff]  ;;  %761 = vst [vmem:[%s9882_s5 + $0xd8] sm:$0xff] %v760_v27 }
  0x27   : > { %763 = vst [vmem:[%s9882_s5 + $0xe0] sm:$0xff] %v762_v28  ;;  %765 = vst [vmem:[%s9882_s5 + $0xe8] sm:$0xff] %v764_v29  ;;  %v766_v30 = vld [vmem:[%s9877_s4 + $0x1e0] sm:$0xff]  ;;  %v768_v31 = vld [vmem:[%s9877_s4 + $0x1f0] sm:$0xff] }
  0x28   : > { %v770_v32 = vld [vmem:[%s9877_s4 + $0x200] sm:$0xff]  ;;  %767 = vst [vmem:[%s9882_s5 + $0xf0] sm:$0xff] %v766_v30  ;;  %769 = vst [vmem:[%s9882_s5 + $0xf8] sm:$0xff] %v768_v31  ;;  %v772_v33 = vld [vmem:[%s9877_s4 + $0x210] sm:$0xff] }
  0x29   : > { %771 = vst [vmem:[%s9882_s5 + $0x100] sm:$0xff] %v770_v32  ;;  %v774_v34 = vld [vmem:[%s9877_s4 + $0x220] sm:$0xff]  ;;  %v776_v35 = vld [vmem:[%s9877_s4 + $0x230] sm:$0xff]  ;;  %773 = vst [vmem:[%s9882_s5 + $0x108] sm:$0xff] %v772_v33 }
  0x2a   : > { %775 = vst [vmem:[%s9882_s5 + $0x110] sm:$0xff] %v774_v34  ;;  %777 = vst [vmem:[%s9882_s5 + $0x118] sm:$0xff] %v776_v35  ;;  %v778_v36 = vld [vmem:[%s9877_s4 + $0x240] sm:$0xff]  ;;  %v780_v37 = vld [vmem:[%s9877_s4 + $0x250] sm:$0xff] }
  0x2b   : > { %v782_v38 = vld [vmem:[%s9877_s4 + $0x260] sm:$0xff]  ;;  %779 = vst [vmem:[%s9882_s5 + $0x120] sm:$0xff] %v778_v36  ;;  %781 = vst [vmem:[%s9882_s5 + $0x128] sm:$0xff] %v780_v37  ;;  %v784_v39 = vld [vmem:[%s9877_s4 + $0x270] sm:$0xff] }
  0x2c   : > { %783 = vst [vmem:[%s9882_s5 + $0x130] sm:$0xff] %v782_v38  ;;  %v786_v40 = vld [vmem:[%s9877_s4 + $0x280] sm:$0xff]  ;;  %v788_v41 = vld [vmem:[%s9877_s4 + $0x290] sm:$0xff]  ;;  %785 = vst [vmem:[%s9882_s5 + $0x138] sm:$0xff] %v784_v39 }
  0x2d   : > { %787 = vst [vmem:[%s9882_s5 + $0x140] sm:$0xff] %v786_v40  ;;  %789 = vst [vmem:[%s9882_s5 + $0x148] sm:$0xff] %v788_v41  ;;  %v790_v42 = vld [vmem:[%s9877_s4 + $0x2a0] sm:$0xff]  ;;  %v792_v43 = vld [vmem:[%s9877_s4 + $0x2b0] sm:$0xff] }
  0x2e   : > { %v794_v44 = vld [vmem:[%s9877_s4 + $0x2c0] sm:$0xff]  ;;  %791 = vst [vmem:[%s9882_s5 + $0x150] sm:$0xff] %v790_v42  ;;  %793 = vst [vmem:[%s9882_s5 + $0x158] sm:$0xff] %v792_v43  ;;  %v796_v45 = vld [vmem:[%s9877_s4 + $0x2d0] sm:$0xff] }
  0x2f   : > { %795 = vst [vmem:[%s9882_s5 + $0x160] sm:$0xff] %v794_v44  ;;  %v798_v46 = vld [vmem:[%s9877_s4 + $0x2e0] sm:$0xff]  ;;  %v800_v47 = vld [vmem:[%s9877_s4 + $0x2f0] sm:$0xff]  ;;  %797 = vst [vmem:[%s9882_s5 + $0x168] sm:$0xff] %v796_v45 }
  0x30   : > { %799 = vst [vmem:[%s9882_s5 + $0x170] sm:$0xff] %v798_v46  ;;  %801 = vst [vmem:[%s9882_s5 + $0x178] sm:$0xff] %v800_v47  ;;  %v802_v48 = vld [vmem:[%s9877_s4 + $0x300] sm:$0xff]  ;;  %v804_v49 = vld [vmem:[%s9877_s4 + $0x310] sm:$0xff] }
  0x31   : > { %v806_v50 = vld [vmem:[%s9877_s4 + $0x320] sm:$0xff]  ;;  %803 = vst [vmem:[%s9882_s5 + $0x180] sm:$0xff] %v802_v48  ;;  %805 = vst [vmem:[%s9882_s5 + $0x188] sm:$0xff] %v804_v49  ;;  %v808_v51 = vld [vmem:[%s9877_s4 + $0x330] sm:$0xff] }
  0x32   : > { %807 = vst [vmem:[%s9882_s5 + $0x190] sm:$0xff] %v806_v50  ;;  %v810_v52 = vld [vmem:[%s9877_s4 + $0x340] sm:$0xff]  ;;  %v812_v53 = vld [vmem:[%s9877_s4 + $0x350] sm:$0xff]  ;;  %809 = vst [vmem:[%s9882_s5 + $0x198] sm:$0xff] %v808_v51 }
  0x33   : > { %811 = vst [vmem:[%s9882_s5 + $0x1a0] sm:$0xff] %v810_v52  ;;  %813 = vst [vmem:[%s9882_s5 + $0x1a8] sm:$0xff] %v812_v53  ;;  %v814_v54 = vld [vmem:[%s9877_s4 + $0x360] sm:$0xff]  ;;  %v816_v55 = vld [vmem:[%s9877_s4 + $0x370] sm:$0xff] }
  0x34   : > { %v818_v56 = vld [vmem:[%s9877_s4 + $0x380] sm:$0xff]  ;;  %815 = vst [vmem:[%s9882_s5 + $0x1b0] sm:$0xff] %v814_v54  ;;  %817 = vst [vmem:[%s9882_s5 + $0x1b8] sm:$0xff] %v816_v55  ;;  %v820_v57 = vld [vmem:[%s9877_s4 + $0x390] sm:$0xff] }
  0x35   : > { %819 = vst [vmem:[%s9882_s5 + $0x1c0] sm:$0xff] %v818_v56  ;;  %v822_v58 = vld [vmem:[%s9877_s4 + $0x3a0] sm:$0xff]  ;;  %v824_v59 = vld [vmem:[%s9877_s4 + $0x3b0] sm:$0xff]  ;;  %821 = vst [vmem:[%s9882_s5 + $0x1c8] sm:$0xff] %v820_v57 }
  0x36   : > { %823 = vst [vmem:[%s9882_s5 + $0x1d0] sm:$0xff] %v822_v58  ;;  %825 = vst [vmem:[%s9882_s5 + $0x1d8] sm:$0xff] %v824_v59  ;;  %v826_v60 = vld [vmem:[%s9877_s4 + $0x3c0] sm:$0xff]  ;;  %v828_v61 = vld [vmem:[%s9877_s4 + $0x3d0] sm:$0xff] }
  0x37   : > { %v830_v62 = vld [vmem:[%s9877_s4 + $0x3e0] sm:$0xff]  ;;  %827 = vst [vmem:[%s9882_s5 + $0x1e0] sm:$0xff] %v826_v60  ;;  %829 = vst [vmem:[%s9882_s5 + $0x1e8] sm:$0xff] %v828_v61  ;;  %v832_v63 = vld [vmem:[%s9877_s4 + $0x3f0] sm:$0xff] }
  0x38   : > { %831 = vst [vmem:[%s9882_s5 + $0x1f0] sm:$0xff] %v830_v62  ;;  %v834_v0 = vld [vmem:[%s9877_s4 + $0x400] sm:$0xff]  ;;  %v836_v1 = vld [vmem:[%s9877_s4 + $0x410] sm:$0xff]  ;;  %833 = vst [vmem:[%s9882_s5 + $0x1f8] sm:$0xff] %v832_v63 }
  0x39   : > { %835 = vst [vmem:[%s9882_s5 + $0x200] sm:$0xff] %v834_v0  ;;  %837 = vst [vmem:[%s9882_s5 + $0x208] sm:$0xff] %v836_v1  ;;  %v838_v2 = vld [vmem:[%s9877_s4 + $0x420] sm:$0xff]  ;;  %v840_v3 = vld [vmem:[%s9877_s4 + $0x430] sm:$0xff] }
  0x3a   : > { %v842_v4 = vld [vmem:[%s9877_s4 + $0x440] sm:$0xff]  ;;  %839 = vst [vmem:[%s9882_s5 + $0x210] sm:$0xff] %v838_v2  ;;  %841 = vst [vmem:[%s9882_s5 + $0x218] sm:$0xff] %v840_v3  ;;  %v844_v5 = vld [vmem:[%s9877_s4 + $0x450] sm:$0xff] }
  0x3b   : > { %843 = vst [vmem:[%s9882_s5 + $0x220] sm:$0xff] %v842_v4  ;;  %v846_v6 = vld [vmem:[%s9877_s4 + $0x460] sm:$0xff]  ;;  %v848_v7 = vld [vmem:[%s9877_s4 + $0x470] sm:$0xff]  ;;  %845 = vst [vmem:[%s9882_s5 + $0x228] sm:$0xff] %v844_v5 }
  0x3c   : > { %847 = vst [vmem:[%s9882_s5 + $0x230] sm:$0xff] %v846_v6  ;;  %849 = vst [vmem:[%s9882_s5 + $0x238] sm:$0xff] %v848_v7  ;;  %v850_v8 = vld [vmem:[%s9877_s4 + $0x480] sm:$0xff]  ;;  %v852_v9 = vld [vmem:[%s9877_s4 + $0x490] sm:$0xff] }
  0x3d   : > { %v854_v10 = vld [vmem:[%s9877_s4 + $0x4a0] sm:$0xff]  ;;  %851 = vst [vmem:[%s9882_s5 + $0x240] sm:$0xff] %v850_v8  ;;  %853 = vst [vmem:[%s9882_s5 + $0x248] sm:$0xff] %v852_v9  ;;  %v856_v11 = vld [vmem:[%s9877_s4 + $0x4b0] sm:$0xff] }
  0x3e   : > { %855 = vst [vmem:[%s9882_s5 + $0x250] sm:$0xff] %v854_v10  ;;  %v858_v12 = vld [vmem:[%s9877_s4 + $0x4c0] sm:$0xff]  ;;  %v860_v13 = vld [vmem:[%s9877_s4 + $0x4d0] sm:$0xff]  ;;  %857 = vst [vmem:[%s9882_s5 + $0x258] sm:$0xff] %v856_v11 }
  0x3f   : > { %859 = vst [vmem:[%s9882_s5 + $0x260] sm:$0xff] %v858_v12  ;;  %861 = vst [vmem:[%s9882_s5 + $0x268] sm:$0xff] %v860_v13  ;;  %v862_v14 = vld [vmem:[%s9877_s4 + $0x4e0] sm:$0xff]  ;;  %v864_v15 = vld [vmem:[%s9877_s4 + $0x4f0] sm:$0xff] }
  0x40   : > { %v866_v16 = vld [vmem:[%s9877_s4 + $0x500] sm:$0xff]  ;;  %863 = vst [vmem:[%s9882_s5 + $0x270] sm:$0xff] %v862_v14  ;;  %865 = vst [vmem:[%s9882_s5 + $0x278] sm:$0xff] %v864_v15  ;;  %v868_v17 = vld [vmem:[%s9877_s4 + $0x510] sm:$0xff] }
  0x41   : > { %867 = vst [vmem:[%s9882_s5 + $0x280] sm:$0xff] %v866_v16  ;;  %v870_v18 = vld [vmem:[%s9877_s4 + $0x520] sm:$0xff]  ;;  %v872_v19 = vld [vmem:[%s9877_s4 + $0x530] sm:$0xff]  ;;  %869 = vst [vmem:[%s9882_s5 + $0x288] sm:$0xff] %v868_v17 }
  0x42   : > { %871 = vst [vmem:[%s9882_s5 + $0x290] sm:$0xff] %v870_v18  ;;  %873 = vst [vmem:[%s9882_s5 + $0x298] sm:$0xff] %v872_v19  ;;  %v874_v20 = vld [vmem:[%s9877_s4 + $0x540] sm:$0xff]  ;;  %v876_v21 = vld [vmem:[%s9877_s4 + $0x550] sm:$0xff] }
  0x43   : > { %v878_v22 = vld [vmem:[%s9877_s4 + $0x560] sm:$0xff]  ;;  %875 = vst [vmem:[%s9882_s5 + $0x2a0] sm:$0xff] %v874_v20  ;;  %877 = vst [vmem:[%s9882_s5 + $0x2a8] sm:$0xff] %v876_v21  ;;  %v880_v23 = vld [vmem:[%s9877_s4 + $0x570] sm:$0xff] }
  0x44   : > { %879 = vst [vmem:[%s9882_s5 + $0x2b0] sm:$0xff] %v878_v22  ;;  %v882_v24 = vld [vmem:[%s9877_s4 + $0x580] sm:$0xff]  ;;  %v884_v25 = vld [vmem:[%s9877_s4 + $0x590] sm:$0xff]  ;;  %881 = vst [vmem:[%s9882_s5 + $0x2b8] sm:$0xff] %v880_v23 }
  0x45   : > { %883 = vst [vmem:[%s9882_s5 + $0x2c0] sm:$0xff] %v882_v24  ;;  %885 = vst [vmem:[%s9882_s5 + $0x2c8] sm:$0xff] %v884_v25  ;;  %v886_v26 = vld [vmem:[%s9877_s4 + $0x5a0] sm:$0xff]  ;;  %v888_v27 = vld [vmem:[%s9877_s4 + $0x5b0] sm:$0xff] }
  0x46   : > { %v890_v28 = vld [vmem:[%s9877_s4 + $0x5c0] sm:$0xff]  ;;  %887 = vst [vmem:[%s9882_s5 + $0x2d0] sm:$0xff] %v886_v26  ;;  %889 = vst [vmem:[%s9882_s5 + $0x2d8] sm:$0xff] %v888_v27  ;;  %v892_v29 = vld [vmem:[%s9877_s4 + $0x5d0] sm:$0xff] }
  0x47   : > { %891 = vst [vmem:[%s9882_s5 + $0x2e0] sm:$0xff] %v890_v28  ;;  %v894_v30 = vld [vmem:[%s9877_s4 + $0x5e0] sm:$0xff]  ;;  %v896_v31 = vld [vmem:[%s9877_s4 + $0x5f0] sm:$0xff]  ;;  %893 = vst [vmem:[%s9882_s5 + $0x2e8] sm:$0xff] %v892_v29 }
  0x48   : > { %895 = vst [vmem:[%s9882_s5 + $0x2f0] sm:$0xff] %v894_v30  ;;  %897 = vst [vmem:[%s9882_s5 + $0x2f8] sm:$0xff] %v896_v31  ;;  %v898_v32 = vld [vmem:[%s9877_s4 + $0x600] sm:$0xff]  ;;  %v900_v33 = vld [vmem:[%s9877_s4 + $0x610] sm:$0xff] }
  0x49   : > { %v902_v34 = vld [vmem:[%s9877_s4 + $0x620] sm:$0xff]  ;;  %899 = vst [vmem:[%s9882_s5 + $0x300] sm:$0xff] %v898_v32  ;;  %901 = vst [vmem:[%s9882_s5 + $0x308] sm:$0xff] %v900_v33  ;;  %v904_v35 = vld [vmem:[%s9877_s4 + $0x630] sm:$0xff] }
  0x4a   : > { %903 = vst [vmem:[%s9882_s5 + $0x310] sm:$0xff] %v902_v34  ;;  %v906_v36 = vld [vmem:[%s9877_s4 + $0x640] sm:$0xff]  ;;  %v908_v37 = vld [vmem:[%s9877_s4 + $0x650] sm:$0xff]  ;;  %905 = vst [vmem:[%s9882_s5 + $0x318] sm:$0xff] %v904_v35 }
  0x4b   : > { %907 = vst [vmem:[%s9882_s5 + $0x320] sm:$0xff] %v906_v36  ;;  %909 = vst [vmem:[%s9882_s5 + $0x328] sm:$0xff] %v908_v37  ;;  %v910_v38 = vld [vmem:[%s9877_s4 + $0x660] sm:$0xff]  ;;  %v912_v39 = vld [vmem:[%s9877_s4 + $0x670] sm:$0xff] }
  0x4c   : > { %v914_v40 = vld [vmem:[%s9877_s4 + $0x680] sm:$0xff]  ;;  %911 = vst [vmem:[%s9882_s5 + $0x330] sm:$0xff] %v910_v38  ;;  %913 = vst [vmem:[%s9882_s5 + $0x338] sm:$0xff] %v912_v39  ;;  %v916_v41 = vld [vmem:[%s9877_s4 + $0x690] sm:$0xff] }
  0x4d   : > { %915 = vst [vmem:[%s9882_s5 + $0x340] sm:$0xff] %v914_v40  ;;  %v918_v42 = vld [vmem:[%s9877_s4 + $0x6a0] sm:$0xff]  ;;  %v920_v43 = vld [vmem:[%s9877_s4 + $0x6b0] sm:$0xff]  ;;  %917 = vst [vmem:[%s9882_s5 + $0x348] sm:$0xff] %v916_v41 }
  0x4e   : > { %919 = vst [vmem:[%s9882_s5 + $0x350] sm:$0xff] %v918_v42  ;;  %921 = vst [vmem:[%s9882_s5 + $0x358] sm:$0xff] %v920_v43  ;;  %v922_v44 = vld [vmem:[%s9877_s4 + $0x6c0] sm:$0xff]  ;;  %v924_v45 = vld [vmem:[%s9877_s4 + $0x6d0] sm:$0xff] }
  0x4f   : > { %v926_v46 = vld [vmem:[%s9877_s4 + $0x6e0] sm:$0xff]  ;;  %923 = vst [vmem:[%s9882_s5 + $0x360] sm:$0xff] %v922_v44  ;;  %925 = vst [vmem:[%s9882_s5 + $0x368] sm:$0xff] %v924_v45  ;;  %v928_v47 = vld [vmem:[%s9877_s4 + $0x6f0] sm:$0xff] }
  0x50   : > { %927 = vst [vmem:[%s9882_s5 + $0x370] sm:$0xff] %v926_v46  ;;  %v930_v48 = vld [vmem:[%s9877_s4 + $0x700] sm:$0xff]  ;;  %v932_v49 = vld [vmem:[%s9877_s4 + $0x710] sm:$0xff]  ;;  %929 = vst [vmem:[%s9882_s5 + $0x378] sm:$0xff] %v928_v47 }
  0x51   : > { %931 = vst [vmem:[%s9882_s5 + $0x380] sm:$0xff] %v930_v48  ;;  %933 = vst [vmem:[%s9882_s5 + $0x388] sm:$0xff] %v932_v49  ;;  %v934_v50 = vld [vmem:[%s9877_s4 + $0x720] sm:$0xff]  ;;  %v936_v51 = vld [vmem:[%s9877_s4 + $0x730] sm:$0xff] }
  0x52   : > { %v938_v52 = vld [vmem:[%s9877_s4 + $0x740] sm:$0xff]  ;;  %935 = vst [vmem:[%s9882_s5 + $0x390] sm:$0xff] %v934_v50  ;;  %937 = vst [vmem:[%s9882_s5 + $0x398] sm:$0xff] %v936_v51  ;;  %v940_v53 = vld [vmem:[%s9877_s4 + $0x750] sm:$0xff] }
  0x53   : > { %939 = vst [vmem:[%s9882_s5 + $0x3a0] sm:$0xff] %v938_v52  ;;  %v942_v54 = vld [vmem:[%s9877_s4 + $0x760] sm:$0xff]  ;;  %v944_v55 = vld [vmem:[%s9877_s4 + $0x770] sm:$0xff]  ;;  %941 = vst [vmem:[%s9882_s5 + $0x3a8] sm:$0xff] %v940_v53 }
  0x54   : > { %943 = vst [vmem:[%s9882_s5 + $0x3b0] sm:$0xff] %v942_v54  ;;  %945 = vst [vmem:[%s9882_s5 + $0x3b8] sm:$0xff] %v944_v55  ;;  %v946_v56 = vld [vmem:[%s9877_s4 + $0x780] sm:$0xff]  ;;  %v948_v57 = vld [vmem:[%s9877_s4 + $0x790] sm:$0xff] }
  0x55   : > { %v950_v58 = vld [vmem:[%s9877_s4 + $0x7a0] sm:$0xff]  ;;  %947 = vst [vmem:[%s9882_s5 + $0x3c0] sm:$0xff] %v946_v56  ;;  %949 = vst [vmem:[%s9882_s5 + $0x3c8] sm:$0xff] %v948_v57  ;;  %v952_v59 = vld [vmem:[%s9877_s4 + $0x7b0] sm:$0xff] }
  0x56   : > { %951 = vst [vmem:[%s9882_s5 + $0x3d0] sm:$0xff] %v950_v58  ;;  %v954_v60 = vld [vmem:[%s9877_s4 + $0x7c0] sm:$0xff]  ;;  %v956_v61 = vld [vmem:[%s9877_s4 + $0x7d0] sm:$0xff]  ;;  %953 = vst [vmem:[%s9882_s5 + $0x3d8] sm:$0xff] %v952_v59 }
  0x57   : > { %955 = vst [vmem:[%s9882_s5 + $0x3e0] sm:$0xff] %v954_v60  ;;  %957 = vst [vmem:[%s9882_s5 + $0x3e8] sm:$0xff] %v956_v61  ;;  %v958_v62 = vld [vmem:[%s9877_s4 + $0x7e0] sm:$0xff]  ;;  %v960_v63 = vld [vmem:[%s9877_s4 + $0x7f0] sm:$0xff] }
  0x58   : > { %v962_v0 = vld [vmem:[%s9877_s4 + $0x800] sm:$0xff]  ;;  %959 = vst [vmem:[%s9882_s5 + $0x3f0] sm:$0xff] %v958_v62  ;;  %961 = vst [vmem:[%s9882_s5 + $0x3f8] sm:$0xff] %v960_v63  ;;  %v964_v1 = vld [vmem:[%s9877_s4 + $0x810] sm:$0xff] }
  0x59   : > { %963 = vst [vmem:[%s9882_s5 + $0x400] sm:$0xff] %v962_v0  ;;  %v966_v2 = vld [vmem:[%s9877_s4 + $0x820] sm:$0xff]  ;;  %v968_v3 = vld [vmem:[%s9877_s4 + $0x830] sm:$0xff]  ;;  %965 = vst [vmem:[%s9882_s5 + $0x408] sm:$0xff] %v964_v1 }
  0x5a   : > { %967 = vst [vmem:[%s9882_s5 + $0x410] sm:$0xff] %v966_v2  ;;  %969 = vst [vmem:[%s9882_s5 + $0x418] sm:$0xff] %v968_v3  ;;  %v970_v4 = vld [vmem:[%s9877_s4 + $0x840] sm:$0xff]  ;;  %v972_v5 = vld [vmem:[%s9877_s4 + $0x850] sm:$0xff] }
  0x5b   : > { %v974_v6 = vld [vmem:[%s9877_s4 + $0x860] sm:$0xff]  ;;  %971 = vst [vmem:[%s9882_s5 + $0x420] sm:$0xff] %v970_v4  ;;  %973 = vst [vmem:[%s9882_s5 + $0x428] sm:$0xff] %v972_v5  ;;  %v976_v7 = vld [vmem:[%s9877_s4 + $0x870] sm:$0xff] }
  0x5c   : > { %975 = vst [vmem:[%s9882_s5 + $0x430] sm:$0xff] %v974_v6  ;;  %v978_v8 = vld [vmem:[%s9877_s4 + $0x880] sm:$0xff]  ;;  %v980_v9 = vld [vmem:[%s9877_s4 + $0x890] sm:$0xff]  ;;  %977 = vst [vmem:[%s9882_s5 + $0x438] sm:$0xff] %v976_v7 }
  0x5d   : > { %979 = vst [vmem:[%s9882_s5 + $0x440] sm:$0xff] %v978_v8  ;;  %981 = vst [vmem:[%s9882_s5 + $0x448] sm:$0xff] %v980_v9  ;;  %v982_v10 = vld [vmem:[%s9877_s4 + $0x8a0] sm:$0xff]  ;;  %v984_v11 = vld [vmem:[%s9877_s4 + $0x8b0] sm:$0xff] }
  0x5e   : > { %v986_v12 = vld [vmem:[%s9877_s4 + $0x8c0] sm:$0xff]  ;;  %983 = vst [vmem:[%s9882_s5 + $0x450] sm:$0xff] %v982_v10  ;;  %985 = vst [vmem:[%s9882_s5 + $0x458] sm:$0xff] %v984_v11  ;;  %v988_v13 = vld [vmem:[%s9877_s4 + $0x8d0] sm:$0xff] }
  0x5f   : > { %987 = vst [vmem:[%s9882_s5 + $0x460] sm:$0xff] %v986_v12  ;;  %v990_v14 = vld [vmem:[%s9877_s4 + $0x8e0] sm:$0xff]  ;;  %v992_v15 = vld [vmem:[%s9877_s4 + $0x8f0] sm:$0xff]  ;;  %989 = vst [vmem:[%s9882_s5 + $0x468] sm:$0xff] %v988_v13 }
  0x60   : > { %991 = vst [vmem:[%s9882_s5 + $0x470] sm:$0xff] %v990_v14  ;;  %993 = vst [vmem:[%s9882_s5 + $0x478] sm:$0xff] %v992_v15  ;;  %v994_v16 = vld [vmem:[%s9877_s4 + $0x900] sm:$0xff]  ;;  %v996_v17 = vld [vmem:[%s9877_s4 + $0x910] sm:$0xff] }
  0x61   : > { %v998_v18 = vld [vmem:[%s9877_s4 + $0x920] sm:$0xff]  ;;  %995 = vst [vmem:[%s9882_s5 + $0x480] sm:$0xff] %v994_v16  ;;  %997 = vst [vmem:[%s9882_s5 + $0x488] sm:$0xff] %v996_v17  ;;  %v1000_v19 = vld [vmem:[%s9877_s4 + $0x930] sm:$0xff] }
  0x62   : > { %999 = vst [vmem:[%s9882_s5 + $0x490] sm:$0xff] %v998_v18  ;;  %v1002_v20 = vld [vmem:[%s9877_s4 + $0x940] sm:$0xff]  ;;  %v1004_v21 = vld [vmem:[%s9877_s4 + $0x950] sm:$0xff]  ;;  %1001 = vst [vmem:[%s9882_s5 + $0x498] sm:$0xff] %v1000_v19 }
  0x63   : > { %1003 = vst [vmem:[%s9882_s5 + $0x4a0] sm:$0xff] %v1002_v20  ;;  %1005 = vst [vmem:[%s9882_s5 + $0x4a8] sm:$0xff] %v1004_v21  ;;  %v1006_v22 = vld [vmem:[%s9877_s4 + $0x960] sm:$0xff]  ;;  %v1008_v23 = vld [vmem:[%s9877_s4 + $0x970] sm:$0xff] }
  0x64   : > { %v1010_v24 = vld [vmem:[%s9877_s4 + $0x980] sm:$0xff]  ;;  %1007 = vst [vmem:[%s9882_s5 + $0x4b0] sm:$0xff] %v1006_v22  ;;  %1009 = vst [vmem:[%s9882_s5 + $0x4b8] sm:$0xff] %v1008_v23  ;;  %v1012_v25 = vld [vmem:[%s9877_s4 + $0x990] sm:$0xff] }
  0x65   : > { %1011 = vst [vmem:[%s9882_s5 + $0x4c0] sm:$0xff] %v1010_v24  ;;  %v1014_v26 = vld [vmem:[%s9877_s4 + $0x9a0] sm:$0xff]  ;;  %v1016_v27 = vld [vmem:[%s9877_s4 + $0x9b0] sm:$0xff]  ;;  %1013 = vst [vmem:[%s9882_s5 + $0x4c8] sm:$0xff] %v1012_v25 }
  0x66   : > { %1015 = vst [vmem:[%s9882_s5 + $0x4d0] sm:$0xff] %v1014_v26  ;;  %1017 = vst [vmem:[%s9882_s5 + $0x4d8] sm:$0xff] %v1016_v27  ;;  %v1018_v28 = vld [vmem:[%s9877_s4 + $0x9c0] sm:$0xff]  ;;  %v1020_v29 = vld [vmem:[%s9877_s4 + $0x9d0] sm:$0xff] }
  0x67   : > { %v1022_v30 = vld [vmem:[%s9877_s4 + $0x9e0] sm:$0xff]  ;;  %1019 = vst [vmem:[%s9882_s5 + $0x4e0] sm:$0xff] %v1018_v28  ;;  %1021 = vst [vmem:[%s9882_s5 + $0x4e8] sm:$0xff] %v1020_v29  ;;  %v1024_v31 = vld [vmem:[%s9877_s4 + $0x9f0] sm:$0xff] }
  0x68   : > { %1023 = vst [vmem:[%s9882_s5 + $0x4f0] sm:$0xff] %v1022_v30  ;;  %v1026_v32 = vld [vmem:[%s9877_s4 + $0xa00] sm:$0xff]  ;;  %v1028_v33 = vld [vmem:[%s9877_s4 + $0xa10] sm:$0xff]  ;;  %1025 = vst [vmem:[%s9882_s5 + $0x4f8] sm:$0xff] %v1024_v31 }
  0x69   : > { %1027 = vst [vmem:[%s9882_s5 + $0x500] sm:$0xff] %v1026_v32  ;;  %1029 = vst [vmem:[%s9882_s5 + $0x508] sm:$0xff] %v1028_v33  ;;  %v1030_v34 = vld [vmem:[%s9877_s4 + $0xa20] sm:$0xff]  ;;  %v1032_v35 = vld [vmem:[%s9877_s4 + $0xa30] sm:$0xff] }
  0x6a   : > { %v1034_v36 = vld [vmem:[%s9877_s4 + $0xa40] sm:$0xff]  ;;  %1031 = vst [vmem:[%s9882_s5 + $0x510] sm:$0xff] %v1030_v34  ;;  %1033 = vst [vmem:[%s9882_s5 + $0x518] sm:$0xff] %v1032_v35  ;;  %v1036_v37 = vld [vmem:[%s9877_s4 + $0xa50] sm:$0xff] }
  0x6b   : > { %1035 = vst [vmem:[%s9882_s5 + $0x520] sm:$0xff] %v1034_v36  ;;  %v1038_v38 = vld [vmem:[%s9877_s4 + $0xa60] sm:$0xff]  ;;  %v1040_v39 = vld [vmem:[%s9877_s4 + $0xa70] sm:$0xff]  ;;  %1037 = vst [vmem:[%s9882_s5 + $0x528] sm:$0xff] %v1036_v37 }
  0x6c   : > { %1039 = vst [vmem:[%s9882_s5 + $0x530] sm:$0xff] %v1038_v38  ;;  %1041 = vst [vmem:[%s9882_s5 + $0x538] sm:$0xff] %v1040_v39  ;;  %v1042_v40 = vld [vmem:[%s9877_s4 + $0xa80] sm:$0xff]  ;;  %v1044_v41 = vld [vmem:[%s9877_s4 + $0xa90] sm:$0xff] }
  0x6d   : > { %v1046_v42 = vld [vmem:[%s9877_s4 + $0xaa0] sm:$0xff]  ;;  %1043 = vst [vmem:[%s9882_s5 + $0x540] sm:$0xff] %v1042_v40  ;;  %1045 = vst [vmem:[%s9882_s5 + $0x548] sm:$0xff] %v1044_v41  ;;  %v1048_v43 = vld [vmem:[%s9877_s4 + $0xab0] sm:$0xff] }
  0x6e   : > { %1047 = vst [vmem:[%s9882_s5 + $0x550] sm:$0xff] %v1046_v42  ;;  %v1050_v44 = vld [vmem:[%s9877_s4 + $0xac0] sm:$0xff]  ;;  %v1052_v45 = vld [vmem:[%s9877_s4 + $0xad0] sm:$0xff]  ;;  %1049 = vst [vmem:[%s9882_s5 + $0x558] sm:$0xff] %v1048_v43 }
  0x6f   : > { %1051 = vst [vmem:[%s9882_s5 + $0x560] sm:$0xff] %v1050_v44  ;;  %1053 = vst [vmem:[%s9882_s5 + $0x568] sm:$0xff] %v1052_v45  ;;  %v1054_v46 = vld [vmem:[%s9877_s4 + $0xae0] sm:$0xff]  ;;  %v1056_v47 = vld [vmem:[%s9877_s4 + $0xaf0] sm:$0xff] }
  0x70   : > { %v1058_v48 = vld [vmem:[%s9877_s4 + $0xb00] sm:$0xff]  ;;  %1055 = vst [vmem:[%s9882_s5 + $0x570] sm:$0xff] %v1054_v46  ;;  %1057 = vst [vmem:[%s9882_s5 + $0x578] sm:$0xff] %v1056_v47  ;;  %v1060_v49 = vld [vmem:[%s9877_s4 + $0xb10] sm:$0xff] }
  0x71   : > { %1059 = vst [vmem:[%s9882_s5 + $0x580] sm:$0xff] %v1058_v48  ;;  %v1062_v50 = vld [vmem:[%s9877_s4 + $0xb20] sm:$0xff]  ;;  %v1064_v51 = vld [vmem:[%s9877_s4 + $0xb30] sm:$0xff]  ;;  %1061 = vst [vmem:[%s9882_s5 + $0x588] sm:$0xff] %v1060_v49 }
  0x72   : > { %1063 = vst [vmem:[%s9882_s5 + $0x590] sm:$0xff] %v1062_v50  ;;  %1065 = vst [vmem:[%s9882_s5 + $0x598] sm:$0xff] %v1064_v51  ;;  %v1066_v52 = vld [vmem:[%s9877_s4 + $0xb40] sm:$0xff]  ;;  %v1068_v53 = vld [vmem:[%s9877_s4 + $0xb50] sm:$0xff] }
  0x73   : > { %v1070_v54 = vld [vmem:[%s9877_s4 + $0xb60] sm:$0xff]  ;;  %1067 = vst [vmem:[%s9882_s5 + $0x5a0] sm:$0xff] %v1066_v52  ;;  %1069 = vst [vmem:[%s9882_s5 + $0x5a8] sm:$0xff] %v1068_v53  ;;  %v1072_v55 = vld [vmem:[%s9877_s4 + $0xb70] sm:$0xff] }
  0x74   : > { %1071 = vst [vmem:[%s9882_s5 + $0x5b0] sm:$0xff] %v1070_v54  ;;  %v1074_v56 = vld [vmem:[%s9877_s4 + $0xb80] sm:$0xff]  ;;  %v1076_v57 = vld [vmem:[%s9877_s4 + $0xb90] sm:$0xff]  ;;  %1073 = vst [vmem:[%s9882_s5 + $0x5b8] sm:$0xff] %v1072_v55 }
  0x75   : > { %1075 = vst [vmem:[%s9882_s5 + $0x5c0] sm:$0xff] %v1074_v56  ;;  %1077 = vst [vmem:[%s9882_s5 + $0x5c8] sm:$0xff] %v1076_v57  ;;  %v1078_v58 = vld [vmem:[%s9877_s4 + $0xba0] sm:$0xff]  ;;  %v1080_v59 = vld [vmem:[%s9877_s4 + $0xbb0] sm:$0xff] }
  0x76   : > { %v1082_v60 = vld [vmem:[%s9877_s4 + $0xbc0] sm:$0xff]  ;;  %1079 = vst [vmem:[%s9882_s5 + $0x5d0] sm:$0xff] %v1078_v58  ;;  %1081 = vst [vmem:[%s9882_s5 + $0x5d8] sm:$0xff] %v1080_v59  ;;  %v1084_v61 = vld [vmem:[%s9877_s4 + $0xbd0] sm:$0xff] }
  0x77   : > { %1083 = vst [vmem:[%s9882_s5 + $0x5e0] sm:$0xff] %v1082_v60  ;;  %v1086_v62 = vld [vmem:[%s9877_s4 + $0xbe0] sm:$0xff]  ;;  %v1088_v63 = vld [vmem:[%s9877_s4 + $0xbf0] sm:$0xff]  ;;  %1085 = vst [vmem:[%s9882_s5 + $0x5e8] sm:$0xff] %v1084_v61 }
  0x78   : > { %1087 = vst [vmem:[%s9882_s5 + $0x5f0] sm:$0xff] %v1086_v62  ;;  %1089 = vst [vmem:[%s9882_s5 + $0x5f8] sm:$0xff] %v1088_v63  ;;  %v1090_v0 = vld [vmem:[%s9877_s4 + $0xc00] sm:$0xff]  ;;  %v1092_v1 = vld [vmem:[%s9877_s4 + $0xc10] sm:$0xff] }
  0x79   : > { %v1094_v2 = vld [vmem:[%s9877_s4 + $0xc20] sm:$0xff]  ;;  %1091 = vst [vmem:[%s9882_s5 + $0x600] sm:$0xff] %v1090_v0  ;;  %1093 = vst [vmem:[%s9882_s5 + $0x608] sm:$0xff] %v1092_v1  ;;  %v1096_v3 = vld [vmem:[%s9877_s4 + $0xc30] sm:$0xff] }
  0x7a   : > { %1095 = vst [vmem:[%s9882_s5 + $0x610] sm:$0xff] %v1094_v2  ;;  %v1098_v4 = vld [vmem:[%s9877_s4 + $0xc40] sm:$0xff]  ;;  %v1100_v5 = vld [vmem:[%s9877_s4 + $0xc50] sm:$0xff]  ;;  %1097 = vst [vmem:[%s9882_s5 + $0x618] sm:$0xff] %v1096_v3 }
  0x7b   : > { %1099 = vst [vmem:[%s9882_s5 + $0x620] sm:$0xff] %v1098_v4  ;;  %1101 = vst [vmem:[%s9882_s5 + $0x628] sm:$0xff] %v1100_v5  ;;  %v1102_v6 = vld [vmem:[%s9877_s4 + $0xc60] sm:$0xff]  ;;  %v1104_v7 = vld [vmem:[%s9877_s4 + $0xc70] sm:$0xff] }
  0x7c   : > { %v1106_v8 = vld [vmem:[%s9877_s4 + $0xc80] sm:$0xff]  ;;  %1103 = vst [vmem:[%s9882_s5 + $0x630] sm:$0xff] %v1102_v6  ;;  %1105 = vst [vmem:[%s9882_s5 + $0x638] sm:$0xff] %v1104_v7  ;;  %v1108_v9 = vld [vmem:[%s9877_s4 + $0xc90] sm:$0xff] }
  0x7d   : > { %1107 = vst [vmem:[%s9882_s5 + $0x640] sm:$0xff] %v1106_v8  ;;  %v1110_v10 = vld [vmem:[%s9877_s4 + $0xca0] sm:$0xff]  ;;  %v1112_v11 = vld [vmem:[%s9877_s4 + $0xcb0] sm:$0xff]  ;;  %1109 = vst [vmem:[%s9882_s5 + $0x648] sm:$0xff] %v1108_v9 }
  0x7e   : > { %1111 = vst [vmem:[%s9882_s5 + $0x650] sm:$0xff] %v1110_v10  ;;  %1113 = vst [vmem:[%s9882_s5 + $0x658] sm:$0xff] %v1112_v11  ;;  %v1114_v12 = vld [vmem:[%s9877_s4 + $0xcc0] sm:$0xff]  ;;  %v1116_v13 = vld [vmem:[%s9877_s4 + $0xcd0] sm:$0xff] }
  0x7f   : > { %v1118_v14 = vld [vmem:[%s9877_s4 + $0xce0] sm:$0xff]  ;;  %1115 = vst [vmem:[%s9882_s5 + $0x660] sm:$0xff] %v1114_v12  ;;  %1117 = vst [vmem:[%s9882_s5 + $0x668] sm:$0xff] %v1116_v13  ;;  %v1120_v15 = vld [vmem:[%s9877_s4 + $0xcf0] sm:$0xff] }
  0x80   : > { %1119 = vst [vmem:[%s9882_s5 + $0x670] sm:$0xff] %v1118_v14  ;;  %v1122_v16 = vld [vmem:[%s9877_s4 + $0xd00] sm:$0xff]  ;;  %v1124_v17 = vld [vmem:[%s9877_s4 + $0xd10] sm:$0xff]  ;;  %1121 = vst [vmem:[%s9882_s5 + $0x678] sm:$0xff] %v1120_v15 }
  0x81   : > { %1123 = vst [vmem:[%s9882_s5 + $0x680] sm:$0xff] %v1122_v16  ;;  %1125 = vst [vmem:[%s9882_s5 + $0x688] sm:$0xff] %v1124_v17  ;;  %v1126_v18 = vld [vmem:[%s9877_s4 + $0xd20] sm:$0xff]  ;;  %v1128_v19 = vld [vmem:[%s9877_s4 + $0xd30] sm:$0xff] }
  0x82   : > { %v1130_v20 = vld [vmem:[%s9877_s4 + $0xd40] sm:$0xff]  ;;  %1127 = vst [vmem:[%s9882_s5 + $0x690] sm:$0xff] %v1126_v18  ;;  %1129 = vst [vmem:[%s9882_s5 + $0x698] sm:$0xff] %v1128_v19  ;;  %v1132_v21 = vld [vmem:[%s9877_s4 + $0xd50] sm:$0xff] }
  0x83   : > { %1131 = vst [vmem:[%s9882_s5 + $0x6a0] sm:$0xff] %v1130_v20  ;;  %v1134_v22 = vld [vmem:[%s9877_s4 + $0xd60] sm:$0xff]  ;;  %v1136_v23 = vld [vmem:[%s9877_s4 + $0xd70] sm:$0xff]  ;;  %1133 = vst [vmem:[%s9882_s5 + $0x6a8] sm:$0xff] %v1132_v21 }
  0x84   : > { %1135 = vst [vmem:[%s9882_s5 + $0x6b0] sm:$0xff] %v1134_v22  ;;  %1137 = vst [vmem:[%s9882_s5 + $0x6b8] sm:$0xff] %v1136_v23  ;;  %v1138_v24 = vld [vmem:[%s9877_s4 + $0xd80] sm:$0xff]  ;;  %v1140_v25 = vld [vmem:[%s9877_s4 + $0xd90] sm:$0xff] }
  0x85   : > { %v1142_v26 = vld [vmem:[%s9877_s4 + $0xda0] sm:$0xff]  ;;  %1139 = vst [vmem:[%s9882_s5 + $0x6c0] sm:$0xff] %v1138_v24  ;;  %1141 = vst [vmem:[%s9882_s5 + $0x6c8] sm:$0xff] %v1140_v25  ;;  %v1144_v27 = vld [vmem:[%s9877_s4 + $0xdb0] sm:$0xff] }
  0x86   : > { %1143 = vst [vmem:[%s9882_s5 + $0x6d0] sm:$0xff] %v1142_v26  ;;  %v1146_v28 = vld [vmem:[%s9877_s4 + $0xdc0] sm:$0xff]  ;;  %v1148_v29 = vld [vmem:[%s9877_s4 + $0xdd0] sm:$0xff]  ;;  %1145 = vst [vmem:[%s9882_s5 + $0x6d8] sm:$0xff] %v1144_v27 }
  0x87   : > { %1147 = vst [vmem:[%s9882_s5 + $0x6e0] sm:$0xff] %v1146_v28  ;;  %1149 = vst [vmem:[%s9882_s5 + $0x6e8] sm:$0xff] %v1148_v29  ;;  %v1150_v30 = vld [vmem:[%s9877_s4 + $0xde0] sm:$0xff]  ;;  %v1152_v31 = vld [vmem:[%s9877_s4 + $0xdf0] sm:$0xff] }
  0x88   : > { %v1154_v32 = vld [vmem:[%s9877_s4 + $0xe00] sm:$0xff]  ;;  %1151 = vst [vmem:[%s9882_s5 + $0x6f0] sm:$0xff] %v1150_v30  ;;  %1153 = vst [vmem:[%s9882_s5 + $0x6f8] sm:$0xff] %v1152_v31  ;;  %v1156_v33 = vld [vmem:[%s9877_s4 + $0xe10] sm:$0xff] }
  0x89   : > { %1155 = vst [vmem:[%s9882_s5 + $0x700] sm:$0xff] %v1154_v32  ;;  %v1158_v34 = vld [vmem:[%s9877_s4 + $0xe20] sm:$0xff]  ;;  %v1160_v35 = vld [vmem:[%s9877_s4 + $0xe30] sm:$0xff]  ;;  %1157 = vst [vmem:[%s9882_s5 + $0x708] sm:$0xff] %v1156_v33 }
  0x8a   : > { %1159 = vst [vmem:[%s9882_s5 + $0x710] sm:$0xff] %v1158_v34  ;;  %1161 = vst [vmem:[%s9882_s5 + $0x718] sm:$0xff] %v1160_v35  ;;  %v1162_v36 = vld [vmem:[%s9877_s4 + $0xe40] sm:$0xff]  ;;  %v1164_v37 = vld [vmem:[%s9877_s4 + $0xe50] sm:$0xff] }
  0x8b   : > { %v1166_v38 = vld [vmem:[%s9877_s4 + $0xe60] sm:$0xff]  ;;  %1163 = vst [vmem:[%s9882_s5 + $0x720] sm:$0xff] %v1162_v36  ;;  %1165 = vst [vmem:[%s9882_s5 + $0x728] sm:$0xff] %v1164_v37  ;;  %v1168_v39 = vld [vmem:[%s9877_s4 + $0xe70] sm:$0xff] }
  0x8c   : > { %1167 = vst [vmem:[%s9882_s5 + $0x730] sm:$0xff] %v1166_v38  ;;  %v1170_v40 = vld [vmem:[%s9877_s4 + $0xe80] sm:$0xff]  ;;  %v1172_v41 = vld [vmem:[%s9877_s4 + $0xe90] sm:$0xff]  ;;  %1169 = vst [vmem:[%s9882_s5 + $0x738] sm:$0xff] %v1168_v39 }
  0x8d   : > { %1171 = vst [vmem:[%s9882_s5 + $0x740] sm:$0xff] %v1170_v40  ;;  %1173 = vst [vmem:[%s9882_s5 + $0x748] sm:$0xff] %v1172_v41  ;;  %v1174_v42 = vld [vmem:[%s9877_s4 + $0xea0] sm:$0xff]  ;;  %v1176_v43 = vld [vmem:[%s9877_s4 + $0xeb0] sm:$0xff] }
  0x8e   : > { %v1178_v44 = vld [vmem:[%s9877_s4 + $0xec0] sm:$0xff]  ;;  %1175 = vst [vmem:[%s9882_s5 + $0x750] sm:$0xff] %v1174_v42  ;;  %1177 = vst [vmem:[%s9882_s5 + $0x758] sm:$0xff] %v1176_v43  ;;  %v1180_v45 = vld [vmem:[%s9877_s4 + $0xed0] sm:$0xff] }
  0x8f   : > { %1179 = vst [vmem:[%s9882_s5 + $0x760] sm:$0xff] %v1178_v44  ;;  %v1182_v46 = vld [vmem:[%s9877_s4 + $0xee0] sm:$0xff]  ;;  %v1184_v47 = vld [vmem:[%s9877_s4 + $0xef0] sm:$0xff]  ;;  %1181 = vst [vmem:[%s9882_s5 + $0x768] sm:$0xff] %v1180_v45 }
  0x90   : > { %1183 = vst [vmem:[%s9882_s5 + $0x770] sm:$0xff] %v1182_v46  ;;  %1185 = vst [vmem:[%s9882_s5 + $0x778] sm:$0xff] %v1184_v47  ;;  %v1186_v48 = vld [vmem:[%s9877_s4 + $0xf00] sm:$0xff]  ;;  %v1188_v49 = vld [vmem:[%s9877_s4 + $0xf10] sm:$0xff] }
  0x91   : > { %v1190_v50 = vld [vmem:[%s9877_s4 + $0xf20] sm:$0xff]  ;;  %1187 = vst [vmem:[%s9882_s5 + $0x780] sm:$0xff] %v1186_v48  ;;  %1189 = vst [vmem:[%s9882_s5 + $0x788] sm:$0xff] %v1188_v49  ;;  %v1192_v51 = vld [vmem:[%s9877_s4 + $0xf30] sm:$0xff] }
  0x92   : > { %1191 = vst [vmem:[%s9882_s5 + $0x790] sm:$0xff] %v1190_v50  ;;  %v1194_v52 = vld [vmem:[%s9877_s4 + $0xf40] sm:$0xff]  ;;  %v1196_v53 = vld [vmem:[%s9877_s4 + $0xf50] sm:$0xff]  ;;  %1193 = vst [vmem:[%s9882_s5 + $0x798] sm:$0xff] %v1192_v51 }
  0x93   : > { %1195 = vst [vmem:[%s9882_s5 + $0x7a0] sm:$0xff] %v1194_v52  ;;  %1197 = vst [vmem:[%s9882_s5 + $0x7a8] sm:$0xff] %v1196_v53  ;;  %v1198_v54 = vld [vmem:[%s9877_s4 + $0xf60] sm:$0xff]  ;;  %v1200_v55 = vld [vmem:[%s9877_s4 + $0xf70] sm:$0xff] }
  0x94   : > { %v1202_v56 = vld [vmem:[%s9877_s4 + $0xf80] sm:$0xff]  ;;  %1199 = vst [vmem:[%s9882_s5 + $0x7b0] sm:$0xff] %v1198_v54  ;;  %1201 = vst [vmem:[%s9882_s5 + $0x7b8] sm:$0xff] %v1200_v55  ;;  %v1204_v57 = vld [vmem:[%s9877_s4 + $0xf90] sm:$0xff] }
  0x95   : > { %1203 = vst [vmem:[%s9882_s5 + $0x7c0] sm:$0xff] %v1202_v56  ;;  %v1206_v58 = vld [vmem:[%s9877_s4 + $0xfa0] sm:$0xff]  ;;  %v1208_v59 = vld [vmem:[%s9877_s4 + $0xfb0] sm:$0xff]  ;;  %1205 = vst [vmem:[%s9882_s5 + $0x7c8] sm:$0xff] %v1204_v57 }
  0x96   : > { %1207 = vst [vmem:[%s9882_s5 + $0x7d0] sm:$0xff] %v1206_v58  ;;  %1209 = vst [vmem:[%s9882_s5 + $0x7d8] sm:$0xff] %v1208_v59  ;;  %v1210_v60 = vld [vmem:[%s9877_s4 + $0xfc0] sm:$0xff]  ;;  %v1212_v61 = vld [vmem:[%s9877_s4 + $0xfd0] sm:$0xff] }
  0x97   : > { %v1214_v62 = vld [vmem:[%s9877_s4 + $0xfe0] sm:$0xff]  ;;  %1211 = vst [vmem:[%s9882_s5 + $0x7e0] sm:$0xff] %v1210_v60  ;;  %1213 = vst [vmem:[%s9882_s5 + $0x7e8] sm:$0xff] %v1212_v61  ;;  %v1216_v63 = vld [vmem:[%s9877_s4 + $0xff0] sm:$0xff] }
  0x98   : > { %1215 = vst [vmem:[%s9882_s5 + $0x7f0] sm:$0xff] %v1214_v62  ;;  %1217 = vst [vmem:[%s9882_s5 + $0x7f8] sm:$0xff] %v1216_v63 }
  0x99 PF: > { %p8979_p11 = scmp.ge.s32.totalorder %s9792_s17, 1  ;;  %p1230_p12 = scmp.lt.s32.totalorder %s9792_s17, 3 }
  0x9b   : > { %p1231_p13 = pnand %p8979_p11, %p1230_p12 }
  0x9d   : > { %1234 = sbr.rel (%p1231_p13) target bundleno = 1570 (0x622), region = 66 }
  0xa4   : > { %v1286_v0 = vld [vmem:[%s14278_s0 + $0x10] sm:$0xff]  ;;  %vm1796_vm0 = vcmask 400384   ;;  %v1284_v1 = vld [vmem:[%s14278_s0] sm:$0xff]  ;;  %v1287_v2 = vld [vmem:[%s14278_s0 + $0x18] sm:$0xff]  ;;  %vm4636_vm1 = vcmask 130112   ;;  %vm4643_vm2 = vcmask 195712  }
  0xa5   : > { %v1803_v3 = vsel %vm1796_vm0, %v1286_v0, 0.0  ;;  %v1797_v4 = vsel %vm1796_vm0, %v1284_v1, 0.0  ;;  %v1285_v5 = vld [vmem:[%s14278_s0 + $0x8] sm:$0xff]  ;;  %v1806_v6 = vsel %vm1796_vm0, %v1287_v2, 0.0  ;;  %v1288_v9 = vld [vmem:[%s14278_s0 + $0x20] sm:$0xff]  ;;  %v1291_v12 = vld [vmem:[%s14278_s0 + $0x38] sm:$0xff] }
  0xa6   : > { %1804 = vadd.xlane.f32.xlu1 %v1803_v3  ;;  %1798 = vadd.xlane.f32.xlu0 %v1797_v4  ;;  %v1800_v7 = vsel %vm1796_vm0, %v1285_v5, 0.0  ;;  %v1289_v8 = vld [vmem:[%s14278_s0 + $0x28] sm:$0xff]  ;;  %v1809_v11 = vsel %vm1796_vm0, %v1288_v9, 0.0  ;;  %v1290_v13 = vld [vmem:[%s14278_s0 + $0x30] sm:$0xff]  ;;  %v1818_v14 = vsel %vm1796_vm0, %v1291_v12, 0.0  ;;  %v1292_v17 = vld [vmem:[%s14278_s0 + $0x40] sm:$0xff] }
  0xa7   : > { %v1812_v10 = vsel %vm1796_vm0, %v1289_v8, 0.0  ;;  %v1815_v15 = vsel %vm1796_vm0, %v1290_v13, 0.0  ;;  %v1293_v16 = vld [vmem:[%s14278_s0 + $0x48] sm:$0xff]  ;;  %v1821_v19 = vsel %vm1796_vm0, %v1292_v17, 0.0  ;;  %v1295_v20 = vld [vmem:[%s14278_s0 + $0x58] sm:$0xff]  ;;  %v1294_v21 = vld [vmem:[%s14278_s0 + $0x50] sm:$0xff] }
  0xa8   : > { %v1824_v18 = vsel %vm1796_vm0, %v1293_v16, 0.0  ;;  %v1830_v22 = vsel %vm1796_vm0, %v1295_v20, 0.0  ;;  %v1827_v23 = vsel %vm1796_vm0, %v1294_v21, 0.0  ;;  %v1297_v24 = vld [vmem:[%s14278_s0 + $0x68] sm:$0xff]  ;;  %v1296_v25 = vld [vmem:[%s14278_s0 + $0x60] sm:$0xff]  ;;  %v1299_v28 = vld [vmem:[%s14278_s0 + $0x78] sm:$0xff] }
  0xa9   : > { %v1836_v26 = vsel %vm1796_vm0, %v1297_v24, 0.0  ;;  %v1833_v27 = vsel %vm1796_vm0, %v1296_v25, 0.0  ;;  %v1298_v29 = vld [vmem:[%s14278_s0 + $0x70] sm:$0xff]  ;;  %v1842_v30 = vsel %vm1796_vm0, %v1299_v28, 0.0  ;;  %v1301_v32 = vld [vmem:[%s14278_s0 + $0x88] sm:$0xff]  ;;  %v1300_v33 = vld [vmem:[%s14278_s0 + $0x80] sm:$0xff] }
  0xaa   : > { %1807 = vadd.xlane.f32.xlu1 %v1806_v6  ;;  %1801 = vadd.xlane.f32.xlu0 %v1800_v7  ;;  %v1839_v31 = vsel %vm1796_vm0, %v1298_v29, 0.0  ;;  %v1848_v34 = vsel %vm1796_vm0, %v1301_v32, 0.0  ;;  %v1845_v35 = vsel %vm1796_vm0, %v1300_v33, 0.0  ;;  %v1303_v36 = vld [vmem:[%s14278_s0 + $0x98] sm:$0xff]  ;;  %v1302_v37 = vld [vmem:[%s14278_s0 + $0x90] sm:$0xff]  ;;  %v1305_v40 = vld [vmem:[%s14278_s0 + $0xa8] sm:$0xff] }
  0xab   : > { %v1854_v38 = vsel %vm1796_vm0, %v1303_v36, 0.0  ;;  %v1851_v39 = vsel %vm1796_vm0, %v1302_v37, 0.0  ;;  %v1304_v41 = vld [vmem:[%s14278_s0 + $0xa0] sm:$0xff]  ;;  %v1860_v42 = vsel %vm1796_vm0, %v1305_v40, 0.0  ;;  %v1307_v44 = vld [vmem:[%s14278_s0 + $0xb8] sm:$0xff]  ;;  %v1306_v45 = vld [vmem:[%s14278_s0 + $0xb0] sm:$0xff] }
  0xac   : > { %v1857_v43 = vsel %vm1796_vm0, %v1304_v41, 0.0  ;;  %v1866_v46 = vsel %vm1796_vm0, %v1307_v44, 0.0  ;;  %v1863_v47 = vsel %vm1796_vm0, %v1306_v45, 0.0  ;;  %v1309_v48 = vld [vmem:[%s14278_s0 + $0xc8] sm:$0xff]  ;;  %v1308_v49 = vld [vmem:[%s14278_s0 + $0xc0] sm:$0xff]  ;;  %v1311_v52 = vld [vmem:[%s14278_s0 + $0xd8] sm:$0xff] }
  0xad   : > { %v1872_v50 = vsel %vm1796_vm0, %v1309_v48, 0.0  ;;  %v1869_v51 = vsel %vm1796_vm0, %v1308_v49, 0.0  ;;  %v1310_v53 = vld [vmem:[%s14278_s0 + $0xd0] sm:$0xff]  ;;  %v1878_v54 = vsel %vm1796_vm0, %v1311_v52, 0.0  ;;  %v1313_v56 = vld [vmem:[%s14278_s0 + $0xe8] sm:$0xff]  ;;  %v1312_v57 = vld [vmem:[%s14278_s0 + $0xe0] sm:$0xff] }
  0xae   : > { %1813 = vadd.xlane.f32.xlu1 %v1812_v10  ;;  %1810 = vadd.xlane.f32.xlu0 %v1809_v11  ;;  %v1875_v55 = vsel %vm1796_vm0, %v1310_v53, 0.0  ;;  %v1884_v58 = vsel %vm1796_vm0, %v1313_v56, 0.0  ;;  %v1881_v59 = vsel %vm1796_vm0, %v1312_v57, 0.0  ;;  %v1315_v60 = vld [vmem:[%s14278_s0 + $0xf8] sm:$0xff]  ;;  %v1314_v61 = vld [vmem:[%s14278_s0 + $0xf0] sm:$0xff]  ;;  %v1317_v0 = vld [vmem:[%s14278_s0 + $0x108] sm:$0xff] }
  0xaf   : > { %v1890_v62 = vsel %vm1796_vm0, %v1315_v60, 0.0  ;;  %v1887_v63 = vsel %vm1796_vm0, %v1314_v61, 0.0  ;;  %v1316_v1 = vld [vmem:[%s14278_s0 + $0x100] sm:$0xff]  ;;  %v1896_v2 = vsel %vm1796_vm0, %v1317_v0, 0.0  ;;  %v1319_v4 = vld [vmem:[%s14278_s0 + $0x118] sm:$0xff]  ;;  %v1318_v5 = vld [vmem:[%s14278_s0 + $0x110] sm:$0xff] }
  0xb0   : > { %v1893_v3 = vsel %vm1796_vm0, %v1316_v1, 0.0  ;;  %v1902_v6 = vsel %vm1796_vm0, %v1319_v4, 0.0  ;;  %v1899_v7 = vsel %vm1796_vm0, %v1318_v5, 0.0  ;;  %v1321_v8 = vld [vmem:[%s14278_s0 + $0x128] sm:$0xff]  ;;  %v1320_v9 = vld [vmem:[%s14278_s0 + $0x120] sm:$0xff]  ;;  %v1323_v12 = vld [vmem:[%s14278_s0 + $0x138] sm:$0xff] }
  0xb1   : > { %v1908_v10 = vsel %vm1796_vm0, %v1321_v8, 0.0  ;;  %v1905_v11 = vsel %vm1796_vm0, %v1320_v9, 0.0  ;;  %v1322_v13 = vld [vmem:[%s14278_s0 + $0x130] sm:$0xff]  ;;  %v1325_v16 = vld [vmem:[%s14278_s0 + $0x148] sm:$0xff]  ;;  %v1324_v17 = vld [vmem:[%s14278_s0 + $0x140] sm:$0xff]  ;;  %vm4650_vm3 = vcmask 261312  }
  0xb2   : > { %1819 = vadd.xlane.f32.xlu1 %v1818_v14  ;;  %1816 = vadd.xlane.f32.xlu0 %v1815_v15  ;;  %v1914_v14 = vsel %vm1796_vm0, %v1323_v12, 0.0  ;;  %v1911_v15 = vsel %vm1796_vm0, %v1322_v13, 0.0  ;;  %v1327_v20 = vld [vmem:[%s14278_s0 + $0x158] sm:$0xff]  ;;  %v1326_v21 = vld [vmem:[%s14278_s0 + $0x150] sm:$0xff]  ;;  %v1329_v24 = vld [vmem:[%s14278_s0 + $0x168] sm:$0xff]  ;;  %vm4657_vm4 = vcmask 326912  }
  0xb3   : > { %v1328_v25 = vld [vmem:[%s14278_s0 + $0x160] sm:$0xff]  ;;  %v1331_v28 = vld [vmem:[%s14278_s0 + $0x178] sm:$0xff]  ;;  %v1330_v29 = vld [vmem:[%s14278_s0 + $0x170] sm:$0xff]  ;;  %vm14290_vm5 = vcmask 392512   ;;  %vm4671_vm6 = vcmask 458112   ;;  %vm4678_vm7 = vcmask 523712  }
  0xb4   : > { %v1333_v32 = vld [vmem:[%s14278_s0 + $0x188] sm:$0xff]  ;;  %v1332_v33 = vld [vmem:[%s14278_s0 + $0x180] sm:$0xff]  ;;  %v1335_v36 = vld [vmem:[%s14278_s0 + $0x198] sm:$0xff]  ;;  %vm4685_vm8 = vcmask 589312   ;;  %vm4692_vm9 = vcmask 654912   ;;  %vm4699_vm10 = vcmask 720512  }
  0xb5   : > { %v1334_v37 = vld [vmem:[%s14278_s0 + $0x190] sm:$0xff]  ;;  %v1337_v40 = vld [vmem:[%s14278_s0 + $0x1a8] sm:$0xff]  ;;  %v1336_v41 = vld [vmem:[%s14278_s0 + $0x1a0] sm:$0xff]  ;;  %vm4706_vm11 = vcmask 786112   ;;  %vm4713_vm12 = vcmask 851712   ;;  %vm4720_vm13 = vcmask 917312  }
  0xb6   : > { %1825 = vadd.xlane.f32.xlu1 %v1824_v18  ;;  %1822 = vadd.xlane.f32.xlu0 %v1821_v19  ;;  %v1920_v18 = vsel %vm1796_vm0, %v1325_v16, 0.0  ;;  %v1917_v19 = vsel %vm1796_vm0, %v1324_v17, 0.0  ;;  %v1339_v44 = vld [vmem:[%s14278_s0 + $0x1b8] sm:$0xff]  ;;  %v1338_v45 = vld [vmem:[%s14278_s0 + $0x1b0] sm:$0xff]  ;;  %v1341_v48 = vld [vmem:[%s14278_s0 + $0x1c8] sm:$0xff]  ;;  %vm4727_vm14 = vcmask 982912  }
  0xb7   : > { %v1340_v49 = vld [vmem:[%s14278_s0 + $0x1c0] sm:$0xff]  ;;  %v1343_v52 = vld [vmem:[%s14278_s0 + $0x1d8] sm:$0xff]  ;;  %v1342_v53 = vld [vmem:[%s14278_s0 + $0x1d0] sm:$0xff]  ;;  %vm4734_vm15 = vcmask 1048512   ;;  %s12088_s26 = sand.u32 1, %s9776_s13   ;;  %s9246_s6 = sshll.u32 %s9784_s15, 6 }
  0xb8   : > { %v1345_v56 = vld [vmem:[%s14278_s0 + $0x1e8] sm:$0xff]  ;;  %v1344_v57 = vld [vmem:[%s14278_s0 + $0x1e0] sm:$0xff]  ;;  %v1347_v60 = vld [vmem:[%s14278_s0 + $0x1f8] sm:$0xff]  ;;  %s8980_s4 = sshll.u32 %s12088_s26, 11  ;;  %s8981_s5 = sshll.u32 %s12088_s26, 2 }
  0xb9   : > { %v1346_v61 = vld [vmem:[%s14278_s0 + $0x1f0] sm:$0xff]  ;;  %v1349_v0 = vld [vmem:[%s14278_s0 + $0x208] sm:$0xff]  ;;  %v1348_v1 = vld [vmem:[%s14278_s0 + $0x200] sm:$0xff]  ;;  %s12106_s9 = scalar_lea.vmem [#allocation2], %s8980_s4  ;;  %s1269_s7 = scalar_lea.vmem [#allocation3], %s8981_s5 }
  0xba   : > { %1831 = vadd.xlane.f32.xlu1 %v1830_v22  ;;  %1828 = vadd.xlane.f32.xlu0 %v1827_v23  ;;  %v1926_v22 = vsel %vm1796_vm0, %v1327_v20, 0.0  ;;  %v1923_v23 = vsel %vm1796_vm0, %v1326_v21, 0.0  ;;  %v1351_v4 = vld [vmem:[%s14278_s0 + $0x218] sm:$0xff]  ;;  %v1350_v5 = vld [vmem:[%s14278_s0 + $0x210] sm:$0xff]  ;;  %v1353_v8 = vld [vmem:[%s14278_s0 + $0x228] sm:$0xff]  ;;  %s8871_s8 = sshll.u32 %s1269_s7, 4  ;;  %s14229_s18 = scalar_lea.hbm %s14281_s3, %s9246_s6  ;;  %s14231_s8 = int_to_ptr.vmem [resolvable:$true] %s8871_s8 }
  0xbb   : > { %v1352_v9 = vld [vmem:[%s14278_s0 + $0x220] sm:$0xff]  ;;  %v1355_v12 = vld [vmem:[%s14278_s0 + $0x238] sm:$0xff]  ;;  %v1354_v13 = vld [vmem:[%s14278_s0 + $0x230] sm:$0xff]  ;;  %s8855_s19 = scalar_lea.sflag [#allocation4], %s12088_s26  ;;  %s9714_s21 = scalar_lea.vmem %s14231_s8, 64 }
  0xbc   : > { %v2007_v16 = vsel %vm1796_vm0, %v1354_v13, 0.0  ;;  %v1357_v17 = vld [vmem:[%s14278_s0 + $0x248] sm:$0xff]  ;;  %p9715_p1 = scmp.ne.s32.totalorder %s14231_s8, %s9714_s21 }
  0xbe   : > { %1837 = vadd.xlane.f32.xlu1 %v1836_v26  ;;  %1834 = vadd.xlane.f32.xlu0 %v1833_v27  ;;  %v1932_v26 = vsel %vm1796_vm0, %v1329_v24, 0.0  ;;  %v1929_v27 = vsel %vm1796_vm0, %v1328_v25, 0.0  ;;  %v1359_v25 = vld [vmem:[%s14278_s0 + $0x258] sm:$0xff]  ;;  %p9716_p2 = pnand %p9715_p1, %p9854_p5 }
  0xc0   : > { %p9717_p3 = pneg %p9716_p2 }
  0xc2   : > { %1843 = vadd.xlane.f32.xlu1 %v1842_v30  ;;  %1840 = vadd.xlane.f32.xlu0 %v1839_v31  ;;  %v1938_v30 = vsel %vm1796_vm0, %v1331_v28, 0.0  ;;  %v1935_v31 = vsel %vm1796_vm0, %v1330_v29, 0.0  ;;  %v1358_v28 = vld [vmem:[%s14278_s0 + $0x250] sm:$0xff] }
  0xc6   : > { %1849 = vadd.xlane.f32.xlu1 %v1848_v34  ;;  %1846 = vadd.xlane.f32.xlu0 %v1845_v35  ;;  %v1944_v34 = vsel %vm1796_vm0, %v1333_v32, 0.0  ;;  %v1941_v35 = vsel %vm1796_vm0, %v1332_v33, 0.0 }
  0xca   : > { %1855 = vadd.xlane.f32.xlu1 %v1854_v38  ;;  %1852 = vadd.xlane.f32.xlu0 %v1851_v39  ;;  %v1950_v38 = vsel %vm1796_vm0, %v1335_v36, 0.0  ;;  %v1947_v39 = vsel %vm1796_vm0, %v1334_v37, 0.0 }
  0xce   : > { %1861 = vadd.xlane.f32.xlu1 %v1860_v42  ;;  %1858 = vadd.xlane.f32.xlu0 %v1857_v43  ;;  %v1956_v42 = vsel %vm1796_vm0, %v1337_v40, 0.0  ;;  %v1953_v43 = vsel %vm1796_vm0, %v1336_v41, 0.0  ;;  %v1361_v40 = vld [vmem:[%s14278_s0 + $0x268] sm:$0xff]  ;;  %v1360_v41 = vld [vmem:[%s14278_s0 + $0x260] sm:$0xff] }
  0xd2   : > { %1867 = vadd.xlane.f32.xlu1 %v1866_v46  ;;  %1864 = vadd.xlane.f32.xlu0 %v1863_v47  ;;  %v1962_v46 = vsel %vm1796_vm0, %v1339_v44, 0.0  ;;  %v1959_v47 = vsel %vm1796_vm0, %v1338_v45, 0.0 }
  0xd6   : > { %1873 = vadd.xlane.f32.xlu1 %v1872_v50  ;;  %1870 = vadd.xlane.f32.xlu0 %v1869_v51  ;;  %v1968_v50 = vsel %vm1796_vm0, %v1341_v48, 0.0  ;;  %v1965_v51 = vsel %vm1796_vm0, %v1340_v49, 0.0  ;;  %v1363_v48 = vld [vmem:[%s14278_s0 + $0x278] sm:$0xff]  ;;  %v1362_v49 = vld [vmem:[%s14278_s0 + $0x270] sm:$0xff] }
  0xda   : > { %1879 = vadd.xlane.f32.xlu1 %v1878_v54  ;;  %1876 = vadd.xlane.f32.xlu0 %v1875_v55  ;;  %v1974_v54 = vsel %vm1796_vm0, %v1343_v52, 0.0  ;;  %v1971_v55 = vsel %vm1796_vm0, %v1342_v53, 0.0  ;;  %v2028_v53 = vsel %vm1796_vm0, %v1361_v40, 0.0 }
  0xde   : > { %1885 = vadd.xlane.f32.xlu1 %v1884_v58  ;;  %1882 = vadd.xlane.f32.xlu0 %v1881_v59  ;;  %v1980_v58 = vsel %vm1796_vm0, %v1345_v56, 0.0  ;;  %v1977_v59 = vsel %vm1796_vm0, %v1344_v57, 0.0 }
  0xe2   : > { %1891 = vadd.xlane.f32.xlu1 %v1890_v62  ;;  %1888 = vadd.xlane.f32.xlu0 %v1887_v63  ;;  %v1986_v62 = vsel %vm1796_vm0, %v1347_v60, 0.0  ;;  %v1983_v63 = vsel %vm1796_vm0, %v1346_v61, 0.0 }
  0xe6   : > { %1897 = vadd.xlane.f32.xlu1 %v1896_v2  ;;  %1894 = vadd.xlane.f32.xlu0 %v1893_v3  ;;  %v1992_v2 = vsel %vm1796_vm0, %v1349_v0, 0.0  ;;  %v1989_v3 = vsel %vm1796_vm0, %v1348_v1, 0.0 }
  0xea   : > { %1903 = vadd.xlane.f32.xlu1 %v1902_v6  ;;  %1900 = vadd.xlane.f32.xlu0 %v1899_v7  ;;  %v1998_v6 = vsel %vm1796_vm0, %v1351_v4, 0.0  ;;  %v1995_v7 = vsel %vm1796_vm0, %v1350_v5, 0.0 }
  0xee   : > { %1909 = vadd.xlane.f32.xlu1 %v1908_v10  ;;  %1906 = vadd.xlane.f32.xlu0 %v1905_v11  ;;  %v2004_v10 = vsel %vm1796_vm0, %v1353_v8, 0.0  ;;  %v2001_v11 = vsel %vm1796_vm0, %v1352_v9, 0.0 }
  0xf2   : > { %1915 = vadd.xlane.f32.xlu1 %v1914_v14  ;;  %1912 = vadd.xlane.f32.xlu0 %v1911_v15  ;;  %v3847_v14 = vlaneseq  ;;  %v2010_v15 = vsel %vm1796_vm0, %v1355_v12, 0.0 }
  0xf4   : > { %v10693_v24 = vshrl.u32 %v3847_v14, 7 }
  0xf6   : > { %1921 = vadd.xlane.f32.xlu1 %v1920_v18  ;;  %1918 = vadd.xlane.f32.xlu0 %v1917_v19  ;;  %v1356_v18 = vld [vmem:[%s14278_s0 + $0x240] sm:$0xff]  ;;  %v10689_v19 = vand.u32 127, %v3847_v14  ;;  %14294 = vst [vmem:[#allocation6_spill] sm:$0xff] %v10693_v24 }
  0xf8   : > { %v4645_v29 = vadd.s32 4294967272, %v10689_v19  ;;  %v10707_v32 = vsub.s32 %v10689_v19, %v10693_v24  ;;  %v4687_v9 = vadd.s32 4294967224, %v10689_v19 }
  0xfa   : > { %1927 = vadd.xlane.f32.xlu1 %v1926_v22  ;;  %1924 = vadd.xlane.f32.xlu0 %v1923_v23  ;;  %v2016_v22 = vsel %vm1796_vm0, %v1357_v17, 0.0  ;;  %v2013_v23 = vsel %vm1796_vm0, %v1356_v18, 0.0 }
  0xfe   : > { %1933 = vadd.xlane.f32.xlu1 %v1932_v26  ;;  %1930 = vadd.xlane.f32.xlu0 %v1929_v27  ;;  %v4638_v26 = vadd.s32 4294967280, %v10689_v19  ;;  %v4631_v27 = vadd.s32 4294967288, %v10689_v19 }
 0x100   : > { %v10712_v36 = vsub.s32 %v4638_v26, %v10693_v24 }
 0x102   : > { %1939 = vadd.xlane.f32.xlu1 %v1938_v30  ;;  %1936 = vadd.xlane.f32.xlu0 %v1935_v31  ;;  %v2022_v30 = vsel %vm1796_vm0, %v1359_v25, 0.0  ;;  %14295 = vst [vmem:[#allocation7_spill] sm:$0xff] %v10712_v36 }
 0x106   : > { %1945 = vadd.xlane.f32.xlu1 %v1944_v34  ;;  %1942 = vadd.xlane.f32.xlu0 %v1941_v35  ;;  %v2019_v34 = vsel %vm1796_vm0, %v1358_v28, 0.0  ;;  %v4652_v35 = vadd.s32 4294967264, %v10689_v19 }
 0x10a   : > { %1951 = vadd.xlane.f32.xlu1 %v1950_v38  ;;  %1948 = vadd.xlane.f32.xlu0 %v1947_v39  ;;  %v10715_v38 = vsub.s32 %v4631_v27, %v10693_v24  ;;  %v10778_v27 = vsub.s32 %v4687_v9, %v10693_v24  ;;  %v4729_v9 = vadd.s32 4294967176, %v10689_v19 }
 0x10e   : > { %1957 = vadd.xlane.f32.xlu1 %v1956_v42  ;;  %1954 = vadd.xlane.f32.xlu0 %v1953_v43  ;;  %v10724_v42 = vsub.s32 %v4645_v29, %v10693_v24  ;;  %v4659_v43 = vadd.s32 4294967256, %v10689_v19  ;;  %v4694_v29 = vadd.s32 4294967216, %v10689_v19 }
 0x110   : > { %14296 = vst [vmem:[#allocation8_spill] sm:$0xff] %v10724_v42  ;;  %v10744_v60 = vsub.s32 %v4659_v43, %v10693_v24 }
 0x112   : > { %1963 = vadd.xlane.f32.xlu1 %v1962_v46  ;;  %1960 = vadd.xlane.f32.xlu0 %v1959_v47 }
 0x116   : > { %1969 = vadd.xlane.f32.xlu1 %v1968_v50  ;;  %1966 = vadd.xlane.f32.xlu0 %v1965_v51  ;;  %v10734_v51 = vsub.s32 %v4652_v35, %v10693_v24 }
 0x118   : > { %14297 = vst [vmem:[#allocation9_spill] sm:$0xff] %v10734_v51 }
 0x11a   : > { %1975 = vadd.xlane.f32.xlu1 %v1974_v54  ;;  %1972 = vadd.xlane.f32.xlu0 %v1971_v55  ;;  %v2025_v54 = vsel %vm1796_vm0, %v1360_v41, 0.0  ;;  %v4666_v55 = vadd.s32 4294967248, %v10689_v19 }
 0x11c   : > { %v10761_v12 = vsub.s32 %v4666_v55, %v10693_v24 }
 0x11e   : > { %1981 = vadd.xlane.f32.xlu1 %v1980_v58  ;;  %1978 = vadd.xlane.f32.xlu0 %v1977_v59  ;;  %v4673_v59 = vadd.s32 4294967240, %v10689_v19 }
 0x120   : > { %v10764_v13 = vsub.s32 %v4673_v59, %v10693_v24 }
 0x122   : > { %1987 = vadd.xlane.f32.xlu1 %v1986_v62  ;;  %1984 = vadd.xlane.f32.xlu0 %v1983_v63  ;;  %v2034_v62 = vsel %vm1796_vm0, %v1363_v48, 0.0  ;;  %v2031_v63 = vsel %vm1796_vm0, %v1362_v49, 0.0  ;;  %v10796_v48 = vsub.s32 %v4694_v29, %v10693_v24 }
 0x126   : > { %1993 = vadd.xlane.f32.xlu1 %v1992_v2  ;;  %1990 = vadd.xlane.f32.xlu0 %v1989_v3  ;;  %v4680_v2 = vadd.s32 4294967232, %v10689_v19  ;;  %v1365_v3 = vld [vmem:[%s14278_s0 + $0x288] sm:$0xff] }
 0x127   : > { %v2040_v17 = vsel %vm1796_vm0, %v1365_v3, 0.0 }
 0x12a   : > { %1999 = vadd.xlane.f32.xlu1 %v1998_v6  ;;  %1996 = vadd.xlane.f32.xlu0 %v1995_v7 }
 0x12e   : > { %2005 = vadd.xlane.f32.xlu1 %v2004_v10  ;;  %2002 = vadd.xlane.f32.xlu0 %v2001_v11  ;;  %v1364_v10 = vld [vmem:[%s14278_s0 + $0x280] sm:$0xff] }
 0x132   : > { %2011 = vadd.xlane.f32.xlu1 %v2010_v15  ;;  %2008 = vadd.xlane.f32.xlu0 %v2007_v16 }
 0x133   : > { %v1805_v20 = vpop.xlane.xlu1 %1804  ;;  %v1799_v21 = vpop.xlane.xlu0 %1798 }
 0x136   : > { %2017 = vadd.xlane.f32.xlu1 %v2016_v22  ;;  %2014 = vadd.xlane.f32.xlu0 %v2013_v23  ;;  %v2037_v22 = vsel %vm1796_vm0, %v1364_v10, 0.0  ;;  %v1367_v23 = vld [vmem:[%s14278_s0 + $0x298] sm:$0xff] }
 0x137   : > { %v1808_v31 = vpop.xlane.xlu1 %1807  ;;  %v1802_v33 = vpop.xlane.xlu0 %1801  ;;  %v1371_v10 = vld [vmem:[%s14278_s0 + $0x2b8] sm:$0xff] }
 0x138   : > { %v3334_v37 = vpack.c.bf16 %v1808_v31, %v1805_v20  ;;  %v3333_v39 = vpack.c.bf16 %v1802_v33, %v1799_v21  ;;  %v10770_v21 = vsub.s32 %v4680_v2, %v10693_v24  ;;  %v1366_v31 = vld [vmem:[%s14278_s0 + $0x290] sm:$0xff] }
 0x13a   : > { %v4115_v44 = vunpack.c.l.b16 %v3334_v37  ;;  %v4116_v45 = vunpack.c.h.b16 %v3334_v37  ;;  %v4113_v46 = vunpack.c.l.b16 %v3333_v39  ;;  %v4114_v47 = vunpack.c.h.b16 %v3333_v39  ;;  %2023 = vadd.xlane.f32.xlu1 %v2022_v30  ;;  %2020 = vadd.xlane.f32.xlu0 %v2019_v34 }
 0x13b   : > { %v1814_v50 = vpop.xlane.xlu1 %1813  ;;  %v1811_v52 = vpop.xlane.xlu0 %1810  ;;  %v4701_v30 = vadd.s32 4294967208, %v10689_v19  ;;  %v2046_v39 = vsel %vm1796_vm0, %v1367_v23, 0.0 }
 0x13c   : > { %v4642_v56 = vrot.slane %v4115_v44, %v10712_v36  ;;  %v4630_v57 = vrot.slane %v4113_v46, %v10707_v32  ;;  %v4635_v58 = vrot.slane %v4114_v47, %v10715_v38  ;;  %v3335_v61 = vpack.c.bf16 %v1814_v50, %v1811_v52 }
 0x13d   : > { %v4649_v0 = vrot.slane %v4116_v45, %v10724_v42  ;;  %v2043_v44 = vsel %vm1796_vm0, %v1366_v31, 0.0  ;;  %v1369_v45 = vld [vmem:[%s14278_s0 + $0x2a8] sm:$0xff]  ;;  %v4708_v50 = vadd.s32 4294967200, %v10689_v19  ;;  %v4715_v52 = vadd.s32 4294967192, %v10689_v19  ;;  %v1372_v31 = vld [vmem:[%s14278_s0 + $0x2c0] sm:$0xff] }
 0x13e   : > { %v4637_v1 = vsel %vm4636_vm1, %v4635_v58, %v4630_v57  ;;  %2029 = vadd.xlane.f32.xlu1 %v2028_v53  ;;  %2026 = vadd.xlane.f32.xlu0 %v2025_v54  ;;  %v4117_v5 = vunpack.c.l.b16 %v3335_v61  ;;  %v4118_v6 = vunpack.c.h.b16 %v3335_v61  ;;  %v1368_v53 = vld [vmem:[%s14278_s0 + $0x2a0] sm:$0xff]  ;;  %v2052_v58 = vsel %vm1796_vm0, %v1369_v45, 0.0 }
 0x13f   : > { %v4644_v4 = vsel %vm4643_vm2, %v4642_v56, %v4637_v1  ;;  %v1820_v7 = vpop.xlane.xlu1 %1819  ;;  %v1817_v8 = vpop.xlane.xlu0 %1816  ;;  %v10806_v56 = vsub.s32 %v4701_v30, %v10693_v24  ;;  %v10813_v2 = vsub.s32 %v4708_v50, %v10693_v24  ;;  %v10816_v3 = vsub.s32 %v4715_v52, %v10693_v24  ;;  %v1373_v30 = vld [vmem:[%s14278_s0 + $0x2c8] sm:$0xff] }
 0x140   : > { %v4651_v11 = vsel %vm4650_vm3, %v4649_v0, %v4644_v4  ;;  %v3336_v14 = vpack.c.bf16 %v1820_v7, %v1817_v8  ;;  %v4656_v15 = vrot.slane %v4117_v5, %v10734_v51  ;;  %v4663_v16 = vrot.slane %v4118_v6, %v10744_v60 }
 0x141   : > { %v4722_v5 = vadd.s32 4294967184, %v10689_v19 }
 0x142   : > { %v4119_v18 = vunpack.c.l.b16 %v3336_v14  ;;  %v4120_v20 = vunpack.c.h.b16 %v3336_v14  ;;  %2035 = vadd.xlane.f32.xlu1 %v2034_v62  ;;  %2032 = vadd.xlane.f32.xlu0 %v2031_v63  ;;  %v4658_v25 = vsel %vm4657_vm4, %v4656_v15, %v4651_v11  ;;  %v2049_v63 = vsel %vm1796_vm0, %v1368_v53, 0.0  ;;  %v1370_v11 = vld [vmem:[%s14278_s0 + $0x2b0] sm:$0xff] }
 0x143   : > { %v1826_v26 = vpop.xlane.xlu1 %1825  ;;  %v1823_v28 = vpop.xlane.xlu0 %1822  ;;  %v4665_v33 = vsel %vm14290_vm5, %v4663_v16, %v4658_v25  ;;  %v10831_v19 = vsub.s32 %v4722_v5, %v10693_v24  ;;  %v2055_v23 = vsel %vm1796_vm0, %v1370_v11, 0.0 }
 0x144   : > { %v4670_v34 = vrot.slane %v4119_v18, %v10761_v12  ;;  %v4677_v35 = vrot.slane %v4120_v20, %v10764_v13  ;;  %v3337_v37 = vpack.c.bf16 %v1826_v26, %v1823_v28  ;;  %v10838_v28 = vsub.s32 %v4729_v9, %v10693_v24  ;;  %v1711_v24 = vld [vmem:[%s14278_s0 + $0xd58] sm:$0xff] }
 0x146   : > { %v4672_v40 = vsel %vm4671_vm6, %v4670_v34, %v4665_v33  ;;  %v4121_v41 = vunpack.c.l.b16 %v3337_v37  ;;  %v4122_v43 = vunpack.c.h.b16 %v3337_v37  ;;  %2041 = vadd.xlane.f32.xlu1 %v2040_v17  ;;  %2038 = vadd.xlane.f32.xlu0 %v2037_v22  ;;  %v2058_v22 = vsel %vm1796_vm0, %v1371_v10, 0.0 }
 0x147   : > { %v4679_v46 = vsel %vm4678_vm7, %v4677_v35, %v4672_v40  ;;  %v1832_v47 = vpop.xlane.xlu1 %1831  ;;  %v1829_v49 = vpop.xlane.xlu0 %1828 }
 0x148   : > { %v4684_v54 = vrot.slane %v4121_v41, %v10770_v21  ;;  %v4691_v55 = vrot.slane %v4122_v43, %v10778_v27  ;;  %v3338_v57 = vpack.c.bf16 %v1832_v47, %v1829_v49  ;;  %v2064_v41 = vsel %vm1796_vm0, %v1373_v30, 0.0  ;;  %v1375_v47 = vld [vmem:[%s14278_s0 + $0x2d8] sm:$0xff]  ;;  %v1374_v49 = vld [vmem:[%s14278_s0 + $0x2d0] sm:$0xff] }
 0x149   : > { %v2061_v43 = vsel %vm1796_vm0, %v1372_v31, 0.0 }
 0x14a   : > { %v4686_v59 = vsel %vm4685_vm8, %v4684_v54, %v4679_v46  ;;  %v4123_v61 = vunpack.c.l.b16 %v3338_v57  ;;  %v4124_v62 = vunpack.c.h.b16 %v3338_v57  ;;  %2047 = vadd.xlane.f32.xlu1 %v2046_v39  ;;  %2044 = vadd.xlane.f32.xlu0 %v2043_v44  ;;  %v2067_v57 = vsel %vm1796_vm0, %v1374_v49, 0.0 }
 0x14b   : > { %v4693_v0 = vsel %vm4692_vm9, %v4691_v55, %v4686_v59  ;;  %v1838_v1 = vpop.xlane.xlu1 %1837  ;;  %v1835_v4 = vpop.xlane.xlu0 %1834  ;;  %v2070_v55 = vsel %vm1796_vm0, %v1375_v47, 0.0 }
 0x14c   : > { %v4698_v6 = vrot.slane %v4123_v61, %v10796_v48  ;;  %v4705_v7 = vrot.slane %v4124_v62, %v10806_v56  ;;  %v3339_v8 = vpack.c.bf16 %v1838_v1, %v1835_v4  ;;  %v1377_v61 = vld [vmem:[%s14278_s0 + $0x2e8] sm:$0xff]  ;;  %v1376_v62 = vld [vmem:[%s14278_s0 + $0x2e0] sm:$0xff] }
 0x14d   : > { %v2073_v9 = vsel %vm1796_vm0, %v1376_v62, 0.0 }
 0x14e   : > { %v4700_v14 = vsel %vm4699_vm10, %v4698_v6, %v4693_v0  ;;  %v4125_v15 = vunpack.c.l.b16 %v3339_v8  ;;  %v4126_v16 = vunpack.c.h.b16 %v3339_v8  ;;  %2053 = vadd.xlane.f32.xlu1 %v2052_v58  ;;  %2050 = vadd.xlane.f32.xlu0 %v2049_v63  ;;  %v2076_v8 = vsel %vm1796_vm0, %v1377_v61, 0.0 }
 0x14f   : > { %v4707_v17 = vsel %vm4706_vm11, %v4705_v7, %v4700_v14  ;;  %v1844_v18 = vpop.xlane.xlu1 %1843  ;;  %v1841_v20 = vpop.xlane.xlu0 %1840 }
 0x150   : > { %v4712_v25 = vrot.slane %v4125_v15, %v10813_v2  ;;  %v4719_v26 = vrot.slane %v4126_v16, %v10816_v3  ;;  %v3340_v29 = vpack.c.bf16 %v1844_v18, %v1841_v20  ;;  %v1379_v15 = vld [vmem:[%s14278_s0 + $0x2f8] sm:$0xff]  ;;  %v1378_v16 = vld [vmem:[%s14278_s0 + $0x2f0] sm:$0xff] }
 0x151   : > { %v2079_v30 = vsel %vm1796_vm0, %v1378_v16, 0.0 }
 0x152   : > { %v4714_v33 = vsel %vm4713_vm12, %v4712_v25, %v4707_v17  ;;  %v4127_v34 = vunpack.c.l.b16 %v3340_v29  ;;  %v4128_v35 = vunpack.c.h.b16 %v3340_v29  ;;  %2059 = vadd.xlane.f32.xlu1 %v2058_v22  ;;  %2056 = vadd.xlane.f32.xlu0 %v2055_v23  ;;  %v2082_v29 = vsel %vm1796_vm0, %v1379_v15, 0.0 }
 0x153   : > { %v4721_v37 = vsel %vm4720_vm13, %v4719_v26, %v4714_v33  ;;  %v1850_v39 = vpop.xlane.xlu1 %1849  ;;  %v1847_v40 = vpop.xlane.xlu0 %1846 }
 0x154   : > { %v4726_v44 = vrot.slane %v4127_v34, %v10831_v19  ;;  %v4733_v45 = vrot.slane %v4128_v35, %v10838_v28  ;;  %v3341_v46 = vpack.c.bf16 %v1850_v39, %v1847_v40  ;;  %v1381_v35 = vld [vmem:[%s14278_s0 + $0x308] sm:$0xff] }
 0x156   : > { %v4129_v50 = vunpack.c.l.b16 %v3341_v46  ;;  %v4130_v52 = vunpack.c.h.b16 %v3341_v46  ;;  %2065 = vadd.xlane.f32.xlu1 %v2064_v41  ;;  %2062 = vadd.xlane.f32.xlu0 %v2061_v43  ;;  %v4728_v58 = vsel %vm4727_vm14, %v4726_v44, %v4721_v37  ;;  %v1380_v37 = vld [vmem:[%s14278_s0 + $0x300] sm:$0xff]  ;;  %v2088_v46 = vsel %vm1796_vm0, %v1381_v35, 0.0 }
 0x157   : > { %v1856_v53 = vpop.xlane.xlu1 %1855  ;;  %v1853_v54 = vpop.xlane.xlu0 %1852  ;;  %v10868_v63 = vsel %vm4734_vm15, %v4733_v45, %v4728_v58  ;;  %v2085_v47 = vsel %vm1796_vm0, %v1380_v37, 0.0 }
 0x158   : > { %v3342_v59 = vpack.c.bf16 %v1856_v53, %v1853_v54  ;;  %v4739_v0 = vrot.slane %v4129_v50, %v10707_v32  ;;  %v4743_v1 = vrot.slane %v4130_v52, %v10715_v38  ;;  %v1383_v53 = vld [vmem:[%s14278_s0 + $0x318] sm:$0xff]  ;;  %v1382_v54 = vld [vmem:[%s14278_s0 + $0x310] sm:$0xff] }
 0x15a   : > { %v4131_v4 = vunpack.c.l.b16 %v3342_v59  ;;  %v4132_v5 = vunpack.c.h.b16 %v3342_v59  ;;  %2071 = vadd.xlane.f32.xlu1 %v2070_v55  ;;  %2068 = vadd.xlane.f32.xlu0 %v2067_v57  ;;  %v4744_v17 = vsel %vm4636_vm1, %v4743_v1, %v4739_v0  ;;  %v2094_v0 = vsel %vm1796_vm0, %v1383_v53, 0.0 }
 0x15b   : > { %v1862_v6 = vpop.xlane.xlu1 %1861  ;;  %v1859_v7 = vpop.xlane.xlu0 %1858  ;;  %v2091_v1 = vsel %vm1796_vm0, %v1382_v54, 0.0 }
 0x15c   : > { %v4748_v10 = vrot.slane %v4131_v4, %v10712_v36  ;;  %v4753_v11 = vrot.slane %v4132_v5, %v10724_v42  ;;  %v3343_v14 = vpack.c.bf16 %v1862_v6, %v1859_v7  ;;  %v1385_v7 = vld [vmem:[%s14278_s0 + $0x328] sm:$0xff] }
 0x15e   : > { %v4749_v18 = vsel %vm4643_vm2, %v4748_v10, %v4744_v17  ;;  %v4133_v20 = vunpack.c.l.b16 %v3343_v14  ;;  %v4134_v22 = vunpack.c.h.b16 %v3343_v14  ;;  %2077 = vadd.xlane.f32.xlu1 %v2076_v8  ;;  %2074 = vadd.xlane.f32.xlu0 %v2073_v9  ;;  %v1384_v8 = vld [vmem:[%s14278_s0 + $0x320] sm:$0xff]  ;;  %v2100_v17 = vsel %vm1796_vm0, %v1385_v7, 0.0 }
 0x15f   : > { %v4754_v23 = vsel %vm4650_vm3, %v4753_v11, %v4749_v18  ;;  %v1868_v25 = vpop.xlane.xlu1 %1867  ;;  %v1865_v26 = vpop.xlane.xlu0 %1864  ;;  %v2097_v18 = vsel %vm1796_vm0, %v1384_v8, 0.0 }
 0x160   : > { %v4758_v31 = vrot.slane %v4133_v20, %v10734_v51  ;;  %v4763_v33 = vrot.slane %v4134_v22, %v10744_v60  ;;  %v3344_v34 = vpack.c.bf16 %v1868_v25, %v1865_v26  ;;  %v1387_v25 = vld [vmem:[%s14278_s0 + $0x338] sm:$0xff]  ;;  %v1386_v26 = vld [vmem:[%s14278_s0 + $0x330] sm:$0xff] }
 0x161   : > { %v2106_v37 = vsel %vm1796_vm0, %v1387_v25, 0.0 }
 0x162   : > { %v4759_v39 = vsel %vm4657_vm4, %v4758_v31, %v4754_v23  ;;  %v4135_v40 = vunpack.c.l.b16 %v3344_v34  ;;  %v4136_v41 = vunpack.c.h.b16 %v3344_v34  ;;  %2083 = vadd.xlane.f32.xlu1 %v2082_v29  ;;  %2080 = vadd.xlane.f32.xlu0 %v2079_v30 }
 0x163   : > { %v4764_v43 = vsel %vm14290_vm5, %v4763_v33, %v4759_v39  ;;  %v1874_v44 = vpop.xlane.xlu1 %1873  ;;  %v1871_v45 = vpop.xlane.xlu0 %1870  ;;  %v2103_v39 = vsel %vm1796_vm0, %v1386_v26, 0.0 }
 0x164   : > { %v4768_v49 = vrot.slane %v4135_v40, %v10761_v12  ;;  %v4773_v50 = vrot.slane %v4136_v41, %v10764_v13  ;;  %v3345_v52 = vpack.c.bf16 %v1874_v44, %v1871_v45  ;;  %v1389_v44 = vld [vmem:[%s14278_s0 + $0x348] sm:$0xff]  ;;  %v1388_v45 = vld [vmem:[%s14278_s0 + $0x340] sm:$0xff] }
 0x165   : > { %v2109_v53 = vsel %vm1796_vm0, %v1388_v45, 0.0 }
 0x166   : > { %v4769_v55 = vsel %vm4671_vm6, %v4768_v49, %v4764_v43  ;;  %v4137_v57 = vunpack.c.l.b16 %v3345_v52  ;;  %v4138_v58 = vunpack.c.h.b16 %v3345_v52  ;;  %2089 = vadd.xlane.f32.xlu1 %v2088_v46  ;;  %2086 = vadd.xlane.f32.xlu0 %v2085_v47  ;;  %v2112_v52 = vsel %vm1796_vm0, %v1389_v44, 0.0 }
 0x167   : > { %v4774_v59 = vsel %vm4678_vm7, %v4773_v50, %v4769_v55  ;;  %v1880_v61 = vpop.xlane.xlu1 %1879  ;;  %v1877_v62 = vpop.xlane.xlu0 %1876 }
 0x168   : > { %v4778_v4 = vrot.slane %v4137_v57, %v10770_v21  ;;  %v4783_v5 = vrot.slane %v4138_v58, %v10778_v27  ;;  %v3346_v6 = vpack.c.bf16 %v1880_v61, %v1877_v62  ;;  %v1390_v61 = vld [vmem:[%s14278_s0 + $0x350] sm:$0xff] }
 0x169   : > { %v2115_v7 = vsel %vm1796_vm0, %v1390_v61, 0.0 }
 0x16a   : > { %v4779_v9 = vsel %vm4685_vm8, %v4778_v4, %v4774_v59  ;;  %v4139_v10 = vunpack.c.l.b16 %v3346_v6  ;;  %v4140_v11 = vunpack.c.h.b16 %v3346_v6  ;;  %2095 = vadd.xlane.f32.xlu1 %v2094_v0  ;;  %2092 = vadd.xlane.f32.xlu0 %v2091_v1  ;;  %v1391_v59 = vld [vmem:[%s14278_s0 + $0x358] sm:$0xff] }
 0x16b   : > { %v4784_v14 = vsel %vm4692_vm9, %v4783_v5, %v4779_v9  ;;  %v1886_v15 = vpop.xlane.xlu1 %1885  ;;  %v1883_v16 = vpop.xlane.xlu0 %1882  ;;  %v2118_v6 = vsel %vm1796_vm0, %v1391_v59, 0.0 }
 0x16c   : > { %v4788_v20 = vrot.slane %v4139_v10, %v10796_v48  ;;  %v4793_v22 = vrot.slane %v4140_v11, %v10806_v56  ;;  %v3347_v23 = vpack.c.bf16 %v1886_v15, %v1883_v16  ;;  %v1393_v10 = vld [vmem:[%s14278_s0 + $0x368] sm:$0xff]  ;;  %v1392_v11 = vld [vmem:[%s14278_s0 + $0x360] sm:$0xff] }
 0x16d   : > { %v2121_v25 = vsel %vm1796_vm0, %v1392_v11, 0.0 }
 0x16e   : > { %v4789_v29 = vsel %vm4699_vm10, %v4788_v20, %v4784_v14  ;;  %v4141_v30 = vunpack.c.l.b16 %v3347_v23  ;;  %v4142_v31 = vunpack.c.h.b16 %v3347_v23  ;;  %2101 = vadd.xlane.f32.xlu1 %v2100_v17  ;;  %2098 = vadd.xlane.f32.xlu0 %v2097_v18  ;;  %v2124_v23 = vsel %vm1796_vm0, %v1393_v10, 0.0 }
 0x16f   : > { %v4794_v33 = vsel %vm4706_vm11, %v4793_v22, %v4789_v29  ;;  %v1892_v34 = vpop.xlane.xlu1 %1891  ;;  %v1889_v35 = vpop.xlane.xlu0 %1888 }
 0x170   : > { %v4798_v40 = vrot.slane %v4141_v30, %v10813_v2  ;;  %v4803_v41 = vrot.slane %v4142_v31, %v10816_v3  ;;  %v3348_v43 = vpack.c.bf16 %v1892_v34, %v1889_v35  ;;  %v1395_v31 = vld [vmem:[%s14278_s0 + $0x378] sm:$0xff] }
 0x171   : > { %v2130_v44 = vsel %vm1796_vm0, %v1395_v31, 0.0 }
 0x172   : > { %v4143_v46 = vunpack.c.l.b16 %v3348_v43  ;;  %v4144_v47 = vunpack.c.h.b16 %v3348_v43  ;;  %2107 = vadd.xlane.f32.xlu1 %v2106_v37  ;;  %2104 = vadd.xlane.f32.xlu0 %v2103_v39  ;;  %v4799_v54 = vsel %vm4713_vm12, %v4798_v40, %v4794_v33  ;;  %v1394_v33 = vld [vmem:[%s14278_s0 + $0x370] sm:$0xff] }
 0x173   : > { %v1898_v49 = vpop.xlane.xlu1 %1897  ;;  %v1895_v50 = vpop.xlane.xlu0 %1894  ;;  %v4804_v62 = vsel %vm4720_vm13, %v4803_v41, %v4799_v54  ;;  %v2127_v45 = vsel %vm1796_vm0, %v1394_v33, 0.0 }
 0x174   : > { %v4808_v55 = vrot.slane %v4143_v46, %v10831_v19  ;;  %v4813_v57 = vrot.slane %v4144_v47, %v10838_v28  ;;  %v3349_v58 = vpack.c.bf16 %v1898_v49, %v1895_v50  ;;  %v1397_v50 = vld [vmem:[%s14278_s0 + $0x388] sm:$0xff] }
 0x175   : > { %v2136_v61 = vsel %vm1796_vm0, %v1397_v50, 0.0 }
 0x176   : > { %v4145_v0 = vunpack.c.l.b16 %v3349_v58  ;;  %v4146_v1 = vunpack.c.h.b16 %v3349_v58  ;;  %2113 = vadd.xlane.f32.xlu1 %v2112_v52  ;;  %2110 = vadd.xlane.f32.xlu0 %v2109_v53  ;;  %v4809_v8 = vsel %vm4727_vm14, %v4808_v55, %v4804_v62  ;;  %v1396_v52 = vld [vmem:[%s14278_s0 + $0x380] sm:$0xff] }
 0x177   : > { %v1904_v4 = vpop.xlane.xlu1 %1903  ;;  %v1901_v5 = vpop.xlane.xlu0 %1900  ;;  %v10965_v14 = vsel %vm4734_vm15, %v4813_v57, %v4809_v8  ;;  %v2133_v62 = vsel %vm1796_vm0, %v1396_v52, 0.0 }
 0x178   : > { %v3350_v9 = vpack.c.bf16 %v1904_v4, %v1901_v5  ;;  %v4818_v15 = vrot.slane %v4145_v0, %v10707_v32  ;;  %v4822_v16 = vrot.slane %v4146_v1, %v10715_v38  ;;  %v1399_v5 = vld [vmem:[%s14278_s0 + $0x398] sm:$0xff] }
 0x17a   : > { %v4147_v17 = vunpack.c.l.b16 %v3350_v9  ;;  %v4148_v18 = vunpack.c.h.b16 %v3350_v9  ;;  %2119 = vadd.xlane.f32.xlu1 %v2118_v6  ;;  %2116 = vadd.xlane.f32.xlu0 %v2115_v7  ;;  %v4823_v34 = vsel %vm4636_vm1, %v4822_v16, %v4818_v15  ;;  %v1398_v6 = vld [vmem:[%s14278_s0 + $0x390] sm:$0xff]  ;;  %v2142_v16 = vsel %vm1796_vm0, %v1399_v5, 0.0 }
 0x17b   : > { %v1910_v20 = vpop.xlane.xlu1 %1909  ;;  %v1907_v22 = vpop.xlane.xlu0 %1906 }
 0x17c   : > { %v4827_v26 = vrot.slane %v4147_v17, %v10712_v36  ;;  %v4832_v29 = vrot.slane %v4148_v18, %v10724_v42  ;;  %v3351_v30 = vpack.c.bf16 %v1910_v20, %v1907_v22  ;;  %v2139_v17 = vsel %vm1796_vm0, %v1398_v6, 0.0 }
 0x17e   : > { %v4828_v35 = vsel %vm4643_vm2, %v4827_v26, %v4823_v34  ;;  %v4149_v37 = vunpack.c.l.b16 %v3351_v30  ;;  %v4150_v39 = vunpack.c.h.b16 %v3351_v30  ;;  %2125 = vadd.xlane.f32.xlu1 %v2124_v23  ;;  %2122 = vadd.xlane.f32.xlu0 %v2121_v25  ;;  %v1401_v23 = vld [vmem:[%s14278_s0 + $0x3a8] sm:$0xff]  ;;  %v1400_v25 = vld [vmem:[%s14278_s0 + $0x3a0] sm:$0xff] }
 0x17f   : > { %v4833_v40 = vsel %vm4650_vm3, %v4832_v29, %v4828_v35  ;;  %v1916_v41 = vpop.xlane.xlu1 %1915  ;;  %v1913_v43 = vpop.xlane.xlu0 %1912  ;;  %v2148_v35 = vsel %vm1796_vm0, %v1401_v23, 0.0 }
 0x180   : > { %v4837_v46 = vrot.slane %v4149_v37, %v10734_v51  ;;  %v4842_v47 = vrot.slane %v4150_v39, %v10744_v60  ;;  %v3352_v49 = vpack.c.bf16 %v1916_v41, %v1913_v43  ;;  %v2145_v37 = vsel %vm1796_vm0, %v1400_v25, 0.0  ;;  %v1403_v43 = vld [vmem:[%s14278_s0 + $0x3b8] sm:$0xff] }
 0x182   : > { %v4838_v53 = vsel %vm4657_vm4, %v4837_v46, %v4833_v40  ;;  %v4151_v54 = vunpack.c.l.b16 %v3352_v49  ;;  %v4152_v55 = vunpack.c.h.b16 %v3352_v49  ;;  %2131 = vadd.xlane.f32.xlu1 %v2130_v44  ;;  %2128 = vadd.xlane.f32.xlu0 %v2127_v45  ;;  %v1402_v44 = vld [vmem:[%s14278_s0 + $0x3b0] sm:$0xff] }
 0x183   : > { %v4843_v57 = vsel %vm14290_vm5, %v4842_v47, %v4838_v53  ;;  %v1922_v58 = vpop.xlane.xlu1 %1921  ;;  %v1919_v59 = vpop.xlane.xlu0 %1918  ;;  %v2154_v53 = vsel %vm1796_vm0, %v1403_v43, 0.0 }
 0x184   : > { %v4847_v0 = vrot.slane %v4151_v54, %v10761_v12  ;;  %v4852_v1 = vrot.slane %v4152_v55, %v10764_v13  ;;  %v3353_v4 = vpack.c.bf16 %v1922_v58, %v1919_v59  ;;  %v2151_v54 = vsel %vm1796_vm0, %v1402_v44, 0.0  ;;  %v1405_v59 = vld [vmem:[%s14278_s0 + $0x3c8] sm:$0xff] }
 0x186   : > { %v4848_v7 = vsel %vm4671_vm6, %v4847_v0, %v4843_v57  ;;  %v4153_v8 = vunpack.c.l.b16 %v3353_v4  ;;  %v4154_v9 = vunpack.c.h.b16 %v3353_v4  ;;  %2137 = vadd.xlane.f32.xlu1 %v2136_v61  ;;  %2134 = vadd.xlane.f32.xlu0 %v2133_v62  ;;  %v1404_v61 = vld [vmem:[%s14278_s0 + $0x3c0] sm:$0xff] }
 0x187   : > { %v4853_v10 = vsel %vm4678_vm7, %v4852_v1, %v4848_v7  ;;  %v1928_v11 = vpop.xlane.xlu1 %1927  ;;  %v1925_v15 = vpop.xlane.xlu0 %1924  ;;  %v2160_v7 = vsel %vm1796_vm0, %v1405_v59, 0.0 }
 0x188   : > { %v4857_v18 = vrot.slane %v4153_v8, %v10770_v21  ;;  %v4862_v20 = vrot.slane %v4154_v9, %v10778_v27  ;;  %v3354_v22 = vpack.c.bf16 %v1928_v11, %v1925_v15  ;;  %v2157_v8 = vsel %vm1796_vm0, %v1404_v61, 0.0  ;;  %v1407_v15 = vld [vmem:[%s14278_s0 + $0x3d8] sm:$0xff] }
 0x189   : > { %v2166_v25 = vsel %vm1796_vm0, %v1407_v15, 0.0 }
 0x18a   : > { %v4858_v26 = vsel %vm4685_vm8, %v4857_v18, %v4853_v10  ;;  %v4155_v29 = vunpack.c.l.b16 %v3354_v22  ;;  %v4156_v30 = vunpack.c.h.b16 %v3354_v22  ;;  %2143 = vadd.xlane.f32.xlu1 %v2142_v16  ;;  %2140 = vadd.xlane.f32.xlu0 %v2139_v17  ;;  %v1406_v16 = vld [vmem:[%s14278_s0 + $0x3d0] sm:$0xff] }
 0x18b   : > { %v4863_v31 = vsel %vm4692_vm9, %v4862_v20, %v4858_v26  ;;  %v1934_v33 = vpop.xlane.xlu1 %1933  ;;  %v1931_v34 = vpop.xlane.xlu0 %1930  ;;  %v2163_v26 = vsel %vm1796_vm0, %v1406_v16, 0.0 }
 0x18c   : > { %v4867_v39 = vrot.slane %v4155_v29, %v10796_v48  ;;  %v4872_v40 = vrot.slane %v4156_v30, %v10806_v56  ;;  %v3355_v41 = vpack.c.bf16 %v1934_v33, %v1931_v34  ;;  %v1408_v33 = vld [vmem:[%s14278_s0 + $0x3e0] sm:$0xff] }
 0x18d   : > { %v2169_v44 = vsel %vm1796_vm0, %v1408_v33, 0.0 }
 0x18e   : > { %v4868_v45 = vsel %vm4699_vm10, %v4867_v39, %v4863_v31  ;;  %v4157_v46 = vunpack.c.l.b16 %v3355_v41  ;;  %v4158_v47 = vunpack.c.h.b16 %v3355_v41  ;;  %2149 = vadd.xlane.f32.xlu1 %v2148_v35  ;;  %2146 = vadd.xlane.f32.xlu0 %v2145_v37  ;;  %v1409_v31 = vld [vmem:[%s14278_s0 + $0x3e8] sm:$0xff] }
 0x18f   : > { %v4873_v49 = vsel %vm4706_vm11, %v4872_v40, %v4868_v45  ;;  %v1940_v50 = vpop.xlane.xlu1 %1939  ;;  %v1937_v52 = vpop.xlane.xlu0 %1936  ;;  %v2172_v43 = vsel %vm1796_vm0, %v1409_v31, 0.0 }
 0x190   : > { %v4877_v55 = vrot.slane %v4157_v46, %v10813_v2  ;;  %v4882_v57 = vrot.slane %v4158_v47, %v10816_v3  ;;  %v3356_v58 = vpack.c.bf16 %v1940_v50, %v1937_v52  ;;  %v1410_v50 = vld [vmem:[%s14278_s0 + $0x3f0] sm:$0xff] }
 0x192   : > { %v4878_v62 = vsel %vm4713_vm12, %v4877_v55, %v4873_v49  ;;  %v4159_v0 = vunpack.c.l.b16 %v3356_v58  ;;  %v4160_v1 = vunpack.c.h.b16 %v3356_v58  ;;  %2155 = vadd.xlane.f32.xlu1 %v2154_v53  ;;  %2152 = vadd.xlane.f32.xlu0 %v2151_v54  ;;  %v1411_v49 = vld [vmem:[%s14278_s0 + $0x3f8] sm:$0xff] }
 0x193   : > { %v4883_v4 = vsel %vm4720_vm13, %v4882_v57, %v4878_v62  ;;  %v1946_v5 = vpop.xlane.xlu1 %1945  ;;  %v1943_v6 = vpop.xlane.xlu0 %1942  ;;  %v2178_v61 = vsel %vm1796_vm0, %v1411_v49, 0.0  ;;  %v2175_v62 = vsel %vm1796_vm0, %v1410_v50, 0.0 }
 0x194   : > { %v4887_v9 = vrot.slane %v4159_v0, %v10831_v19  ;;  %v4892_v10 = vrot.slane %v4160_v1, %v10838_v28  ;;  %v3357_v11 = vpack.c.bf16 %v1946_v5, %v1943_v6  ;;  %v1413_v5 = vld [vmem:[%s14278_s0 + $0x408] sm:$0xff]  ;;  %v1412_v6 = vld [vmem:[%s14278_s0 + $0x400] sm:$0xff] }
 0x195   : > { %v2184_v16 = vsel %vm1796_vm0, %v1413_v5, 0.0 }
 0x196   : > { %v4888_v17 = vsel %vm4727_vm14, %v4887_v9, %v4883_v4  ;;  %v4161_v18 = vunpack.c.l.b16 %v3357_v11  ;;  %v4162_v20 = vunpack.c.h.b16 %v3357_v11  ;;  %2161 = vadd.xlane.f32.xlu1 %v2160_v7  ;;  %2158 = vadd.xlane.f32.xlu0 %v2157_v8 }
 0x197   : > { %v1952_v22 = vpop.xlane.xlu1 %1951  ;;  %v1949_v23 = vpop.xlane.xlu0 %1948  ;;  %v11056_v29 = vsel %vm4734_vm15, %v4892_v10, %v4888_v17  ;;  %v2181_v17 = vsel %vm1796_vm0, %v1412_v6, 0.0 }
 0x198   : > { %14298 = vst [vmem:[#allocation10_spill] sm:$0xff] %v11056_v29  ;;  %v3358_v30 = vpack.c.bf16 %v1952_v22, %v1949_v23  ;;  %v4897_v34 = vrot.slane %v4161_v18, %v10707_v32  ;;  %v4901_v35 = vrot.slane %v4162_v20, %v10715_v38  ;;  %v1415_v23 = vld [vmem:[%s14278_s0 + $0x418] sm:$0xff] }
 0x19a   : > { %v4163_v37 = vunpack.c.l.b16 %v3358_v30  ;;  %v4164_v39 = vunpack.c.h.b16 %v3358_v30  ;;  %2167 = vadd.xlane.f32.xlu1 %v2166_v25  ;;  %2164 = vadd.xlane.f32.xlu0 %v2163_v26  ;;  %v4902_v52 = vsel %vm4636_vm1, %v4901_v35, %v4897_v34  ;;  %v1414_v25 = vld [vmem:[%s14278_s0 + $0x410] sm:$0xff] }
 0x19b   : > { %v1958_v40 = vpop.xlane.xlu1 %1957  ;;  %v1955_v41 = vpop.xlane.xlu0 %1954 }
 0x19c   : > { %v4906_v45 = vrot.slane %v4163_v37, %v10712_v36  ;;  %v4911_v46 = vrot.slane %v4164_v39, %v10724_v42  ;;  %v3359_v47 = vpack.c.bf16 %v1958_v40, %v1955_v41  ;;  %v2190_v37 = vsel %vm1796_vm0, %v1415_v23, 0.0 }
 0x19d   : > { %v2187_v39 = vsel %vm1796_vm0, %v1414_v25, 0.0 }
 0x19e   : > { %v4907_v53 = vsel %vm4643_vm2, %v4906_v45, %v4902_v52  ;;  %v4165_v54 = vunpack.c.l.b16 %v3359_v47  ;;  %v4166_v55 = vunpack.c.h.b16 %v3359_v47  ;;  %2173 = vadd.xlane.f32.xlu1 %v2172_v43  ;;  %2170 = vadd.xlane.f32.xlu0 %v2169_v44  ;;  %v1417_v44 = vld [vmem:[%s14278_s0 + $0x428] sm:$0xff]  ;;  %v1416_v45 = vld [vmem:[%s14278_s0 + $0x420] sm:$0xff] }
 0x19f   : > { %v4912_v57 = vsel %vm4650_vm3, %v4911_v46, %v4907_v53  ;;  %v1964_v58 = vpop.xlane.xlu1 %1963  ;;  %v1961_v59 = vpop.xlane.xlu0 %1960 }
 0x1a0   : > { %v4916_v0 = vrot.slane %v4165_v54, %v10734_v51  ;;  %v4921_v1 = vrot.slane %v4166_v55, %v10744_v60  ;;  %v3360_v4 = vpack.c.bf16 %v1964_v58, %v1961_v59  ;;  %v2196_v54 = vsel %vm1796_vm0, %v1417_v44, 0.0 }
 0x1a1   : > { %v2193_v55 = vsel %vm1796_vm0, %v1416_v45, 0.0 }
 0x1a2   : > { %v4917_v7 = vsel %vm4657_vm4, %v4916_v0, %v4912_v57  ;;  %v4167_v8 = vunpack.c.l.b16 %v3360_v4  ;;  %v4168_v9 = vunpack.c.h.b16 %v3360_v4  ;;  %2179 = vadd.xlane.f32.xlu1 %v2178_v61  ;;  %2176 = vadd.xlane.f32.xlu0 %v2175_v62  ;;  %v1419_v61 = vld [vmem:[%s14278_s0 + $0x438] sm:$0xff]  ;;  %v1418_v62 = vld [vmem:[%s14278_s0 + $0x430] sm:$0xff] }
 0x1a3   : > { %v4922_v10 = vsel %vm14290_vm5, %v4921_v1, %v4917_v7  ;;  %v1970_v11 = vpop.xlane.xlu1 %1969  ;;  %v1967_v15 = vpop.xlane.xlu0 %1966 }
 0x1a4   : > { %v4926_v18 = vrot.slane %v4167_v8, %v10761_v12  ;;  %v4931_v20 = vrot.slane %v4168_v9, %v10764_v13  ;;  %v3361_v22 = vpack.c.bf16 %v1970_v11, %v1967_v15  ;;  %v2202_v8 = vsel %vm1796_vm0, %v1419_v61, 0.0 }
 0x1a5   : > { %v2199_v9 = vsel %vm1796_vm0, %v1418_v62, 0.0 }
 0x1a6   : > { %v4927_v26 = vsel %vm4671_vm6, %v4926_v18, %v4922_v10  ;;  %v4169_v30 = vunpack.c.l.b16 %v3361_v22  ;;  %v4170_v31 = vunpack.c.h.b16 %v3361_v22  ;;  %2185 = vadd.xlane.f32.xlu1 %v2184_v16  ;;  %2182 = vadd.xlane.f32.xlu0 %v2181_v17  ;;  %v1421_v16 = vld [vmem:[%s14278_s0 + $0x448] sm:$0xff]  ;;  %v1420_v17 = vld [vmem:[%s14278_s0 + $0x440] sm:$0xff] }
 0x1a7   : > { %v4932_v33 = vsel %vm4678_vm7, %v4931_v20, %v4927_v26  ;;  %v1976_v34 = vpop.xlane.xlu1 %1975  ;;  %v1973_v35 = vpop.xlane.xlu0 %1972 }
 0x1a8   : > { %v4936_v40 = vrot.slane %v4169_v30, %v10770_v21  ;;  %v4941_v41 = vrot.slane %v4170_v31, %v10778_v27  ;;  %v3362_v43 = vpack.c.bf16 %v1976_v34, %v1973_v35  ;;  %v2208_v30 = vsel %vm1796_vm0, %v1421_v16, 0.0 }
 0x1a9   : > { %v2205_v31 = vsel %vm1796_vm0, %v1420_v17, 0.0 }
 0x1aa   : > { %v4937_v46 = vsel %vm4685_vm8, %v4936_v40, %v4932_v33  ;;  %v4171_v47 = vunpack.c.l.b16 %v3362_v43  ;;  %v4172_v49 = vunpack.c.h.b16 %v3362_v43  ;;  %2191 = vadd.xlane.f32.xlu1 %v2190_v37  ;;  %2188 = vadd.xlane.f32.xlu0 %v2187_v39  ;;  %v1423_v37 = vld [vmem:[%s14278_s0 + $0x458] sm:$0xff]  ;;  %v1422_v39 = vld [vmem:[%s14278_s0 + $0x450] sm:$0xff] }
 0x1ab   : > { %v4942_v50 = vsel %vm4692_vm9, %v4941_v41, %v4937_v46  ;;  %v1982_v52 = vpop.xlane.xlu1 %1981  ;;  %v1979_v53 = vpop.xlane.xlu0 %1978  ;;  %v2214_v45 = vsel %vm1796_vm0, %v1423_v37, 0.0  ;;  %v2211_v46 = vsel %vm1796_vm0, %v1422_v39, 0.0 }
 0x1ac   : > { %v4946_v57 = vrot.slane %v4171_v47, %v10796_v48  ;;  %v4951_v58 = vrot.slane %v4172_v49, %v10806_v56  ;;  %v3363_v59 = vpack.c.bf16 %v1982_v52, %v1979_v53  ;;  %v1424_v52 = vld [vmem:[%s14278_s0 + $0x460] sm:$0xff] }
 0x1ae   : > { %v4947_v0 = vsel %vm4699_vm10, %v4946_v57, %v4942_v50  ;;  %v4173_v1 = vunpack.c.l.b16 %v3363_v59  ;;  %v4174_v4 = vunpack.c.h.b16 %v3363_v59  ;;  %2197 = vadd.xlane.f32.xlu1 %v2196_v54  ;;  %2194 = vadd.xlane.f32.xlu0 %v2193_v55  ;;  %v1425_v50 = vld [vmem:[%s14278_s0 + $0x468] sm:$0xff] }
 0x1af   : > { %v4952_v5 = vsel %vm4706_vm11, %v4951_v58, %v4947_v0  ;;  %v1988_v6 = vpop.xlane.xlu1 %1987  ;;  %v1985_v7 = vpop.xlane.xlu0 %1984  ;;  %v2220_v62 = vsel %vm1796_vm0, %v1425_v50, 0.0  ;;  %v2217_v0 = vsel %vm1796_vm0, %v1424_v52, 0.0 }
 0x1b0   : > { %v4956_v10 = vrot.slane %v4173_v1, %v10813_v2  ;;  %v4961_v11 = vrot.slane %v4174_v4, %v10816_v3  ;;  %v3364_v15 = vpack.c.bf16 %v1988_v6, %v1985_v7  ;;  %v1427_v6 = vld [vmem:[%s14278_s0 + $0x478] sm:$0xff]  ;;  %v1426_v7 = vld [vmem:[%s14278_s0 + $0x470] sm:$0xff] }
 0x1b2   : > { %v4957_v18 = vsel %vm4713_vm12, %v4956_v10, %v4952_v5  ;;  %v4175_v20 = vunpack.c.l.b16 %v3364_v15  ;;  %v4176_v22 = vunpack.c.h.b16 %v3364_v15  ;;  %2203 = vadd.xlane.f32.xlu1 %v2202_v8  ;;  %2200 = vadd.xlane.f32.xlu0 %v2199_v9 }
 0x1b3   : > { %v4962_v23 = vsel %vm4720_vm13, %v4961_v11, %v4957_v18  ;;  %v1994_v25 = vpop.xlane.xlu1 %1993  ;;  %v1991_v26 = vpop.xlane.xlu0 %1990  ;;  %v2226_v18 = vsel %vm1796_vm0, %v1427_v6, 0.0 }
 0x1b4   : > { %v4966_v33 = vrot.slane %v4175_v20, %v10831_v19  ;;  %v4971_v34 = vrot.slane %v4176_v22, %v10838_v28  ;;  %v3365_v35 = vpack.c.bf16 %v1994_v25, %v1991_v26  ;;  %v2223_v20 = vsel %vm1796_vm0, %v1426_v7, 0.0  ;;  %v1429_v26 = vld [vmem:[%s14278_s0 + $0x488] sm:$0xff] }
 0x1b6   : > { %v4177_v40 = vunpack.c.l.b16 %v3365_v35  ;;  %v4178_v41 = vunpack.c.h.b16 %v3365_v35  ;;  %2209 = vadd.xlane.f32.xlu1 %v2208_v30  ;;  %2206 = vadd.xlane.f32.xlu0 %v2205_v31  ;;  %v4967_v47 = vsel %vm4727_vm14, %v4966_v33, %v4962_v23  ;;  %v1428_v30 = vld [vmem:[%s14278_s0 + $0x480] sm:$0xff] }
 0x1b7   : > { %v2000_v43 = vpop.xlane.xlu1 %1999  ;;  %v1997_v44 = vpop.xlane.xlu0 %1996  ;;  %v11159_v53 = vsel %vm4734_vm15, %v4971_v34, %v4967_v47  ;;  %v1430_v47 = vld [vmem:[%s14278_s0 + $0x490] sm:$0xff] }
 0x1b8   : > { %v3366_v49 = vpack.c.bf16 %v2000_v43, %v1997_v44  ;;  %14299 = vst [vmem:[#allocation11_spill] sm:$0xff] %v11159_v53  ;;  %v4976_v54 = vrot.slane %v4177_v40, %v10707_v32  ;;  %v4980_v55 = vrot.slane %v4178_v41, %v10715_v38  ;;  %v2232_v40 = vsel %vm1796_vm0, %v1429_v26, 0.0 }
 0x1b9   : > { %v2229_v41 = vsel %vm1796_vm0, %v1428_v30, 0.0 }
 0x1ba   : > { %v4179_v57 = vunpack.c.l.b16 %v3366_v49  ;;  %v4180_v58 = vunpack.c.h.b16 %v3366_v49  ;;  %2215 = vadd.xlane.f32.xlu1 %v2214_v45  ;;  %2212 = vadd.xlane.f32.xlu0 %v2211_v46  ;;  %v4981_v8 = vsel %vm4636_vm1, %v4980_v55, %v4976_v54  ;;  %v1431_v46 = vld [vmem:[%s14278_s0 + $0x498] sm:$0xff] }
 0x1bb   : > { %v2006_v59 = vpop.xlane.xlu1 %2005  ;;  %v2003_v61 = vpop.xlane.xlu0 %2002 }
 0x1bc   : > { %v4985_v1 = vrot.slane %v4179_v57, %v10712_v36  ;;  %v4990_v4 = vrot.slane %v4180_v58, %v10724_v42  ;;  %v3367_v5 = vpack.c.bf16 %v2006_v59, %v2003_v61  ;;  %v2238_v58 = vsel %vm1796_vm0, %v1431_v46, 0.0 }
 0x1bd   : > { %v2235_v59 = vsel %vm1796_vm0, %v1430_v47, 0.0 }
 0x1be   : > { %v4986_v9 = vsel %vm4643_vm2, %v4985_v1, %v4981_v8  ;;  %v4181_v10 = vunpack.c.l.b16 %v3367_v5  ;;  %v4182_v11 = vunpack.c.h.b16 %v3367_v5  ;;  %2221 = vadd.xlane.f32.xlu1 %v2220_v62  ;;  %2218 = vadd.xlane.f32.xlu0 %v2217_v0  ;;  %v1433_v1 = vld [vmem:[%s14278_s0 + $0x4a8] sm:$0xff] }
 0x1bf   : > { %v4991_v15 = vsel %vm4650_vm3, %v4990_v4, %v4986_v9  ;;  %v2012_v16 = vpop.xlane.xlu1 %2011  ;;  %v2009_v17 = vpop.xlane.xlu0 %2008  ;;  %v1432_v4 = vld [vmem:[%s14278_s0 + $0x4a0] sm:$0xff] }
 0x1c0   : > { %v4995_v22 = vrot.slane %v4181_v10, %v10734_v51  ;;  %v5000_v23 = vrot.slane %v4182_v11, %v10744_v60  ;;  %v3368_v25 = vpack.c.bf16 %v2012_v16, %v2009_v17  ;;  %v2244_v11 = vsel %vm1796_vm0, %v1433_v1, 0.0 }
 0x1c2   : > { %v4996_v31 = vsel %vm4657_vm4, %v4995_v22, %v4991_v15  ;;  %v4183_v33 = vunpack.c.l.b16 %v3368_v25  ;;  %v4184_v34 = vunpack.c.h.b16 %v3368_v25  ;;  %2227 = vadd.xlane.f32.xlu1 %v2226_v18  ;;  %2224 = vadd.xlane.f32.xlu0 %v2223_v20  ;;  %v2241_v15 = vsel %vm1796_vm0, %v1432_v4, 0.0  ;;  %v1435_v20 = vld [vmem:[%s14278_s0 + $0x4b8] sm:$0xff]  ;;  %v1434_v22 = vld [vmem:[%s14278_s0 + $0x4b0] sm:$0xff] }
 0x1c3   : > { %v5001_v35 = vsel %vm14290_vm5, %v5000_v23, %v4996_v31  ;;  %v2018_v37 = vpop.xlane.xlu1 %2017  ;;  %v2015_v39 = vpop.xlane.xlu0 %2014 }
 0x1c4   : > { %v5005_v43 = vrot.slane %v4183_v33, %v10761_v12  ;;  %v5010_v44 = vrot.slane %v4184_v34, %v10764_v13  ;;  %v3369_v45 = vpack.c.bf16 %v2018_v37, %v2015_v39  ;;  %v2250_v34 = vsel %vm1796_vm0, %v1435_v20, 0.0 }
 0x1c6   : > { %v5006_v49 = vsel %vm4671_vm6, %v5005_v43, %v5001_v35  ;;  %v4185_v50 = vunpack.c.l.b16 %v3369_v45  ;;  %v4186_v52 = vunpack.c.h.b16 %v3369_v45  ;;  %2233 = vadd.xlane.f32.xlu1 %v2232_v40  ;;  %2230 = vadd.xlane.f32.xlu0 %v2229_v41  ;;  %v2247_v35 = vsel %vm1796_vm0, %v1434_v22, 0.0  ;;  %v1437_v41 = vld [vmem:[%s14278_s0 + $0x4c8] sm:$0xff]  ;;  %v1436_v43 = vld [vmem:[%s14278_s0 + $0x4c0] sm:$0xff] }
 0x1c7   : > { %v5011_v54 = vsel %vm4678_vm7, %v5010_v44, %v5006_v49  ;;  %v2024_v55 = vpop.xlane.xlu1 %2023  ;;  %v2021_v57 = vpop.xlane.xlu0 %2020 }
 0x1c8   : > { %v5015_v61 = vrot.slane %v4185_v50, %v10770_v21  ;;  %v5020_v62 = vrot.slane %v4186_v52, %v10778_v27  ;;  %v3370_v0 = vpack.c.bf16 %v2024_v55, %v2021_v57  ;;  %v2256_v52 = vsel %vm1796_vm0, %v1437_v41, 0.0 }
 0x1ca   : > { %v5016_v5 = vsel %vm4685_vm8, %v5015_v61, %v5011_v54  ;;  %v4187_v6 = vunpack.c.l.b16 %v3370_v0  ;;  %v4188_v7 = vunpack.c.h.b16 %v3370_v0  ;;  %2239 = vadd.xlane.f32.xlu1 %v2238_v58  ;;  %2236 = vadd.xlane.f32.xlu0 %v2235_v59  ;;  %v2253_v54 = vsel %vm1796_vm0, %v1436_v43, 0.0  ;;  %v1439_v59 = vld [vmem:[%s14278_s0 + $0x4d8] sm:$0xff]  ;;  %v1438_v61 = vld [vmem:[%s14278_s0 + $0x4d0] sm:$0xff] }
 0x1cb   : > { %v5021_v8 = vsel %vm4692_vm9, %v5020_v62, %v5016_v5  ;;  %v2030_v9 = vpop.xlane.xlu1 %2029  ;;  %v2027_v10 = vpop.xlane.xlu0 %2026 }
 0x1cc   : > { %v5025_v16 = vrot.slane %v4187_v6, %v10796_v48  ;;  %v5030_v17 = vrot.slane %v4188_v7, %v10806_v56  ;;  %v3371_v18 = vpack.c.bf16 %v2030_v9, %v2027_v10  ;;  %v2262_v6 = vsel %vm1796_vm0, %v1439_v59, 0.0  ;;  %v1441_v10 = vld [vmem:[%s14278_s0 + $0x4e8] sm:$0xff] }
 0x1cd   : > { %v2259_v7 = vsel %vm1796_vm0, %v1438_v61, 0.0 }
 0x1ce   : > { %v5026_v23 = vsel %vm4699_vm10, %v5025_v16, %v5021_v8  ;;  %v4189_v25 = vunpack.c.l.b16 %v3371_v18  ;;  %v4190_v26 = vunpack.c.h.b16 %v3371_v18  ;;  %2245 = vadd.xlane.f32.xlu1 %v2244_v11  ;;  %2242 = vadd.xlane.f32.xlu0 %v2241_v15  ;;  %v1440_v11 = vld [vmem:[%s14278_s0 + $0x4e0] sm:$0xff] }
 0x1cf   : > { %v5031_v30 = vsel %vm4706_vm11, %v5030_v17, %v5026_v23  ;;  %v2036_v31 = vpop.xlane.xlu1 %2035  ;;  %v2033_v33 = vpop.xlane.xlu0 %2032  ;;  %v2268_v23 = vsel %vm1796_vm0, %v1441_v10, 0.0 }
 0x1d0   : > { %v5035_v37 = vrot.slane %v4189_v25, %v10813_v2  ;;  %v5040_v39 = vrot.slane %v4190_v26, %v10816_v3  ;;  %v3372_v40 = vpack.c.bf16 %v2036_v31, %v2033_v33  ;;  %v2265_v25 = vsel %vm1796_vm0, %v1440_v11, 0.0  ;;  %v1443_v33 = vld [vmem:[%s14278_s0 + $0x4f8] sm:$0xff] }
 0x1d2   : > { %v5036_v44 = vsel %vm4713_vm12, %v5035_v37, %v5031_v30  ;;  %v4191_v45 = vunpack.c.l.b16 %v3372_v40  ;;  %v4192_v46 = vunpack.c.h.b16 %v3372_v40  ;;  %2251 = vadd.xlane.f32.xlu1 %v2250_v34  ;;  %2248 = vadd.xlane.f32.xlu0 %v2247_v35  ;;  %v1442_v34 = vld [vmem:[%s14278_s0 + $0x4f0] sm:$0xff] }
 0x1d3   : > { %v5041_v47 = vsel %vm4720_vm13, %v5040_v39, %v5036_v44  ;;  %v2042_v49 = vpop.xlane.xlu1 %2041  ;;  %v2039_v50 = vpop.xlane.xlu0 %2038 }
 0x1d4   : > { %v5045_v55 = vrot.slane %v4191_v45, %v10831_v19  ;;  %v5050_v57 = vrot.slane %v4192_v46, %v10838_v28  ;;  %v3373_v58 = vpack.c.bf16 %v2042_v49, %v2039_v50  ;;  %v2274_v45 = vsel %vm1796_vm0, %v1443_v33, 0.0 }
 0x1d5   : > { %v2271_v46 = vsel %vm1796_vm0, %v1442_v34, 0.0 }
 0x1d6   : > { %v5046_v62 = vsel %vm4727_vm14, %v5045_v55, %v5041_v47  ;;  %v4193_v0 = vunpack.c.l.b16 %v3373_v58  ;;  %v4194_v1 = vunpack.c.h.b16 %v3373_v58  ;;  %2257 = vadd.xlane.f32.xlu1 %v2256_v52  ;;  %2254 = vadd.xlane.f32.xlu0 %v2253_v54  ;;  %v1445_v52 = vld [vmem:[%s14278_s0 + $0x508] sm:$0xff]  ;;  %v1444_v54 = vld [vmem:[%s14278_s0 + $0x500] sm:$0xff] }
 0x1d7   : > { %v2048_v4 = vpop.xlane.xlu1 %2047  ;;  %v2045_v5 = vpop.xlane.xlu0 %2044  ;;  %v11250_v8 = vsel %vm4734_vm15, %v5050_v57, %v5046_v62 }
 0x1d8   : > { %14300 = vst [vmem:[#allocation12_spill] sm:$0xff] %v11250_v8  ;;  %v3374_v9 = vpack.c.bf16 %v2048_v4, %v2045_v5  ;;  %v5055_v15 = vrot.slane %v4193_v0, %v10707_v32  ;;  %v5059_v16 = vrot.slane %v4194_v1, %v10715_v38  ;;  %v2280_v0 = vsel %vm1796_vm0, %v1445_v52, 0.0 }
 0x1d9   : > { %v2277_v1 = vsel %vm1796_vm0, %v1444_v54, 0.0 }
 0x1da   : > { %v4195_v17 = vunpack.c.l.b16 %v3374_v9  ;;  %v4196_v18 = vunpack.c.h.b16 %v3374_v9  ;;  %2263 = vadd.xlane.f32.xlu1 %v2262_v6  ;;  %2260 = vadd.xlane.f32.xlu0 %v2259_v7  ;;  %v5060_v35 = vsel %vm4636_vm1, %v5059_v16, %v5055_v15  ;;  %v1447_v7 = vld [vmem:[%s14278_s0 + $0x518] sm:$0xff]  ;;  %v1446_v9 = vld [vmem:[%s14278_s0 + $0x510] sm:$0xff] }
 0x1db   : > { %v2054_v20 = vpop.xlane.xlu1 %2053  ;;  %v2051_v22 = vpop.xlane.xlu0 %2050 }
 0x1dc   : > { %v5064_v26 = vrot.slane %v4195_v17, %v10712_v36  ;;  %v5069_v30 = vrot.slane %v4196_v18, %v10724_v42  ;;  %v3375_v31 = vpack.c.bf16 %v2054_v20, %v2051_v22  ;;  %v2286_v20 = vsel %vm1796_vm0, %v1447_v7, 0.0 }
 0x1dd   : > { %v2283_v22 = vsel %vm1796_vm0, %v1446_v9, 0.0 }
 0x1de   : > { %v5065_v37 = vsel %vm4643_vm2, %v5064_v26, %v5060_v35  ;;  %v4197_v39 = vunpack.c.l.b16 %v3375_v31  ;;  %v4198_v40 = vunpack.c.h.b16 %v3375_v31  ;;  %2269 = vadd.xlane.f32.xlu1 %v2268_v23  ;;  %2266 = vadd.xlane.f32.xlu0 %v2265_v25  ;;  %v1448_v31 = vld [vmem:[%s14278_s0 + $0x520] sm:$0xff] }
 0x1df   : > { %v5070_v41 = vsel %vm4650_vm3, %v5069_v30, %v5065_v37  ;;  %v2060_v43 = vpop.xlane.xlu1 %2059  ;;  %v2057_v44 = vpop.xlane.xlu0 %2056  ;;  %v1449_v30 = vld [vmem:[%s14278_s0 + $0x528] sm:$0xff] }
 0x1e0   : > { %v5074_v47 = vrot.slane %v4197_v39, %v10734_v51  ;;  %v5079_v49 = vrot.slane %v4198_v40, %v10744_v60  ;;  %v3376_v50 = vpack.c.bf16 %v2060_v43, %v2057_v44  ;;  %v2289_v43 = vsel %vm1796_vm0, %v1448_v31, 0.0 }
 0x1e2   : > { %v5075_v55 = vsel %vm4657_vm4, %v5074_v47, %v5070_v41  ;;  %v4199_v57 = vunpack.c.l.b16 %v3376_v50  ;;  %v4200_v58 = vunpack.c.h.b16 %v3376_v50  ;;  %2275 = vadd.xlane.f32.xlu1 %v2274_v45  ;;  %2272 = vadd.xlane.f32.xlu0 %v2271_v46  ;;  %v2292_v41 = vsel %vm1796_vm0, %v1449_v30, 0.0  ;;  %v1451_v47 = vld [vmem:[%s14278_s0 + $0x538] sm:$0xff] }
 0x1e3   : > { %v5080_v59 = vsel %vm14290_vm5, %v5079_v49, %v5075_v55  ;;  %v2066_v61 = vpop.xlane.xlu1 %2065  ;;  %v2063_v62 = vpop.xlane.xlu0 %2062  ;;  %v1450_v49 = vld [vmem:[%s14278_s0 + $0x530] sm:$0xff] }
 0x1e4   : > { %v5084_v4 = vrot.slane %v4199_v57, %v10761_v12  ;;  %v5089_v5 = vrot.slane %v4200_v58, %v10764_v13  ;;  %v3377_v6 = vpack.c.bf16 %v2066_v61, %v2063_v62  ;;  %v2295_v61 = vsel %vm1796_vm0, %v1450_v49, 0.0 }
 0x1e6   : > { %v5085_v10 = vsel %vm4671_vm6, %v5084_v4, %v5080_v59  ;;  %v4201_v11 = vunpack.c.l.b16 %v3377_v6  ;;  %v4202_v15 = vunpack.c.h.b16 %v3377_v6  ;;  %2281 = vadd.xlane.f32.xlu1 %v2280_v0  ;;  %2278 = vadd.xlane.f32.xlu0 %v2277_v1  ;;  %v2298_v59 = vsel %vm1796_vm0, %v1451_v47, 0.0  ;;  %v1453_v4 = vld [vmem:[%s14278_s0 + $0x548] sm:$0xff] }
 0x1e7   : > { %v5090_v16 = vsel %vm4678_vm7, %v5089_v5, %v5085_v10  ;;  %v2072_v17 = vpop.xlane.xlu1 %2071  ;;  %v2069_v18 = vpop.xlane.xlu0 %2068  ;;  %v1452_v5 = vld [vmem:[%s14278_s0 + $0x540] sm:$0xff] }
 0x1e8   : > { %v5094_v23 = vrot.slane %v4201_v11, %v10770_v21  ;;  %v5099_v25 = vrot.slane %v4202_v15, %v10778_v27  ;;  %v3378_v26 = vpack.c.bf16 %v2072_v17, %v2069_v18  ;;  %v2301_v17 = vsel %vm1796_vm0, %v1452_v5, 0.0 }
 0x1ea   : > { %v5095_v33 = vsel %vm4685_vm8, %v5094_v23, %v5090_v16  ;;  %v4203_v34 = vunpack.c.l.b16 %v3378_v26  ;;  %v4204_v35 = vunpack.c.h.b16 %v3378_v26  ;;  %2287 = vadd.xlane.f32.xlu1 %v2286_v20  ;;  %2284 = vadd.xlane.f32.xlu0 %v2283_v22  ;;  %v2304_v16 = vsel %vm1796_vm0, %v1453_v4, 0.0  ;;  %v1455_v23 = vld [vmem:[%s14278_s0 + $0x558] sm:$0xff] }
 0x1eb   : > { %v5100_v37 = vsel %vm4692_vm9, %v5099_v25, %v5095_v33  ;;  %v2078_v39 = vpop.xlane.xlu1 %2077  ;;  %v2075_v40 = vpop.xlane.xlu0 %2074  ;;  %v1454_v25 = vld [vmem:[%s14278_s0 + $0x550] sm:$0xff] }
 0x1ec   : > { %v5104_v44 = vrot.slane %v4203_v34, %v10796_v48  ;;  %v5109_v45 = vrot.slane %v4204_v35, %v10806_v56  ;;  %v3379_v46 = vpack.c.bf16 %v2078_v39, %v2075_v40  ;;  %v2310_v34 = vsel %vm1796_vm0, %v1455_v23, 0.0  ;;  %v1457_v40 = vld [vmem:[%s14278_s0 + $0x568] sm:$0xff] }
 0x1ed   : > { %v2307_v35 = vsel %vm1796_vm0, %v1454_v25, 0.0 }
 0x1ee   : > { %v5105_v50 = vsel %vm4699_vm10, %v5104_v44, %v5100_v37  ;;  %v4205_v52 = vunpack.c.l.b16 %v3379_v46  ;;  %v4206_v54 = vunpack.c.h.b16 %v3379_v46  ;;  %2293 = vadd.xlane.f32.xlu1 %v2292_v41  ;;  %2290 = vadd.xlane.f32.xlu0 %v2289_v43  ;;  %v1456_v41 = vld [vmem:[%s14278_s0 + $0x560] sm:$0xff] }
 0x1ef   : > { %v5110_v55 = vsel %vm4706_vm11, %v5109_v45, %v5105_v50  ;;  %v2084_v57 = vpop.xlane.xlu1 %2083  ;;  %v2081_v58 = vpop.xlane.xlu0 %2080 }
 0x1f0   : > { %v5114_v62 = vrot.slane %v4205_v52, %v10813_v2  ;;  %v5119_v0 = vrot.slane %v4206_v54, %v10816_v3  ;;  %v3380_v1 = vpack.c.bf16 %v2084_v57, %v2081_v58  ;;  %v2316_v52 = vsel %vm1796_vm0, %v1457_v40, 0.0  ;;  %v1462_v40 = vld [vmem:[%s14278_s0 + $0x590] sm:$0xff] }
 0x1f1   : > { %v2313_v54 = vsel %vm1796_vm0, %v1456_v41, 0.0 }
 0x1f2   : > { %v5115_v6 = vsel %vm4713_vm12, %v5114_v62, %v5110_v55  ;;  %v4207_v7 = vunpack.c.l.b16 %v3380_v1  ;;  %v4208_v9 = vunpack.c.h.b16 %v3380_v1  ;;  %2299 = vadd.xlane.f32.xlu1 %v2298_v59  ;;  %2296 = vadd.xlane.f32.xlu0 %v2295_v61  ;;  %v1459_v59 = vld [vmem:[%s14278_s0 + $0x578] sm:$0xff]  ;;  %v1458_v61 = vld [vmem:[%s14278_s0 + $0x570] sm:$0xff] }
 0x1f3   : > { %v5120_v10 = vsel %vm4720_vm13, %v5119_v0, %v5115_v6  ;;  %v2090_v11 = vpop.xlane.xlu1 %2089  ;;  %v2087_v15 = vpop.xlane.xlu0 %2086 }
 0x1f4   : > { %v5124_v18 = vrot.slane %v4207_v7, %v10831_v19  ;;  %v5129_v20 = vrot.slane %v4208_v9, %v10838_v28  ;;  %v3381_v22 = vpack.c.bf16 %v2090_v11, %v2087_v15  ;;  %v2322_v9 = vsel %vm1796_vm0, %v1459_v59, 0.0  ;;  %v1464_v59 = vld [vmem:[%s14278_s0 + $0x5a0] sm:$0xff] }
 0x1f6   : > { %v4209_v26 = vunpack.c.l.b16 %v3381_v22  ;;  %v4210_v30 = vunpack.c.h.b16 %v3381_v22  ;;  %2305 = vadd.xlane.f32.xlu1 %v2304_v16  ;;  %2302 = vadd.xlane.f32.xlu0 %v2301_v17  ;;  %v5125_v37 = vsel %vm4727_vm14, %v5124_v18, %v5120_v10  ;;  %v2319_v10 = vsel %vm1796_vm0, %v1458_v61, 0.0  ;;  %v1461_v17 = vld [vmem:[%s14278_s0 + $0x588] sm:$0xff]  ;;  %v1460_v18 = vld [vmem:[%s14278_s0 + $0x580] sm:$0xff] }
 0x1f7   : > { %v2096_v31 = vpop.xlane.xlu1 %2095  ;;  %v2093_v33 = vpop.xlane.xlu0 %2092  ;;  %v11353_v43 = vsel %vm4734_vm15, %v5129_v20, %v5125_v37 }
 0x1f8   : > { %v3382_v39 = vpack.c.bf16 %v2096_v31, %v2093_v33  ;;  %14301 = vst [vmem:[#allocation13_spill] sm:$0xff] %v11353_v43  ;;  %v5134_v44 = vrot.slane %v4209_v26, %v10707_v32  ;;  %v5138_v45 = vrot.slane %v4210_v30, %v10715_v38  ;;  %v2328_v31 = vsel %vm1796_vm0, %v1461_v17, 0.0 }
 0x1f9   : > { %v2325_v33 = vsel %vm1796_vm0, %v1460_v18, 0.0 }
 0x1fa   : > { %v4211_v46 = vunpack.c.l.b16 %v3382_v39  ;;  %v4212_v47 = vunpack.c.h.b16 %v3382_v39  ;;  %2311 = vadd.xlane.f32.xlu1 %v2310_v34  ;;  %2308 = vadd.xlane.f32.xlu0 %v2307_v35  ;;  %v5139_v62 = vsel %vm4636_vm1, %v5138_v45, %v5134_v44  ;;  %v1463_v39 = vld [vmem:[%s14278_s0 + $0x598] sm:$0xff] }
 0x1fb   : > { %v2102_v49 = vpop.xlane.xlu1 %2101  ;;  %v2099_v50 = vpop.xlane.xlu0 %2098 }
 0x1fc   : > { %v5143_v55 = vrot.slane %v4211_v46, %v10712_v36  ;;  %v5148_v57 = vrot.slane %v4212_v47, %v10724_v42  ;;  %v3383_v58 = vpack.c.bf16 %v2102_v49, %v2099_v50  ;;  %v2334_v50 = vsel %vm1796_vm0, %v1463_v39, 0.0 }
 0x1fe   : > { %v5144_v0 = vsel %vm4643_vm2, %v5143_v55, %v5139_v62  ;;  %v4213_v1 = vunpack.c.l.b16 %v3383_v58  ;;  %v4214_v4 = vunpack.c.h.b16 %v3383_v58  ;;  %2317 = vadd.xlane.f32.xlu1 %v2316_v52  ;;  %2314 = vadd.xlane.f32.xlu0 %v2313_v54  ;;  %v2331_v52 = vsel %vm1796_vm0, %v1462_v40, 0.0  ;;  %v1465_v58 = vld [vmem:[%s14278_s0 + $0x5a8] sm:$0xff] }
 0x1ff   : > { %v5149_v5 = vsel %vm4650_vm3, %v5148_v57, %v5144_v0  ;;  %v2108_v6 = vpop.xlane.xlu1 %2107  ;;  %v2105_v7 = vpop.xlane.xlu0 %2104 }
 0x200   : > { %v5153_v11 = vrot.slane %v4213_v1, %v10734_v51  ;;  %v5158_v15 = vrot.slane %v4214_v4, %v10744_v60  ;;  %v3384_v16 = vpack.c.bf16 %v2108_v6, %v2105_v7  ;;  %v2340_v6 = vsel %vm1796_vm0, %v1465_v58, 0.0 }
 0x201   : > { %v2337_v7 = vsel %vm1796_vm0, %v1464_v59, 0.0 }
 0x202   : > { %v5154_v20 = vsel %vm4657_vm4, %v5153_v11, %v5149_v5  ;;  %v4215_v22 = vunpack.c.l.b16 %v3384_v16  ;;  %v4216_v23 = vunpack.c.h.b16 %v3384_v16  ;;  %2323 = vadd.xlane.f32.xlu1 %v2322_v9  ;;  %2320 = vadd.xlane.f32.xlu0 %v2319_v10  ;;  %v1466_v16 = vld [vmem:[%s14278_s0 + $0x5b0] sm:$0xff] }
 0x203   : > { %v5159_v25 = vsel %vm14290_vm5, %v5158_v15, %v5154_v20  ;;  %v2114_v26 = vpop.xlane.xlu1 %2113  ;;  %v2111_v30 = vpop.xlane.xlu0 %2110  ;;  %v1467_v15 = vld [vmem:[%s14278_s0 + $0x5b8] sm:$0xff] }
 0x204   : > { %v5163_v34 = vrot.slane %v4215_v22, %v10761_v12  ;;  %v5168_v35 = vrot.slane %v4216_v23, %v10764_v13  ;;  %v3385_v37 = vpack.c.bf16 %v2114_v26, %v2111_v30  ;;  %v2346_v26 = vsel %vm1796_vm0, %v1467_v15, 0.0 }
 0x205   : > { %v2343_v30 = vsel %vm1796_vm0, %v1466_v16, 0.0 }
 0x206   : > { %v5164_v41 = vsel %vm4671_vm6, %v5163_v34, %v5159_v25  ;;  %v4217_v44 = vunpack.c.l.b16 %v3385_v37  ;;  %v4218_v45 = vunpack.c.h.b16 %v3385_v37  ;;  %2329 = vadd.xlane.f32.xlu1 %v2328_v31  ;;  %2326 = vadd.xlane.f32.xlu0 %v2325_v33  ;;  %v1468_v37 = vld [vmem:[%s14278_s0 + $0x5c0] sm:$0xff] }
 0x207   : > { %v5169_v46 = vsel %vm4678_vm7, %v5168_v35, %v5164_v41  ;;  %v2120_v47 = vpop.xlane.xlu1 %2119  ;;  %v2117_v49 = vpop.xlane.xlu0 %2116  ;;  %v1469_v35 = vld [vmem:[%s14278_s0 + $0x5c8] sm:$0xff] }
 0x208   : > { %v5173_v54 = vrot.slane %v4217_v44, %v10770_v21  ;;  %v5178_v55 = vrot.slane %v4218_v45, %v10778_v27  ;;  %v3386_v57 = vpack.c.bf16 %v2120_v47, %v2117_v49  ;;  %v2352_v47 = vsel %vm1796_vm0, %v1469_v35, 0.0 }
 0x209   : > { %v2349_v49 = vsel %vm1796_vm0, %v1468_v37, 0.0 }
 0x20a   : > { %v5174_v61 = vsel %vm4685_vm8, %v5173_v54, %v5169_v46  ;;  %v4219_v62 = vunpack.c.l.b16 %v3386_v57  ;;  %v4220_v0 = vunpack.c.h.b16 %v3386_v57  ;;  %2335 = vadd.xlane.f32.xlu1 %v2334_v50  ;;  %2332 = vadd.xlane.f32.xlu0 %v2331_v52  ;;  %v1470_v57 = vld [vmem:[%s14278_s0 + $0x5d0] sm:$0xff] }
 0x20b   : > { %v5179_v1 = vsel %vm4692_vm9, %v5178_v55, %v5174_v61  ;;  %v2126_v4 = vpop.xlane.xlu1 %2125  ;;  %v2123_v5 = vpop.xlane.xlu0 %2122  ;;  %v1471_v55 = vld [vmem:[%s14278_s0 + $0x5d8] sm:$0xff] }
 0x20c   : > { %v5183_v9 = vrot.slane %v4219_v62, %v10796_v48  ;;  %v5188_v10 = vrot.slane %v4220_v0, %v10806_v56  ;;  %v3387_v11 = vpack.c.bf16 %v2126_v4, %v2123_v5  ;;  %v2355_v4 = vsel %vm1796_vm0, %v1470_v57, 0.0 }
 0x20e   : > { %v5184_v17 = vsel %vm4699_vm10, %v5183_v9, %v5179_v1  ;;  %v4221_v18 = vunpack.c.l.b16 %v3387_v11  ;;  %v4222_v20 = vunpack.c.h.b16 %v3387_v11  ;;  %2341 = vadd.xlane.f32.xlu1 %v2340_v6  ;;  %2338 = vadd.xlane.f32.xlu0 %v2337_v7  ;;  %v2358_v1 = vsel %vm1796_vm0, %v1471_v55, 0.0  ;;  %v1473_v7 = vld [vmem:[%s14278_s0 + $0x5e8] sm:$0xff]  ;;  %v1472_v9 = vld [vmem:[%s14278_s0 + $0x5e0] sm:$0xff] }
 0x20f   : > { %v5189_v22 = vsel %vm4706_vm11, %v5188_v10, %v5184_v17  ;;  %v2132_v23 = vpop.xlane.xlu1 %2131  ;;  %v2129_v25 = vpop.xlane.xlu0 %2128 }
 0x210   : > { %v5193_v31 = vrot.slane %v4221_v18, %v10813_v2  ;;  %v5198_v33 = vrot.slane %v4222_v20, %v10816_v3  ;;  %v3388_v34 = vpack.c.bf16 %v2132_v23, %v2129_v25  ;;  %v2364_v20 = vsel %vm1796_vm0, %v1473_v7, 0.0  ;;  %v1479_v7 = vld [vmem:[%s14278_s0 + $0x618] sm:$0xff] }
 0x212   : > { %v5194_v39 = vsel %vm4713_vm12, %v5193_v31, %v5189_v22  ;;  %v4223_v40 = vunpack.c.l.b16 %v3388_v34  ;;  %v4224_v41 = vunpack.c.h.b16 %v3388_v34  ;;  %2347 = vadd.xlane.f32.xlu1 %v2346_v26  ;;  %2344 = vadd.xlane.f32.xlu0 %v2343_v30  ;;  %v2361_v22 = vsel %vm1796_vm0, %v1472_v9, 0.0  ;;  %v1475_v30 = vld [vmem:[%s14278_s0 + $0x5f8] sm:$0xff]  ;;  %v1474_v31 = vld [vmem:[%s14278_s0 + $0x5f0] sm:$0xff] }
 0x213   : > { %v5199_v44 = vsel %vm4720_vm13, %v5198_v33, %v5194_v39  ;;  %v2138_v45 = vpop.xlane.xlu1 %2137  ;;  %v2135_v46 = vpop.xlane.xlu0 %2134  ;;  %v1478_v9 = vld [vmem:[%s14278_s0 + $0x610] sm:$0xff] }
 0x214   : > { %v5203_v50 = vrot.slane %v4223_v40, %v10831_v19  ;;  %v5208_v52 = vrot.slane %v4224_v41, %v10838_v28  ;;  %v3389_v54 = vpack.c.bf16 %v2138_v45, %v2135_v46  ;;  %v2367_v45 = vsel %vm1796_vm0, %v1474_v31, 0.0  ;;  %v1480_v31 = vld [vmem:[%s14278_s0 + $0x620] sm:$0xff] }
 0x216   : > { %v5204_v58 = vsel %vm4727_vm14, %v5203_v50, %v5199_v44  ;;  %v4225_v59 = vunpack.c.l.b16 %v3389_v54  ;;  %v4226_v61 = vunpack.c.h.b16 %v3389_v54  ;;  %2353 = vadd.xlane.f32.xlu1 %v2352_v47  ;;  %2350 = vadd.xlane.f32.xlu0 %v2349_v49  ;;  %v2370_v44 = vsel %vm1796_vm0, %v1475_v30, 0.0  ;;  %v1477_v50 = vld [vmem:[%s14278_s0 + $0x608] sm:$0xff] }
 0x217   : > { %v2144_v62 = vpop.xlane.xlu1 %2143  ;;  %v2141_v0 = vpop.xlane.xlu0 %2140  ;;  %v11444_v5 = vsel %vm4734_vm15, %v5208_v52, %v5204_v58  ;;  %v1476_v52 = vld [vmem:[%s14278_s0 + $0x600] sm:$0xff]  ;;  %v1481_v30 = vld [vmem:[%s14278_s0 + $0x628] sm:$0xff] }
 0x218   : > { %14302 = vst [vmem:[#allocation14_spill] sm:$0xff] %v11444_v5  ;;  %v3390_v6 = vpack.c.bf16 %v2144_v62, %v2141_v0  ;;  %v5213_v10 = vrot.slane %v4225_v59, %v10707_v32  ;;  %v5217_v11 = vrot.slane %v4226_v61, %v10715_v38  ;;  %v2376_v62 = vsel %vm1796_vm0, %v1477_v50, 0.0  ;;  %v1482_v50 = vld [vmem:[%s14278_s0 + $0x630] sm:$0xff] }
 0x219   : > { %v2373_v0 = vsel %vm1796_vm0, %v1476_v52, 0.0 }
 0x21a   : > { %v4227_v15 = vunpack.c.l.b16 %v3390_v6  ;;  %v4228_v16 = vunpack.c.h.b16 %v3390_v6  ;;  %2359 = vadd.xlane.f32.xlu1 %v2358_v1  ;;  %2356 = vadd.xlane.f32.xlu0 %v2355_v4  ;;  %v5218_v33 = vsel %vm4636_vm1, %v5217_v11, %v5213_v10 }
 0x21b   : > { %v2150_v17 = vpop.xlane.xlu1 %2149  ;;  %v2147_v18 = vpop.xlane.xlu0 %2146 }
 0x21c   : > { %v5222_v23 = vrot.slane %v4227_v15, %v10712_v36  ;;  %v5227_v25 = vrot.slane %v4228_v16, %v10724_v42  ;;  %v3391_v26 = vpack.c.bf16 %v2150_v17, %v2147_v18 }
 0x21e   : > { %v5223_v34 = vsel %vm4643_vm2, %v5222_v23, %v5218_v33  ;;  %v4229_v35 = vunpack.c.l.b16 %v3391_v26  ;;  %v4230_v37 = vunpack.c.h.b16 %v3391_v26  ;;  %2365 = vadd.xlane.f32.xlu1 %v2364_v20  ;;  %2362 = vadd.xlane.f32.xlu0 %v2361_v22  ;;  %v2382_v20 = vsel %vm1796_vm0, %v1479_v7, 0.0  ;;  %v1484_v7 = vld [vmem:[%s14278_s0 + $0x640] sm:$0xff] }
 0x21f   : > { %v5228_v39 = vsel %vm4650_vm3, %v5227_v25, %v5223_v34  ;;  %v2156_v40 = vpop.xlane.xlu1 %2155  ;;  %v2153_v41 = vpop.xlane.xlu0 %2152  ;;  %v2379_v22 = vsel %vm1796_vm0, %v1478_v9, 0.0 }
 0x220   : > { %v5232_v46 = vrot.slane %v4229_v35, %v10734_v51  ;;  %v5237_v47 = vrot.slane %v4230_v37, %v10744_v60  ;;  %v3392_v49 = vpack.c.bf16 %v2156_v40, %v2153_v41  ;;  %v2388_v41 = vsel %vm1796_vm0, %v1481_v30, 0.0  ;;  %v1486_v30 = vld [vmem:[%s14278_s0 + $0x650] sm:$0xff] }
 0x222   : > { %v5233_v54 = vsel %vm4657_vm4, %v5232_v46, %v5228_v39  ;;  %v4231_v55 = vunpack.c.l.b16 %v3392_v49  ;;  %v4232_v57 = vunpack.c.h.b16 %v3392_v49  ;;  %2371 = vadd.xlane.f32.xlu1 %v2370_v44  ;;  %2368 = vadd.xlane.f32.xlu0 %v2367_v45  ;;  %v2385_v44 = vsel %vm1796_vm0, %v1480_v31, 0.0  ;;  %v1483_v49 = vld [vmem:[%s14278_s0 + $0x638] sm:$0xff] }
 0x223   : > { %v5238_v58 = vsel %vm14290_vm5, %v5237_v47, %v5233_v54  ;;  %v2162_v59 = vpop.xlane.xlu1 %2161  ;;  %v2159_v61 = vpop.xlane.xlu0 %2158 }
 0x224   : > { %v5242_v1 = vrot.slane %v4231_v55, %v10761_v12  ;;  %v5247_v4 = vrot.slane %v4232_v57, %v10764_v13  ;;  %v3393_v6 = vpack.c.bf16 %v2162_v59, %v2159_v61  ;;  %v2394_v61 = vsel %vm1796_vm0, %v1483_v49, 0.0 }
 0x226   : > { %v5243_v10 = vsel %vm4671_vm6, %v5242_v1, %v5238_v58  ;;  %v4233_v11 = vunpack.c.l.b16 %v3393_v6  ;;  %v4234_v15 = vunpack.c.h.b16 %v3393_v6  ;;  %2377 = vadd.xlane.f32.xlu1 %v2376_v62  ;;  %2374 = vadd.xlane.f32.xlu0 %v2373_v0  ;;  %v2391_v62 = vsel %vm1796_vm0, %v1482_v50, 0.0  ;;  %v1485_v6 = vld [vmem:[%s14278_s0 + $0x648] sm:$0xff] }
 0x227   : > { %v5248_v16 = vsel %vm4678_vm7, %v5247_v4, %v5243_v10  ;;  %v2168_v17 = vpop.xlane.xlu1 %2167  ;;  %v2165_v18 = vpop.xlane.xlu0 %2164 }
 0x228   : > { %v5252_v23 = vrot.slane %v4233_v11, %v10770_v21  ;;  %v5257_v25 = vrot.slane %v4234_v15, %v10778_v27  ;;  %v3394_v26 = vpack.c.bf16 %v2168_v17, %v2165_v18  ;;  %v2400_v18 = vsel %vm1796_vm0, %v1485_v6, 0.0 }
 0x22a   : > { %v5253_v33 = vsel %vm4685_vm8, %v5252_v23, %v5248_v16  ;;  %v4235_v34 = vunpack.c.l.b16 %v3394_v26  ;;  %v4236_v35 = vunpack.c.h.b16 %v3394_v26  ;;  %2383 = vadd.xlane.f32.xlu1 %v2382_v20  ;;  %2380 = vadd.xlane.f32.xlu0 %v2379_v22  ;;  %v2397_v20 = vsel %vm1796_vm0, %v1484_v7, 0.0  ;;  %v1487_v26 = vld [vmem:[%s14278_s0 + $0x658] sm:$0xff] }
 0x22b   : > { %v5258_v37 = vsel %vm4692_vm9, %v5257_v25, %v5253_v33  ;;  %v2174_v39 = vpop.xlane.xlu1 %2173  ;;  %v2171_v40 = vpop.xlane.xlu0 %2170 }
 0x22c   : > { %v5262_v45 = vrot.slane %v4235_v34, %v10796_v48  ;;  %v5267_v46 = vrot.slane %v4236_v35, %v10806_v56  ;;  %v3395_v47 = vpack.c.bf16 %v2174_v39, %v2171_v40  ;;  %v2403_v39 = vsel %vm1796_vm0, %v1486_v30, 0.0 }
 0x22e   : > { %v5263_v52 = vsel %vm4699_vm10, %v5262_v45, %v5258_v37  ;;  %v4237_v54 = vunpack.c.l.b16 %v3395_v47  ;;  %v4238_v55 = vunpack.c.h.b16 %v3395_v47  ;;  %2389 = vadd.xlane.f32.xlu1 %v2388_v41  ;;  %2386 = vadd.xlane.f32.xlu0 %v2385_v44  ;;  %v2406_v37 = vsel %vm1796_vm0, %v1487_v26, 0.0  ;;  %v1489_v44 = vld [vmem:[%s14278_s0 + $0x668] sm:$0xff]  ;;  %v1488_v45 = vld [vmem:[%s14278_s0 + $0x660] sm:$0xff] }
 0x22f   : > { %v5268_v57 = vsel %vm4706_vm11, %v5267_v46, %v5263_v52  ;;  %v2180_v58 = vpop.xlane.xlu1 %2179  ;;  %v2177_v59 = vpop.xlane.xlu0 %2176 }
 0x230   : > { %v5272_v0 = vrot.slane %v4237_v54, %v10813_v2  ;;  %v5277_v1 = vrot.slane %v4238_v55, %v10816_v3  ;;  %v3396_v4 = vpack.c.bf16 %v2180_v58, %v2177_v59  ;;  %v2409_v58 = vsel %vm1796_vm0, %v1488_v45, 0.0  ;;  %v1495_v45 = vld [vmem:[%s14278_s0 + $0x698] sm:$0xff] }
 0x232   : > { %v5273_v9 = vsel %vm4713_vm12, %v5272_v0, %v5268_v57  ;;  %v4239_v10 = vunpack.c.l.b16 %v3396_v4  ;;  %v4240_v11 = vunpack.c.h.b16 %v3396_v4  ;;  %2395 = vadd.xlane.f32.xlu1 %v2394_v61  ;;  %2392 = vadd.xlane.f32.xlu0 %v2391_v62  ;;  %v2412_v57 = vsel %vm1796_vm0, %v1489_v44, 0.0  ;;  %v1491_v0 = vld [vmem:[%s14278_s0 + $0x678] sm:$0xff] }
 0x233   : > { %v5278_v15 = vsel %vm4720_vm13, %v5277_v1, %v5273_v9  ;;  %v2186_v16 = vpop.xlane.xlu1 %2185  ;;  %v2183_v17 = vpop.xlane.xlu0 %2182  ;;  %v1490_v1 = vld [vmem:[%s14278_s0 + $0x670] sm:$0xff] }
 0x234   : > { %v5282_v22 = vrot.slane %v4239_v10, %v10831_v19  ;;  %v5287_v23 = vrot.slane %v4240_v11, %v10838_v28  ;;  %v3397_v25 = vpack.c.bf16 %v2186_v16, %v2183_v17  ;;  %v2418_v16 = vsel %vm1796_vm0, %v1491_v0, 0.0 }
 0x235   : > { %v2415_v17 = vsel %vm1796_vm0, %v1490_v1, 0.0  ;;  %v1497_v1 = vld [vmem:[%s14278_s0 + $0x6a8] sm:$0xff] }
 0x236   : > { %v4241_v31 = vunpack.c.l.b16 %v3397_v25  ;;  %v4242_v33 = vunpack.c.h.b16 %v3397_v25  ;;  %2401 = vadd.xlane.f32.xlu1 %v2400_v18  ;;  %2398 = vadd.xlane.f32.xlu0 %v2397_v20  ;;  %v5283_v40 = vsel %vm4727_vm14, %v5282_v22, %v5278_v15  ;;  %v1492_v25 = vld [vmem:[%s14278_s0 + $0x680] sm:$0xff] }
 0x237   : > { %v2192_v34 = vpop.xlane.xlu1 %2191  ;;  %v2189_v35 = vpop.xlane.xlu0 %2188  ;;  %v11547_v46 = vsel %vm4734_vm15, %v5287_v23, %v5283_v40  ;;  %v1493_v23 = vld [vmem:[%s14278_s0 + $0x688] sm:$0xff] }
 0x238   : > { %v3398_v41 = vpack.c.bf16 %v2192_v34, %v2189_v35  ;;  %14303 = vst [vmem:[#allocation15_spill] sm:$0xff] %v11547_v46  ;;  %v5292_v47 = vrot.slane %v4241_v31, %v10707_v32  ;;  %v5296_v49 = vrot.slane %v4242_v33, %v10715_v38  ;;  %v1712_v46 = vld [vmem:[%s14278_s0 + $0xd60] sm:$0xff] }
 0x239   : > { %v12704_v53 = vsel %vm1796_vm0, %v1712_v46, 0.0  ;;  %v1715_v46 = vld [vmem:[%s14278_s0 + $0xd78] sm:$0xff] }
 0x23a   : > { %v4243_v50 = vunpack.c.l.b16 %v3398_v41  ;;  %v4244_v52 = vunpack.c.h.b16 %v3398_v41  ;;  %2407 = vadd.xlane.f32.xlu1 %v2406_v37  ;;  %2404 = vadd.xlane.f32.xlu0 %v2403_v39  ;;  %v5297_v4 = vsel %vm4636_vm1, %v5296_v49, %v5292_v47  ;;  %v2424_v37 = vsel %vm1796_vm0, %v1493_v23, 0.0  ;;  %v1494_v47 = vld [vmem:[%s14278_s0 + $0x690] sm:$0xff]  ;;  %v1499_v23 = vld [vmem:[%s14278_s0 + $0x6b8] sm:$0xff] }
 0x23b   : > { %v2198_v54 = vpop.xlane.xlu1 %2197  ;;  %v2195_v55 = vpop.xlane.xlu0 %2194  ;;  %v2421_v39 = vsel %vm1796_vm0, %v1492_v25, 0.0  ;;  %v1498_v25 = vld [vmem:[%s14278_s0 + $0x6b0] sm:$0xff] }
 0x23c   : > { %v5301_v59 = vrot.slane %v4243_v50, %v10712_v36  ;;  %v5306_v61 = vrot.slane %v4244_v52, %v10724_v42  ;;  %v3399_v62 = vpack.c.bf16 %v2198_v54, %v2195_v55 }
 0x23e   : > { %v5302_v6 = vsel %vm4643_vm2, %v5301_v59, %v5297_v4  ;;  %v4245_v7 = vunpack.c.l.b16 %v3399_v62  ;;  %v4246_v9 = vunpack.c.h.b16 %v3399_v62  ;;  %2413 = vadd.xlane.f32.xlu1 %v2412_v57  ;;  %2410 = vadd.xlane.f32.xlu0 %v2409_v58  ;;  %v2430_v58 = vsel %vm1796_vm0, %v1495_v45, 0.0  ;;  %v1496_v4 = vld [vmem:[%s14278_s0 + $0x6a0] sm:$0xff]  ;;  %v1501_v45 = vld [vmem:[%s14278_s0 + $0x6c8] sm:$0xff] }
 0x23f   : > { %v5307_v10 = vsel %vm4650_vm3, %v5306_v61, %v5302_v6  ;;  %v2204_v11 = vpop.xlane.xlu1 %2203  ;;  %v2201_v15 = vpop.xlane.xlu0 %2200  ;;  %v2427_v59 = vsel %vm1796_vm0, %v1494_v47, 0.0  ;;  %v1500_v47 = vld [vmem:[%s14278_s0 + $0x6c0] sm:$0xff] }
 0x240   : > { %v5311_v18 = vrot.slane %v4245_v7, %v10734_v51  ;;  %v5316_v20 = vrot.slane %v4246_v9, %v10744_v60  ;;  %v3400_v22 = vpack.c.bf16 %v2204_v11, %v2201_v15 }
 0x242   : > { %v5312_v26 = vsel %vm4657_vm4, %v5311_v18, %v5307_v10  ;;  %v4247_v30 = vunpack.c.l.b16 %v3400_v22  ;;  %v4248_v31 = vunpack.c.h.b16 %v3400_v22  ;;  %2419 = vadd.xlane.f32.xlu1 %v2418_v16  ;;  %2416 = vadd.xlane.f32.xlu0 %v2415_v17  ;;  %v2436_v16 = vsel %vm1796_vm0, %v1497_v1, 0.0  ;;  %v1503_v1 = vld [vmem:[%s14278_s0 + $0x6d8] sm:$0xff] }
 0x243   : > { %v5317_v33 = vsel %vm14290_vm5, %v5316_v20, %v5312_v26  ;;  %v2210_v34 = vpop.xlane.xlu1 %2209  ;;  %v2207_v35 = vpop.xlane.xlu0 %2206  ;;  %v2433_v17 = vsel %vm1796_vm0, %v1496_v4, 0.0  ;;  %v1502_v4 = vld [vmem:[%s14278_s0 + $0x6d0] sm:$0xff] }
 0x244   : > { %v5321_v40 = vrot.slane %v4247_v30, %v10761_v12  ;;  %v5326_v41 = vrot.slane %v4248_v31, %v10764_v13  ;;  %v3401_v44 = vpack.c.bf16 %v2210_v34, %v2207_v35 }
 0x246   : > { %v5322_v49 = vsel %vm4671_vm6, %v5321_v40, %v5317_v33  ;;  %v4249_v50 = vunpack.c.l.b16 %v3401_v44  ;;  %v4250_v52 = vunpack.c.h.b16 %v3401_v44  ;;  %2425 = vadd.xlane.f32.xlu1 %v2424_v37  ;;  %2422 = vadd.xlane.f32.xlu0 %v2421_v39  ;;  %v2442_v37 = vsel %vm1796_vm0, %v1499_v23, 0.0 }
 0x247   : > { %v5327_v54 = vsel %vm4678_vm7, %v5326_v41, %v5322_v49  ;;  %v2216_v55 = vpop.xlane.xlu1 %2215  ;;  %v2213_v57 = vpop.xlane.xlu0 %2212  ;;  %v2439_v39 = vsel %vm1796_vm0, %v1498_v25, 0.0 }
 0x248   : > { %v5331_v61 = vrot.slane %v4249_v50, %v10770_v21  ;;  %v5336_v62 = vrot.slane %v4250_v52, %v10778_v27  ;;  %v3402_v0 = vpack.c.bf16 %v2216_v55, %v2213_v57 }
 0x24a   : > { %v5332_v6 = vsel %vm4685_vm8, %v5331_v61, %v5327_v54  ;;  %v4251_v7 = vunpack.c.l.b16 %v3402_v0  ;;  %v4252_v9 = vunpack.c.h.b16 %v3402_v0  ;;  %2431 = vadd.xlane.f32.xlu1 %v2430_v58  ;;  %2428 = vadd.xlane.f32.xlu0 %v2427_v59  ;;  %v2448_v58 = vsel %vm1796_vm0, %v1501_v45, 0.0 }
 0x24b   : > { %v5337_v10 = vsel %vm4692_vm9, %v5336_v62, %v5332_v6  ;;  %v2222_v11 = vpop.xlane.xlu1 %2221  ;;  %v2219_v15 = vpop.xlane.xlu0 %2218  ;;  %v2445_v59 = vsel %vm1796_vm0, %v1500_v47, 0.0 }
 0x24c   : > { %v5341_v18 = vrot.slane %v4251_v7, %v10796_v48  ;;  %v5346_v20 = vrot.slane %v4252_v9, %v10806_v56  ;;  %v3403_v22 = vpack.c.bf16 %v2222_v11, %v2219_v15  ;;  %v2454_v11 = vsel %vm1796_vm0, %v1503_v1, 0.0  ;;  %v1508_v1 = vld [vmem:[%s14278_s0 + $0x700] sm:$0xff] }
 0x24d   : > { %v2451_v15 = vsel %vm1796_vm0, %v1502_v4, 0.0 }
 0x24e   : > { %v5342_v26 = vsel %vm4699_vm10, %v5341_v18, %v5337_v10  ;;  %v4253_v30 = vunpack.c.l.b16 %v3403_v22  ;;  %v4254_v31 = vunpack.c.h.b16 %v3403_v22  ;;  %2437 = vadd.xlane.f32.xlu1 %v2436_v16  ;;  %2434 = vadd.xlane.f32.xlu0 %v2433_v17  ;;  %v1505_v18 = vld [vmem:[%s14278_s0 + $0x6e8] sm:$0xff] }
 0x24f   : > { %v5347_v33 = vsel %vm4706_vm11, %v5346_v20, %v5342_v26  ;;  %v2228_v34 = vpop.xlane.xlu1 %2227  ;;  %v2225_v35 = vpop.xlane.xlu0 %2224  ;;  %v1504_v20 = vld [vmem:[%s14278_s0 + $0x6e0] sm:$0xff] }
 0x250   : > { %v5351_v40 = vrot.slane %v4253_v30, %v10813_v2  ;;  %v5356_v41 = vrot.slane %v4254_v31, %v10816_v3  ;;  %v3404_v44 = vpack.c.bf16 %v2228_v34, %v2225_v35  ;;  %v2460_v34 = vsel %vm1796_vm0, %v1505_v18, 0.0 }
 0x251   : > { %v2457_v35 = vsel %vm1796_vm0, %v1504_v20, 0.0 }
 0x252   : > { %v5352_v49 = vsel %vm4713_vm12, %v5351_v40, %v5347_v33  ;;  %v4255_v50 = vunpack.c.l.b16 %v3404_v44  ;;  %v4256_v52 = vunpack.c.h.b16 %v3404_v44  ;;  %2443 = vadd.xlane.f32.xlu1 %v2442_v37  ;;  %2440 = vadd.xlane.f32.xlu0 %v2439_v39  ;;  %v1506_v44 = vld [vmem:[%s14278_s0 + $0x6f0] sm:$0xff] }
 0x253   : > { %v5357_v54 = vsel %vm4720_vm13, %v5356_v41, %v5352_v49  ;;  %v2234_v55 = vpop.xlane.xlu1 %2233  ;;  %v2231_v57 = vpop.xlane.xlu0 %2230  ;;  %v1507_v41 = vld [vmem:[%s14278_s0 + $0x6f8] sm:$0xff] }
 0x254   : > { %v5361_v61 = vrot.slane %v4255_v50, %v10831_v19  ;;  %v5366_v62 = vrot.slane %v4256_v52, %v10838_v28  ;;  %v3405_v0 = vpack.c.bf16 %v2234_v55, %v2231_v57  ;;  %v2466_v57 = vsel %vm1796_vm0, %v1507_v41, 0.0 }
 0x256   : > { %v4257_v6 = vunpack.c.l.b16 %v3405_v0  ;;  %v4258_v7 = vunpack.c.h.b16 %v3405_v0  ;;  %2449 = vadd.xlane.f32.xlu1 %v2448_v58  ;;  %2446 = vadd.xlane.f32.xlu0 %v2445_v59  ;;  %v5362_v16 = vsel %vm4727_vm14, %v5361_v61, %v5357_v54  ;;  %v2463_v58 = vsel %vm1796_vm0, %v1506_v44, 0.0  ;;  %v1509_v0 = vld [vmem:[%s14278_s0 + $0x708] sm:$0xff] }
 0x257   : > { %v2240_v9 = vpop.xlane.xlu1 %2239  ;;  %v2237_v10 = vpop.xlane.xlu0 %2236  ;;  %v11644_v22 = vsel %vm4734_vm15, %v5366_v62, %v5362_v16  ;;  %v2469_v16 = vsel %vm1796_vm0, %v1508_v1, 0.0  ;;  %v1515_v1 = vld [vmem:[%s14278_s0 + $0x738] sm:$0xff] }
 0x258   : > { %v3406_v17 = vpack.c.bf16 %v2240_v9, %v2237_v10  ;;  %v5371_v23 = vrot.slane %v4257_v6, %v10707_v32  ;;  %v5375_v25 = vrot.slane %v4258_v7, %v10715_v38 }
 0x25a   : > { %v4259_v26 = vunpack.c.l.b16 %v3406_v17  ;;  %v4260_v30 = vunpack.c.h.b16 %v3406_v17  ;;  %2455 = vadd.xlane.f32.xlu1 %v2454_v11  ;;  %2452 = vadd.xlane.f32.xlu0 %v2451_v15  ;;  %v5376_v45 = vsel %vm4636_vm1, %v5375_v25, %v5371_v23  ;;  %v2472_v15 = vsel %vm1796_vm0, %v1509_v0, 0.0  ;;  %v1511_v23 = vld [vmem:[%s14278_s0 + $0x718] sm:$0xff]  ;;  %v1510_v25 = vld [vmem:[%s14278_s0 + $0x710] sm:$0xff] }
 0x25b   : > { %v2246_v31 = vpop.xlane.xlu1 %2245  ;;  %v2243_v33 = vpop.xlane.xlu0 %2242 }
 0x25c   : > { %v5380_v37 = vrot.slane %v4259_v26, %v10712_v36  ;;  %v5385_v39 = vrot.slane %v4260_v30, %v10724_v42  ;;  %v3407_v40 = vpack.c.bf16 %v2246_v31, %v2243_v33 }
 0x25e   : > { %v5381_v47 = vsel %vm4643_vm2, %v5380_v37, %v5376_v45  ;;  %v4261_v49 = vunpack.c.l.b16 %v3407_v40  ;;  %v4262_v50 = vunpack.c.h.b16 %v3407_v40  ;;  %2461 = vadd.xlane.f32.xlu1 %v2460_v34  ;;  %2458 = vadd.xlane.f32.xlu0 %v2457_v35  ;;  %v2478_v37 = vsel %vm1796_vm0, %v1511_v23, 0.0  ;;  %v1513_v45 = vld [vmem:[%s14278_s0 + $0x728] sm:$0xff] }
 0x25f   : > { %v5386_v52 = vsel %vm4650_vm3, %v5385_v39, %v5381_v47  ;;  %v2252_v54 = vpop.xlane.xlu1 %2251  ;;  %v2249_v55 = vpop.xlane.xlu0 %2248  ;;  %v2475_v39 = vsel %vm1796_vm0, %v1510_v25, 0.0  ;;  %v1512_v47 = vld [vmem:[%s14278_s0 + $0x720] sm:$0xff]  ;;  %v1517_v25 = vld [vmem:[%s14278_s0 + $0x748] sm:$0xff] }
 0x260   : > { %v5390_v59 = vrot.slane %v4261_v49, %v10734_v51  ;;  %v5395_v61 = vrot.slane %v4262_v50, %v10744_v60  ;;  %v3408_v62 = vpack.c.bf16 %v2252_v54, %v2249_v55 }
 0x262   : > { %v5391_v4 = vsel %vm4657_vm4, %v5390_v59, %v5386_v52  ;;  %v4263_v6 = vunpack.c.l.b16 %v3408_v62  ;;  %v4264_v7 = vunpack.c.h.b16 %v3408_v62  ;;  %2467 = vadd.xlane.f32.xlu1 %v2466_v57  ;;  %2464 = vadd.xlane.f32.xlu0 %v2463_v58  ;;  %v2484_v58 = vsel %vm1796_vm0, %v1513_v45, 0.0  ;;  %v1519_v45 = vld [vmem:[%s14278_s0 + $0x758] sm:$0xff] }
 0x263   : > { %v5396_v9 = vsel %vm14290_vm5, %v5395_v61, %v5391_v4  ;;  %v2258_v10 = vpop.xlane.xlu1 %2257  ;;  %v2255_v11 = vpop.xlane.xlu0 %2254  ;;  %v2481_v59 = vsel %vm1796_vm0, %v1512_v47, 0.0  ;;  %v1514_v4 = vld [vmem:[%s14278_s0 + $0x730] sm:$0xff] }
 0x264   : > { %v5400_v17 = vrot.slane %v4263_v6, %v10761_v12  ;;  %v5405_v18 = vrot.slane %v4264_v7, %v10764_v13  ;;  %v3409_v20 = vpack.c.bf16 %v2258_v10, %v2255_v11  ;;  %v1518_v47 = vld [vmem:[%s14278_s0 + $0x750] sm:$0xff] }
 0x266   : > { %v5401_v26 = vsel %vm4671_vm6, %v5400_v17, %v5396_v9  ;;  %v4265_v30 = vunpack.c.l.b16 %v3409_v20  ;;  %v4266_v31 = vunpack.c.h.b16 %v3409_v20  ;;  %2473 = vadd.xlane.f32.xlu1 %v2472_v15  ;;  %2470 = vadd.xlane.f32.xlu0 %v2469_v16  ;;  %v2490_v16 = vsel %vm1796_vm0, %v1515_v1, 0.0 }
 0x267   : > { %v5406_v33 = vsel %vm4678_vm7, %v5405_v18, %v5401_v26  ;;  %v2264_v34 = vpop.xlane.xlu1 %2263  ;;  %v2261_v35 = vpop.xlane.xlu0 %2260  ;;  %v2487_v17 = vsel %vm1796_vm0, %v1514_v4, 0.0  ;;  %v1516_v26 = vld [vmem:[%s14278_s0 + $0x740] sm:$0xff] }
 0x268   : > { %v5410_v40 = vrot.slane %v4265_v30, %v10770_v21  ;;  %v5415_v41 = vrot.slane %v4266_v31, %v10778_v27  ;;  %v3410_v44 = vpack.c.bf16 %v2264_v34, %v2261_v35  ;;  %v2496_v35 = vsel %vm1796_vm0, %v1517_v25, 0.0  ;;  %v1522_v25 = vld [vmem:[%s14278_s0 + $0x770] sm:$0xff] }
 0x26a   : > { %v5411_v49 = vsel %vm4685_vm8, %v5410_v40, %v5406_v33  ;;  %v4267_v50 = vunpack.c.l.b16 %v3410_v44  ;;  %v4268_v52 = vunpack.c.h.b16 %v3410_v44  ;;  %2479 = vadd.xlane.f32.xlu1 %v2478_v37  ;;  %2476 = vadd.xlane.f32.xlu0 %v2475_v39  ;;  %v2493_v37 = vsel %vm1796_vm0, %v1516_v26, 0.0 }
 0x26b   : > { %v5416_v54 = vsel %vm4692_vm9, %v5415_v41, %v5411_v49  ;;  %v2270_v55 = vpop.xlane.xlu1 %2269  ;;  %v2267_v57 = vpop.xlane.xlu0 %2266 }
 0x26c   : > { %v5420_v61 = vrot.slane %v4267_v50, %v10796_v48  ;;  %v5425_v62 = vrot.slane %v4268_v52, %v10806_v56  ;;  %v3411_v0 = vpack.c.bf16 %v2270_v55, %v2267_v57  ;;  %v2502_v57 = vsel %vm1796_vm0, %v1519_v45, 0.0 }
 0x26e   : > { %v5421_v6 = vsel %vm4699_vm10, %v5420_v61, %v5416_v54  ;;  %v4269_v7 = vunpack.c.l.b16 %v3411_v0  ;;  %v4270_v9 = vunpack.c.h.b16 %v3411_v0  ;;  %2485 = vadd.xlane.f32.xlu1 %v2484_v58  ;;  %2482 = vadd.xlane.f32.xlu0 %v2481_v59  ;;  %v2499_v58 = vsel %vm1796_vm0, %v1518_v47, 0.0  ;;  %v1520_v0 = vld [vmem:[%s14278_s0 + $0x760] sm:$0xff]  ;;  %v1525_v47 = vld [vmem:[%s14278_s0 + $0x788] sm:$0xff] }
 0x26f   : > { %v5426_v10 = vsel %vm4706_vm11, %v5425_v62, %v5421_v6  ;;  %v2276_v11 = vpop.xlane.xlu1 %2275  ;;  %v2273_v15 = vpop.xlane.xlu0 %2272  ;;  %v1521_v62 = vld [vmem:[%s14278_s0 + $0x768] sm:$0xff] }
 0x270   : > { %v5430_v18 = vrot.slane %v4269_v7, %v10813_v2  ;;  %v5435_v20 = vrot.slane %v4270_v9, %v10816_v3  ;;  %v3412_v23 = vpack.c.bf16 %v2276_v11, %v2273_v15  ;;  %v2508_v15 = vsel %vm1796_vm0, %v1521_v62, 0.0 }
 0x272   : > { %v4271_v30 = vunpack.c.l.b16 %v3412_v23  ;;  %v4272_v31 = vunpack.c.h.b16 %v3412_v23  ;;  %2491 = vadd.xlane.f32.xlu1 %v2490_v16  ;;  %2488 = vadd.xlane.f32.xlu0 %v2487_v17  ;;  %v5431_v39 = vsel %vm4713_vm12, %v5430_v18, %v5426_v10  ;;  %v2505_v16 = vsel %vm1796_vm0, %v1520_v0, 0.0  ;;  %v1523_v23 = vld [vmem:[%s14278_s0 + $0x778] sm:$0xff] }
 0x273   : > { %v2282_v33 = vpop.xlane.xlu1 %2281  ;;  %v2279_v34 = vpop.xlane.xlu0 %2278  ;;  %v5436_v49 = vsel %vm4720_vm13, %v5435_v20, %v5431_v39  ;;  %v2514_v39 = vsel %vm1796_vm0, %v1523_v23, 0.0 }
 0x274   : > { %v5440_v40 = vrot.slane %v4271_v30, %v10831_v19  ;;  %v5445_v41 = vrot.slane %v4272_v31, %v10838_v28  ;;  %v3413_v44 = vpack.c.bf16 %v2282_v33, %v2279_v34 }
 0x276   : > { %v4273_v50 = vunpack.c.l.b16 %v3413_v44  ;;  %v4274_v52 = vunpack.c.h.b16 %v3413_v44  ;;  %2497 = vadd.xlane.f32.xlu1 %v2496_v35  ;;  %2494 = vadd.xlane.f32.xlu0 %v2493_v37  ;;  %v5441_v59 = vsel %vm4727_vm14, %v5440_v40, %v5436_v49  ;;  %v2511_v40 = vsel %vm1796_vm0, %v1522_v25, 0.0  ;;  %v1524_v49 = vld [vmem:[%s14278_s0 + $0x780] sm:$0xff] }
 0x277   : > { %v2288_v54 = vpop.xlane.xlu1 %2287  ;;  %v2285_v55 = vpop.xlane.xlu0 %2284  ;;  %v11741_v1 = vsel %vm4734_vm15, %v5445_v41, %v5441_v59  ;;  %v2520_v59 = vsel %vm1796_vm0, %v1525_v47, 0.0 }
 0x278   : > { %v3414_v61 = vpack.c.bf16 %v2288_v54, %v2285_v55  ;;  %v5450_v4 = vrot.slane %v4273_v50, %v10707_v32  ;;  %v5454_v6 = vrot.slane %v4274_v52, %v10715_v38 }
 0x27a   : > { %v4275_v7 = vunpack.c.l.b16 %v3414_v61  ;;  %v4276_v9 = vunpack.c.h.b16 %v3414_v61  ;;  %2503 = vadd.xlane.f32.xlu1 %v2502_v57  ;;  %2500 = vadd.xlane.f32.xlu0 %v2499_v58  ;;  %v5455_v26 = vsel %vm4636_vm1, %v5454_v6, %v5450_v4  ;;  %v2517_v61 = vsel %vm1796_vm0, %v1524_v49, 0.0  ;;  %v1527_v6 = vld [vmem:[%s14278_s0 + $0x798] sm:$0xff] }
 0x27b   : > { %v2294_v10 = vpop.xlane.xlu1 %2293  ;;  %v2291_v11 = vpop.xlane.xlu0 %2290 }
 0x27c   : > { %v5459_v17 = vrot.slane %v4275_v7, %v10712_v36  ;;  %v5464_v18 = vrot.slane %v4276_v9, %v10724_v42  ;;  %v3415_v20 = vpack.c.bf16 %v2294_v10, %v2291_v11  ;;  %v1526_v7 = vld [vmem:[%s14278_s0 + $0x790] sm:$0xff] }
 0x27e   : > { %v5460_v30 = vsel %vm4643_vm2, %v5459_v17, %v5455_v26  ;;  %v4277_v31 = vunpack.c.l.b16 %v3415_v20  ;;  %v4278_v33 = vunpack.c.h.b16 %v3415_v20  ;;  %2509 = vadd.xlane.f32.xlu1 %v2508_v15  ;;  %2506 = vadd.xlane.f32.xlu0 %v2505_v16  ;;  %v2523_v20 = vsel %vm1796_vm0, %v1526_v7, 0.0 }
 0x27f   : > { %v5465_v34 = vsel %vm4650_vm3, %v5464_v18, %v5460_v30  ;;  %v2300_v35 = vpop.xlane.xlu1 %2299  ;;  %v2297_v37 = vpop.xlane.xlu0 %2296  ;;  %v2526_v18 = vsel %vm1796_vm0, %v1527_v6, 0.0  ;;  %v1529_v30 = vld [vmem:[%s14278_s0 + $0x7a8] sm:$0xff] }
 0x280   : > { %v5469_v41 = vrot.slane %v4277_v31, %v10734_v51  ;;  %v5474_v44 = vrot.slane %v4278_v33, %v10744_v60  ;;  %v3416_v45 = vpack.c.bf16 %v2300_v35, %v2297_v37  ;;  %v1528_v31 = vld [vmem:[%s14278_s0 + $0x7a0] sm:$0xff] }
 0x282   : > { %v5470_v50 = vsel %vm4657_vm4, %v5469_v41, %v5465_v34  ;;  %v4279_v52 = vunpack.c.l.b16 %v3416_v45  ;;  %v4280_v54 = vunpack.c.h.b16 %v3416_v45  ;;  %2515 = vadd.xlane.f32.xlu1 %v2514_v39  ;;  %2512 = vadd.xlane.f32.xlu0 %v2511_v40  ;;  %v2532_v41 = vsel %vm1796_vm0, %v1529_v30, 0.0 }
 0x283   : > { %v5475_v55 = vsel %vm14290_vm5, %v5474_v44, %v5470_v50  ;;  %v2306_v57 = vpop.xlane.xlu1 %2305  ;;  %v2303_v58 = vpop.xlane.xlu0 %2302  ;;  %v2529_v44 = vsel %vm1796_vm0, %v1528_v31, 0.0  ;;  %v1531_v50 = vld [vmem:[%s14278_s0 + $0x7b8] sm:$0xff] }
 0x284   : > { %v5479_v62 = vrot.slane %v4279_v52, %v10761_v12  ;;  %v5484_v0 = vrot.slane %v4280_v54, %v10764_v13  ;;  %v3417_v4 = vpack.c.bf16 %v2306_v57, %v2303_v58  ;;  %v1530_v52 = vld [vmem:[%s14278_s0 + $0x7b0] sm:$0xff] }
 0x286   : > { %v5480_v9 = vsel %vm4671_vm6, %v5479_v62, %v5475_v55  ;;  %v4281_v10 = vunpack.c.l.b16 %v3417_v4  ;;  %v4282_v11 = vunpack.c.h.b16 %v3417_v4  ;;  %2521 = vadd.xlane.f32.xlu1 %v2520_v59  ;;  %2518 = vadd.xlane.f32.xlu0 %v2517_v61  ;;  %v2538_v62 = vsel %vm1796_vm0, %v1531_v50, 0.0  ;;  %v1537_v50 = vld [vmem:[%s14278_s0 + $0x7e8] sm:$0xff] }
 0x287   : > { %v5485_v15 = vsel %vm4678_vm7, %v5484_v0, %v5480_v9  ;;  %v2312_v16 = vpop.xlane.xlu1 %2311  ;;  %v2309_v17 = vpop.xlane.xlu0 %2308  ;;  %v2535_v0 = vsel %vm1796_vm0, %v1530_v52, 0.0  ;;  %v1533_v9 = vld [vmem:[%s14278_s0 + $0x7c8] sm:$0xff]  ;;  %v1536_v52 = vld [vmem:[%s14278_s0 + $0x7e0] sm:$0xff] }
 0x288   : > { %v5489_v23 = vrot.slane %v4281_v10, %v10770_v21  ;;  %v5494_v25 = vrot.slane %v4282_v11, %v10778_v27  ;;  %v3418_v26 = vpack.c.bf16 %v2312_v16, %v2309_v17  ;;  %v1532_v10 = vld [vmem:[%s14278_s0 + $0x7c0] sm:$0xff] }
 0x28a   : > { %v5490_v33 = vsel %vm4685_vm8, %v5489_v23, %v5485_v15  ;;  %v4283_v34 = vunpack.c.l.b16 %v3418_v26  ;;  %v4284_v35 = vunpack.c.h.b16 %v3418_v26  ;;  %2527 = vadd.xlane.f32.xlu1 %v2526_v18  ;;  %2524 = vadd.xlane.f32.xlu0 %v2523_v20  ;;  %v2544_v23 = vsel %vm1796_vm0, %v1533_v9, 0.0  ;;  %v1539_v9 = vld [vmem:[%s14278_s0 + $0x7f8] sm:$0xff] }
 0x28b   : > { %v5495_v37 = vsel %vm4692_vm9, %v5494_v25, %v5490_v33  ;;  %v2318_v39 = vpop.xlane.xlu1 %2317  ;;  %v2315_v40 = vpop.xlane.xlu0 %2314  ;;  %v2541_v25 = vsel %vm1796_vm0, %v1532_v10, 0.0  ;;  %v1535_v33 = vld [vmem:[%s14278_s0 + $0x7d8] sm:$0xff]  ;;  %v1538_v10 = vld [vmem:[%s14278_s0 + $0x7f0] sm:$0xff] }
 0x28c   : > { %v5499_v45 = vrot.slane %v4283_v34, %v10796_v48  ;;  %v5504_v47 = vrot.slane %v4284_v35, %v10806_v56  ;;  %v3419_v49 = vpack.c.bf16 %v2318_v39, %v2315_v40  ;;  %v1534_v34 = vld [vmem:[%s14278_s0 + $0x7d0] sm:$0xff] }
 0x28e   : > { %v5500_v54 = vsel %vm4699_vm10, %v5499_v45, %v5495_v37  ;;  %v4285_v55 = vunpack.c.l.b16 %v3419_v49  ;;  %v4286_v57 = vunpack.c.h.b16 %v3419_v49  ;;  %2533 = vadd.xlane.f32.xlu1 %v2532_v41  ;;  %2530 = vadd.xlane.f32.xlu0 %v2529_v44  ;;  %v2550_v44 = vsel %vm1796_vm0, %v1535_v33, 0.0 }
 0x28f   : > { %v5505_v58 = vsel %vm4706_vm11, %v5504_v47, %v5500_v54  ;;  %v2324_v59 = vpop.xlane.xlu1 %2323  ;;  %v2321_v61 = vpop.xlane.xlu0 %2320  ;;  %v2547_v45 = vsel %vm1796_vm0, %v1534_v34, 0.0  ;;  %v1541_v34 = vld [vmem:[%s14278_s0 + $0x808] sm:$0xff] }
 0x290   : > { %v5509_v4 = vrot.slane %v4285_v55, %v10813_v2  ;;  %v5514_v6 = vrot.slane %v4286_v57, %v10816_v3  ;;  %v3420_v7 = vpack.c.bf16 %v2324_v59, %v2321_v61 }
 0x292   : > { %v5510_v11 = vsel %vm4713_vm12, %v5509_v4, %v5505_v58  ;;  %v4287_v15 = vunpack.c.l.b16 %v3420_v7  ;;  %v4288_v16 = vunpack.c.h.b16 %v3420_v7  ;;  %2539 = vadd.xlane.f32.xlu1 %v2538_v62  ;;  %2536 = vadd.xlane.f32.xlu0 %v2535_v0  ;;  %v2556_v62 = vsel %vm1796_vm0, %v1537_v50, 0.0 }
 0x293   : > { %v5515_v17 = vsel %vm4720_vm13, %v5514_v6, %v5510_v11  ;;  %v2330_v18 = vpop.xlane.xlu1 %2329  ;;  %v2327_v20 = vpop.xlane.xlu0 %2326  ;;  %v2553_v0 = vsel %vm1796_vm0, %v1536_v52, 0.0 }
 0x294   : > { %v5519_v26 = vrot.slane %v4287_v15, %v10831_v19  ;;  %v5524_v30 = vrot.slane %v4288_v16, %v10838_v28  ;;  %v3421_v31 = vpack.c.bf16 %v2330_v18, %v2327_v20 }
 0x296   : > { %v5520_v35 = vsel %vm4727_vm14, %v5519_v26, %v5515_v17  ;;  %v4289_v37 = vunpack.c.l.b16 %v3421_v31  ;;  %v4290_v39 = vunpack.c.h.b16 %v3421_v31  ;;  %2545 = vadd.xlane.f32.xlu1 %v2544_v23  ;;  %2542 = vadd.xlane.f32.xlu0 %v2541_v25  ;;  %v2562_v25 = vsel %vm1796_vm0, %v1539_v9, 0.0 }
 0x297   : > { %v2336_v40 = vpop.xlane.xlu1 %2335  ;;  %v2333_v41 = vpop.xlane.xlu0 %2332  ;;  %v11832_v47 = vsel %vm4734_vm15, %v5524_v30, %v5520_v35  ;;  %v2559_v26 = vsel %vm1796_vm0, %v1538_v10, 0.0  ;;  %v1540_v35 = vld [vmem:[%s14278_s0 + $0x800] sm:$0xff] }
 0x298   : > { %14304 = vst [vmem:[#allocation16_spill] sm:$0xff] %v11832_v47  ;;  %v3422_v49 = vpack.c.bf16 %v2336_v40, %v2333_v41  ;;  %v5529_v54 = vrot.slane %v4289_v37, %v10707_v32  ;;  %v5533_v55 = vrot.slane %v4290_v39, %v10715_v38  ;;  %v2565_v50 = vsel %vm1796_vm0, %v1540_v35, 0.0 }
 0x29a   : > { %v4291_v57 = vunpack.c.l.b16 %v3422_v49  ;;  %v4292_v58 = vunpack.c.h.b16 %v3422_v49  ;;  %2551 = vadd.xlane.f32.xlu1 %v2550_v44  ;;  %2548 = vadd.xlane.f32.xlu0 %v2547_v45  ;;  %v5534_v11 = vsel %vm4636_vm1, %v5533_v55, %v5529_v54  ;;  %v2568_v49 = vsel %vm1796_vm0, %v1541_v34, 0.0 }
 0x29b   : > { %v2342_v59 = vpop.xlane.xlu1 %2341  ;;  %v2339_v61 = vpop.xlane.xlu0 %2338 }
 0x29c   : > { %v5538_v4 = vrot.slane %v4291_v57, %v10712_v36  ;;  %v5543_v6 = vrot.slane %v4292_v58, %v10724_v42  ;;  %v3423_v7 = vpack.c.bf16 %v2342_v59, %v2339_v61  ;;  %v1557_v57 = vld [vmem:[%s14278_s0 + $0x888] sm:$0xff]  ;;  %v1556_v58 = vld [vmem:[%s14278_s0 + $0x880] sm:$0xff] }
 0x29d   : > { %v2613_v9 = vsel %vm1796_vm0, %v1556_v58, 0.0 }
 0x29e   : > { %v5539_v15 = vsel %vm4643_vm2, %v5538_v4, %v5534_v11  ;;  %v4293_v16 = vunpack.c.l.b16 %v3423_v7  ;;  %v4294_v17 = vunpack.c.h.b16 %v3423_v7  ;;  %2557 = vadd.xlane.f32.xlu1 %v2556_v62  ;;  %2554 = vadd.xlane.f32.xlu0 %v2553_v0  ;;  %v2616_v7 = vsel %vm1796_vm0, %v1557_v57, 0.0 }
 0x29f   : > { %v5544_v18 = vsel %vm4650_vm3, %v5543_v6, %v5539_v15  ;;  %v2348_v20 = vpop.xlane.xlu1 %2347  ;;  %v2345_v23 = vpop.xlane.xlu0 %2344 }
 0x2a0   : > { %v5548_v30 = vrot.slane %v4293_v16, %v10734_v51  ;;  %v5553_v31 = vrot.slane %v4294_v17, %v10744_v60  ;;  %v3424_v33 = vpack.c.bf16 %v2348_v20, %v2345_v23  ;;  %v1559_v16 = vld [vmem:[%s14278_s0 + $0x898] sm:$0xff]  ;;  %v1558_v17 = vld [vmem:[%s14278_s0 + $0x890] sm:$0xff] }
 0x2a2   : > { %v5549_v37 = vsel %vm4657_vm4, %v5548_v30, %v5544_v18  ;;  %v4295_v39 = vunpack.c.l.b16 %v3424_v33  ;;  %v4296_v40 = vunpack.c.h.b16 %v3424_v33  ;;  %2563 = vadd.xlane.f32.xlu1 %v2562_v25  ;;  %2560 = vadd.xlane.f32.xlu0 %v2559_v26  ;;  %v2619_v33 = vsel %vm1796_vm0, %v1558_v17, 0.0 }
 0x2a3   : > { %v5554_v41 = vsel %vm14290_vm5, %v5553_v31, %v5549_v37  ;;  %v2354_v44 = vpop.xlane.xlu1 %2353  ;;  %v2351_v45 = vpop.xlane.xlu0 %2350  ;;  %v2622_v31 = vsel %vm1796_vm0, %v1559_v16, 0.0 }
 0x2a4   : > { %v5558_v52 = vrot.slane %v4295_v39, %v10761_v12  ;;  %v5563_v54 = vrot.slane %v4296_v40, %v10764_v13  ;;  %v3425_v55 = vpack.c.bf16 %v2354_v44, %v2351_v45  ;;  %v1543_v39 = vld [vmem:[%s14278_s0 + $0x818] sm:$0xff]  ;;  %v1542_v40 = vld [vmem:[%s14278_s0 + $0x810] sm:$0xff] }
 0x2a6   : > { %v5559_v59 = vsel %vm4671_vm6, %v5558_v52, %v5554_v41  ;;  %v4297_v61 = vunpack.c.l.b16 %v3425_v55  ;;  %v4298_v62 = vunpack.c.h.b16 %v3425_v55  ;;  %2569 = vadd.xlane.f32.xlu1 %v2568_v49  ;;  %2566 = vadd.xlane.f32.xlu0 %v2565_v50  ;;  %v2571_v55 = vsel %vm1796_vm0, %v1542_v40, 0.0  ;;  %v1668_v40 = vld [vmem:[%s14278_s0 + $0xc00] sm:$0xff] }
 0x2a7   : > { %v5564_v0 = vsel %vm4678_vm7, %v5563_v54, %v5559_v59  ;;  %v2360_v4 = vpop.xlane.xlu1 %2359  ;;  %v2357_v6 = vpop.xlane.xlu0 %2356  ;;  %v2574_v54 = vsel %vm1796_vm0, %v1543_v39, 0.0  ;;  %v1669_v39 = vld [vmem:[%s14278_s0 + $0xc08] sm:$0xff] }
 0x2a8   : > { %v5568_v10 = vrot.slane %v4297_v61, %v10770_v21  ;;  %v5573_v11 = vrot.slane %v4298_v62, %v10778_v27  ;;  %v3426_v15 = vpack.c.bf16 %v2360_v4, %v2357_v6  ;;  %v1685_v61 = vld [vmem:[%s14278_s0 + $0xc88] sm:$0xff]  ;;  %v1684_v62 = vld [vmem:[%s14278_s0 + $0xc80] sm:$0xff] }
 0x2aa   : > { %v5569_v18 = vsel %vm4685_vm8, %v5568_v10, %v5564_v0  ;;  %v4299_v20 = vunpack.c.l.b16 %v3426_v15  ;;  %v4300_v23 = vunpack.c.h.b16 %v3426_v15  ;;  %2617 = vadd.xlane.f32.xlu1 %v2616_v7  ;;  %2614 = vadd.xlane.f32.xlu0 %v2613_v9  ;;  %v2997_v15 = vsel %vm1796_vm0, %v1684_v62, 0.0  ;;  %v1687_v62 = vld [vmem:[%s14278_s0 + $0xc98] sm:$0xff] }
 0x2ab   : > { %v5574_v25 = vsel %vm4692_vm9, %v5573_v11, %v5569_v18  ;;  %v2366_v26 = vpop.xlane.xlu1 %2365  ;;  %v2363_v30 = vpop.xlane.xlu0 %2362  ;;  %v3000_v11 = vsel %vm1796_vm0, %v1685_v61, 0.0 }
 0x2ac   : > { %v5578_v34 = vrot.slane %v4299_v20, %v10796_v48  ;;  %v5583_v35 = vrot.slane %v4300_v23, %v10806_v56  ;;  %v3427_v37 = vpack.c.bf16 %v2366_v26, %v2363_v30  ;;  %v1561_v20 = vld [vmem:[%s14278_s0 + $0x8a8] sm:$0xff]  ;;  %v1560_v23 = vld [vmem:[%s14278_s0 + $0x8a0] sm:$0xff] }
 0x2ae   : > { %v5579_v41 = vsel %vm4699_vm10, %v5578_v34, %v5574_v25  ;;  %v4301_v44 = vunpack.c.l.b16 %v3427_v37  ;;  %v4302_v45 = vunpack.c.h.b16 %v3427_v37  ;;  %2623 = vadd.xlane.f32.xlu1 %v2622_v31  ;;  %2620 = vadd.xlane.f32.xlu0 %v2619_v33  ;;  %v2628_v33 = vsel %vm1796_vm0, %v1561_v20, 0.0 }
 0x2af   : > { %v5584_v49 = vsel %vm4706_vm11, %v5583_v35, %v5579_v41  ;;  %v2372_v50 = vpop.xlane.xlu1 %2371  ;;  %v2369_v52 = vpop.xlane.xlu0 %2368  ;;  %v2625_v34 = vsel %vm1796_vm0, %v1560_v23, 0.0 }
 0x2b0   : > { %v5588_v57 = vrot.slane %v4301_v44, %v10813_v2  ;;  %v5593_v58 = vrot.slane %v4302_v45, %v10816_v3  ;;  %v3428_v59 = vpack.c.bf16 %v2372_v50, %v2369_v52 }
 0x2b2   : > { %v5589_v0 = vsel %vm4713_vm12, %v5588_v57, %v5584_v49  ;;  %v4303_v4 = vunpack.c.l.b16 %v3428_v59  ;;  %v4304_v6 = vunpack.c.h.b16 %v3428_v59  ;;  %2575 = vadd.xlane.f32.xlu1 %v2574_v54  ;;  %2572 = vadd.xlane.f32.xlu0 %v2571_v55  ;;  %v2952_v55 = vsel %vm1796_vm0, %v1669_v39, 0.0 }
 0x2b3   : > { %v5594_v7 = vsel %vm4720_vm13, %v5593_v58, %v5589_v0  ;;  %v2378_v9 = vpop.xlane.xlu1 %2377  ;;  %v2375_v10 = vpop.xlane.xlu0 %2374  ;;  %v2949_v57 = vsel %vm1796_vm0, %v1668_v40, 0.0  ;;  %v1686_v0 = vld [vmem:[%s14278_s0 + $0xc90] sm:$0xff] }
 0x2b4   : > { %v5598_v16 = vrot.slane %v4303_v4, %v10831_v19  ;;  %v5603_v17 = vrot.slane %v4304_v6, %v10838_v28  ;;  %v3429_v18 = vpack.c.bf16 %v2378_v9, %v2375_v10 }
 0x2b6   : > { %v4305_v25 = vunpack.c.l.b16 %v3429_v18  ;;  %v4306_v26 = vunpack.c.h.b16 %v3429_v18  ;;  %3001 = vadd.xlane.f32.xlu1 %v3000_v11  ;;  %2998 = vadd.xlane.f32.xlu0 %v2997_v15  ;;  %v5599_v35 = vsel %vm4727_vm14, %v5598_v16, %v5594_v7  ;;  %v3006_v16 = vsel %vm1796_vm0, %v1687_v62, 0.0 }
 0x2b7   : > { %v2384_v30 = vpop.xlane.xlu1 %2383  ;;  %v2381_v31 = vpop.xlane.xlu0 %2380  ;;  %v11935_v41 = vsel %vm4734_vm15, %v5603_v17, %v5599_v35  ;;  %v3003_v17 = vsel %vm1796_vm0, %v1686_v0, 0.0 }
 0x2b8   : > { %v3430_v37 = vpack.c.bf16 %v2384_v30, %v2381_v31  ;;  %14305 = vst [vmem:[#allocation17_spill] sm:$0xff] %v11935_v41  ;;  %v5608_v44 = vrot.slane %v4305_v25, %v10707_v32  ;;  %v5612_v45 = vrot.slane %v4306_v26, %v10715_v38  ;;  %v1545_v25 = vld [vmem:[%s14278_s0 + $0x828] sm:$0xff]  ;;  %v1544_v26 = vld [vmem:[%s14278_s0 + $0x820] sm:$0xff] }
 0x2b9   : > { %v2580_v39 = vsel %vm1796_vm0, %v1545_v25, 0.0  ;;  %v2577_v40 = vsel %vm1796_vm0, %v1544_v26, 0.0 }
 0x2ba   : > { %v4307_v49 = vunpack.c.l.b16 %v3430_v37  ;;  %v4308_v50 = vunpack.c.h.b16 %v3430_v37  ;;  %2629 = vadd.xlane.f32.xlu1 %v2628_v33  ;;  %2626 = vadd.xlane.f32.xlu0 %v2625_v34  ;;  %v5613_v4 = vsel %vm4636_vm1, %v5612_v45, %v5608_v44 }
 0x2bb   : > { %v2390_v52 = vpop.xlane.xlu1 %2389  ;;  %v2387_v54 = vpop.xlane.xlu0 %2386 }
 0x2bc   : > { %v5617_v58 = vrot.slane %v4307_v49, %v10712_v36  ;;  %v5622_v59 = vrot.slane %v4308_v50, %v10724_v42  ;;  %v3431_v61 = vpack.c.bf16 %v2390_v52, %v2387_v54  ;;  %v1671_v50 = vld [vmem:[%s14278_s0 + $0xc18] sm:$0xff]  ;;  %v1670_v52 = vld [vmem:[%s14278_s0 + $0xc10] sm:$0xff] }
 0x2bd   : > { %v2958_v62 = vsel %vm1796_vm0, %v1671_v50, 0.0  ;;  %v2955_v0 = vsel %vm1796_vm0, %v1670_v52, 0.0 }
 0x2be   : > { %v5618_v6 = vsel %vm4643_vm2, %v5617_v58, %v5613_v4  ;;  %v4309_v7 = vunpack.c.l.b16 %v3431_v61  ;;  %v4310_v9 = vunpack.c.h.b16 %v3431_v61  ;;  %2953 = vadd.xlane.f32.xlu1 %v2952_v55  ;;  %2950 = vadd.xlane.f32.xlu0 %v2949_v57 }
 0x2bf   : > { %v5623_v10 = vsel %vm4650_vm3, %v5622_v59, %v5618_v6  ;;  %v2396_v11 = vpop.xlane.xlu1 %2395  ;;  %v2393_v15 = vpop.xlane.xlu0 %2392 }
 0x2c0   : > { %v5627_v18 = vrot.slane %v4309_v7, %v10734_v51  ;;  %v5632_v20 = vrot.slane %v4310_v9, %v10744_v60  ;;  %v3432_v23 = vpack.c.bf16 %v2396_v11, %v2393_v15  ;;  %v1563_v9 = vld [vmem:[%s14278_s0 + $0x8b8] sm:$0xff] }
 0x2c2   : > { %v5628_v30 = vsel %vm4657_vm4, %v5627_v18, %v5623_v10  ;;  %v4311_v31 = vunpack.c.l.b16 %v3432_v23  ;;  %v4312_v33 = vunpack.c.h.b16 %v3432_v23  ;;  %3007 = vadd.xlane.f32.xlu1 %v3006_v16  ;;  %3004 = vadd.xlane.f32.xlu0 %v3003_v17  ;;  %v1562_v10 = vld [vmem:[%s14278_s0 + $0x8b0] sm:$0xff]  ;;  %v2634_v23 = vsel %vm1796_vm0, %v1563_v9, 0.0 }
 0x2c3   : > { %v5633_v34 = vsel %vm14290_vm5, %v5632_v20, %v5628_v30  ;;  %v2402_v35 = vpop.xlane.xlu1 %2401  ;;  %v2399_v37 = vpop.xlane.xlu0 %2398  ;;  %v2631_v25 = vsel %vm1796_vm0, %v1562_v10, 0.0 }
 0x2c4   : > { %v5637_v44 = vrot.slane %v4311_v31, %v10761_v12  ;;  %v5642_v45 = vrot.slane %v4312_v33, %v10764_v13  ;;  %v3433_v49 = vpack.c.bf16 %v2402_v35, %v2399_v37  ;;  %v1689_v33 = vld [vmem:[%s14278_s0 + $0xca8] sm:$0xff] }
 0x2c6   : > { %v5638_v54 = vsel %vm4671_vm6, %v5637_v44, %v5633_v34  ;;  %v4313_v55 = vunpack.c.l.b16 %v3433_v49  ;;  %v4314_v57 = vunpack.c.h.b16 %v3433_v49  ;;  %2581 = vadd.xlane.f32.xlu1 %v2580_v39  ;;  %2578 = vadd.xlane.f32.xlu0 %v2577_v40  ;;  %v1688_v34 = vld [vmem:[%s14278_s0 + $0xca0] sm:$0xff]  ;;  %v3012_v49 = vsel %vm1796_vm0, %v1689_v33, 0.0 }
 0x2c7   : > { %v5643_v58 = vsel %vm4678_vm7, %v5642_v45, %v5638_v54  ;;  %v2408_v59 = vpop.xlane.xlu1 %2407  ;;  %v2405_v61 = vpop.xlane.xlu0 %2404  ;;  %v3009_v50 = vsel %vm1796_vm0, %v1688_v34, 0.0 }
 0x2c8   : > { %v5647_v4 = vrot.slane %v4313_v55, %v10770_v21  ;;  %v5652_v6 = vrot.slane %v4314_v57, %v10778_v27  ;;  %v3434_v7 = vpack.c.bf16 %v2408_v59, %v2405_v61  ;;  %v1547_v57 = vld [vmem:[%s14278_s0 + $0x838] sm:$0xff] }
 0x2ca   : > { %v5648_v11 = vsel %vm4685_vm8, %v5647_v4, %v5643_v58  ;;  %v4315_v15 = vunpack.c.l.b16 %v3434_v7  ;;  %v4316_v16 = vunpack.c.h.b16 %v3434_v7  ;;  %2959 = vadd.xlane.f32.xlu1 %v2958_v62  ;;  %2956 = vadd.xlane.f32.xlu0 %v2955_v0  ;;  %v1546_v58 = vld [vmem:[%s14278_s0 + $0x830] sm:$0xff]  ;;  %v2586_v7 = vsel %vm1796_vm0, %v1547_v57, 0.0 }
 0x2cb   : > { %v5653_v17 = vsel %vm4692_vm9, %v5652_v6, %v5648_v11  ;;  %v2414_v18 = vpop.xlane.xlu1 %2413  ;;  %v2411_v20 = vpop.xlane.xlu0 %2410  ;;  %v2583_v9 = vsel %vm1796_vm0, %v1546_v58, 0.0 }
 0x2cc   : > { %v5657_v26 = vrot.slane %v4315_v15, %v10796_v48  ;;  %v5662_v30 = vrot.slane %v4316_v16, %v10806_v56  ;;  %v3435_v31 = vpack.c.bf16 %v2414_v18, %v2411_v20  ;;  %v1673_v16 = vld [vmem:[%s14278_s0 + $0xc28] sm:$0xff] }
 0x2ce   : > { %v5658_v35 = vsel %vm4699_vm10, %v5657_v26, %v5653_v17  ;;  %v4317_v37 = vunpack.c.l.b16 %v3435_v31  ;;  %v4318_v39 = vunpack.c.h.b16 %v3435_v31  ;;  %2635 = vadd.xlane.f32.xlu1 %v2634_v23  ;;  %2632 = vadd.xlane.f32.xlu0 %v2631_v25  ;;  %v1672_v17 = vld [vmem:[%s14278_s0 + $0xc20] sm:$0xff] }
 0x2cf   : > { %v5663_v40 = vsel %vm4706_vm11, %v5662_v30, %v5658_v35  ;;  %v2420_v44 = vpop.xlane.xlu1 %2419  ;;  %v2417_v45 = vpop.xlane.xlu0 %2416  ;;  %v2964_v30 = vsel %vm1796_vm0, %v1673_v16, 0.0  ;;  %v2961_v31 = vsel %vm1796_vm0, %v1672_v17, 0.0  ;;  %v1565_v35 = vld [vmem:[%s14278_s0 + $0x8c8] sm:$0xff] }
 0x2d0   : > { %v5667_v52 = vrot.slane %v4317_v37, %v10813_v2  ;;  %v5672_v54 = vrot.slane %v4318_v39, %v10816_v3  ;;  %v3436_v55 = vpack.c.bf16 %v2420_v44, %v2417_v45  ;;  %v1564_v37 = vld [vmem:[%s14278_s0 + $0x8c0] sm:$0xff] }
 0x2d2   : > { %v5668_v59 = vsel %vm4713_vm12, %v5667_v52, %v5663_v40  ;;  %v4319_v61 = vunpack.c.l.b16 %v3436_v55  ;;  %v4320_v62 = vunpack.c.h.b16 %v3436_v55  ;;  %3013 = vadd.xlane.f32.xlu1 %v3012_v49  ;;  %3010 = vadd.xlane.f32.xlu0 %v3009_v50  ;;  %v2640_v52 = vsel %vm1796_vm0, %v1565_v35, 0.0 }
 0x2d3   : > { %v5673_v0 = vsel %vm4720_vm13, %v5672_v54, %v5668_v59  ;;  %v2426_v4 = vpop.xlane.xlu1 %2425  ;;  %v2423_v6 = vpop.xlane.xlu0 %2422  ;;  %v2637_v54 = vsel %vm1796_vm0, %v1564_v37, 0.0  ;;  %v1691_v59 = vld [vmem:[%s14278_s0 + $0xcb8] sm:$0xff] }
 0x2d4   : > { %v5677_v10 = vrot.slane %v4319_v61, %v10831_v19  ;;  %v5682_v11 = vrot.slane %v4320_v62, %v10838_v28  ;;  %v3437_v15 = vpack.c.bf16 %v2426_v4, %v2423_v6  ;;  %v1690_v61 = vld [vmem:[%s14278_s0 + $0xcb0] sm:$0xff] }
 0x2d6   : > { %v5678_v18 = vsel %vm4727_vm14, %v5677_v10, %v5673_v0  ;;  %v4321_v20 = vunpack.c.l.b16 %v3437_v15  ;;  %v4322_v23 = vunpack.c.h.b16 %v3437_v15  ;;  %2587 = vadd.xlane.f32.xlu1 %v2586_v7  ;;  %2584 = vadd.xlane.f32.xlu0 %v2583_v9  ;;  %v3015_v15 = vsel %vm1796_vm0, %v1690_v61, 0.0 }
 0x2d7   : > { %v2432_v25 = vpop.xlane.xlu1 %2431  ;;  %v2429_v26 = vpop.xlane.xlu0 %2428  ;;  %v12026_v33 = vsel %vm4734_vm15, %v5682_v11, %v5678_v18  ;;  %v3018_v11 = vsel %vm1796_vm0, %v1691_v59, 0.0 }
 0x2d8   : > { %14306 = vst [vmem:[#allocation18_spill] sm:$0xff] %v12026_v33  ;;  %v3438_v34 = vpack.c.bf16 %v2432_v25, %v2429_v26  ;;  %v5687_v39 = vrot.slane %v4321_v20, %v10707_v32  ;;  %v5691_v40 = vrot.slane %v4322_v23, %v10715_v38  ;;  %v1549_v20 = vld [vmem:[%s14278_s0 + $0x848] sm:$0xff]  ;;  %v1548_v23 = vld [vmem:[%s14278_s0 + $0x840] sm:$0xff]  ;;  %v1731_v33 = vld [vmem:[%s14278_s0 + $0xdf8] sm:$0xff] }
 0x2d9   : > { %v2592_v37 = vsel %vm1796_vm0, %v1549_v20, 0.0 }
 0x2da   : > { %v4323_v44 = vunpack.c.l.b16 %v3438_v34  ;;  %v4324_v45 = vunpack.c.h.b16 %v3438_v34  ;;  %2965 = vadd.xlane.f32.xlu1 %v2964_v30  ;;  %2962 = vadd.xlane.f32.xlu0 %v2961_v31  ;;  %v5692_v62 = vsel %vm4636_vm1, %v5691_v40, %v5687_v39  ;;  %v2589_v39 = vsel %vm1796_vm0, %v1548_v23, 0.0 }
 0x2db   : > { %v2438_v49 = vpop.xlane.xlu1 %2437  ;;  %v2435_v50 = vpop.xlane.xlu0 %2434 }
 0x2dc   : > { %v5696_v55 = vrot.slane %v4323_v44, %v10712_v36  ;;  %v5701_v57 = vrot.slane %v4324_v45, %v10724_v42  ;;  %v3439_v58 = vpack.c.bf16 %v2438_v49, %v2435_v50  ;;  %v1675_v49 = vld [vmem:[%s14278_s0 + $0xc38] sm:$0xff]  ;;  %v1674_v50 = vld [vmem:[%s14278_s0 + $0xc30] sm:$0xff] }
 0x2dd   : > { %v2970_v61 = vsel %vm1796_vm0, %v1675_v49, 0.0 }
 0x2de   : > { %v5697_v0 = vsel %vm4643_vm2, %v5696_v55, %v5692_v62  ;;  %v4325_v4 = vunpack.c.l.b16 %v3439_v58  ;;  %v4326_v6 = vunpack.c.h.b16 %v3439_v58  ;;  %2641 = vadd.xlane.f32.xlu1 %v2640_v52  ;;  %2638 = vadd.xlane.f32.xlu0 %v2637_v54  ;;  %v2967_v62 = vsel %vm1796_vm0, %v1674_v50, 0.0 }
 0x2df   : > { %v5702_v7 = vsel %vm4650_vm3, %v5701_v57, %v5697_v0  ;;  %v2444_v9 = vpop.xlane.xlu1 %2443  ;;  %v2441_v10 = vpop.xlane.xlu0 %2440 }
 0x2e0   : > { %v5706_v16 = vrot.slane %v4325_v4, %v10734_v51  ;;  %v5711_v17 = vrot.slane %v4326_v6, %v10744_v60  ;;  %v3440_v18 = vpack.c.bf16 %v2444_v9, %v2441_v10  ;;  %v1566_v9 = vld [vmem:[%s14278_s0 + $0x8d0] sm:$0xff] }
 0x2e1   : > { %v2643_v23 = vsel %vm1796_vm0, %v1566_v9, 0.0  ;;  %v9333_v9 = vld [vmem:[%s12106_s9 + $0x14] ss:$8 sps:$4 sm:$0xff]  }
 0x2e2   : > { %v5707_v25 = vsel %vm4657_vm4, %v5706_v16, %v5702_v7  ;;  %v4327_v26 = vunpack.c.l.b16 %v3440_v18  ;;  %v4328_v30 = vunpack.c.h.b16 %v3440_v18  ;;  %3019 = vadd.xlane.f32.xlu1 %v3018_v11  ;;  %3016 = vadd.xlane.f32.xlu0 %v3015_v15  ;;  %v1567_v7 = vld [vmem:[%s14278_s0 + $0x8d8] sm:$0xff] }
 0x2e3   : > { %v5712_v31 = vsel %vm14290_vm5, %v5711_v17, %v5707_v25  ;;  %v2450_v34 = vpop.xlane.xlu1 %2449  ;;  %v2447_v35 = vpop.xlane.xlu0 %2446  ;;  %v2646_v20 = vsel %vm1796_vm0, %v1567_v7, 0.0  ;;  %v1676_v7 = vld [vmem:[%s14278_s0 + $0xc40] sm:$0xff] }
 0x2e4   : > { %v5716_v40 = vrot.slane %v4327_v26, %v10761_v12  ;;  %v5721_v44 = vrot.slane %v4328_v30, %v10764_v13  ;;  %v3441_v45 = vpack.c.bf16 %v2450_v34, %v2447_v35  ;;  %v1692_v34 = vld [vmem:[%s14278_s0 + $0xcc0] sm:$0xff] }
 0x2e6   : > { %v5717_v52 = vsel %vm4671_vm6, %v5716_v40, %v5712_v31  ;;  %v4329_v54 = vunpack.c.l.b16 %v3441_v45  ;;  %v4330_v55 = vunpack.c.h.b16 %v3441_v45  ;;  %2593 = vadd.xlane.f32.xlu1 %v2592_v37  ;;  %2590 = vadd.xlane.f32.xlu0 %v2589_v39  ;;  %v1693_v31 = vld [vmem:[%s14278_s0 + $0xcc8] sm:$0xff]  ;;  %v1551_v40 = vld [vmem:[%s14278_s0 + $0x858] sm:$0xff] }
 0x2e7   : > { %v5722_v57 = vsel %vm4678_vm7, %v5721_v44, %v5717_v52  ;;  %v2456_v58 = vpop.xlane.xlu1 %2455  ;;  %v2453_v59 = vpop.xlane.xlu0 %2452  ;;  %v1550_v44 = vld [vmem:[%s14278_s0 + $0x850] sm:$0xff]  ;;  %v9330_v45 = vld [vmem:[%s12106_s9 + $0x4] ss:$8 sps:$4 sm:$0xff]  }
 0x2e8   : > { %v5726_v0 = vrot.slane %v4329_v54, %v10770_v21  ;;  %v5731_v4 = vrot.slane %v4330_v55, %v10778_v27  ;;  %v3442_v6 = vpack.c.bf16 %v2456_v58, %v2453_v59  ;;  %v3024_v54 = vsel %vm1796_vm0, %v1693_v31, 0.0  ;;  %8514 = vmatprep.subr.bf16.mxu1 %v9330_v45  ;;  %v9338_v45 = vld [vmem:[%s12106_s9 + $0x20] ss:$8 sps:$4 sm:$0xff]  }
 0x2e9   : > { %v3021_v55 = vsel %vm1796_vm0, %v1692_v34, 0.0  ;;  %v1568_v34 = vld [vmem:[%s14278_s0 + $0x8e0] sm:$0xff] }
 0x2ea   : > { %v5727_v10 = vsel %vm4685_vm8, %v5726_v0, %v5722_v57  ;;  %v4331_v11 = vunpack.c.l.b16 %v3442_v6  ;;  %v4332_v15 = vunpack.c.h.b16 %v3442_v6  ;;  %2971 = vadd.xlane.f32.xlu1 %v2970_v61  ;;  %2968 = vadd.xlane.f32.xlu0 %v2967_v62  ;;  %v9332_v57 = vld [vmem:[%s12106_s9] ss:$8 sps:$4 sm:$0xff]  }
 0x2eb   : > { %v5732_v16 = vsel %vm4692_vm9, %v5731_v4, %v5727_v10  ;;  %v2462_v17 = vpop.xlane.xlu1 %2461  ;;  %v2459_v18 = vpop.xlane.xlu0 %2458  ;;  %8515 = vmatpush1.bf16.msra.mxu1 %v9332_v57  ;;  %v1677_v6 = vld [vmem:[%s14278_s0 + $0xc48] sm:$0xff]  ;;  %v1695_v57 = vld [vmem:[%s14278_s0 + $0xcd8] sm:$0xff] }
 0x2ec   : > { %v5736_v25 = vrot.slane %v4331_v11, %v10796_v48  ;;  %v5741_v26 = vrot.slane %v4332_v15, %v10806_v56  ;;  %v3443_v30 = vpack.c.bf16 %v2462_v17, %v2459_v18  ;;  %v2595_v17 = vsel %vm1796_vm0, %v1550_v44, 0.0  ;;  %v9335_v18 = vld [vmem:[%s12106_s9 + $0x10] ss:$8 sps:$4 sm:$0xff]   ;;  %8516 = vmatprep.subr.bf16.mxu1 %v9333_v9 }
 0x2ed   : > { %v2973_v44 = vsel %vm1796_vm0, %v1676_v7, 0.0  ;;  %v2649_v9 = vsel %vm1796_vm0, %v1568_v34, 0.0  ;;  %v9345_v34 = vld [vmem:[%s12106_s9 + $0x44] ss:$8 sps:$4 sm:$0xff]  }
 0x2ee   : > { %v5737_v35 = vsel %vm4699_vm10, %v5736_v25, %v5732_v16  ;;  %v4333_v37 = vunpack.c.l.b16 %v3443_v30  ;;  %v4334_v39 = vunpack.c.h.b16 %v3443_v30  ;;  %2647 = vadd.xlane.f32.xlu1 %v2646_v20  ;;  %2644 = vadd.xlane.f32.xlu0 %v2643_v23  ;;  %v2598_v16 = vsel %vm1796_vm0, %v1551_v40, 0.0 }
 0x2ef   : > { %v5742_v49 = vsel %vm4706_vm11, %v5741_v26, %v5737_v35  ;;  %v2468_v50 = vpop.xlane.xlu1 %2467  ;;  %v2465_v52 = vpop.xlane.xlu0 %2464  ;;  %v1569_v26 = vld [vmem:[%s14278_s0 + $0x8e8] sm:$0xff]  ;;  %8517 = vmatpush1.bf16.msra.mxu1 %v9335_v18  ;;  %v2976_v40 = vsel %vm1796_vm0, %v1677_v6, 0.0 }
 0x2f0   : > { %v5746_v58 = vrot.slane %v4333_v37, %v10813_v2  ;;  %v5751_v59 = vrot.slane %v4334_v39, %v10816_v3  ;;  %v3444_v61 = vpack.c.bf16 %v2468_v50, %v2465_v52  ;;  %v9336_v35 = vld [vmem:[%s12106_s9 + $0x24] ss:$8 sps:$4 sm:$0xff]  }
 0x2f1   : > { %8518 = vmatprep.subr.bf16.mxu1 %v9336_v35  ;;  %v9347_v35 = vld [vmem:[%s12106_s9 + $0x414] ss:$8 sps:$4 sm:$0xff]  }
 0x2f2   : > { %v5747_v62 = vsel %vm4713_vm12, %v5746_v58, %v5742_v49  ;;  %v4335_v0 = vunpack.c.l.b16 %v3444_v61  ;;  %v4336_v4 = vunpack.c.h.b16 %v3444_v61  ;;  %3025 = vadd.xlane.f32.xlu1 %v3024_v54  ;;  %3022 = vadd.xlane.f32.xlu0 %v3021_v55  ;;  %v2652_v61 = vsel %vm1796_vm0, %v1569_v26, 0.0 }
 0x2f3   : > { %v5752_v10 = vsel %vm4720_vm13, %v5751_v59, %v5747_v62  ;;  %v2474_v11 = vpop.xlane.xlu1 %2473  ;;  %v2471_v15 = vpop.xlane.xlu0 %2470  ;;  %8519 = vmatpush1.bf16.msra.mxu1 %v9338_v45  ;;  %v1694_v62 = vld [vmem:[%s14278_s0 + $0xcd0] sm:$0xff]  ;;  %v9349_v45 = vld [vmem:[%s12106_s9 + $0x40] ss:$8 sps:$4 sm:$0xff]  }
 0x2f4   : > { %v5756_v20 = vrot.slane %v4335_v0, %v10831_v19  ;;  %v5761_v23 = vrot.slane %v4336_v4, %v10838_v28  ;;  %v3445_v25 = vpack.c.bf16 %v2474_v11, %v2471_v15  ;;  %v9339_v0 = vld [vmem:[%s12106_s9 + $0x34] ss:$8 sps:$4 sm:$0xff]   ;;  %v9341_v4 = vld [vmem:[%s12106_s9 + $0x404] ss:$8 sps:$4 sm:$0xff]   ;;  %v9344_v11 = vld [vmem:[%s12106_s9 + $0x400] ss:$8 sps:$4 sm:$0xff]  }
 0x2f5   : > { %8520 = vmatprep.subr.bf16.mxu1 %v9339_v0  ;;  %8678 = vmatprep.subr.bf16.mxu0 %v9341_v4  ;;  %v1678_v0 = vld [vmem:[%s14278_s0 + $0xc50] sm:$0xff] }
 0x2f6   : > { %v4337_v30 = vunpack.c.l.b16 %v3445_v25  ;;  %v4338_v31 = vunpack.c.h.b16 %v3445_v25  ;;  %2599 = vadd.xlane.f32.xlu1 %v2598_v16  ;;  %2596 = vadd.xlane.f32.xlu0 %v2595_v17  ;;  %v5757_v49 = vsel %vm4727_vm14, %v5756_v20, %v5752_v10  ;;  %v9343_v10 = vld [vmem:[%s12106_s9 + $0x30] ss:$8 sps:$4 sm:$0xff]   ;;  %v1553_v20 = vld [vmem:[%s14278_s0 + $0x868] sm:$0xff]  ;;  %v9351_v4 = vld [vmem:[%s12106_s9 + $0x54] ss:$8 sps:$4 sm:$0xff]  }
 0x2f7   : > { %v2480_v37 = vpop.xlane.xlu1 %2479  ;;  %v2477_v39 = vpop.xlane.xlu0 %2476  ;;  %v12141_v52 = vsel %vm4734_vm15, %v5761_v23, %v5757_v49  ;;  %8521 = vmatpush1.bf16.msra.mxu1 %v9343_v10  ;;  %8679 = vmatpush1.bf16.msra.mxu0 %v9344_v11  ;;  %v9350_v49 = vld [vmem:[%s12106_s9 + $0x410] ss:$8 sps:$4 sm:$0xff]  }
 0x2f8   : > { %v3446_v50 = vpack.c.bf16 %v2480_v37, %v2477_v39  ;;  %14307 = vst [vmem:[#allocation19_spill] sm:$0xff] %v12141_v52  ;;  %v5766_v54 = vrot.slane %v4337_v30, %v10707_v32  ;;  %v5770_v55 = vrot.slane %v4338_v31, %v10715_v38  ;;  %v3030_v30 = vsel %vm1796_vm0, %v1695_v57, 0.0  ;;  %v1552_v31 = vld [vmem:[%s14278_s0 + $0x860] sm:$0xff]  ;;  %8522 = vmatprep.subr.bf16.mxu1 %v9345_v34  ;;  %v1679_v57 = vld [vmem:[%s14278_s0 + $0xc58] sm:$0xff]  ;;  %v1570_v34 = vld [vmem:[%s14278_s0 + $0x8f0] sm:$0xff] }
 0x2f9   : > { %8680 = vmatprep.subr.bf16.mxu0 %v9347_v35  ;;  %v2601_v11 = vsel %vm1796_vm0, %v1552_v31, 0.0  ;;  %v2982_v31 = vsel %vm1796_vm0, %v1679_v57, 0.0  ;;  %v9357_v35 = vld [vmem:[%s12106_s9 + $0x64] ss:$8 sps:$4 sm:$0xff]  }
 0x2fa   : > { %v4339_v58 = vunpack.c.l.b16 %v3446_v50  ;;  %v4340_v59 = vunpack.c.h.b16 %v3446_v50  ;;  %2977 = vadd.xlane.f32.xlu1 %v2976_v40  ;;  %2974 = vadd.xlane.f32.xlu0 %v2973_v44  ;;  %v5771_v18 = vsel %vm4636_vm1, %v5770_v55, %v5766_v54  ;;  %v3027_v44 = vsel %vm1796_vm0, %v1694_v62, 0.0 }
 0x2fb   : > { %v2486_v6 = vpop.xlane.xlu1 %2485  ;;  %v2483_v7 = vpop.xlane.xlu0 %2482  ;;  %8523 = vmatpush1.bf16.msra.mxu1 %v9349_v45  ;;  %8681 = vmatpush1.bf16.msra.mxu0 %v9350_v49  ;;  %v2604_v62 = vsel %vm1796_vm0, %v1553_v20, 0.0  ;;  %v2979_v45 = vsel %vm1796_vm0, %v1678_v0, 0.0  ;;  %v9361_v49 = vld [vmem:[%s12106_s9 + $0x60] ss:$8 sps:$4 sm:$0xff]  }
 0x2fc   : > { %v5775_v15 = vrot.slane %v4339_v58, %v10712_v36  ;;  %v5780_v16 = vrot.slane %v4340_v59, %v10724_v42  ;;  %v3447_v17 = vpack.c.bf16 %v2486_v6, %v2483_v7  ;;  %v9353_v6 = vld [vmem:[%s12106_s9 + $0x424] ss:$8 sps:$4 sm:$0xff]   ;;  %8524 = vmatprep.subr.bf16.mxu1 %v9351_v4 }
 0x2fd   : > { %8682 = vmatprep.subr.bf16.mxu0 %v9353_v6  ;;  %v1696_v4 = vld [vmem:[%s14278_s0 + $0xce0] sm:$0xff]  ;;  %v9363_v6 = vld [vmem:[%s12106_s9 + $0x74] ss:$8 sps:$4 sm:$0xff]  }
 0x2fe   : > { %v5776_v23 = vsel %vm4643_vm2, %v5775_v15, %v5771_v18  ;;  %v4341_v25 = vunpack.c.l.b16 %v3447_v17  ;;  %v4342_v26 = vunpack.c.h.b16 %v3447_v17  ;;  %2653 = vadd.xlane.f32.xlu1 %v2652_v61  ;;  %2650 = vadd.xlane.f32.xlu0 %v2649_v9  ;;  %v9355_v15 = vld [vmem:[%s12106_s9 + $0x50] ss:$8 sps:$4 sm:$0xff]  }
 0x2ff   : > { %v5781_v37 = vsel %vm4650_vm3, %v5780_v16, %v5776_v23  ;;  %v2492_v39 = vpop.xlane.xlu1 %2491  ;;  %v2489_v40 = vpop.xlane.xlu0 %2488  ;;  %v9356_v16 = vld [vmem:[%s12106_s9 + $0x420] ss:$8 sps:$4 sm:$0xff]   ;;  %v1571_v23 = vld [vmem:[%s14278_s0 + $0x8f8] sm:$0xff]  ;;  %8525 = vmatpush1.bf16.msra.mxu1 %v9355_v15  ;;  %v2655_v15 = vsel %vm1796_vm0, %v1570_v34, 0.0 }
 0x300   : > { %v5785_v50 = vrot.slane %v4341_v25, %v10734_v51  ;;  %v5790_v54 = vrot.slane %v4342_v26, %v10744_v60  ;;  %v3448_v55 = vpack.c.bf16 %v2492_v39, %v2489_v40  ;;  %8683 = vmatpush1.bf16.msra.mxu0 %v9356_v16  ;;  %8526 = vmatprep.subr.bf16.mxu1 %v9357_v35  ;;  %v2658_v0 = vsel %vm1796_vm0, %v1571_v23, 0.0  ;;  %v9367_v16 = vld [vmem:[%s12106_s9 + $0x70] ss:$8 sps:$4 sm:$0xff]  }
 0x301   : > { %v1554_v35 = vld [vmem:[%s14278_s0 + $0x870] sm:$0xff] }
 0x302   : > { %v5786_v58 = vsel %vm4657_vm4, %v5785_v50, %v5781_v37  ;;  %v4343_v59 = vunpack.c.l.b16 %v3448_v55  ;;  %v4344_v61 = vunpack.c.h.b16 %v3448_v55  ;;  %3031 = vadd.xlane.f32.xlu1 %v3030_v30  ;;  %3028 = vadd.xlane.f32.xlu0 %v3027_v44  ;;  %v9359_v37 = vld [vmem:[%s12106_s9 + $0x434] ss:$8 sps:$4 sm:$0xff]   ;;  %v9362_v50 = vld [vmem:[%s12106_s9 + $0x430] ss:$8 sps:$4 sm:$0xff]  }
 0x303   : > { %v5791_v7 = vsel %vm14290_vm5, %v5790_v54, %v5786_v58  ;;  %v2498_v9 = vpop.xlane.xlu1 %2497  ;;  %v2495_v10 = vpop.xlane.xlu0 %2494  ;;  %8684 = vmatprep.subr.bf16.mxu0 %v9359_v37  ;;  %v1697_v58 = vld [vmem:[%s14278_s0 + $0xce8] sm:$0xff]  ;;  %8527 = vmatpush1.bf16.msra.mxu1 %v9361_v49  ;;  %v3033_v49 = vsel %vm1796_vm0, %v1696_v4, 0.0 }
 0x304   : > { %v5795_v17 = vrot.slane %v4343_v59, %v10761_v12  ;;  %v5800_v18 = vrot.slane %v4344_v61, %v10764_v13  ;;  %v3449_v20 = vpack.c.bf16 %v2498_v9, %v2495_v10  ;;  %8685 = vmatpush1.bf16.msra.mxu0 %v9362_v50  ;;  %8528 = vmatprep.subr.bf16.mxu1 %v9363_v6  ;;  %v3036_v34 = vsel %vm1796_vm0, %v1697_v58, 0.0  ;;  %v9369_v37 = vld [vmem:[%s12106_s9 + $0x84] ss:$8 sps:$4 sm:$0xff]   ;;  %v9373_v50 = vld [vmem:[%s12106_s9 + $0x80] ss:$8 sps:$4 sm:$0xff]  }
 0x305   : > { %v1680_v6 = vld [vmem:[%s14278_s0 + $0xc60] sm:$0xff] }
 0x306   : > { %v5796_v25 = vsel %vm4671_vm6, %v5795_v17, %v5791_v7  ;;  %v4345_v26 = vunpack.c.l.b16 %v3449_v20  ;;  %v4346_v30 = vunpack.c.h.b16 %v3449_v20  ;;  %2605 = vadd.xlane.f32.xlu1 %v2604_v62  ;;  %2602 = vadd.xlane.f32.xlu0 %v2601_v11  ;;  %v9365_v7 = vld [vmem:[%s12106_s9 + $0x444] ss:$8 sps:$4 sm:$0xff]   ;;  %v9368_v17 = vld [vmem:[%s12106_s9 + $0x440] ss:$8 sps:$4 sm:$0xff]  }
 0x307   : > { %v5801_v39 = vsel %vm4678_vm7, %v5800_v18, %v5796_v25  ;;  %v2504_v40 = vpop.xlane.xlu1 %2503  ;;  %v2501_v44 = vpop.xlane.xlu0 %2500  ;;  %8686 = vmatprep.subr.bf16.mxu0 %v9365_v7  ;;  %v1555_v25 = vld [vmem:[%s14278_s0 + $0x878] sm:$0xff]  ;;  %8529 = vmatpush1.bf16.msra.mxu1 %v9367_v16  ;;  %v2607_v16 = vsel %vm1796_vm0, %v1554_v35, 0.0 }
 0x308   : > { %v5805_v54 = vrot.slane %v4345_v26, %v10770_v21  ;;  %v5810_v55 = vrot.slane %v4346_v30, %v10778_v27  ;;  %v3450_v57 = vpack.c.bf16 %v2504_v40, %v2501_v44  ;;  %8687 = vmatpush1.bf16.msra.mxu0 %v9368_v17  ;;  %8530 = vmatprep.subr.bf16.mxu1 %v9369_v37  ;;  %v2610_v4 = vsel %vm1796_vm0, %v1555_v25, 0.0  ;;  %v9375_v7 = vld [vmem:[%s12106_s9 + $0x94] ss:$8 sps:$4 sm:$0xff]   ;;  %v9379_v17 = vld [vmem:[%s12106_s9 + $0x90] ss:$8 sps:$4 sm:$0xff]  }
 0x309   : > { %v1698_v37 = vld [vmem:[%s14278_s0 + $0xcf0] sm:$0xff] }
 0x30a   : > { %v5806_v59 = vsel %vm4685_vm8, %v5805_v54, %v5801_v39  ;;  %v4347_v61 = vunpack.c.l.b16 %v3450_v57  ;;  %v4348_v62 = vunpack.c.h.b16 %v3450_v57  ;;  %2983 = vadd.xlane.f32.xlu1 %v2982_v31  ;;  %2980 = vadd.xlane.f32.xlu0 %v2979_v45  ;;  %v9371_v39 = vld [vmem:[%s12106_s9 + $0x454] ss:$8 sps:$4 sm:$0xff]   ;;  %v9374_v54 = vld [vmem:[%s12106_s9 + $0x450] ss:$8 sps:$4 sm:$0xff]  }
 0x30b   : > { %v5811_v9 = vsel %vm4692_vm9, %v5810_v55, %v5806_v59  ;;  %v2510_v10 = vpop.xlane.xlu1 %2509  ;;  %v2507_v11 = vpop.xlane.xlu0 %2506  ;;  %8688 = vmatprep.subr.bf16.mxu0 %v9371_v39  ;;  %v1681_v59 = vld [vmem:[%s14278_s0 + $0xc68] sm:$0xff]  ;;  %8531 = vmatpush1.bf16.msra.mxu1 %v9373_v50 }
 0x30c   : > { %v5815_v18 = vrot.slane %v4347_v61, %v10796_v48  ;;  %v5820_v20 = vrot.slane %v4348_v62, %v10806_v56  ;;  %v3451_v23 = vpack.c.bf16 %v2510_v10, %v2507_v11  ;;  %8689 = vmatpush1.bf16.msra.mxu0 %v9374_v54  ;;  %8532 = vmatprep.subr.bf16.mxu1 %v9375_v7  ;;  %v2988_v35 = vsel %vm1796_vm0, %v1681_v59, 0.0  ;;  %v9381_v39 = vld [vmem:[%s12106_s9 + $0xa4] ss:$8 sps:$4 sm:$0xff]   ;;  %v9385_v50 = vld [vmem:[%s12106_s9 + $0xa0] ss:$8 sps:$4 sm:$0xff]  }
 0x30d   : > { %v9386_v54 = vld [vmem:[%s12106_s9 + $0x470] ss:$8 sps:$4 sm:$0xff]   ;;  %v9387_v7 = vld [vmem:[%s12106_s9 + $0xb4] ss:$8 sps:$4 sm:$0xff]  }
 0x30e   : > { %v5816_v26 = vsel %vm4699_vm10, %v5815_v18, %v5811_v9  ;;  %v4349_v30 = vunpack.c.l.b16 %v3451_v23  ;;  %v4350_v31 = vunpack.c.h.b16 %v3451_v23  ;;  %2659 = vadd.xlane.f32.xlu1 %v2658_v0  ;;  %2656 = vadd.xlane.f32.xlu0 %v2655_v15  ;;  %v9377_v9 = vld [vmem:[%s12106_s9 + $0x464] ss:$8 sps:$4 sm:$0xff]   ;;  %v9380_v18 = vld [vmem:[%s12106_s9 + $0x460] ss:$8 sps:$4 sm:$0xff]  }
 0x30f   : > { %v5821_v40 = vsel %vm4706_vm11, %v5820_v20, %v5816_v26  ;;  %v2516_v44 = vpop.xlane.xlu1 %2515  ;;  %v2513_v45 = vpop.xlane.xlu0 %2512  ;;  %8690 = vmatprep.subr.bf16.mxu0 %v9377_v9  ;;  %v1699_v26 = vld [vmem:[%s14278_s0 + $0xcf8] sm:$0xff]  ;;  %8533 = vmatpush1.bf16.msra.mxu1 %v9379_v17  ;;  %v9389_v9 = vld [vmem:[%s12106_s9 + $0x484] ss:$8 sps:$4 sm:$0xff]   ;;  %v9392_v17 = vld [vmem:[%s12106_s9 + $0x480] ss:$8 sps:$4 sm:$0xff]  }
 0x310   : > { %v5825_v55 = vrot.slane %v4349_v30, %v10813_v2  ;;  %v5830_v57 = vrot.slane %v4350_v31, %v10816_v3  ;;  %v3452_v58 = vpack.c.bf16 %v2516_v44, %v2513_v45  ;;  %8691 = vmatpush1.bf16.msra.mxu0 %v9380_v18  ;;  %8534 = vmatprep.subr.bf16.mxu1 %v9381_v39  ;;  %v9393_v39 = vld [vmem:[%s12106_s9 + $0xc4] ss:$8 sps:$4 sm:$0xff]  }
 0x312   : > { %v5826_v61 = vsel %vm4713_vm12, %v5825_v55, %v5821_v40  ;;  %v4351_v62 = vunpack.c.l.b16 %v3452_v58  ;;  %v4352_v0 = vunpack.c.h.b16 %v3452_v58  ;;  %3037 = vadd.xlane.f32.xlu1 %v3036_v34  ;;  %3034 = vadd.xlane.f32.xlu0 %v3033_v49  ;;  %v9383_v40 = vld [vmem:[%s12106_s9 + $0x474] ss:$8 sps:$4 sm:$0xff]   ;;  %v2985_v49 = vsel %vm1796_vm0, %v1680_v6, 0.0 }
 0x313   : > { %v5831_v10 = vsel %vm4720_vm13, %v5830_v57, %v5826_v61  ;;  %v2522_v11 = vpop.xlane.xlu1 %2521  ;;  %v2519_v15 = vpop.xlane.xlu0 %2518  ;;  %8692 = vmatprep.subr.bf16.mxu0 %v9383_v40  ;;  %v1683_v61 = vld [vmem:[%s14278_s0 + $0xc78] sm:$0xff]  ;;  %8535 = vmatpush1.bf16.msra.mxu1 %v9385_v50  ;;  %v1682_v6 = vld [vmem:[%s14278_s0 + $0xc70] sm:$0xff] }
 0x314   : > { %v5835_v20 = vrot.slane %v4351_v62, %v10831_v19  ;;  %v5840_v23 = vrot.slane %v4352_v0, %v10838_v28  ;;  %v3453_v25 = vpack.c.bf16 %v2522_v11, %v2519_v15  ;;  %8693 = vmatpush1.bf16.msra.mxu0 %v9386_v54  ;;  %v3039_v15 = vsel %vm1796_vm0, %v1698_v37, 0.0  ;;  %8536 = vmatprep.subr.bf16.mxu1 %v9387_v7  ;;  %v1588_v37 = vld [vmem:[%s14278_s0 + $0x980] sm:$0xff]  ;;  %v9395_v40 = vld [vmem:[%s12106_s9 + $0x494] ss:$8 sps:$4 sm:$0xff]  }
 0x315   : > { %8694 = vmatprep.subr.bf16.mxu0 %v9389_v9  ;;  %v2991_v50 = vsel %vm1796_vm0, %v1682_v6, 0.0  ;;  %v9397_v54 = vld [vmem:[%s12106_s9 + $0xc0] ss:$8 sps:$4 sm:$0xff]  }
 0x316   : > { %v5836_v30 = vsel %vm4727_vm14, %v5835_v20, %v5831_v10  ;;  %v4353_v31 = vunpack.c.l.b16 %v3453_v25  ;;  %v4354_v34 = vunpack.c.h.b16 %v3453_v25  ;;  %2611 = vadd.xlane.f32.xlu1 %v2610_v4  ;;  %2608 = vadd.xlane.f32.xlu0 %v2607_v16  ;;  %v3042_v4 = vsel %vm1796_vm0, %v1699_v26, 0.0  ;;  %v9391_v16 = vld [vmem:[%s12106_s9 + $0xb0] ss:$8 sps:$4 sm:$0xff]   ;;  %v1589_v26 = vld [vmem:[%s14278_s0 + $0x988] sm:$0xff]  ;;  %v1572_v9 = vld [vmem:[%s14278_s0 + $0x900] sm:$0xff] }
 0x317   : > { %v2528_v44 = vpop.xlane.xlu1 %2527  ;;  %v2525_v45 = vpop.xlane.xlu0 %2524  ;;  %v12270_v55 = vsel %vm4734_vm15, %v5840_v23, %v5836_v30  ;;  %8537 = vmatpush1.bf16.msra.mxu1 %v9391_v16  ;;  %v2712_v7 = vsel %vm1796_vm0, %v1589_v26, 0.0 }
 0x318   : > { %14308 = vst [vmem:[#allocation20_spill] sm:$0xff] %v12270_v55  ;;  %v3454_v57 = vpack.c.bf16 %v2528_v44, %v2525_v45  ;;  %v5845_v58 = vrot.slane %v4353_v31, %v10707_v32  ;;  %v5849_v59 = vrot.slane %v4354_v34, %v10715_v38  ;;  %8695 = vmatpush1.bf16.msra.mxu0 %v9392_v17  ;;  %v1710_v55 = vld [vmem:[%s14278_s0 + $0xd50] sm:$0xff] }
 0x319   : > { %8538 = vmatprep.subr.bf16.mxu1 %v9393_v39  ;;  %8696 = vmatprep.subr.bf16.mxu0 %v9395_v40  ;;  %v1590_v40 = vld [vmem:[%s14278_s0 + $0x990] sm:$0xff] }
 0x31a   : > { %v4355_v62 = vunpack.c.l.b16 %v3454_v57  ;;  %v4356_v0 = vunpack.c.h.b16 %v3454_v57  ;;  %2989 = vadd.xlane.f32.xlu1 %v2988_v35  ;;  %2986 = vadd.xlane.f32.xlu0 %v2985_v49  ;;  %v5850_v25 = vsel %vm4636_vm1, %v5849_v59, %v5845_v58  ;;  %v2994_v35 = vsel %vm1796_vm0, %v1683_v61, 0.0  ;;  %v9398_v57 = vld [vmem:[%s12106_s9 + $0x490] ss:$8 sps:$4 sm:$0xff]  }
 0x31b   : > { %v2534_v10 = vpop.xlane.xlu1 %2533  ;;  %v2531_v11 = vpop.xlane.xlu0 %2530  ;;  %8539 = vmatpush1.bf16.msra.mxu1 %v9397_v54 }
 0x31c   : > { %v5854_v18 = vrot.slane %v4355_v62, %v10712_v36  ;;  %v5859_v20 = vrot.slane %v4356_v0, %v10724_v42  ;;  %v3455_v23 = vpack.c.bf16 %v2534_v10, %v2531_v11  ;;  %v1573_v62 = vld [vmem:[%s14278_s0 + $0x908] sm:$0xff]  ;;  %8697 = vmatpush1.bf16.msra.mxu0 %v9398_v57  ;;  %v9399_v10 = vld [vmem:[%s12106_s9 + $0xd4] ss:$8 sps:$4 sm:$0xff]   ;;  %v2661_v57 = vsel %vm1796_vm0, %v1572_v9, 0.0 }
 0x31d   : > { %v9401_v11 = vld [vmem:[%s12106_s9 + $0x4a4] ss:$8 sps:$4 sm:$0xff]   ;;  %8540 = vmatprep.subr.bf16.mxu1 %v9399_v10  ;;  %v2664_v39 = vsel %vm1796_vm0, %v1573_v62, 0.0  ;;  %v1575_v10 = vld [vmem:[%s14278_s0 + $0x918] sm:$0xff] }
 0x31e   : > { %v5855_v30 = vsel %vm4643_vm2, %v5854_v18, %v5850_v25  ;;  %v4357_v31 = vunpack.c.l.b16 %v3455_v23  ;;  %v4358_v34 = vunpack.c.h.b16 %v3455_v23  ;;  %3043 = vadd.xlane.f32.xlu1 %v3042_v4  ;;  %3040 = vadd.xlane.f32.xlu0 %v3039_v15  ;;  %v2709_v18 = vsel %vm1796_vm0, %v1588_v37, 0.0  ;;  %v9404_v23 = vld [vmem:[%s12106_s9 + $0x4a0] ss:$8 sps:$4 sm:$0xff]  }
 0x31f   : > { %v5860_v44 = vsel %vm4650_vm3, %v5859_v20, %v5855_v30  ;;  %v2540_v45 = vpop.xlane.xlu1 %2539  ;;  %v2537_v49 = vpop.xlane.xlu0 %2536  ;;  %v9403_v20 = vld [vmem:[%s12106_s9 + $0xd0] ss:$8 sps:$4 sm:$0xff]   ;;  %8698 = vmatprep.subr.bf16.mxu0 %v9401_v11 }
 0x320   : > { %v5864_v58 = vrot.slane %v4357_v31, %v10734_v51  ;;  %v5869_v59 = vrot.slane %v4358_v34, %v10744_v60  ;;  %v3456_v61 = vpack.c.bf16 %v2540_v45, %v2537_v49  ;;  %v1591_v31 = vld [vmem:[%s14278_s0 + $0x998] sm:$0xff]  ;;  %8541 = vmatpush1.bf16.msra.mxu1 %v9403_v20  ;;  %8699 = vmatpush1.bf16.msra.mxu0 %v9404_v23  ;;  %v1574_v11 = vld [vmem:[%s14278_s0 + $0x910] sm:$0xff]  ;;  %v2715_v23 = vsel %vm1796_vm0, %v1590_v40, 0.0  ;;  %v1717_v40 = vld [vmem:[%s14278_s0 + $0xd88] sm:$0xff] }
 0x321   : > { %v9407_v45 = vld [vmem:[%s12106_s9 + $0x4b4] ss:$8 sps:$4 sm:$0xff]   ;;  %v2718_v9 = vsel %vm1796_vm0, %v1591_v31, 0.0 }
 0x322   : > { %v5865_v0 = vsel %vm4657_vm4, %v5864_v58, %v5860_v44  ;;  %v4359_v4 = vunpack.c.l.b16 %v3456_v61  ;;  %v4360_v6 = vunpack.c.h.b16 %v3456_v61  ;;  %2995 = vadd.xlane.f32.xlu1 %v2994_v35  ;;  %2992 = vadd.xlane.f32.xlu0 %v2991_v50  ;;  %v9405_v44 = vld [vmem:[%s12106_s9 + $0xe4] ss:$8 sps:$4 sm:$0xff]   ;;  %v9409_v58 = vld [vmem:[%s12106_s9 + $0xe0] ss:$8 sps:$4 sm:$0xff]  }
 0x323   : > { %v5870_v15 = vsel %vm14290_vm5, %v5869_v59, %v5865_v0  ;;  %v2546_v16 = vpop.xlane.xlu1 %2545  ;;  %v2543_v17 = vpop.xlane.xlu0 %2542  ;;  %v9410_v59 = vld [vmem:[%s12106_s9 + $0x4b0] ss:$8 sps:$4 sm:$0xff]   ;;  %8542 = vmatprep.subr.bf16.mxu1 %v9405_v44  ;;  %8700 = vmatprep.subr.bf16.mxu0 %v9407_v45  ;;  %v1716_v44 = vld [vmem:[%s14278_s0 + $0xd80] sm:$0xff]  ;;  %v9417_v45 = vld [vmem:[%s12106_s9 + $0x4d4] ss:$8 sps:$4 sm:$0xff]  }
 0x324   : > { %v5874_v25 = vrot.slane %v4359_v4, %v10761_v12  ;;  %v5879_v26 = vrot.slane %v4360_v6, %v10764_v13  ;;  %v3457_v30 = vpack.c.bf16 %v2546_v16, %v2543_v17  ;;  %8543 = vmatpush1.bf16.msra.mxu1 %v9409_v58  ;;  %8701 = vmatpush1.bf16.msra.mxu0 %v9410_v59  ;;  %v9413_v16 = vld [vmem:[%s12106_s9 + $0x4c4] ss:$8 sps:$4 sm:$0xff]   ;;  %v2667_v58 = vsel %vm1796_vm0, %v1574_v11, 0.0  ;;  %v9419_v59 = vld [vmem:[%s12106_s9 + $0x4d0] ss:$8 sps:$4 sm:$0xff]  }
 0x325   : > { %8702 = vmatprep.subr.bf16.mxu0 %v9413_v16  ;;  %v9420_v11 = vld [vmem:[%s12106_s9 + $0x4e4] ss:$8 sps:$4 sm:$0xff]  }
 0x326   : > { %v5875_v34 = vsel %vm4671_vm6, %v5874_v25, %v5870_v15  ;;  %v4361_v35 = vunpack.c.l.b16 %v3457_v30  ;;  %v4362_v37 = vunpack.c.h.b16 %v3457_v30  ;;  %2713 = vadd.xlane.f32.xlu1 %v2712_v7  ;;  %2710 = vadd.xlane.f32.xlu0 %v2709_v18  ;;  %v9411_v15 = vld [vmem:[%s12106_s9 + $0xf4] ss:$8 sps:$4 sm:$0xff]   ;;  %v9415_v25 = vld [vmem:[%s12106_s9 + $0xf0] ss:$8 sps:$4 sm:$0xff]  }
 0x327   : > { %v5880_v49 = vsel %vm4678_vm7, %v5879_v26, %v5875_v34  ;;  %v2552_v50 = vpop.xlane.xlu1 %2551  ;;  %v2549_v54 = vpop.xlane.xlu0 %2548  ;;  %v9416_v26 = vld [vmem:[%s12106_s9 + $0x4c0] ss:$8 sps:$4 sm:$0xff]   ;;  %8544 = vmatprep.subr.bf16.mxu1 %v9411_v15 }
 0x328   : > { %v5884_v61 = vrot.slane %v4361_v35, %v10770_v21  ;;  %v5889_v62 = vrot.slane %v4362_v37, %v10778_v27  ;;  %v3458_v0 = vpack.c.bf16 %v2552_v50, %v2549_v54  ;;  %8545 = vmatpush1.bf16.msra.mxu1 %v9415_v25  ;;  %8703 = vmatpush1.bf16.msra.mxu0 %v9416_v26 }
 0x329   : > { %8704 = vmatprep.subr.bf16.mxu0 %v9417_v45  ;;  %v9425_v45 = vld [vmem:[%s12106_s9 + $0x4f0] ss:$8 sps:$4 sm:$0xff]  }
 0x32a   : > { %v5885_v4 = vsel %vm4685_vm8, %v5884_v61, %v5880_v49  ;;  %v4363_v6 = vunpack.c.l.b16 %v3458_v0  ;;  %v4364_v7 = vunpack.c.h.b16 %v3458_v0  ;;  %2665 = vadd.xlane.f32.xlu1 %v2664_v39  ;;  %2662 = vadd.xlane.f32.xlu0 %v2661_v57  ;;  %v2670_v57 = vsel %vm1796_vm0, %v1575_v10, 0.0  ;;  %v1592_v10 = vld [vmem:[%s14278_s0 + $0x9a0] sm:$0xff] }
 0x32b   : > { %v5890_v17 = vsel %vm4692_vm9, %v5889_v62, %v5885_v4  ;;  %v2558_v18 = vpop.xlane.xlu1 %2557  ;;  %v2555_v20 = vpop.xlane.xlu0 %2554 }
 0x32c   : > { %v5894_v30 = vrot.slane %v4363_v6, %v10796_v48  ;;  %v5899_v31 = vrot.slane %v4364_v7, %v10806_v56  ;;  %v3459_v34 = vpack.c.bf16 %v2558_v18, %v2555_v20  ;;  %8705 = vmatpush1.bf16.msra.mxu0 %v9419_v59  ;;  %v3096_v18 = vsel %vm1796_vm0, %v1717_v40, 0.0  ;;  %v1719_v59 = vld [vmem:[%s14278_s0 + $0xd98] sm:$0xff] }
 0x32d   : > { %v3093_v20 = vsel %vm1796_vm0, %v1716_v44, 0.0  ;;  %8706 = vmatprep.subr.bf16.mxu0 %v9420_v11  ;;  %v2721_v44 = vsel %vm1796_vm0, %v1592_v10, 0.0 }
 0x32e   : > { %v5895_v35 = vsel %vm4699_vm10, %v5894_v30, %v5890_v17  ;;  %v4365_v37 = vunpack.c.l.b16 %v3459_v34  ;;  %v4366_v39 = vunpack.c.h.b16 %v3459_v34  ;;  %2719 = vadd.xlane.f32.xlu1 %v2718_v9  ;;  %2716 = vadd.xlane.f32.xlu0 %v2715_v23  ;;  %v1593_v9 = vld [vmem:[%s14278_s0 + $0x9a8] sm:$0xff]  ;;  %v1700_v34 = vld [vmem:[%s14278_s0 + $0xd00] sm:$0xff] }
 0x32f   : > { %v5900_v49 = vsel %vm4706_vm11, %v5899_v31, %v5895_v35  ;;  %v2564_v50 = vpop.xlane.xlu1 %2563  ;;  %v2561_v54 = vpop.xlane.xlu0 %2560  ;;  %v9422_v23 = vld [vmem:[%s12106_s9 + $0x4e0] ss:$8 sps:$4 sm:$0xff]   ;;  %v9423_v35 = vld [vmem:[%s12106_s9 + $0x4f4] ss:$8 sps:$4 sm:$0xff]   ;;  %v2724_v40 = vsel %vm1796_vm0, %v1593_v9, 0.0 }
 0x330   : > { %v5904_v61 = vrot.slane %v4365_v37, %v10813_v2  ;;  %v5909_v62 = vrot.slane %v4366_v39, %v10816_v3  ;;  %v3460_v0 = vpack.c.bf16 %v2564_v50, %v2561_v54  ;;  %8707 = vmatpush1.bf16.msra.mxu0 %v9422_v23  ;;  %v1701_v31 = vld [vmem:[%s14278_s0 + $0xd08] sm:$0xff] }
 0x331   : > { %8708 = vmatprep.subr.bf16.mxu0 %v9423_v35 }
 0x332   : > { %v5905_v4 = vsel %vm4713_vm12, %v5904_v61, %v5900_v49  ;;  %v4367_v6 = vunpack.c.l.b16 %v3460_v0  ;;  %v4368_v7 = vunpack.c.h.b16 %v3460_v0  ;;  %2671 = vadd.xlane.f32.xlu1 %v2670_v57  ;;  %2668 = vadd.xlane.f32.xlu0 %v2667_v58  ;;  %v1718_v61 = vld [vmem:[%s14278_s0 + $0xd90] sm:$0xff] }
 0x333   : > { %v5910_v15 = vsel %vm4720_vm13, %v5909_v62, %v5905_v4  ;;  %v2570_v16 = vpop.xlane.xlu1 %2569  ;;  %v2567_v17 = vpop.xlane.xlu0 %2566  ;;  %v3048_v4 = vsel %vm1796_vm0, %v1701_v31, 0.0 }
 0x334   : > { %v5914_v25 = vrot.slane %v4367_v6, %v10831_v19  ;;  %v5919_v26 = vrot.slane %v4368_v7, %v10838_v28  ;;  %v3461_v30 = vpack.c.bf16 %v2570_v16, %v2567_v17  ;;  %8709 = vmatpush1.bf16.msra.mxu0 %v9425_v45  ;;  %v3045_v6 = vsel %vm1796_vm0, %v1700_v34, 0.0 }
 0x336   : > { %3097 = vadd.xlane.f32.xlu1 %v3096_v18  ;;  %3094 = vadd.xlane.f32.xlu0 %v3093_v20  ;;  %v5915_v49 = vsel %vm4727_vm14, %v5914_v25, %v5910_v15  ;;  %v4369_v9 = vunpack.c.l.b16 %v3461_v30  ;;  %v4370_v10 = vunpack.c.h.b16 %v3461_v30  ;;  %v1577_v18 = vld [vmem:[%s14278_s0 + $0x928] sm:$0xff]  ;;  %v1576_v20 = vld [vmem:[%s14278_s0 + $0x920] sm:$0xff]  ;;  %v3099_v30 = vsel %vm1796_vm0, %v1718_v61, 0.0 }
 0x337   : > { %v2618_v37 = vpop.xlane.xlu1 %2617  ;;  %v2615_v39 = vpop.xlane.xlu0 %2614  ;;  %v12393_v54 = vsel %vm4734_vm15, %v5919_v26, %v5915_v49  ;;  %v3102_v26 = vsel %vm1796_vm0, %v1719_v59, 0.0 }
 0x338   : > { %v3469_v50 = vpack.c.bf16 %v2618_v37, %v2615_v39  ;;  %14309 = vst [vmem:[#allocation21_spill] sm:$0xff] %v12393_v54  ;;  %v5924_v37 = vrot.slane %v4369_v9, %v10707_v32  ;;  %v5928_v39 = vrot.slane %v4370_v10, %v10715_v38 }
 0x33a   : > { %v4385_v57 = vunpack.c.l.b16 %v3469_v50  ;;  %v4386_v58 = vunpack.c.h.b16 %v3469_v50  ;;  %2725 = vadd.xlane.f32.xlu1 %v2724_v40  ;;  %2722 = vadd.xlane.f32.xlu0 %v2721_v44  ;;  %v1703_v50 = vld [vmem:[%s14278_s0 + $0xd18] sm:$0xff]  ;;  %v5929_v9 = vsel %vm4636_vm1, %v5928_v39, %v5924_v37 }
 0x33b   : > { %v2624_v62 = vpop.xlane.xlu1 %2623  ;;  %v2621_v0 = vpop.xlane.xlu0 %2620 }
 0x33c   : > { %v3470_v7 = vpack.c.bf16 %v2624_v62, %v2621_v0  ;;  %v6003_v11 = vrot.slane %v4385_v57, %v10707_v32  ;;  %v6007_v15 = vrot.slane %v4386_v58, %v10715_v38  ;;  %v1702_v57 = vld [vmem:[%s14278_s0 + $0xd10] sm:$0xff]  ;;  %v2676_v62 = vsel %vm1796_vm0, %v1577_v18, 0.0 }
 0x33d   : > { %v2673_v0 = vsel %vm1796_vm0, %v1576_v20, 0.0  ;;  %v3054_v20 = vsel %vm1796_vm0, %v1703_v50, 0.0 }
 0x33e   : > { %v4387_v16 = vunpack.c.l.b16 %v3470_v7  ;;  %v4388_v17 = vunpack.c.h.b16 %v3470_v7  ;;  %3049 = vadd.xlane.f32.xlu1 %v3048_v4  ;;  %3046 = vadd.xlane.f32.xlu0 %v3045_v6  ;;  %v6008_v40 = vsel %vm4636_vm1, %v6007_v15, %v6003_v11  ;;  %v1595_v11 = vld [vmem:[%s14278_s0 + $0x9b8] sm:$0xff]  ;;  %v1594_v15 = vld [vmem:[%s14278_s0 + $0x9b0] sm:$0xff] }
 0x33f   : > { %v2576_v23 = vpop.xlane.xlu1 %2575  ;;  %v2573_v25 = vpop.xlane.xlu0 %2572  ;;  %v2730_v39 = vsel %vm1796_vm0, %v1595_v11, 0.0 }
 0x340   : > { %v6012_v31 = vrot.slane %v4387_v16, %v10712_v36  ;;  %v6017_v34 = vrot.slane %v4388_v17, %v10724_v42  ;;  %v3462_v35 = vpack.c.bf16 %v2576_v23, %v2573_v25  ;;  %v3051_v23 = vsel %vm1796_vm0, %v1702_v57, 0.0 }
 0x342   : > { %v6013_v44 = vsel %vm4643_vm2, %v6012_v31, %v6008_v40  ;;  %v4371_v45 = vunpack.c.l.b16 %v3462_v35  ;;  %v4372_v49 = vunpack.c.h.b16 %v3462_v35  ;;  %3103 = vadd.xlane.f32.xlu1 %v3102_v26  ;;  %3100 = vadd.xlane.f32.xlu0 %v3099_v30  ;;  %v1721_v31 = vld [vmem:[%s14278_s0 + $0xda8] sm:$0xff]  ;;  %v2727_v40 = vsel %vm1796_vm0, %v1594_v15, 0.0 }
 0x343   : > { %v6018_v58 = vsel %vm4650_vm3, %v6017_v34, %v6013_v44  ;;  %v3002_v59 = vpop.xlane.xlu1 %3001  ;;  %v2999_v61 = vpop.xlane.xlu0 %2998  ;;  %v1720_v34 = vld [vmem:[%s14278_s0 + $0xda0] sm:$0xff] }
 0x344   : > { %v5933_v4 = vrot.slane %v4371_v45, %v10712_v36  ;;  %v5938_v6 = vrot.slane %v4372_v49, %v10724_v42  ;;  %v3533_v7 = vpack.c.bf16 %v3002_v59, %v2999_v61  ;;  %v1579_v61 = vld [vmem:[%s14278_s0 + $0x938] sm:$0xff] }
 0x346   : > { %v5934_v10 = vsel %vm4643_vm2, %v5933_v4, %v5929_v9  ;;  %2677 = vadd.xlane.f32.xlu1 %v2676_v62  ;;  %2674 = vadd.xlane.f32.xlu0 %v2673_v0  ;;  %v4513_v50 = vunpack.c.l.b16 %v3533_v7  ;;  %v4514_v57 = vunpack.c.h.b16 %v3533_v7  ;;  %v1578_v62 = vld [vmem:[%s14278_s0 + $0x930] sm:$0xff]  ;;  %v3108_v9 = vsel %vm1796_vm0, %v1721_v31, 0.0 }
 0x347   : > { %v12439_v16 = vsel %vm4650_vm3, %v5938_v6, %v5934_v10  ;;  %v2630_v17 = vpop.xlane.xlu1 %2629  ;;  %v2627_v18 = vpop.xlane.xlu0 %2626  ;;  %v3105_v7 = vsel %vm1796_vm0, %v1720_v34, 0.0 }
 0x348   : > { %v3471_v25 = vpack.c.bf16 %v2630_v17, %v2627_v18  ;;  %v6635_v10 = vrot.slane %v4513_v50, %v10707_v32  ;;  %v6639_v11 = vrot.slane %v4514_v57, %v10715_v38  ;;  %v1705_v18 = vld [vmem:[%s14278_s0 + $0xd28] sm:$0xff] }
 0x349   : > { %v1597_v57 = vld [vmem:[%s14278_s0 + $0x9c8] sm:$0xff] }
 0x34a   : > { %v4389_v26 = vunpack.c.l.b16 %v3471_v25  ;;  %v4390_v30 = vunpack.c.h.b16 %v3471_v25  ;;  %3055 = vadd.xlane.f32.xlu1 %v3054_v20  ;;  %3052 = vadd.xlane.f32.xlu0 %v3051_v23  ;;  %v1704_v20 = vld [vmem:[%s14278_s0 + $0xd20] sm:$0xff] }
 0x34b   : > { %v2954_v35 = vpop.xlane.xlu1 %2953  ;;  %v2951_v37 = vpop.xlane.xlu0 %2950 }
 0x34c   : > { %v6022_v44 = vrot.slane %v4389_v26, %v10734_v51  ;;  %v6027_v45 = vrot.slane %v4390_v30, %v10744_v60  ;;  %v3525_v49 = vpack.c.bf16 %v2954_v35, %v2951_v37  ;;  %v2682_v26 = vsel %vm1796_vm0, %v1579_v61, 0.0 }
 0x34d   : > { %v2679_v30 = vsel %vm1796_vm0, %v1578_v62, 0.0  ;;  %v6640_v37 = vsel %vm4636_vm1, %v6639_v11, %v6635_v10 }
 0x34e   : > { %v6023_v59 = vsel %vm4657_vm4, %v6022_v44, %v6018_v58  ;;  %2731 = vadd.xlane.f32.xlu1 %v2730_v39  ;;  %2728 = vadd.xlane.f32.xlu0 %v2727_v40  ;;  %v4497_v39 = vunpack.c.l.b16 %v3525_v49  ;;  %v4498_v40 = vunpack.c.h.b16 %v3525_v49  ;;  %v3060_v49 = vsel %vm1796_vm0, %v1705_v18, 0.0  ;;  %v1723_v18 = vld [vmem:[%s14278_s0 + $0xdb8] sm:$0xff] }
 0x34f   : > { %v12461_v0 = vsel %vm14290_vm5, %v6027_v45, %v6023_v59  ;;  %v3008_v4 = vpop.xlane.xlu1 %3007  ;;  %v3005_v6 = vpop.xlane.xlu0 %3004  ;;  %v1596_v59 = vld [vmem:[%s14278_s0 + $0x9c0] sm:$0xff] }
 0x350   : > { %v3534_v58 = vpack.c.bf16 %v3008_v4, %v3005_v6  ;;  %v3057_v6 = vsel %vm1796_vm0, %v1704_v20, 0.0  ;;  %v6556_v10 = vrot.slane %v4497_v39, %v10707_v32  ;;  %v6560_v11 = vrot.slane %v4498_v40, %v10715_v38  ;;  %v1722_v20 = vld [vmem:[%s14278_s0 + $0xdb0] sm:$0xff]  ;;  %v1581_v40 = vld [vmem:[%s14278_s0 + $0x948] sm:$0xff] }
 0x352   : > { %v4515_v15 = vunpack.c.l.b16 %v3534_v58  ;;  %v4516_v17 = vunpack.c.h.b16 %v3534_v58  ;;  %3109 = vadd.xlane.f32.xlu1 %v3108_v9  ;;  %3106 = vadd.xlane.f32.xlu0 %v3105_v7 }
 0x353   : > { %v2582_v23 = vpop.xlane.xlu1 %2581  ;;  %v2579_v25 = vpop.xlane.xlu0 %2578 }
 0x354   : > { %v6644_v31 = vrot.slane %v4515_v15, %v10712_v36  ;;  %v6649_v34 = vrot.slane %v4516_v17, %v10724_v42  ;;  %v3463_v35 = vpack.c.bf16 %v2582_v23, %v2579_v25 }
 0x356   : > { %v6645_v44 = vsel %vm4643_vm2, %v6644_v31, %v6640_v37  ;;  %v4373_v45 = vunpack.c.l.b16 %v3463_v35  ;;  %v4374_v50 = vunpack.c.h.b16 %v3463_v35  ;;  %2683 = vadd.xlane.f32.xlu1 %v2682_v26  ;;  %2680 = vadd.xlane.f32.xlu0 %v2679_v30  ;;  %v2733_v31 = vsel %vm1796_vm0, %v1596_v59, 0.0 }
 0x357   : > { %v6650_v61 = vsel %vm4650_vm3, %v6649_v34, %v6645_v44  ;;  %v2960_v62 = vpop.xlane.xlu1 %2959  ;;  %v2957_v4 = vpop.xlane.xlu0 %2956  ;;  %v6561_v37 = vsel %vm4636_vm1, %v6560_v11, %v6556_v10  ;;  %v1580_v44 = vld [vmem:[%s14278_s0 + $0x940] sm:$0xff]  ;;  %v3114_v59 = vsel %vm1796_vm0, %v1723_v18, 0.0  ;;  %v2688_v11 = vsel %vm1796_vm0, %v1581_v40, 0.0 }
 0x358   : > { %v5943_v9 = vrot.slane %v4373_v45, %v10734_v51  ;;  %v5948_v7 = vrot.slane %v4374_v50, %v10744_v60  ;;  %v3526_v58 = vpack.c.bf16 %v2960_v62, %v2957_v4  ;;  %v3111_v62 = vsel %vm1796_vm0, %v1722_v20, 0.0  ;;  %v1599_v20 = vld [vmem:[%s14278_s0 + $0x9d8] sm:$0xff]  ;;  %v1724_v40 = vld [vmem:[%s14278_s0 + $0xdc0] sm:$0xff] }
 0x35a   : > { %v5944_v15 = vsel %vm4657_vm4, %v5943_v9, %v12439_v16  ;;  %v4499_v17 = vunpack.c.l.b16 %v3526_v58  ;;  %v4500_v23 = vunpack.c.h.b16 %v3526_v58  ;;  %3061 = vadd.xlane.f32.xlu1 %v3060_v49  ;;  %3058 = vadd.xlane.f32.xlu0 %v3057_v6  ;;  %v2736_v16 = vsel %vm1796_vm0, %v1597_v57, 0.0  ;;  %v1707_v9 = vld [vmem:[%s14278_s0 + $0xd38] sm:$0xff] }
 0x35b   : > { %v12501_v25 = vsel %vm14290_vm5, %v5948_v7, %v5944_v15  ;;  %v12503_v26 = vpop.xlane.xlu1 %2635  ;;  %v12505_v30 = vpop.xlane.xlu0 %2632  ;;  %v1706_v7 = vld [vmem:[%s14278_s0 + $0xd30] sm:$0xff]  ;;  %v2685_v15 = vsel %vm1796_vm0, %v1580_v44, 0.0 }
 0x35c   : > { %v6565_v34 = vrot.slane %v4499_v17, %v10712_v36  ;;  %v6570_v35 = vrot.slane %v4500_v23, %v10724_v42 }
 0x35e   : > { %v6566_v39 = vsel %vm4643_vm2, %v6565_v34, %v6561_v37  ;;  %2737 = vadd.xlane.f32.xlu1 %v2736_v16  ;;  %2734 = vadd.xlane.f32.xlu0 %v2733_v31  ;;  %v1598_v16 = vld [vmem:[%s14278_s0 + $0x9d0] sm:$0xff]  ;;  %v3063_v37 = vsel %vm1796_vm0, %v1706_v7, 0.0  ;;  %v1583_v7 = vld [vmem:[%s14278_s0 + $0x958] sm:$0xff] }
 0x35f   : > { %v12520_v45 = vsel %vm4650_vm3, %v6570_v35, %v6566_v39  ;;  %v3014_v50 = vpop.xlane.xlu1 %3013  ;;  %v3011_v57 = vpop.xlane.xlu0 %3010  ;;  %v1725_v39 = vld [vmem:[%s14278_s0 + $0xdc8] sm:$0xff] }
 0x360   : > { %v3535_v4 = vpack.c.bf16 %v3014_v50, %v3011_v57  ;;  %v2742_v57 = vsel %vm1796_vm0, %v1599_v20, 0.0  ;;  %v1709_v20 = vld [vmem:[%s14278_s0 + $0xd48] sm:$0xff] }
 0x362   : > { %v4517_v49 = vunpack.c.l.b16 %v3535_v4  ;;  %v4518_v6 = vunpack.c.h.b16 %v3535_v4  ;;  %3115 = vadd.xlane.f32.xlu1 %v3114_v59  ;;  %3112 = vadd.xlane.f32.xlu0 %v3111_v62  ;;  %v2739_v59 = vsel %vm1796_vm0, %v1598_v16, 0.0  ;;  %v9428_v62 = vld [vmem:[%s12106_s9 + $0x104] ss:$8 sps:$4 sm:$0xff]  }
 0x363   : > { %v12530_v58 = vpop.xlane.xlu1 %2587  ;;  %v12532_v10 = vpop.xlane.xlu0 %2584  ;;  %8555 = vmatprep.subr.bf16.mxu1 %v9428_v62  ;;  %v1708_v16 = vld [vmem:[%s14278_s0 + $0xd40] sm:$0xff] }
 0x364   : > { %v6654_v17 = vrot.slane %v4517_v49, %v10734_v51  ;;  %v6659_v23 = vrot.slane %v4518_v6, %v10744_v60  ;;  %v3120_v6 = vsel %vm1796_vm0, %v1725_v39, 0.0  ;;  %v3072_v39 = vsel %vm1796_vm0, %v1709_v20, 0.0  ;;  %v9440_v62 = vld [vmem:[%s12106_s9 + $0x504] ss:$8 sps:$4 sm:$0xff]  }
 0x365   : > { %8719 = vmatprep.subr.bf16.mxu0 %v9440_v62  ;;  %v3472_v62 = vpack.c.bf16 %v12503_v26, %v12505_v30  ;;  %v3464_v26 = vpack.c.bf16 %v12530_v58, %v12532_v10  ;;  %v1602_v58 = vld [vmem:[%s14278_s0 + $0x9f0] sm:$0xff] }
 0x366   : > { %v6655_v18 = vsel %vm4657_vm4, %v6654_v17, %v6650_v61  ;;  %2689 = vadd.xlane.f32.xlu1 %v2688_v11  ;;  %2686 = vadd.xlane.f32.xlu0 %v2685_v15  ;;  %v3066_v61 = vsel %vm1796_vm0, %v1707_v9, 0.0  ;;  %v3117_v9 = vsel %vm1796_vm0, %v1724_v40, 0.0  ;;  %v1582_v11 = vld [vmem:[%s14278_s0 + $0x950] sm:$0xff]  ;;  %v3069_v40 = vsel %vm1796_vm0, %v1708_v16, 0.0 }
 0x367   : > { %v12546_v31 = vsel %vm14290_vm5, %v6659_v23, %v6655_v18  ;;  %v12548_v34 = vpop.xlane.xlu1 %2965  ;;  %v12550_v35 = vpop.xlane.xlu0 %2962  ;;  %v2694_v23 = vsel %vm1796_vm0, %v1583_v7, 0.0  ;;  %v2691_v18 = vsel %vm1796_vm0, %v1582_v11, 0.0  ;;  %v4391_v54 = vunpack.c.l.b16 %v3472_v62 }
 0x368   : > { %v12646_v30 = vpack.c.bf16 %v12548_v34, %v12550_v35  ;;  %v1729_v34 = vld [vmem:[%s14278_s0 + $0xde8] sm:$0xff]  ;;  %v1587_v35 = vld [vmem:[%s14278_s0 + $0x978] sm:$0xff]  ;;  %v4375_v52 = vunpack.c.l.b16 %v3464_v26 }
 0x369   : > { %v6032_v5 = vrot.slane %v4391_v54, %v10761_v12  ;;  %v3132_v54 = vsel %vm1796_vm0, %v1729_v34, 0.0  ;;  %v12707_v34 = vsel %vm1796_vm0, %v1731_v33, 0.0  ;;  %v1714_v33 = vld [vmem:[%s14278_s0 + $0xd70] sm:$0xff] }
 0x36a   : > { %3067 = vadd.xlane.f32.xlu1 %v3066_v61  ;;  %3064 = vadd.xlane.f32.xlu0 %v3063_v37  ;;  %v4501_v8 = vunpack.c.l.b16 %v12646_v30 }
 0x36b   : > { %v12560_v44 = vpop.xlane.xlu1 %2641  ;;  %v12562_v50 = vpop.xlane.xlu0 %2638 }
 0x36c   : > { %v3473_v10 = vpack.c.bf16 %v12560_v44, %v12562_v50  ;;  %v1586_v44 = vld [vmem:[%s14278_s0 + $0x970] sm:$0xff]  ;;  %v1713_v50 = vld [vmem:[%s14278_s0 + $0xd68] sm:$0xff] }
 0x36d   : > { %v12696_v47 = vsel %vm1796_vm0, %v1713_v50, 0.0  ;;  %v4376_v50 = vunpack.c.h.b16 %v3464_v26 }
 0x36e   : > { %2743 = vadd.xlane.f32.xlu1 %v2742_v57  ;;  %2740 = vadd.xlane.f32.xlu0 %v2739_v59  ;;  %v1601_v57 = vld [vmem:[%s14278_s0 + $0x9e8] sm:$0xff]  ;;  %v1600_v59 = vld [vmem:[%s14278_s0 + $0x9e0] sm:$0xff]  ;;  %v4394_v26 = vunpack.c.h.b16 %v3473_v10 }
 0x36f   : > { %v12567_v4 = vpop.xlane.xlu1 %3019  ;;  %v12569_v49 = vpop.xlane.xlu0 %3016  ;;  %v2748_v7 = vsel %vm1796_vm0, %v1601_v57, 0.0  ;;  %v2745_v11 = vsel %vm1796_vm0, %v1600_v59, 0.0  ;;  %v1585_v57 = vld [vmem:[%s14278_s0 + $0x968] sm:$0xff]  ;;  %v1584_v59 = vld [vmem:[%s14278_s0 + $0x960] sm:$0xff] }
 0x372   : > { %3121 = vadd.xlane.f32.xlu1 %v3120_v6  ;;  %3118 = vadd.xlane.f32.xlu0 %v3117_v9 }
 0x373   : > { %v12579_v15 = vpop.xlane.xlu1 %2593  ;;  %v12581_v17 = vpop.xlane.xlu0 %2590 }
 0x374   : > { %v12701_v29 = vpack.c.bf16 %v12579_v15, %v12581_v17  ;;  %v5953_v17 = vrot.slane %v4375_v52, %v10761_v12 }
 0x376   : > { %2695 = vadd.xlane.f32.xlu1 %v2694_v23  ;;  %2692 = vadd.xlane.f32.xlu0 %v2691_v18  ;;  %v1727_v23 = vld [vmem:[%s14278_s0 + $0xdd8] sm:$0xff]  ;;  %v1726_v18 = vld [vmem:[%s14278_s0 + $0xdd0] sm:$0xff] }
 0x377   : > { %v12591_v61 = vpop.xlane.xlu1 %2971  ;;  %v12593_v37 = vpop.xlane.xlu0 %2968 }
 0x37a   : > { %3073 = vadd.xlane.f32.xlu1 %v3072_v39  ;;  %3070 = vadd.xlane.f32.xlu0 %v3069_v40  ;;  %v3126_v39 = vsel %vm1796_vm0, %v1727_v23, 0.0  ;;  %v3123_v40 = vsel %vm1796_vm0, %v1726_v18, 0.0  ;;  %v2700_v23 = vsel %vm1796_vm0, %v1585_v57, 0.0  ;;  %v2697_v18 = vsel %vm1796_vm0, %v1584_v59, 0.0 }
 0x37b   : > { %v12604_v6 = vpop.xlane.xlu1 %2647  ;;  %v12606_v9 = vpop.xlane.xlu0 %2644  ;;  %v3078_v57 = vsel %vm1796_vm0, %v1711_v24, 0.0  ;;  %v3075_v59 = vsel %vm1796_vm0, %v1710_v55, 0.0  ;;  %v1728_v24 = vld [vmem:[%s14278_s0 + $0xde0] sm:$0xff]  ;;  %v12670_v55 = vpack.c.bf16 %v12567_v4, %v12569_v49  ;;  %v2751_v49 = vsel %vm1796_vm0, %v1602_v58, 0.0 }
 0x37c   : > { %v2703_v58 = vsel %vm1796_vm0, %v1586_v44, 0.0  ;;  %v3474_v15 = vpack.c.bf16 %v12604_v6, %v12606_v9 }
 0x37d   : > { %v4519_v41 = vunpack.c.l.b16 %v12670_v55 }
 0x37e   : > { %2749 = vadd.xlane.f32.xlu1 %v2748_v7  ;;  %2746 = vadd.xlane.f32.xlu0 %v2745_v11 }
 0x37f   : > { %v12616_v20 = vpop.xlane.xlu1 %3025  ;;  %v12618_v16 = vpop.xlane.xlu0 %3022  ;;  %v6664_v52 = vrot.slane %v4519_v41, %v10761_v12 }
 0x382   : > { %3127 = vadd.xlane.f32.xlu1 %v3126_v39  ;;  %3124 = vadd.xlane.f32.xlu0 %v3123_v40 }
 0x383   : > { %v12630_v7 = vpop.xlane.xlu1 %2599  ;;  %v12632_v11 = vpop.xlane.xlu0 %2596 }
 0x386   : > { %2701 = vadd.xlane.f32.xlu1 %v2700_v23  ;;  %2698 = vadd.xlane.f32.xlu0 %v2697_v18  ;;  %v1603_v23 = vld [vmem:[%s14278_s0 + $0x9f8] sm:$0xff]  ;;  %v4392_v18 = vunpack.c.h.b16 %v3472_v62 }
 0x387   : > { %v12648_v39 = vpop.xlane.xlu1 %2977  ;;  %v12650_v40 = vpop.xlane.xlu0 %2974  ;;  %v2754_v4 = vsel %vm1796_vm0, %v1603_v23, 0.0  ;;  %v2706_v23 = vsel %vm1796_vm0, %v1587_v35, 0.0  ;;  %v6033_v35 = vsel %vm4671_vm6, %v6032_v5, %v12461_v0  ;;  %v4502_v5 = vunpack.c.h.b16 %v12646_v30 }
 0x388   : > { %v6037_v44 = vrot.slane %v4392_v18, %v10764_v13  ;;  %v6575_v0 = vrot.slane %v4501_v8, %v10734_v51  ;;  %v4377_v30 = vunpack.c.l.b16 %v12701_v29  ;;  %v12740_v8 = vsel %vm1796_vm0, %v1715_v46, 0.0 }
 0x389   : > { %v4395_v51 = vunpack.c.l.b16 %v3474_v15 }
 0x38a   : > { %3079 = vadd.xlane.f32.xlu1 %v3078_v57  ;;  %3076 = vadd.xlane.f32.xlu0 %v3075_v59  ;;  %v3129_v57 = vsel %vm1796_vm0, %v1728_v24, 0.0  ;;  %v4393_v59 = vunpack.c.l.b16 %v3473_v10  ;;  %v1730_v24 = vld [vmem:[%s14278_s0 + $0xdf0] sm:$0xff]  ;;  %v12743_v10 = vsel %vm1796_vm0, %v1714_v33, 0.0  ;;  %v6576_v41 = vsel %vm4657_vm4, %v6575_v0, %v12520_v45 }
 0x38b   : > { %v2654_v62 = vpop.xlane.xlu1 %2653  ;;  %v2651_v43 = vpop.xlane.xlu0 %2650  ;;  %v12735_v42 = vsel %vm1796_vm0, %v1730_v24, 0.0  ;;  %v6047_v24 = vrot.slane %v4394_v26, %v10778_v27  ;;  %v3466_v45 = vpack.c.bf16 %v12630_v7, %v12632_v11 }
 0x38c   : > { %v6042_v9 = vrot.slane %v4393_v59, %v10770_v21  ;;  %v6038_v59 = vsel %vm4678_vm7, %v6037_v44, %v6033_v35  ;;  %v3475_v36 = vpack.c.bf16 %v2654_v62, %v2651_v43  ;;  %v1621_v35 = vld [vmem:[%s14278_s0 + $0xa88] sm:$0xff]  ;;  %v1620_v43 = vld [vmem:[%s14278_s0 + $0xa80] sm:$0xff]  ;;  %v4378_v44 = vunpack.c.h.b16 %v12701_v29 }
 0x38d   : > { %v12769_v26 = vsel %vm1796_vm0, %v1621_v35, 0.0  ;;  %v3537_v29 = vpack.c.bf16 %v12616_v20, %v12618_v16 }
 0x38e   : > { %2755 = vadd.xlane.f32.xlu1 %v2754_v4  ;;  %2752 = vadd.xlane.f32.xlu0 %v2751_v49  ;;  %v4520_v4 = vunpack.c.h.b16 %v12670_v55  ;;  %v3528_v49 = vpack.c.bf16 %v12591_v61, %v12593_v37  ;;  %v5958_v55 = vrot.slane %v4376_v50, %v10764_v13  ;;  %v5954_v61 = vsel %vm4671_vm6, %v5953_v17, %v12501_v25 }
 0x38f   : > { %v12726_v18 = vpop.xlane.xlu1 %3031  ;;  %v12728_v6 = vpop.xlane.xlu0 %3028  ;;  %v6580_v37 = vrot.slane %v4502_v5, %v10744_v60  ;;  %v6043_v62 = vsel %vm4685_vm8, %v6042_v9, %v6038_v59  ;;  %v5963_v50 = vrot.slane %v4377_v30, %v10770_v21  ;;  %v4396_v17 = vunpack.c.h.b16 %v3474_v15 }
 0x390   : > { %v6669_v25 = vrot.slane %v4520_v4, %v10764_v13  ;;  %v6052_v5 = vrot.slane %v4395_v51, %v10796_v48  ;;  %v4397_v0 = vunpack.c.l.b16 %v3475_v36  ;;  %v12772_v9 = vsel %vm1796_vm0, %v1620_v43, 0.0  ;;  %v1605_v51 = vld [vmem:[%s14278_s0 + $0xa08] sm:$0xff] }
 0x391   : > { %v5959_v7 = vsel %vm4678_vm7, %v5958_v55, %v5954_v61  ;;  %v4504_v11 = vunpack.c.h.b16 %v3528_v49  ;;  %v4379_v30 = vunpack.c.l.b16 %v3466_v45  ;;  %v6057_v55 = vrot.slane %v4396_v17, %v10806_v56 }
 0x392   : > { %3133 = vadd.xlane.f32.xlu1 %v3132_v54  ;;  %3130 = vadd.xlane.f32.xlu0 %v3129_v57  ;;  %v4503_v54 = vunpack.c.l.b16 %v3528_v49  ;;  %v6665_v57 = vsel %vm4671_vm6, %v6664_v52, %v12546_v31  ;;  %v6581_v31 = vsel %vm14290_vm5, %v6580_v37, %v6576_v41  ;;  %v5964_v59 = vsel %vm4685_vm8, %v5963_v50, %v5959_v7 }
 0x393   : > { %v2606_v46 = vpop.xlane.xlu1 %2605  ;;  %v2603_v33 = vpop.xlane.xlu0 %2602  ;;  %v5968_v49 = vrot.slane %v4378_v44, %v10778_v27  ;;  %v4398_v20 = vunpack.c.h.b16 %v3475_v36  ;;  %vm14291_vm5 = vcmask 1041409   ;;  %v6062_v61 = vrot.slane %v4397_v0, %v10813_v2 }
 0x394   : > { %v6585_v52 = vrot.slane %v4503_v54, %v10761_v12  ;;  %v3467_v41 = vpack.c.bf16 %v2606_v46, %v2603_v33  ;;  %v12792_v37 = vsel %vm1796_vm0, %v1605_v51, 0.0  ;;  %v4521_v35 = vunpack.c.l.b16 %v3537_v29 }
 0x395   : > { %v4522_v43 = vunpack.c.h.b16 %v3537_v29  ;;  %v3529_v36 = vpack.c.bf16 %v12648_v39, %v12650_v40  ;;  %v5973_v46 = vrot.slane %v4379_v30, %v10796_v48  ;;  %v6067_v44 = vrot.slane %v4398_v20, %v10816_v3 }
 0x396   : > { %2707 = vadd.xlane.f32.xlu1 %v2706_v23  ;;  %2704 = vadd.xlane.f32.xlu0 %v2703_v58  ;;  %v6048_v23 = vsel %vm4692_vm9, %v6047_v24, %v6043_v62  ;;  %v6670_v58 = vsel %vm4678_vm7, %v6669_v25, %v6665_v57  ;;  %v6590_v24 = vrot.slane %v4504_v11, %v10764_v13  ;;  %v4380_v57 = vunpack.c.h.b16 %v3466_v45 }
 0x397   : > { %v2984_v15 = vpop.xlane.xlu1 %2983  ;;  %v2981_v4 = vpop.xlane.xlu0 %2980  ;;  %v6053_v16 = vsel %vm4699_vm10, %v6052_v5, %v6048_v23  ;;  %v6586_v54 = vsel %vm4671_vm6, %v6585_v52, %v6581_v31  ;;  %v3538_v50 = vpack.c.bf16 %v12726_v18, %v12728_v6  ;;  %v4381_v17 = vunpack.c.l.b16 %v3467_v41  ;;  %v1604_v18 = vld [vmem:[%s14278_s0 + $0xa00] sm:$0xff] }
 0x398   : > { %v6058_v33 = vsel %vm4706_vm11, %v6057_v55, %v6053_v16  ;;  %v6591_v45 = vsel %vm4678_vm7, %v6590_v24, %v6586_v54  ;;  %v6674_v0 = vrot.slane %v4521_v35, %v10770_v21  ;;  %v6679_v7 = vrot.slane %v4522_v43, %v10778_v27 }
 0x399   : > { %v6063_v40 = vsel %vm4713_vm12, %v6062_v61, %v6058_v33  ;;  %v4505_v31 = vunpack.c.l.b16 %v3529_v36  ;;  %v4523_v23 = vunpack.c.l.b16 %v3538_v50  ;;  %v4382_v52 = vunpack.c.h.b16 %v3467_v41 }
 0x39a   : > { %3085 = vadd.xlane.f32.xlu1 %v12696_v47  ;;  %3082 = vadd.xlane.f32.xlu0 %v12704_v53  ;;  %v5969_v53 = vsel %vm4692_vm9, %v5968_v49, %v5964_v59  ;;  %v3530_v30 = vpack.c.bf16 %v2984_v15, %v2981_v4  ;;  %v6068_v59 = vsel %vm4720_vm13, %v6067_v44, %v6063_v40  ;;  %v2757_v16 = vsel %vm1796_vm0, %v1604_v18, 0.0 }
 0x39b   : > { %v2660_v62 = vpop.xlane.xlu1 %2659  ;;  %v2657_v25 = vpop.xlane.xlu0 %2656  ;;  %v5974_v6 = vsel %vm4699_vm10, %v5973_v46, %v5969_v53  ;;  %v5983_v49 = vrot.slane %v4381_v17, %v10813_v2  ;;  %v4506_v61 = vunpack.c.h.b16 %v3529_v36  ;;  %v6595_v24 = vrot.slane %v4505_v31, %v10770_v21 }
 0x39c   : > { %v3476_v47 = vpack.c.bf16 %v2660_v62, %v2657_v25  ;;  %v4524_v35 = vunpack.c.h.b16 %v3538_v50  ;;  %v6675_v4 = vsel %vm4685_vm8, %v6674_v0, %v6670_v58  ;;  %v5988_v54 = vrot.slane %v4382_v52, %v10816_v3 }
 0x39d   : > { %v4507_v36 = vunpack.c.l.b16 %v3530_v30  ;;  %v6680_v58 = vsel %vm4692_vm9, %v6679_v7, %v6675_v4  ;;  %v6596_v44 = vsel %vm4685_vm8, %v6595_v24, %v6591_v45  ;;  %v9426_v24 = vld [vmem:[%s12106_s9 + $0x100] ss:$8 sps:$4 sm:$0xff]   ;;  %v9431_v4 = vld [vmem:[%s12106_s9 + $0x114] ss:$8 sps:$4 sm:$0xff]  }
 0x39e   : > { %v4399_v5 = vunpack.c.l.b16 %v3476_v47  ;;  %v4400_v39 = vunpack.c.h.b16 %v3476_v47  ;;  %3139 = vadd.xlane.f32.xlu1 %v12707_v34  ;;  %3136 = vadd.xlane.f32.xlu0 %v12735_v42  ;;  %v5978_v34 = vrot.slane %v4380_v57, %v10806_v56  ;;  %v6689_v50 = vrot.slane %v4524_v35, %v10806_v56 }
 0x39f   : > { %v3038_v11 = vpop.xlane.xlu1 %3037  ;;  %v3035_v29 = vpop.xlane.xlu0 %3034 }
 0x3a0   : > { %v6072_v42 = vrot.slane %v4399_v5, %v10831_v19  ;;  %v6077_v51 = vrot.slane %v4400_v39, %v10838_v28  ;;  %v3539_v55 = vpack.c.bf16 %v3038_v11, %v3035_v29  ;;  %v5979_v62 = vsel %vm4706_vm11, %v5978_v34, %v5974_v6 }
 0x3a1   : > { %v5984_v46 = vsel %vm4713_vm12, %v5983_v49, %v5979_v62  ;;  %v4508_v39 = vunpack.c.h.b16 %v3530_v30  ;;  %v6605_v11 = vrot.slane %v4507_v36, %v10796_v48 }
 0x3a2   : > { %3091 = vadd.xlane.f32.xlu1 %v12740_v8  ;;  %3088 = vadd.xlane.f32.xlu0 %v12743_v10  ;;  %v6073_v20 = vsel %vm4727_vm14, %v6072_v42, %v6068_v59  ;;  %v6684_v10 = vrot.slane %v4523_v23, %v10796_v48  ;;  %v4525_v47 = vunpack.c.l.b16 %v3539_v55  ;;  %v5989_v7 = vsel %vm4720_vm13, %v5988_v54, %v5984_v46 }
 0x3a3   : > { %v2612_v43 = vpop.xlane.xlu1 %2611  ;;  %v2609_v41 = vpop.xlane.xlu0 %2608  ;;  %v6078_v15 = vsel %vm4734_vm15, %v6077_v51, %v6073_v20  ;;  %v4526_v29 = vunpack.c.h.b16 %v3539_v55  ;;  %v6610_v55 = vrot.slane %v4508_v39, %v10806_v56 }
 0x3a4   : > { %v3468_v25 = vpack.c.bf16 %v2612_v43, %v2609_v41  ;;  %v7187_v8 = vsel %vm14291_vm5, %v6078_v15, %v10965_v14  ;;  %v6600_v14 = vrot.slane %v4506_v61, %v10778_v27  ;;  %v6685_v45 = vsel %vm4699_vm10, %v6684_v10, %v6680_v58  ;;  %v1606_v61 = vld [vmem:[%s14278_s0 + $0xa10] sm:$0xff]  ;;  %v1748_v58 = vld [vmem:[%s14278_s0 + $0xe80] sm:$0xff] }
 0x3a5   : > { %v7203_v57 = vpack.c.b16 %v7187_v8, %v7187_v8  ;;  %v6694_v18 = vrot.slane %v4525_v47, %v10813_v2  ;;  %v6690_v49 = vsel %vm4706_vm11, %v6689_v50, %v6685_v45  ;;  %v6699_v43 = vrot.slane %v4526_v29, %v10816_v3 }
 0x3a6   : > { %v4383_v53 = vunpack.c.l.b16 %v3468_v25  ;;  %v4384_v33 = vunpack.c.h.b16 %v3468_v25  ;;  %2809 = vadd.xlane.f32.xlu1 %v12769_v26  ;;  %2806 = vadd.xlane.f32.xlu0 %v12772_v9  ;;  %v1623_v26 = vld [vmem:[%s14278_s0 + $0xa98] sm:$0xff]  ;;  %v1622_v9 = vld [vmem:[%s14278_s0 + $0xa90] sm:$0xff]  ;;  %v6601_v42 = vsel %vm4692_vm9, %v6600_v14, %v6596_v44 }
 0x3a7   : > { %v2990_v17 = vpop.xlane.xlu1 %2989  ;;  %8546 = vmatprep.mubr.bf16.mxu1 %v7203_v57  ;;  %v2987_v5 = vpop.xlane.xlu0 %2986  ;;  %v2814_v52 = vsel %vm1796_vm0, %v1623_v26, 0.0  ;;  %v2811_v30 = vsel %vm1796_vm0, %v1622_v9, 0.0  ;;  %v6606_v35 = vsel %vm4699_vm10, %v6605_v11, %v6601_v42  ;;  %v6695_v8 = vsel %vm4713_vm12, %v6694_v18, %v6690_v49  ;;  %v9429_v44 = vld [vmem:[%s12106_s9 + $0x110] ss:$8 sps:$4 sm:$0xff]   ;;  %v1625_v42 = vld [vmem:[%s14278_s0 + $0xaa8] sm:$0xff] }
 0x3a8   : > { %v5993_v40 = vrot.slane %v4383_v53, %v10831_v19  ;;  %v5998_v0 = vrot.slane %v4384_v33, %v10838_v28  ;;  %v3531_v31 = vpack.c.bf16 %v2990_v17, %v2987_v5  ;;  %v2763_v57 = vsel %vm1796_vm0, %v1606_v61, 0.0  ;;  %v1749_v33 = vld [vmem:[%s14278_s0 + $0xe88] sm:$0xff] }
 0x3a9   : > { %v6611_v14 = vsel %vm4706_vm11, %v6610_v55, %v6606_v35  ;;  %v6700_v17 = vsel %vm4720_vm13, %v6699_v43, %v6695_v8  ;;  %v9434_v5 = vld [vmem:[%s12106_s9 + $0x124] ss:$8 sps:$4 sm:$0xff]   ;;  %v3192_v45 = vsel %vm1796_vm0, %v1749_v33, 0.0  ;;  %v9446_v8 = vld [vmem:[%s12106_s9 + $0x514] ss:$8 sps:$4 sm:$0xff]  }
 0x3aa   : > { %v4509_v6 = vunpack.c.l.b16 %v3531_v31  ;;  %2761 = vadd.xlane.f32.xlu1 %v12792_v37  ;;  %2758 = vadd.xlane.f32.xlu0 %v2757_v16  ;;  %v5994_v34 = vsel %vm4727_vm14, %v5993_v40, %v5989_v7  ;;  %v1607_v16 = vld [vmem:[%s14278_s0 + $0xa18] sm:$0xff]  ;;  %v4510_v41 = vunpack.c.h.b16 %v3531_v31  ;;  %v3189_v7 = vsel %vm1796_vm0, %v1748_v58, 0.0  ;;  %v1733_v61 = vld [vmem:[%s14278_s0 + $0xe08] sm:$0xff]  ;;  %v1732_v43 = vld [vmem:[%s14278_s0 + $0xe00] sm:$0xff] }
 0x3ab   : > { %v3044_v51 = vpop.xlane.xlu1 %3043  ;;  %v3041_v23 = vpop.xlane.xlu0 %3040  ;;  %v5999_v59 = vsel %vm4734_vm15, %v5998_v0, %v5994_v34  ;;  %v2766_v36 = vsel %vm1796_vm0, %v1607_v16, 0.0  ;;  %v9444_v33 = vld [vmem:[%s12106_s9 + $0x510] ss:$8 sps:$4 sm:$0xff]  }
 0x3ac   : > { %v3540_v20 = vpack.c.bf16 %v3044_v51, %v3041_v23  ;;  %v7186_v37 = vsel %vm14291_vm5, %v5999_v59, %v10868_v63  ;;  %v6615_v62 = vrot.slane %v4509_v6, %v10813_v2  ;;  %v6620_v50 = vrot.slane %v4510_v41, %v10816_v3  ;;  %v1624_v51 = vld [vmem:[%s14278_s0 + $0xaa0] sm:$0xff]  ;;  %v9437_v59 = vld [vmem:[%s12106_s9 + $0x134] ss:$8 sps:$4 sm:$0xff]   ;;  %v9435_v41 = vld [vmem:[%s12106_s9 + $0x130] ss:$8 sps:$4 sm:$0xff]  }
 0x3ad   : > { %v7202_v15 = vpack.c.b16 %v7186_v37, %v7186_v37  ;;  %v9432_v23 = vld [vmem:[%s12106_s9 + $0x120] ss:$8 sps:$4 sm:$0xff]   ;;  %v2817_v37 = vsel %vm1796_vm0, %v1624_v51, 0.0 }
 0x3ae   : > { %v4527_v25 = vunpack.c.l.b16 %v3540_v20  ;;  %v4528_v63 = vunpack.c.h.b16 %v3540_v20  ;;  %2815 = vadd.xlane.f32.xlu1 %v2814_v52  ;;  %2812 = vadd.xlane.f32.xlu0 %v2811_v30  ;;  %v6616_v39 = vsel %vm4713_vm12, %v6615_v62, %v6611_v14  ;;  %v2820_v20 = vsel %vm1796_vm0, %v1625_v42, 0.0  ;;  %v9447_v42 = vld [vmem:[%s12106_s9 + $0x150] ss:$8 sps:$4 sm:$0xff]   ;;  %v9450_v51 = vld [vmem:[%s12106_s9 + $0x520] ss:$8 sps:$4 sm:$0xff]  }
 0x3af   : > { %v2996_v10 = vpop.xlane.xlu1 %2995  ;;  %v2993_v54 = vpop.xlane.xlu0 %2992  ;;  %8547 = vmatmul.mubr.bf16.vlgmr.msra.gmra.mrb[0].mxu1 %v7202_v15  ;;  %v6621_v52 = vsel %vm4720_vm13, %v6620_v50, %v6616_v39  ;;  %v9438_v15 = vld [vmem:[%s12106_s9 + $0x500] ss:$8 sps:$4 sm:$0xff]  }
 0x3b0   : > { %v6704_v46 = vrot.slane %v4527_v25, %v10831_v19  ;;  %v6709_v47 = vrot.slane %v4528_v63, %v10838_v28  ;;  %v3532_v53 = vpack.c.bf16 %v2996_v10, %v2993_v54  ;;  %8556 = vmatpush1.bf16.msra.mxu1 %v9426_v24  ;;  %v9443_v63 = vld [vmem:[%s12106_s9 + $0x144] ss:$8 sps:$4 sm:$0xff]  }
 0x3b1   : > { %8557 = vmatprep.subr.bf16.mxu1 %v9431_v4 }
 0x3b2   : > { %v4511_v40 = vunpack.c.l.b16 %v3532_v53  ;;  %v4512_v0 = vunpack.c.h.b16 %v3532_v53  ;;  %2767 = vadd.xlane.f32.xlu1 %v2766_v36  ;;  %2764 = vadd.xlane.f32.xlu0 %v2763_v57  ;;  %v6705_v31 = vsel %vm4727_vm14, %v6704_v46, %v6700_v17  ;;  %v3141_v36 = vsel %vm1796_vm0, %v1732_v43, 0.0  ;;  %v1751_v57 = vld [vmem:[%s14278_s0 + $0xe98] sm:$0xff]  ;;  %v9441_v53 = vld [vmem:[%s12106_s9 + $0x140] ss:$8 sps:$4 sm:$0xff]  }
 0x3b3   : > { %v2714_v26 = vpop.xlane.xlu1 %2713  ;;  %v2711_v9 = vpop.xlane.xlu0 %2710  ;;  %v6710_v11 = vsel %vm4734_vm15, %v6709_v47, %v6705_v31  ;;  %v1750_v47 = vld [vmem:[%s14278_s0 + $0xe90] sm:$0xff]  ;;  %v1735_v43 = vld [vmem:[%s14278_s0 + $0xe18] sm:$0xff] }
 0x3b4   : > { %v6625_v29 = vrot.slane %v4511_v40, %v10831_v19  ;;  %v6630_v18 = vrot.slane %v4512_v0, %v10838_v28  ;;  %v3485_v6 = vpack.c.bf16 %v2714_v26, %v2711_v9  ;;  %v7195_v34 = vsel %vm14291_vm5, %v6710_v11, %v11741_v1  ;;  %8558 = vmatpush1.bf16.msra.mxu1 %v9429_v44  ;;  %v9449_v17 = vld [vmem:[%s12106_s9 + $0x154] ss:$8 sps:$4 sm:$0xff]  }
 0x3b5   : > { %v7211_v30 = vpack.c.b16 %v7195_v34, %v7195_v34  ;;  %8559 = vmatprep.subr.bf16.mxu1 %v9434_v5  ;;  %v9452_v5 = vld [vmem:[%s12106_s9 + $0x524] ss:$8 sps:$4 sm:$0xff]   ;;  %v3198_v26 = vsel %vm1796_vm0, %v1751_v57, 0.0  ;;  %v3195_v9 = vsel %vm1796_vm0, %v1750_v47, 0.0  ;;  %v3150_v47 = vsel %vm1796_vm0, %v1735_v43, 0.0 }
 0x3b6   : > { %3193 = vadd.xlane.f32.xlu1 %v3192_v45  ;;  %3190 = vadd.xlane.f32.xlu0 %v3189_v7  ;;  %v6626_v1 = vsel %vm4727_vm14, %v6625_v29, %v6621_v52  ;;  %v4417_v4 = vunpack.c.l.b16 %v3485_v6  ;;  %v4418_v62 = vunpack.c.h.b16 %v3485_v6  ;;  %v1609_v45 = vld [vmem:[%s14278_s0 + $0xa28] sm:$0xff]  ;;  %v14310_v7 = vld [vmem:[#allocation7_spill] sm:$0xff]  ;;  %v14311_v29 = vld [vmem:[#allocation8_spill] sm:$0xff] }
 0x3b7   : > { %v2666_v49 = vpop.xlane.xlu1 %2665  ;;  %8710 = vmatprep.mubr.bf16.mxu0 %v7211_v30  ;;  %v2663_v55 = vpop.xlane.xlu0 %2662  ;;  %v6631_v16 = vsel %vm4734_vm15, %v6630_v18, %v6626_v1  ;;  %v1608_v34 = vld [vmem:[%s14278_s0 + $0xa20] sm:$0xff]  ;;  %v9458_v1 = vld [vmem:[%s12106_s9 + $0x534] ss:$8 sps:$4 sm:$0xff]  }
 0x3b8   : > { %v3477_v24 = vpack.c.bf16 %v2666_v49, %v2663_v55  ;;  %v7194_v35 = vsel %vm14291_vm5, %v6631_v16, %v11644_v22  ;;  %8560 = vmatpush1.bf16.msra.mxu1 %v9432_v23  ;;  %v3144_v22 = vsel %vm1796_vm0, %v1733_v61, 0.0  ;;  %v6161_v58 = vrot.slane %v4417_v4, %v10707_v32 }
 0x3b9   : > { %v7210_v25 = vpack.c.b16 %v7194_v35, %v7194_v35  ;;  %8561 = vmatprep.subr.bf16.mxu1 %v9437_v59  ;;  %v6165_v44 = vrot.slane %v4418_v62, %v10715_v38  ;;  %v9455_v59 = vld [vmem:[%s12106_s9 + $0x164] ss:$8 sps:$4 sm:$0xff]   ;;  %v2769_v35 = vsel %vm1796_vm0, %v1608_v34, 0.0  ;;  %v1734_v62 = vld [vmem:[%s14278_s0 + $0xe10] sm:$0xff]  ;;  %vm14313_vm5 = vcmask 392512  }
 0x3ba   : > { %2821 = vadd.xlane.f32.xlu1 %v2820_v20  ;;  %2818 = vadd.xlane.f32.xlu0 %v2817_v37  ;;  %v4401_v14 = vunpack.c.l.b16 %v3477_v24  ;;  %v4402_v50 = vunpack.c.h.b16 %v3477_v24  ;;  %v2772_v24 = vsel %vm1796_vm0, %v1609_v45, 0.0  ;;  %v1753_v45 = vld [vmem:[%s14278_s0 + $0xea8] sm:$0xff] }
 0x3bb   : > { %v2720_v10 = vpop.xlane.xlu1 %2719  ;;  %v2717_v54 = vpop.xlane.xlu0 %2716  ;;  %8711 = vmatmul.mubr.bf16.vlgmr.msra.gmra.mrb[0].mxu0 %v7210_v25  ;;  %v6166_v23 = vsel %vm4636_vm1, %v6165_v44, %v6161_v58  ;;  %v9453_v25 = vld [vmem:[%s12106_s9 + $0x160] ss:$8 sps:$4 sm:$0xff]   ;;  %v1626_v44 = vld [vmem:[%s14278_s0 + $0xab0] sm:$0xff] }
 0x3bc   : > { %v3486_v46 = vpack.c.bf16 %v2720_v10, %v2717_v54  ;;  %8562 = vmatpush1.bf16.msra.mxu1 %v9435_v41  ;;  %8720 = vmatpush1.bf16.msra.mxu0 %v9438_v15  ;;  %v6082_v52 = vrot.slane %v4401_v14, %v10707_v32  ;;  %v6086_v30 = vrot.slane %v4402_v50, %v10715_v38  ;;  %v9461_v10 = vld [vmem:[%s12106_s9 + $0x174] ss:$8 sps:$4 sm:$0xff]   ;;  %v9464_v54 = vld [vmem:[%s12106_s9 + $0x544] ss:$8 sps:$4 sm:$0xff]   ;;  %v9459_v14 = vld [vmem:[%s12106_s9 + $0x170] ss:$8 sps:$4 sm:$0xff]  }
 0x3bd   : > { %8563 = vmatprep.subr.bf16.mxu1 %v9443_v63  ;;  %8721 = vmatprep.subr.bf16.mxu0 %v9446_v8  ;;  %v9456_v63 = vld [vmem:[%s12106_s9 + $0x530] ss:$8 sps:$4 sm:$0xff]   ;;  %v9462_v50 = vld [vmem:[%s12106_s9 + $0x540] ss:$8 sps:$4 sm:$0xff]  }
 0x3be   : > { %v4419_v39 = vunpack.c.l.b16 %v3486_v46  ;;  %v4420_v40 = vunpack.c.h.b16 %v3486_v46  ;;  %3145 = vadd.xlane.f32.xlu1 %v3144_v22  ;;  %3142 = vadd.xlane.f32.xlu0 %v3141_v36  ;;  %v6087_v8 = vsel %vm4636_vm1, %v6086_v30, %v6082_v52 }
 0x3bf   : > { %v2672_v0 = vpop.xlane.xlu1 %2671  ;;  %v2669_v31 = vpop.xlane.xlu0 %2668 }
 0x3c0   : > { %v6170_v11 = vrot.slane %v4419_v39, %v14310_v7  ;;  %v6175_v18 = vrot.slane %v4420_v40, %v14311_v29  ;;  %v3478_v6 = vpack.c.bf16 %v2672_v0, %v2669_v31  ;;  %8564 = vmatpush1.bf16.msra.mxu1 %v9441_v53  ;;  %8722 = vmatpush1.bf16.msra.mxu0 %v9444_v33  ;;  %v3147_v53 = vsel %vm1796_vm0, %v1734_v62, 0.0  ;;  %v1627_v33 = vld [vmem:[%s14278_s0 + $0xab8] sm:$0xff] }
 0x3c1   : > { %8565 = vmatprep.subr.bf16.mxu1 %v9449_v17  ;;  %8723 = vmatprep.subr.bf16.mxu0 %v9452_v5  ;;  %v9467_v17 = vld [vmem:[%s12106_s9 + $0x184] ss:$8 sps:$4 sm:$0xff]   ;;  %v9470_v5 = vld [vmem:[%s12106_s9 + $0x554] ss:$8 sps:$4 sm:$0xff]  }
 0x3c2   : > { %v6171_v49 = vsel %vm4643_vm2, %v6170_v11, %v6166_v23  ;;  %v4403_v55 = vunpack.c.l.b16 %v3478_v6  ;;  %v4404_v20 = vunpack.c.h.b16 %v3478_v6  ;;  %3199 = vadd.xlane.f32.xlu1 %v3198_v26  ;;  %3196 = vadd.xlane.f32.xlu0 %v3195_v9  ;;  %v2826_v26 = vsel %vm1796_vm0, %v1627_v33, 0.0  ;;  %v14312_v11 = vld [vmem:[#allocation9_spill] sm:$0xff]  ;;  %v9468_v23 = vld [vmem:[%s12106_s9 + $0x550] ss:$8 sps:$4 sm:$0xff]  }
 0x3c3   : > { %v6176_v37 = vsel %vm4650_vm3, %v6175_v18, %v6171_v49  ;;  %v3098_v16 = vpop.xlane.xlu1 %3097  ;;  %v3095_v61 = vpop.xlane.xlu0 %3094  ;;  %v2823_v9 = vsel %vm1796_vm0, %v1626_v44, 0.0  ;;  %v1736_v44 = vld [vmem:[%s14278_s0 + $0xe20] sm:$0xff] }
 0x3c4   : > { %v6091_v41 = vrot.slane %v4403_v55, %v14310_v7  ;;  %v6096_v15 = vrot.slane %v4404_v20, %v14311_v29  ;;  %v12961_v4 = vpack.c.bf16 %v3098_v16, %v3095_v61  ;;  %8566 = vmatpush1.bf16.msra.mxu1 %v9447_v42  ;;  %8724 = vmatpush1.bf16.msra.mxu0 %v9450_v51  ;;  %v1752_v42 = vld [vmem:[%s14278_s0 + $0xea0] sm:$0xff]  ;;  %v3204_v61 = vsel %vm1796_vm0, %v1753_v45, 0.0 }
 0x3c5   : > { %8567 = vmatprep.subr.bf16.mxu1 %v9455_v59  ;;  %8725 = vmatprep.subr.bf16.mxu0 %v9458_v1  ;;  %v9465_v51 = vld [vmem:[%s12106_s9 + $0x180] ss:$8 sps:$4 sm:$0xff]   ;;  %v9473_v59 = vld [vmem:[%s12106_s9 + $0x194] ss:$8 sps:$4 sm:$0xff]   ;;  %v9476_v1 = vld [vmem:[%s12106_s9 + $0x564] ss:$8 sps:$4 sm:$0xff]  }
 0x3c6   : > { %v6092_v22 = vsel %vm4643_vm2, %v6091_v41, %v6087_v8  ;;  %2773 = vadd.xlane.f32.xlu1 %v2772_v24  ;;  %2770 = vadd.xlane.f32.xlu0 %v2769_v35  ;;  %v4545_v52 = vunpack.c.l.b16 %v12961_v4  ;;  %v4546_v30 = vunpack.c.h.b16 %v12961_v4  ;;  %v3201_v24 = vsel %vm1796_vm0, %v1752_v42, 0.0  ;;  %v1611_v35 = vld [vmem:[%s14278_s0 + $0xa38] sm:$0xff] }
 0x3c7   : > { %v12973_v36 = vsel %vm4650_vm3, %v6096_v15, %v6092_v22  ;;  %v2726_v57 = vpop.xlane.xlu1 %2725  ;;  %v2723_v46 = vpop.xlane.xlu0 %2722  ;;  %v9471_v41 = vld [vmem:[%s12106_s9 + $0x190] ss:$8 sps:$4 sm:$0xff]   ;;  %v9474_v15 = vld [vmem:[%s12106_s9 + $0x560] ss:$8 sps:$4 sm:$0xff]   ;;  %v3153_v42 = vsel %vm1796_vm0, %v1736_v44, 0.0 }
 0x3c8   : > { %v3487_v58 = vpack.c.bf16 %v2726_v57, %v2723_v46  ;;  %8568 = vmatpush1.bf16.msra.mxu1 %v9453_v25  ;;  %8726 = vmatpush1.bf16.msra.mxu0 %v9456_v63  ;;  %v6793_v4 = vrot.slane %v4545_v52, %v10707_v32  ;;  %v6797_v62 = vrot.slane %v4546_v30, %v10715_v38  ;;  %v9479_v25 = vld [vmem:[%s12106_s9 + $0x1a4] ss:$8 sps:$4 sm:$0xff]   ;;  %v9482_v63 = vld [vmem:[%s12106_s9 + $0x574] ss:$8 sps:$4 sm:$0xff]   ;;  %v2778_v57 = vsel %vm1796_vm0, %v1611_v35, 0.0 }
 0x3c9   : > { %8569 = vmatprep.subr.bf16.mxu1 %v9461_v10  ;;  %8727 = vmatprep.subr.bf16.mxu0 %v9464_v54 }
 0x3ca   : > { %v4421_v39 = vunpack.c.l.b16 %v3487_v58  ;;  %v4422_v40 = vunpack.c.h.b16 %v3487_v58  ;;  %3151 = vadd.xlane.f32.xlu1 %v3150_v47  ;;  %3148 = vadd.xlane.f32.xlu0 %v3147_v53  ;;  %v1737_v47 = vld [vmem:[%s14278_s0 + $0xe28] sm:$0xff] }
 0x3cb   : > { %v3050_v0 = vpop.xlane.xlu1 %3049  ;;  %v3047_v31 = vpop.xlane.xlu0 %3046 }
 0x3cc   : > { %v6180_v18 = vrot.slane %v4421_v39, %v14312_v11  ;;  %v6185_v6 = vrot.slane %v4422_v40, %v10744_v60  ;;  %v12994_v34 = vpack.c.bf16 %v3050_v0, %v3047_v31  ;;  %8570 = vmatpush1.bf16.msra.mxu1 %v9459_v14  ;;  %8728 = vmatpush1.bf16.msra.mxu0 %v9462_v50  ;;  %v9477_v14 = vld [vmem:[%s12106_s9 + $0x1a0] ss:$8 sps:$4 sm:$0xff]   ;;  %v9480_v50 = vld [vmem:[%s12106_s9 + $0x570] ss:$8 sps:$4 sm:$0xff]   ;;  %v9485_v40 = vld [vmem:[%s12106_s9 + $0x1b4] ss:$8 sps:$4 sm:$0xff]  }
 0x3cd   : > { %8571 = vmatprep.subr.bf16.mxu1 %v9467_v17  ;;  %8729 = vmatprep.subr.bf16.mxu0 %v9470_v5  ;;  %v6798_v17 = vsel %vm4636_vm1, %v6797_v62, %v6793_v4  ;;  %v9488_v0 = vld [vmem:[%s12106_s9 + $0x584] ss:$8 sps:$4 sm:$0xff]  }
 0x3ce   : > { %v6181_v49 = vsel %vm4657_vm4, %v6180_v18, %v6176_v37  ;;  %2827 = vadd.xlane.f32.xlu1 %v2826_v26  ;;  %2824 = vadd.xlane.f32.xlu0 %v2823_v9  ;;  %v1610_v37 = vld [vmem:[%s14278_s0 + $0xa30] sm:$0xff]  ;;  %v4529_v5 = vunpack.c.l.b16 %v12994_v34  ;;  %v4530_v39 = vunpack.c.h.b16 %v12994_v34  ;;  %v3156_v34 = vsel %vm1796_vm0, %v1737_v47, 0.0  ;;  %v9500_v47 = vld [vmem:[%s12106_s9 + $0x5a4] ss:$8 sps:$4 sm:$0xff]  }
 0x3cf   : > { %v13007_v55 = vsel %vm14313_vm5, %v6185_v6, %v6181_v49  ;;  %v3104_v20 = vpop.xlane.xlu1 %3103  ;;  %v3101_v16 = vpop.xlane.xlu0 %3100  ;;  %v2775_v46 = vsel %vm1796_vm0, %v1610_v37, 0.0  ;;  %v9486_v49 = vld [vmem:[%s12106_s9 + $0x580] ss:$8 sps:$4 sm:$0xff]  }
 0x3d0   : > { %v3550_v43 = vpack.c.bf16 %v3104_v20, %v3101_v16  ;;  %8572 = vmatpush1.bf16.msra.mxu1 %v9465_v51  ;;  %8730 = vmatpush1.bf16.msra.mxu0 %v9468_v23  ;;  %v1629_v51 = vld [vmem:[%s14278_s0 + $0xac8] sm:$0xff]  ;;  %v6714_v20 = vrot.slane %v4529_v5, %v10707_v32  ;;  %v6718_v16 = vrot.slane %v4530_v39, %v10715_v38  ;;  %v1612_v39 = vld [vmem:[%s14278_s0 + $0xa40] sm:$0xff] }
 0x3d1   : > { %8573 = vmatprep.subr.bf16.mxu1 %v9473_v59  ;;  %8731 = vmatprep.subr.bf16.mxu0 %v9476_v1  ;;  %v1628_v59 = vld [vmem:[%s14278_s0 + $0xac0] sm:$0xff]  ;;  %v9483_v1 = vld [vmem:[%s12106_s9 + $0x1b0] ss:$8 sps:$4 sm:$0xff]   ;;  %v2832_v62 = vsel %vm1796_vm0, %v1629_v51, 0.0  ;;  %v2781_v51 = vsel %vm1796_vm0, %v1612_v39, 0.0 }
 0x3d2   : > { %v4547_v8 = vunpack.c.l.b16 %v3550_v43  ;;  %v4548_v10 = vunpack.c.h.b16 %v3550_v43  ;;  %3205 = vadd.xlane.f32.xlu1 %v3204_v61  ;;  %3202 = vadd.xlane.f32.xlu0 %v3201_v24  ;;  %v9491_v61 = vld [vmem:[%s12106_s9 + $0x1c4] ss:$8 sps:$4 sm:$0xff]   ;;  %v9494_v24 = vld [vmem:[%s12106_s9 + $0x594] ss:$8 sps:$4 sm:$0xff]  }
 0x3d3   : > { %v2678_v54 = vpop.xlane.xlu1 %2677  ;;  %v2675_v22 = vpop.xlane.xlu0 %2674  ;;  %v1615_v39 = vld [vmem:[%s14278_s0 + $0xa58] sm:$0xff] }
 0x3d4   : > { %v6802_v53 = vrot.slane %v4547_v8, %v14310_v7  ;;  %v6807_v33 = vrot.slane %v4548_v10, %v14311_v29  ;;  %v3479_v58 = vpack.c.bf16 %v2678_v54, %v2675_v22  ;;  %8574 = vmatpush1.bf16.msra.mxu1 %v9471_v41  ;;  %8732 = vmatpush1.bf16.msra.mxu0 %v9474_v15  ;;  %v1754_v10 = vld [vmem:[%s14278_s0 + $0xeb0] sm:$0xff]  ;;  %v9489_v54 = vld [vmem:[%s12106_s9 + $0x1c0] ss:$8 sps:$4 sm:$0xff]  }
 0x3d5   : > { %8575 = vmatprep.subr.bf16.mxu1 %v9479_v25  ;;  %8733 = vmatprep.subr.bf16.mxu0 %v9482_v63  ;;  %v2829_v25 = vsel %vm1796_vm0, %v1628_v59, 0.0  ;;  %v9492_v22 = vld [vmem:[%s12106_s9 + $0x590] ss:$8 sps:$4 sm:$0xff]  }
 0x3d6   : > { %v6803_v31 = vsel %vm4643_vm2, %v6802_v53, %v6798_v17  ;;  %v4405_v26 = vunpack.c.l.b16 %v3479_v58  ;;  %v4406_v9 = vunpack.c.h.b16 %v3479_v58  ;;  %2779 = vadd.xlane.f32.xlu1 %v2778_v57  ;;  %2776 = vadd.xlane.f32.xlu0 %v2775_v46  ;;  %v6719_v57 = vsel %vm4636_vm1, %v6718_v16, %v6714_v20  ;;  %v9497_v46 = vld [vmem:[%s12106_s9 + $0x1d4] ss:$8 sps:$4 sm:$0xff]   ;;  %v1613_v17 = vld [vmem:[%s14278_s0 + $0xa48] sm:$0xff] }
 0x3d7   : > { %v13042_v45 = vsel %vm4650_vm3, %v6807_v33, %v6803_v31  ;;  %v3056_v18 = vpop.xlane.xlu1 %3055  ;;  %v3053_v6 = vpop.xlane.xlu0 %3052  ;;  %v9503_v31 = vld [vmem:[%s12106_s9 + $0x1e4] ss:$8 sps:$4 sm:$0xff]   ;;  %v1738_v59 = vld [vmem:[%s14278_s0 + $0xe30] sm:$0xff] }
 0x3d8   : > { %v6101_v23 = vrot.slane %v4405_v26, %v14312_v11  ;;  %v6106_v52 = vrot.slane %v4406_v9, %v10744_v60  ;;  %v3542_v30 = vpack.c.bf16 %v3056_v18, %v3053_v6  ;;  %8576 = vmatpush1.bf16.msra.mxu1 %v9477_v14  ;;  %8734 = vmatpush1.bf16.msra.mxu0 %v9480_v50  ;;  %v3207_v50 = vsel %vm1796_vm0, %v1754_v10, 0.0  ;;  %v9506_v26 = vld [vmem:[%s12106_s9 + $0x5b4] ss:$8 sps:$4 sm:$0xff]   ;;  %v9512_v16 = vld [vmem:[%s12106_s9 + $0x5c4] ss:$8 sps:$4 sm:$0xff]  }
 0x3d9   : > { %8577 = vmatprep.subr.bf16.mxu1 %v9485_v40  ;;  %8735 = vmatprep.subr.bf16.mxu0 %v9488_v0  ;;  %v9495_v40 = vld [vmem:[%s12106_s9 + $0x1d0] ss:$8 sps:$4 sm:$0xff]   ;;  %v9498_v0 = vld [vmem:[%s12106_s9 + $0x5a0] ss:$8 sps:$4 sm:$0xff]   ;;  %v9509_v20 = vld [vmem:[%s12106_s9 + $0x1f4] ss:$8 sps:$4 sm:$0xff]  }
 0x3da   : > { %v6102_v35 = vsel %vm4657_vm4, %v6101_v23, %v12973_v36  ;;  %v4531_v43 = vunpack.c.l.b16 %v3542_v30  ;;  %v4532_v37 = vunpack.c.h.b16 %v3542_v30  ;;  %3157 = vadd.xlane.f32.xlu1 %v3156_v34  ;;  %3154 = vadd.xlane.f32.xlu0 %v3153_v42  ;;  %v1755_v36 = vld [vmem:[%s14278_s0 + $0xeb8] sm:$0xff]  ;;  %v2784_v42 = vsel %vm1796_vm0, %v1613_v17, 0.0 }
 0x3db   : > { %v13063_v41 = vsel %vm14313_vm5, %v6106_v52, %v6102_v35  ;;  %v13065_v15 = vpop.xlane.xlu1 %2731  ;;  %v13067_v4 = vpop.xlane.xlu0 %2728  ;;  %v3210_v14 = vsel %vm1796_vm0, %v1755_v36, 0.0  ;;  %v1739_v23 = vld [vmem:[%s14278_s0 + $0xe38] sm:$0xff] }
 0x3dc   : > { %v6723_v63 = vrot.slane %v4531_v43, %v14310_v7  ;;  %v6728_v8 = vrot.slane %v4532_v37, %v14311_v29  ;;  %8578 = vmatpush1.bf16.msra.mxu1 %v9483_v1  ;;  %8736 = vmatpush1.bf16.msra.mxu0 %v9486_v49  ;;  %v9501_v1 = vld [vmem:[%s12106_s9 + $0x1e0] ss:$8 sps:$4 sm:$0xff]   ;;  %v9504_v49 = vld [vmem:[%s12106_s9 + $0x5b0] ss:$8 sps:$4 sm:$0xff]   ;;  %v3162_v37 = vsel %vm1796_vm0, %v1739_v23, 0.0 }
 0x3dd   : > { %8579 = vmatprep.subr.bf16.mxu1 %v9491_v61  ;;  %8737 = vmatprep.subr.bf16.mxu0 %v9494_v24  ;;  %v9507_v36 = vld [vmem:[%s12106_s9 + $0x1f0] ss:$8 sps:$4 sm:$0xff]   ;;  %v1740_v23 = vld [vmem:[%s14278_s0 + $0xe40] sm:$0xff] }
 0x3de   : > { %v6724_v53 = vsel %vm4643_vm2, %v6723_v63, %v6719_v57  ;;  %2833 = vadd.xlane.f32.xlu1 %v2832_v62  ;;  %2830 = vadd.xlane.f32.xlu0 %v2829_v25  ;;  %v3159_v62 = vsel %vm1796_vm0, %v1738_v59, 0.0  ;;  %v1631_v25 = vld [vmem:[%s14278_s0 + $0xad8] sm:$0xff]  ;;  %v9510_v63 = vld [vmem:[%s12106_s9 + $0x5c0] ss:$8 sps:$4 sm:$0xff]  }
 0x3df   : > { %v13086_v33 = vsel %vm4650_vm3, %v6728_v8, %v6724_v53  ;;  %v3110_v58 = vpop.xlane.xlu1 %3109  ;;  %v3107_v44 = vpop.xlane.xlu0 %3106  ;;  %v9515_v8 = vld [vmem:[%s12106_s9 + $0x5d4] ss:$8 sps:$4 sm:$0xff]   ;;  %v9513_v53 = vld [vmem:[%s12106_s9 + $0x5d0] ss:$8 sps:$4 sm:$0xff]  }
 0x3e0   : > { %v3551_v5 = vpack.c.bf16 %v3110_v58, %v3107_v44  ;;  %8580 = vmatpush1.bf16.msra.mxu1 %v9489_v54  ;;  %8738 = vmatpush1.bf16.msra.mxu0 %v9492_v22  ;;  %v2838_v22 = vsel %vm1796_vm0, %v1631_v25, 0.0  ;;  %v9518_v58 = vld [vmem:[%s12106_s9 + $0x5e4] ss:$8 sps:$4 sm:$0xff]  }
 0x3e1   : > { %8581 = vmatprep.subr.bf16.mxu1 %v9497_v46  ;;  %8739 = vmatprep.subr.bf16.mxu0 %v9500_v47  ;;  %v1757_v46 = vld [vmem:[%s14278_s0 + $0xec8] sm:$0xff]  ;;  %v1756_v47 = vld [vmem:[%s14278_s0 + $0xec0] sm:$0xff] }
 0x3e2   : > { %v4549_v9 = vunpack.c.l.b16 %v3551_v5  ;;  %v4550_v18 = vunpack.c.h.b16 %v3551_v5  ;;  %3211 = vadd.xlane.f32.xlu1 %v3210_v14  ;;  %3208 = vadd.xlane.f32.xlu0 %v3207_v50  ;;  %v9524_v44 = vld [vmem:[%s12106_s9 + $0x204] ss:$8 sps:$4 sm:$0xff]   ;;  %v3216_v17 = vsel %vm1796_vm0, %v1757_v46, 0.0  ;;  %v3213_v5 = vsel %vm1796_vm0, %v1756_v47, 0.0 }
 0x3e3   : > { %v13100_v6 = vpop.xlane.xlu1 %2683  ;;  %v13102_v34 = vpop.xlane.xlu0 %2680  ;;  %v1617_v47 = vld [vmem:[%s14278_s0 + $0xa68] sm:$0xff] }
 0x3e4   : > { %v6812_v52 = vrot.slane %v4549_v9, %v14312_v11  ;;  %v6817_v30 = vrot.slane %v4550_v18, %v10744_v60  ;;  %8582 = vmatpush1.bf16.msra.mxu1 %v9495_v40  ;;  %8740 = vmatpush1.bf16.msra.mxu0 %v9498_v0  ;;  %v1614_v40 = vld [vmem:[%s14278_s0 + $0xa50] sm:$0xff]  ;;  %v9516_v0 = vld [vmem:[%s12106_s9 + $0x5e0] ss:$8 sps:$4 sm:$0xff]   ;;  %v2790_v18 = vsel %vm1796_vm0, %v1615_v39, 0.0 }
 0x3e5   : > { %8583 = vmatprep.subr.bf16.mxu1 %v9503_v31  ;;  %8741 = vmatprep.subr.bf16.mxu0 %v9506_v26  ;;  %v9521_v31 = vld [vmem:[%s12106_s9 + $0x5f4] ss:$8 sps:$4 sm:$0xff]  }
 0x3e6   : > { %v6813_v61 = vsel %vm4657_vm4, %v6812_v52, %v13042_v45  ;;  %2785 = vadd.xlane.f32.xlu1 %v2784_v42  ;;  %2782 = vadd.xlane.f32.xlu0 %v2781_v51  ;;  %v1630_v45 = vld [vmem:[%s14278_s0 + $0xad0] sm:$0xff]  ;;  %v2787_v42 = vsel %vm1796_vm0, %v1614_v40, 0.0  ;;  %v1741_v51 = vld [vmem:[%s14278_s0 + $0xe48] sm:$0xff]  ;;  %v1743_v40 = vld [vmem:[%s14278_s0 + $0xe58] sm:$0xff] }
 0x3e7   : > { %v13121_v24 = vsel %vm14313_vm5, %v6817_v30, %v6813_v61  ;;  %v13123_v35 = vpop.xlane.xlu1 %3061  ;;  %v13125_v43 = vpop.xlane.xlu0 %3058  ;;  %v2835_v57 = vsel %vm1796_vm0, %v1630_v45, 0.0  ;;  %v9519_v52 = vld [vmem:[%s12106_s9 + $0x5f0] ss:$8 sps:$4 sm:$0xff]   ;;  %v9536_v61 = vld [vmem:[%s12106_s9 + $0x604] ss:$8 sps:$4 sm:$0xff]  }
 0x3e8   : > { %8584 = vmatpush1.bf16.msra.mxu1 %v9501_v1  ;;  %8742 = vmatpush1.bf16.msra.mxu0 %v9504_v49  ;;  %v3168_v1 = vsel %vm1796_vm0, %v1741_v51, 0.0  ;;  %v3165_v49 = vsel %vm1796_vm0, %v1740_v23, 0.0  ;;  %v3174_v51 = vsel %vm1796_vm0, %v1743_v40, 0.0 }
 0x3e9   : > { %8585 = vmatprep.subr.bf16.mxu1 %v9509_v20  ;;  %8743 = vmatprep.subr.bf16.mxu0 %v9512_v16  ;;  %v1633_v20 = vld [vmem:[%s14278_s0 + $0xae8] sm:$0xff]  ;;  %v1632_v16 = vld [vmem:[%s14278_s0 + $0xae0] sm:$0xff] }
 0x3ea   : > { %3163 = vadd.xlane.f32.xlu1 %v3162_v37  ;;  %3160 = vadd.xlane.f32.xlu0 %v3159_v62  ;;  %v2844_v25 = vsel %vm1796_vm0, %v1633_v20, 0.0  ;;  %v2841_v45 = vsel %vm1796_vm0, %v1632_v16, 0.0 }
 0x3eb   : > { %v13138_v10 = vpop.xlane.xlu1 %2737  ;;  %v13140_v54 = vpop.xlane.xlu0 %2734 }
 0x3ec   : > { %8586 = vmatpush1.bf16.msra.mxu1 %v9507_v36  ;;  %8744 = vmatpush1.bf16.msra.mxu0 %v9510_v63  ;;  %v1759_v36 = vld [vmem:[%s14278_s0 + $0xed8] sm:$0xff]  ;;  %v1758_v63 = vld [vmem:[%s14278_s0 + $0xed0] sm:$0xff] }
 0x3ed   : > { %8745 = vmatprep.subr.bf16.mxu0 %v9515_v8  ;;  %8596 = vmatprep.subr.bf16.mxu1 %v9524_v44  ;;  %v3219_v46 = vsel %vm1796_vm0, %v1758_v63, 0.0 }
 0x3ee   : > { %2839 = vadd.xlane.f32.xlu1 %v2838_v22  ;;  %2836 = vadd.xlane.f32.xlu0 %v2835_v57  ;;  %v3222_v57 = vsel %vm1796_vm0, %v1759_v36, 0.0 }
 0x3ef   : > { %v13153_v14 = vpop.xlane.xlu1 %3115  ;;  %v13155_v50 = vpop.xlane.xlu0 %3112 }
 0x3f0   : > { %8746 = vmatpush1.bf16.msra.mxu0 %v9513_v53  ;;  %v1616_v53 = vld [vmem:[%s14278_s0 + $0xa60] sm:$0xff] }
 0x3f1   : > { %8747 = vmatprep.subr.bf16.mxu0 %v9518_v58  ;;  %v3488_v58 = vpack.c.bf16 %v13065_v15, %v13067_v4  ;;  %v2793_v39 = vsel %vm1796_vm0, %v1616_v53, 0.0  ;;  %v3480_v15 = vpack.c.bf16 %v13100_v6, %v13102_v34  ;;  %v13235_v4 = vpack.c.bf16 %v13123_v35, %v13125_v43  ;;  %v1634_v6 = vld [vmem:[%s14278_s0 + $0xaf0] sm:$0xff]  ;;  %v1761_v35 = vld [vmem:[%s14278_s0 + $0xee8] sm:$0xff]  ;;  %v1760_v43 = vld [vmem:[%s14278_s0 + $0xee0] sm:$0xff] }
 0x3f2   : > { %3217 = vadd.xlane.f32.xlu1 %v3216_v17  ;;  %3214 = vadd.xlane.f32.xlu0 %v3213_v5  ;;  %v2796_v5 = vsel %vm1796_vm0, %v1617_v47, 0.0  ;;  %v3489_v34 = vpack.c.bf16 %v13138_v10, %v13140_v54  ;;  %v1618_v10 = vld [vmem:[%s14278_s0 + $0xa70] sm:$0xff]  ;;  %v1745_v54 = vld [vmem:[%s14278_s0 + $0xe68] sm:$0xff]  ;;  %v3225_v47 = vsel %vm1796_vm0, %v1760_v43, 0.0 }
 0x3f3   : > { %v13167_v26 = vpop.xlane.xlu1 %2689  ;;  %v13169_v9 = vpop.xlane.xlu0 %2686  ;;  %v4424_v20 = vunpack.c.h.b16 %v3488_v58  ;;  %v4533_v36 = vunpack.c.l.b16 %v13235_v4  ;;  %v1746_v43 = vld [vmem:[%s14278_s0 + $0xe70] sm:$0xff] }
 0x3f4   : > { %8748 = vmatpush1.bf16.msra.mxu0 %v9516_v0  ;;  %v1742_v0 = vld [vmem:[%s14278_s0 + $0xe50] sm:$0xff]  ;;  %v4425_v53 = vunpack.c.l.b16 %v3489_v34 }
 0x3f5   : > { %8749 = vmatprep.subr.bf16.mxu0 %v9521_v31  ;;  %v4423_v31 = vunpack.c.l.b16 %v3488_v58  ;;  %v3171_v23 = vsel %vm1796_vm0, %v1742_v0, 0.0  ;;  %v13290_v0 = vpack.c.bf16 %v13167_v26, %v13169_v9  ;;  %v1747_v9 = vld [vmem:[%s14278_s0 + $0xe78] sm:$0xff] }
 0x3f6   : > { %2791 = vadd.xlane.f32.xlu1 %v2790_v18  ;;  %2788 = vadd.xlane.f32.xlu0 %v2787_v42 }
 0x3f7   : > { %v13180_v30 = vpop.xlane.xlu1 %3067  ;;  %v13182_v59 = vpop.xlane.xlu0 %3064  ;;  %v6190_v16 = vrot.slane %v4423_v31, %v10761_v12 }
 0x3f8   : > { %8750 = vmatpush1.bf16.msra.mxu0 %v9519_v52  ;;  %v1635_v52 = vld [vmem:[%s14278_s0 + $0xaf8] sm:$0xff] }
 0x3f9   : > { %8760 = vmatprep.subr.bf16.mxu0 %v9536_v61  ;;  %v1744_v61 = vld [vmem:[%s14278_s0 + $0xe60] sm:$0xff] }
 0x3fa   : > { %3169 = vadd.xlane.f32.xlu1 %v3168_v1  ;;  %3166 = vadd.xlane.f32.xlu0 %v3165_v49  ;;  %v13259_v1 = vpack.c.bf16 %v13153_v14, %v13155_v50  ;;  %v1619_v49 = vld [vmem:[%s14278_s0 + $0xa78] sm:$0xff]  ;;  %v2850_v14 = vsel %vm1796_vm0, %v1635_v52, 0.0  ;;  %v2847_v50 = vsel %vm1796_vm0, %v1634_v6, 0.0  ;;  %v13293_v31 = vsel %vm1796_vm0, %v1744_v61, 0.0 }
 0x3fb   : > { %v13193_v37 = vpop.xlane.xlu1 %2743  ;;  %v13195_v62 = vpop.xlane.xlu0 %2740  ;;  %v2802_v58 = vsel %vm1796_vm0, %v1619_v49, 0.0  ;;  %v6191_v52 = vsel %vm4671_vm6, %v6190_v16, %v13007_v55  ;;  %v6195_v6 = vrot.slane %v4424_v20, %v10764_v13  ;;  %v4534_v55 = vunpack.c.h.b16 %v13235_v4 }
 0x3fc   : > { %v4551_v40 = vunpack.c.l.b16 %v13259_v1  ;;  %v3490_v26 = vpack.c.bf16 %v13193_v37, %v13195_v62  ;;  %v6200_v62 = vrot.slane %v4425_v53, %v10770_v21  ;;  %v4552_v20 = vunpack.c.h.b16 %v13259_v1 }
 0x3fd   : > { %v3544_v16 = vpack.c.bf16 %v13180_v30, %v13182_v59  ;;  %v4409_v4 = vunpack.c.l.b16 %v13290_v0  ;;  %v13332_v61 = vsel %vm1796_vm0, %v1746_v43, 0.0  ;;  %v6738_v53 = vrot.slane %v4534_v55, %v10744_v60 }
 0x3fe   : > { %2845 = vadd.xlane.f32.xlu1 %v2844_v25  ;;  %2842 = vadd.xlane.f32.xlu0 %v2841_v45  ;;  %v1763_v25 = vld [vmem:[%s14278_s0 + $0xef8] sm:$0xff]  ;;  %v4407_v45 = vunpack.c.l.b16 %v3480_v15  ;;  %v4428_v43 = vunpack.c.h.b16 %v3490_v26 }
 0x3ff   : > { %v13205_v8 = vpop.xlane.xlu1 %3121  ;;  %v13207_v22 = vpop.xlane.xlu0 %3118 }
 0x400   : > { %v6111_v49 = vrot.slane %v4407_v45, %v10761_v12  ;;  %v4427_v45 = vunpack.c.l.b16 %v3490_v26 }
 0x402   : > { %3223 = vadd.xlane.f32.xlu1 %v3222_v57  ;;  %3220 = vadd.xlane.f32.xlu0 %v3219_v46  ;;  %v3228_v46 = vsel %vm1796_vm0, %v1761_v35, 0.0  ;;  %v4408_v35 = vunpack.c.h.b16 %v3480_v15  ;;  %v4426_v15 = vunpack.c.h.b16 %v3489_v34  ;;  %v13329_v34 = vsel %vm1796_vm0, %v1747_v9, 0.0 }
 0x403   : > { %v13219_v44 = vpop.xlane.xlu1 %2695  ;;  %v13221_v17 = vpop.xlane.xlu0 %2692  ;;  %v6112_v30 = vsel %vm4671_vm6, %v6111_v49, %v13063_v41  ;;  %v6827_v41 = vrot.slane %v4552_v20, %v10764_v13  ;;  %v6210_v49 = vrot.slane %v4427_v45, %v10796_v48 }
 0x404   : > { %v6116_v1 = vrot.slane %v4408_v35, %v10764_v13  ;;  %v6121_v35 = vrot.slane %v4409_v4, %v10770_v21 }
 0x406   : > { %2797 = vadd.xlane.f32.xlu1 %v2796_v5  ;;  %2794 = vadd.xlane.f32.xlu0 %v2793_v39  ;;  %v2799_v5 = vsel %vm1796_vm0, %v1618_v10, 0.0  ;;  %v13285_v39 = vsel %vm1796_vm0, %v1745_v54, 0.0  ;;  %v6733_v10 = vrot.slane %v4533_v36, %v14312_v11 }
 0x407   : > { %v13237_v18 = vpop.xlane.xlu1 %3073  ;;  %v13239_v42 = vpop.xlane.xlu0 %3070 }
 0x408   : > { %v6734_v59 = vsel %vm4657_vm4, %v6733_v10, %v13086_v33  ;;  %v3482_v33 = vpack.c.bf16 %v13219_v44, %v13221_v17  ;;  %v6117_v44 = vsel %vm4678_vm7, %v6116_v1, %v6112_v30  ;;  %v4536_v17 = vunpack.c.h.b16 %v3544_v16 }
 0x409   : > { %v6215_v1 = vrot.slane %v4428_v43, %v10806_v56 }
 0x40a   : > { %3175 = vadd.xlane.f32.xlu1 %v3174_v51  ;;  %3172 = vadd.xlane.f32.xlu0 %v3171_v23  ;;  %v13296_v51 = vsel %vm1796_vm0, %v1763_v25, 0.0  ;;  %v1762_v23 = vld [vmem:[%s14278_s0 + $0xef0] sm:$0xff]  ;;  %v6196_v25 = vsel %vm4678_vm7, %v6195_v6, %v6191_v52  ;;  %v1653_v52 = vld [vmem:[%s14278_s0 + $0xb88] sm:$0xff]  ;;  %v4410_v6 = vunpack.c.h.b16 %v13290_v0  ;;  %v3553_v0 = vpack.c.bf16 %v13205_v8, %v13207_v22 }
 0x40b   : > { %v2750_v63 = vpop.xlane.xlu1 %2749  ;;  %v2747_v57 = vpop.xlane.xlu0 %2746  ;;  %v13358_v10 = vsel %vm1796_vm0, %v1653_v52, 0.0  ;;  %v4411_v4 = vunpack.c.l.b16 %v3482_v33 }
 0x40c   : > { %v3491_v36 = vpack.c.bf16 %v2750_v63, %v2747_v57  ;;  %v1652_v63 = vld [vmem:[%s14278_s0 + $0xb80] sm:$0xff]  ;;  %v6201_v57 = vsel %vm4685_vm8, %v6200_v62, %v6196_v25  ;;  %v6122_v25 = vsel %vm4685_vm8, %v6121_v35, %v6117_v44  ;;  %v4554_v52 = vunpack.c.h.b16 %v3553_v0 }
 0x40e   : > { %2851 = vadd.xlane.f32.xlu1 %v2850_v14  ;;  %2848 = vadd.xlane.f32.xlu0 %v2847_v50  ;;  %v13324_v14 = vsel %vm1796_vm0, %v1762_v23, 0.0  ;;  %v6822_v50 = vrot.slane %v4551_v40, %v10761_v12  ;;  %v6205_v40 = vrot.slane %v4426_v15, %v10778_v27  ;;  %v4429_v55 = vunpack.c.l.b16 %v3491_v36 }
 0x40f   : > { %v13315_v54 = vpop.xlane.xlu1 %3127  ;;  %v13317_v37 = vpop.xlane.xlu0 %3124  ;;  %v13361_v15 = vsel %vm1796_vm0, %v1652_v63, 0.0  ;;  %v4430_v8 = vunpack.c.h.b16 %v3491_v36  ;;  %v3545_v63 = vpack.c.bf16 %v13237_v18, %v13239_v42 }
 0x410   : > { %v6220_v45 = vrot.slane %v4429_v55, %v10813_v2  ;;  %v6837_v55 = vrot.slane %v4554_v52, %v10778_v27 }
 0x411   : > { %v4537_v44 = vunpack.c.l.b16 %v3545_v63 }
 0x412   : > { %3229 = vadd.xlane.f32.xlu1 %v3228_v46  ;;  %3226 = vadd.xlane.f32.xlu0 %v3225_v47  ;;  %v4535_v46 = vunpack.c.l.b16 %v3544_v16  ;;  %v6823_v47 = vsel %vm4671_vm6, %v6822_v50, %v13121_v24  ;;  %v6739_v24 = vsel %vm14313_vm5, %v6738_v53, %v6734_v59  ;;  %v6126_v16 = vrot.slane %v4410_v6, %v10778_v27 }
 0x413   : > { %v2702_v23 = vpop.xlane.xlu1 %2701  ;;  %v2699_v9 = vpop.xlane.xlu0 %2698  ;;  %v6828_v20 = vsel %vm4678_vm7, %v6827_v41, %v6823_v47  ;;  %v6748_v53 = vrot.slane %v4536_v17, %v10764_v13  ;;  %v6225_v47 = vrot.slane %v4430_v8, %v10816_v3  ;;  %v3554_v6 = vpack.c.bf16 %v13315_v54, %v13317_v37  ;;  %v1636_v54 = vld [vmem:[%s14278_s0 + $0xb00] sm:$0xff] }
 0x414   : > { %v6743_v50 = vrot.slane %v4535_v46, %v10761_v12  ;;  %v3483_v30 = vpack.c.bf16 %v2702_v23, %v2699_v9  ;;  %v4412_v46 = vunpack.c.h.b16 %v3482_v33  ;;  %v6131_v23 = vrot.slane %v4411_v4, %v10796_v48 }
 0x415   : > { %v2853_v8 = vsel %vm1796_vm0, %v1636_v54, 0.0  ;;  %vm14315_vm5 = vcmask 1041409  }
 0x416   : > { %2803 = vadd.xlane.f32.xlu1 %v2802_v58  ;;  %2800 = vadd.xlane.f32.xlu0 %v2799_v5  ;;  %v1637_v58 = vld [vmem:[%s14278_s0 + $0xb08] sm:$0xff]  ;;  %v6206_v5 = vsel %vm4692_vm9, %v6205_v40, %v6201_v57  ;;  %v4553_v40 = vunpack.c.l.b16 %v3553_v0  ;;  %v6744_v41 = vsel %vm4671_vm6, %v6743_v50, %v6739_v24  ;;  %v4413_v18 = vunpack.c.l.b16 %v3483_v30 }
 0x417   : > { %v3080_v26 = vpop.xlane.xlu1 %3079  ;;  %v3077_v62 = vpop.xlane.xlu0 %3076  ;;  %v6211_v22 = vsel %vm4699_vm10, %v6210_v49, %v6206_v5  ;;  %v13381_v59 = vsel %vm1796_vm0, %v1637_v58, 0.0  ;;  %v6749_v33 = vsel %vm4678_vm7, %v6748_v53, %v6744_v41  ;;  %v6136_v0 = vrot.slane %v4412_v46, %v10806_v56 }
 0x418   : > { %v6216_v9 = vsel %vm4706_vm11, %v6215_v1, %v6211_v22  ;;  %v6832_v49 = vrot.slane %v4553_v40, %v10770_v21  ;;  %v4555_v5 = vunpack.c.l.b16 %v3554_v6  ;;  %v4414_v50 = vunpack.c.h.b16 %v3483_v30 }
 0x419   : > { %v6221_v35 = vsel %vm4713_vm12, %v6220_v45, %v6216_v9  ;;  %v3546_v4 = vpack.c.bf16 %v3080_v26, %v3077_v62  ;;  %v4538_v22 = vunpack.c.h.b16 %v3545_v63  ;;  %v6753_v45 = vrot.slane %v4537_v44, %v10770_v21 }
 0x41a   : > { %3181 = vadd.xlane.f32.xlu1 %v13285_v39  ;;  %3178 = vadd.xlane.f32.xlu0 %v13293_v31  ;;  %v6127_v31 = vsel %vm4692_vm9, %v6126_v16, %v6122_v25  ;;  %v6226_v58 = vsel %vm4720_vm13, %v6225_v47, %v6221_v35  ;;  %v6141_v25 = vrot.slane %v4413_v18, %v10813_v2  ;;  %v4556_v53 = vunpack.c.h.b16 %v3554_v6 }
 0x41b   : > { %v2756_v36 = vpop.xlane.xlu1 %2755  ;;  %v2753_v57 = vpop.xlane.xlu0 %2752  ;;  %v6132_v37 = vsel %vm4699_vm10, %v6131_v23, %v6127_v31  ;;  %v6833_v26 = vsel %vm4685_vm8, %v6832_v49, %v6828_v20  ;;  %v6146_v41 = vrot.slane %v4414_v50, %v10816_v3  ;;  %v4539_v63 = vunpack.c.l.b16 %v3546_v4 }
 0x41c   : > { %v3492_v39 = vpack.c.bf16 %v2756_v36, %v2753_v57  ;;  %v6137_v62 = vsel %vm4706_vm11, %v6136_v0, %v6132_v37  ;;  %v6842_v57 = vrot.slane %v4555_v5, %v10796_v48  ;;  %v6838_v20 = vsel %vm4692_vm9, %v6837_v55, %v6833_v26 }
 0x41d   : > { %v6142_v23 = vsel %vm4713_vm12, %v6141_v25, %v6137_v62  ;;  %v6754_v47 = vsel %vm4685_vm8, %v6753_v45, %v6749_v33  ;;  %v6758_v6 = vrot.slane %v4538_v22, %v10778_v27  ;;  %v6847_v35 = vrot.slane %v4556_v53, %v10806_v56  ;;  %v14316_v45 = vld [vmem:[#allocation10_spill] sm:$0xff]  ;;  %v1638_v53 = vld [vmem:[%s14278_s0 + $0xb10] sm:$0xff] }
 0x41e   : > { %v4431_v42 = vunpack.c.l.b16 %v3492_v39  ;;  %v4432_v43 = vunpack.c.h.b16 %v3492_v39  ;;  %3235 = vadd.xlane.f32.xlu1 %v13296_v51  ;;  %3232 = vadd.xlane.f32.xlu0 %v13324_v14  ;;  %v6843_v33 = vsel %vm4699_vm10, %v6842_v57, %v6838_v20  ;;  %v6147_v55 = vsel %vm4720_vm13, %v6146_v41, %v6142_v23 }
 0x41f   : > { %v3134_v24 = vpop.xlane.xlu1 %3133  ;;  %v3131_v17 = vpop.xlane.xlu0 %3130 }
 0x420   : > { %v6230_v51 = vrot.slane %v4431_v42, %v10831_v19  ;;  %v6235_v14 = vrot.slane %v4432_v43, %v10838_v28  ;;  %v3555_v16 = vpack.c.bf16 %v3134_v24, %v3131_v17  ;;  %v4540_v43 = vunpack.c.h.b16 %v3546_v4 }
 0x421   : > { %v6763_v17 = vrot.slane %v4539_v63, %v10796_v48 }
 0x422   : > { %3187 = vadd.xlane.f32.xlu1 %v13329_v34  ;;  %3184 = vadd.xlane.f32.xlu0 %v13332_v61  ;;  %v6231_v1 = vsel %vm4727_vm14, %v6230_v51, %v6226_v58  ;;  %v14314_v34 = vld [vmem:[#allocation11_spill] sm:$0xff]  ;;  %v4557_v39 = vunpack.c.l.b16 %v3555_v16  ;;  %v4558_v54 = vunpack.c.h.b16 %v3555_v16  ;;  %v6848_v16 = vsel %vm4706_vm11, %v6847_v35, %v6843_v33 }
 0x423   : > { %v2708_v40 = vpop.xlane.xlu1 %2707  ;;  %v2705_v52 = vpop.xlane.xlu0 %2704  ;;  %v6236_v30 = vsel %vm4734_vm15, %v6235_v14, %v6231_v1  ;;  %v6759_v14 = vsel %vm4692_vm9, %v6758_v6, %v6754_v47  ;;  %v6768_v1 = vrot.slane %v4540_v43, %v10806_v56  ;;  %v1781_v47 = vld [vmem:[%s14278_s0 + $0xf88] sm:$0xff]  ;;  %v1780_v6 = vld [vmem:[%s14278_s0 + $0xf80] sm:$0xff]  ;;  %v9525_v35 = vld [vmem:[%s12106_s9 + $0x210] ss:$8 sps:$4 sm:$0xff]  }
 0x424   : > { %v3484_v36 = vpack.c.bf16 %v2708_v40, %v2705_v52  ;;  %v7189_v61 = vsel %vm14315_vm5, %v6236_v30, %v14314_v34  ;;  %v6852_v37 = vrot.slane %v4557_v39, %v10813_v2  ;;  %v9522_v40 = vld [vmem:[%s12106_s9 + $0x200] ss:$8 sps:$4 sm:$0xff]   ;;  %v6764_v52 = vsel %vm4699_vm10, %v6763_v17, %v6759_v14 }
 0x425   : > { %v7205_v46 = vpack.c.b16 %v7189_v61, %v7189_v61  ;;  %v6857_v30 = vrot.slane %v4558_v54, %v10816_v3  ;;  %v2859_v39 = vsel %vm1796_vm0, %v1638_v53, 0.0  ;;  %v3288_v17 = vsel %vm1796_vm0, %v1781_v47, 0.0 }
 0x426   : > { %v4415_v31 = vunpack.c.l.b16 %v3484_v36  ;;  %v4416_v9 = vunpack.c.h.b16 %v3484_v36  ;;  %2905 = vadd.xlane.f32.xlu1 %v13358_v10  ;;  %2902 = vadd.xlane.f32.xlu0 %v13361_v15  ;;  %v1655_v10 = vld [vmem:[%s14278_s0 + $0xb98] sm:$0xff]  ;;  %v1654_v15 = vld [vmem:[%s14278_s0 + $0xb90] sm:$0xff]  ;;  %v6853_v34 = vsel %vm4713_vm12, %v6852_v37, %v6848_v16  ;;  %v3285_v54 = vsel %vm1796_vm0, %v1780_v6, 0.0 }
 0x427   : > { %v3086_v18 = vpop.xlane.xlu1 %3085  ;;  %v3083_v42 = vpop.xlane.xlu0 %3082  ;;  %8587 = vmatprep.mubr.bf16.mxu1 %v7205_v46  ;;  %v2910_v50 = vsel %vm1796_vm0, %v1655_v10, 0.0  ;;  %v2907_v4 = vsel %vm1796_vm0, %v1654_v15, 0.0  ;;  %v9527_v36 = vld [vmem:[%s12106_s9 + $0x214] ss:$8 sps:$4 sm:$0xff]  }
 0x428   : > { %v6151_v49 = vrot.slane %v4415_v31, %v10831_v19  ;;  %v6156_v44 = vrot.slane %v4416_v9, %v10838_v28  ;;  %v3547_v24 = vpack.c.bf16 %v3086_v18, %v3083_v42  ;;  %v6769_v18 = vsel %vm4706_vm11, %v6768_v1, %v6764_v52  ;;  %v1783_v6 = vld [vmem:[%s14278_s0 + $0xf98] sm:$0xff] }
 0x429   : > { %v6858_v42 = vsel %vm4720_vm13, %v6857_v30, %v6853_v34  ;;  %v1765_v30 = vld [vmem:[%s14278_s0 + $0xf08] sm:$0xff]  ;;  %v1764_v34 = vld [vmem:[%s14278_s0 + $0xf00] sm:$0xff] }
 0x42a   : > { %v6152_v0 = vsel %vm4727_vm14, %v6151_v49, %v6147_v55  ;;  %v4541_v51 = vunpack.c.l.b16 %v3547_v24  ;;  %2857 = vadd.xlane.f32.xlu1 %v13381_v59  ;;  %2854 = vadd.xlane.f32.xlu0 %v2853_v8  ;;  %v1639_v8 = vld [vmem:[%s14278_s0 + $0xb18] sm:$0xff]  ;;  %v4542_v26 = vunpack.c.h.b16 %v3547_v24  ;;  %v9530_v49 = vld [vmem:[%s12106_s9 + $0x224] ss:$8 sps:$4 sm:$0xff]   ;;  %v3237_v47 = vsel %vm1796_vm0, %v1764_v34, 0.0 }
 0x42b   : > { %v3140_v58 = vpop.xlane.xlu1 %3139  ;;  %v3137_v5 = vpop.xlane.xlu0 %3136  ;;  %v6157_v25 = vsel %vm4734_vm15, %v6156_v44, %v6152_v0  ;;  %v2862_v23 = vsel %vm1796_vm0, %v1639_v8, 0.0 }
 0x42c   : > { %v3556_v22 = vpack.c.bf16 %v3140_v58, %v3137_v5  ;;  %v7188_v59 = vsel %vm14315_vm5, %v6157_v25, %v14316_v45  ;;  %v6773_v61 = vrot.slane %v4541_v51, %v10813_v2  ;;  %v6778_v43 = vrot.slane %v4542_v26, %v10816_v3  ;;  %v14317_v58 = vld [vmem:[#allocation17_spill] sm:$0xff] }
 0x42d   : > { %v7204_v62 = vpack.c.b16 %v7188_v59, %v7188_v59  ;;  %v9528_v25 = vld [vmem:[%s12106_s9 + $0x220] ss:$8 sps:$4 sm:$0xff]  }
 0x42e   : > { %v4559_v57 = vunpack.c.l.b16 %v3556_v22  ;;  %v4560_v41 = vunpack.c.h.b16 %v3556_v22  ;;  %2911 = vadd.xlane.f32.xlu1 %v2910_v50  ;;  %2908 = vadd.xlane.f32.xlu0 %v2907_v4  ;;  %v6774_v44 = vsel %vm4713_vm12, %v6773_v61, %v6769_v18  ;;  %v1657_v50 = vld [vmem:[%s14278_s0 + $0xba8] sm:$0xff]  ;;  %v1656_v4 = vld [vmem:[%s14278_s0 + $0xba0] sm:$0xff]  ;;  %v9533_v22 = vld [vmem:[%s12106_s9 + $0x234] ss:$8 sps:$4 sm:$0xff]  }
 0x42f   : > { %v3092_v63 = vpop.xlane.xlu1 %3091  ;;  %v3089_v46 = vpop.xlane.xlu0 %3088  ;;  %8588 = vmatmul.mubr.bf16.vlgmr.msra.gmra.mrb[0].mxu1 %v7204_v62  ;;  %v6779_v16 = vsel %vm4720_vm13, %v6778_v43, %v6774_v44  ;;  %v2916_v53 = vsel %vm1796_vm0, %v1657_v50, 0.0  ;;  %v14318_v62 = vld [vmem:[#allocation16_spill] sm:$0xff]  ;;  %v1782_v18 = vld [vmem:[%s14278_s0 + $0xf90] sm:$0xff] }
 0x430   : > { %v6862_v31 = vrot.slane %v4559_v57, %v10831_v19  ;;  %v6867_v9 = vrot.slane %v4560_v41, %v10838_v28  ;;  %v3548_v20 = vpack.c.bf16 %v3092_v63, %v3089_v46  ;;  %8597 = vmatpush1.bf16.msra.mxu1 %v9522_v40  ;;  %v2913_v40 = vsel %vm1796_vm0, %v1656_v4, 0.0  ;;  %v9531_v61 = vld [vmem:[%s12106_s9 + $0x230] ss:$8 sps:$4 sm:$0xff]   ;;  %v9534_v57 = vld [vmem:[%s12106_s9 + $0x600] ss:$8 sps:$4 sm:$0xff]  }
 0x431   : > { %8598 = vmatprep.subr.bf16.mxu1 %v9527_v36  ;;  %v9540_v43 = vld [vmem:[%s12106_s9 + $0x610] ss:$8 sps:$4 sm:$0xff]   ;;  %v1640_v4 = vld [vmem:[%s14278_s0 + $0xb20] sm:$0xff] }
 0x432   : > { %v4543_v24 = vunpack.c.l.b16 %v3548_v20  ;;  %v4544_v10 = vunpack.c.h.b16 %v3548_v20  ;;  %2863 = vadd.xlane.f32.xlu1 %v2862_v23  ;;  %2860 = vadd.xlane.f32.xlu0 %v2859_v39  ;;  %v6863_v15 = vsel %vm4727_vm14, %v6862_v31, %v6858_v42  ;;  %v9539_v23 = vld [vmem:[%s12106_s9 + $0x244] ss:$8 sps:$4 sm:$0xff]   ;;  %v9542_v39 = vld [vmem:[%s12106_s9 + $0x614] ss:$8 sps:$4 sm:$0xff]   ;;  %v3240_v20 = vsel %vm1796_vm0, %v1765_v30, 0.0 }
 0x433   : > { %v2810_v33 = vpop.xlane.xlu1 %2809  ;;  %v2807_v55 = vpop.xlane.xlu0 %2806  ;;  %v6868_v37 = vsel %vm4734_vm15, %v6867_v9, %v6863_v15  ;;  %v9537_v42 = vld [vmem:[%s12106_s9 + $0x240] ss:$8 sps:$4 sm:$0xff]   ;;  %v9545_v15 = vld [vmem:[%s12106_s9 + $0x254] ss:$8 sps:$4 sm:$0xff]   ;;  %v2865_v34 = vsel %vm1796_vm0, %v1640_v4, 0.0 }
 0x434   : > { %v6783_v0 = vrot.slane %v4543_v24, %v10831_v19  ;;  %v6788_v51 = vrot.slane %v4544_v10, %v10838_v28  ;;  %v3501_v14 = vpack.c.bf16 %v2810_v33, %v2807_v55  ;;  %v7197_v5 = vsel %vm14315_vm5, %v6868_v37, %v14317_v58  ;;  %8599 = vmatpush1.bf16.msra.mxu1 %v9525_v35  ;;  %v9548_v33 = vld [vmem:[%s12106_s9 + $0x624] ss:$8 sps:$4 sm:$0xff]  }
 0x435   : > { %v7213_v1 = vpack.c.b16 %v7197_v5, %v7197_v5  ;;  %8600 = vmatprep.subr.bf16.mxu1 %v9530_v49 }
 0x436   : > { %v6784_v45 = vsel %vm4727_vm14, %v6783_v0, %v6779_v16  ;;  %3289 = vadd.xlane.f32.xlu1 %v3288_v17  ;;  %3286 = vadd.xlane.f32.xlu0 %v3285_v54  ;;  %v4449_v41 = vunpack.c.l.b16 %v3501_v14  ;;  %v4450_v63 = vunpack.c.h.b16 %v3501_v14  ;;  %v3294_v0 = vsel %vm1796_vm0, %v1783_v6, 0.0  ;;  %v1641_v14 = vld [vmem:[%s14278_s0 + $0xb28] sm:$0xff] }
 0x437   : > { %v2762_v59 = vpop.xlane.xlu1 %2761  ;;  %v2759_v8 = vpop.xlane.xlu0 %2758  ;;  %8751 = vmatprep.mubr.bf16.mxu0 %v7213_v1  ;;  %v6789_v52 = vsel %vm4734_vm15, %v6788_v51, %v6784_v45  ;;  %v3291_v51 = vsel %vm1796_vm0, %v1782_v18, 0.0  ;;  %v9546_v16 = vld [vmem:[%s12106_s9 + $0x620] ss:$8 sps:$4 sm:$0xff]  }
 0x438   : > { %v3493_v26 = vpack.c.bf16 %v2762_v59, %v2759_v8  ;;  %v7196_v36 = vsel %vm14315_vm5, %v6789_v52, %v14318_v62  ;;  %8601 = vmatpush1.bf16.msra.mxu1 %v9528_v25  ;;  %v6319_v49 = vrot.slane %v4449_v41, %v10707_v32  ;;  %v6323_v44 = vrot.slane %v4450_v63, %v10715_v38  ;;  %v9543_v25 = vld [vmem:[%s12106_s9 + $0x250] ss:$8 sps:$4 sm:$0xff]   ;;  %v9551_v59 = vld [vmem:[%s12106_s9 + $0x264] ss:$8 sps:$4 sm:$0xff]   ;;  %v9554_v8 = vld [vmem:[%s12106_s9 + $0x634] ss:$8 sps:$4 sm:$0xff]  }
 0x439   : > { %v7212_v46 = vpack.c.b16 %v7196_v36, %v7196_v36  ;;  %8602 = vmatprep.subr.bf16.mxu1 %v9533_v22  ;;  %v2868_v36 = vsel %vm1796_vm0, %v1641_v14, 0.0  ;;  %vm14319_vm5 = vcmask 392512  }
 0x43a   : > { %2917 = vadd.xlane.f32.xlu1 %v2916_v53  ;;  %2914 = vadd.xlane.f32.xlu0 %v2913_v40  ;;  %v4433_v24 = vunpack.c.l.b16 %v3493_v26  ;;  %v4434_v10 = vunpack.c.h.b16 %v3493_v26  ;;  %v6324_v1 = vsel %vm4636_vm1, %v6323_v44, %v6319_v49  ;;  %v1659_v49 = vld [vmem:[%s14278_s0 + $0xbb8] sm:$0xff] }
 0x43b   : > { %v2816_v31 = vpop.xlane.xlu1 %2815  ;;  %v2813_v9 = vpop.xlane.xlu0 %2812  ;;  %8752 = vmatmul.mubr.bf16.vlgmr.msra.gmra.mrb[0].mxu0 %v7212_v46  ;;  %v1766_v46 = vld [vmem:[%s14278_s0 + $0xf10] sm:$0xff] }
 0x43c   : > { %v3502_v35 = vpack.c.bf16 %v2816_v31, %v2813_v9  ;;  %8603 = vmatpush1.bf16.msra.mxu1 %v9531_v61  ;;  %8761 = vmatpush1.bf16.msra.mxu0 %v9534_v57  ;;  %v6240_v22 = vrot.slane %v4433_v24, %v10707_v32  ;;  %v6244_v45 = vrot.slane %v4434_v10, %v10715_v38  ;;  %v1767_v61 = vld [vmem:[%s14278_s0 + $0xf18] sm:$0xff]  ;;  %v1658_v24 = vld [vmem:[%s14278_s0 + $0xbb0] sm:$0xff] }
 0x43d   : > { %8604 = vmatprep.subr.bf16.mxu1 %v9539_v23  ;;  %8762 = vmatprep.subr.bf16.mxu0 %v9542_v39  ;;  %v9549_v23 = vld [vmem:[%s12106_s9 + $0x260] ss:$8 sps:$4 sm:$0xff]   ;;  %v9552_v39 = vld [vmem:[%s12106_s9 + $0x630] ss:$8 sps:$4 sm:$0xff]   ;;  %v9557_v9 = vld [vmem:[%s12106_s9 + $0x274] ss:$8 sps:$4 sm:$0xff]  }
 0x43e   : > { %v4451_v55 = vunpack.c.l.b16 %v3502_v35  ;;  %v4452_v17 = vunpack.c.h.b16 %v3502_v35  ;;  %3241 = vadd.xlane.f32.xlu1 %v3240_v20  ;;  %3238 = vadd.xlane.f32.xlu0 %v3237_v47  ;;  %v6245_v31 = vsel %vm4636_vm1, %v6244_v45, %v6240_v22  ;;  %v9560_v20 = vld [vmem:[%s12106_s9 + $0x644] ss:$8 sps:$4 sm:$0xff]   ;;  %v9555_v10 = vld [vmem:[%s12106_s9 + $0x270] ss:$8 sps:$4 sm:$0xff]   ;;  %v2919_v14 = vsel %vm1796_vm0, %v1658_v24, 0.0 }
 0x43f   : > { %v2768_v54 = vpop.xlane.xlu1 %2767  ;;  %v2765_v37 = vpop.xlane.xlu0 %2764  ;;  %v1768_v24 = vld [vmem:[%s14278_s0 + $0xf20] sm:$0xff] }
 0x440   : > { %v6328_v58 = vrot.slane %v4451_v55, %v14310_v7  ;;  %v6333_v5 = vrot.slane %v4452_v17, %v14311_v29  ;;  %v3494_v50 = vpack.c.bf16 %v2768_v54, %v2765_v37  ;;  %8605 = vmatpush1.bf16.msra.mxu1 %v9537_v42  ;;  %8763 = vmatpush1.bf16.msra.mxu0 %v9540_v43  ;;  %v3246_v42 = vsel %vm1796_vm0, %v1767_v61, 0.0  ;;  %v9566_v55 = vld [vmem:[%s12106_s9 + $0x654] ss:$8 sps:$4 sm:$0xff]  }
 0x441   : > { %8606 = vmatprep.subr.bf16.mxu1 %v9545_v15  ;;  %8764 = vmatprep.subr.bf16.mxu0 %v9548_v33  ;;  %v3243_v43 = vsel %vm1796_vm0, %v1766_v46, 0.0  ;;  %v9558_v15 = vld [vmem:[%s12106_s9 + $0x640] ss:$8 sps:$4 sm:$0xff]   ;;  %v9563_v33 = vld [vmem:[%s12106_s9 + $0x284] ss:$8 sps:$4 sm:$0xff]  }
 0x442   : > { %v6329_v53 = vsel %vm4643_vm2, %v6328_v58, %v6324_v1  ;;  %v4435_v40 = vunpack.c.l.b16 %v3494_v50  ;;  %v4436_v52 = vunpack.c.h.b16 %v3494_v50  ;;  %3295 = vadd.xlane.f32.xlu1 %v3294_v0  ;;  %3292 = vadd.xlane.f32.xlu0 %v3291_v51  ;;  %v2922_v51 = vsel %vm1796_vm0, %v1659_v49, 0.0  ;;  %v1785_v58 = vld [vmem:[%s14278_s0 + $0xfa8] sm:$0xff]  ;;  %v9564_v1 = vld [vmem:[%s12106_s9 + $0x650] ss:$8 sps:$4 sm:$0xff]  }
 0x443   : > { %v6334_v30 = vsel %vm4650_vm3, %v6333_v5, %v6329_v53  ;;  %v3194_v26 = vpop.xlane.xlu1 %3193  ;;  %v3191_v62 = vpop.xlane.xlu0 %3190 }
 0x444   : > { %v6249_v57 = vrot.slane %v4435_v40, %v14310_v7  ;;  %v6254_v41 = vrot.slane %v4436_v52, %v14311_v29  ;;  %v13550_v63 = vpack.c.bf16 %v3194_v26, %v3191_v62  ;;  %8607 = vmatpush1.bf16.msra.mxu1 %v9543_v25  ;;  %8765 = vmatpush1.bf16.msra.mxu0 %v9546_v16  ;;  %v1784_v25 = vld [vmem:[%s14278_s0 + $0xfa0] sm:$0xff]  ;;  %v3300_v62 = vsel %vm1796_vm0, %v1785_v58, 0.0 }
 0x445   : > { %8608 = vmatprep.subr.bf16.mxu1 %v9551_v59  ;;  %8766 = vmatprep.subr.bf16.mxu0 %v9554_v8  ;;  %v9561_v16 = vld [vmem:[%s12106_s9 + $0x280] ss:$8 sps:$4 sm:$0xff]   ;;  %v9569_v59 = vld [vmem:[%s12106_s9 + $0x294] ss:$8 sps:$4 sm:$0xff]   ;;  %v9572_v8 = vld [vmem:[%s12106_s9 + $0x664] ss:$8 sps:$4 sm:$0xff]  }
 0x446   : > { %v6250_v47 = vsel %vm4643_vm2, %v6249_v57, %v6245_v31  ;;  %2869 = vadd.xlane.f32.xlu1 %v2868_v36  ;;  %2866 = vadd.xlane.f32.xlu0 %v2865_v34  ;;  %v4577_v22 = vunpack.c.l.b16 %v13550_v63  ;;  %v4578_v45 = vunpack.c.h.b16 %v13550_v63  ;;  %v3297_v36 = vsel %vm1796_vm0, %v1784_v25, 0.0  ;;  %v1643_v34 = vld [vmem:[%s14278_s0 + $0xb38] sm:$0xff] }
 0x447   : > { %v13562_v6 = vsel %vm4650_vm3, %v6254_v41, %v6250_v47  ;;  %v2822_v35 = vpop.xlane.xlu1 %2821  ;;  %v2819_v18 = vpop.xlane.xlu0 %2818  ;;  %v9567_v57 = vld [vmem:[%s12106_s9 + $0x290] ss:$8 sps:$4 sm:$0xff]   ;;  %v9570_v41 = vld [vmem:[%s12106_s9 + $0x660] ss:$8 sps:$4 sm:$0xff]   ;;  %v3249_v25 = vsel %vm1796_vm0, %v1768_v24, 0.0 }
 0x448   : > { %v3503_v44 = vpack.c.bf16 %v2822_v35, %v2819_v18  ;;  %8609 = vmatpush1.bf16.msra.mxu1 %v9549_v23  ;;  %8767 = vmatpush1.bf16.msra.mxu0 %v9552_v39  ;;  %v6951_v63 = vrot.slane %v4577_v22, %v10707_v32  ;;  %v6955_v46 = vrot.slane %v4578_v45, %v10715_v38  ;;  %v9575_v23 = vld [vmem:[%s12106_s9 + $0x2a4] ss:$8 sps:$4 sm:$0xff]   ;;  %v9578_v39 = vld [vmem:[%s12106_s9 + $0x674] ss:$8 sps:$4 sm:$0xff]   ;;  %v2874_v35 = vsel %vm1796_vm0, %v1643_v34, 0.0 }
 0x449   : > { %8610 = vmatprep.subr.bf16.mxu1 %v9557_v9  ;;  %8768 = vmatprep.subr.bf16.mxu0 %v9560_v20 }
 0x44a   : > { %v4453_v17 = vunpack.c.l.b16 %v3503_v44  ;;  %v4454_v54 = vunpack.c.h.b16 %v3503_v44  ;;  %3247 = vadd.xlane.f32.xlu1 %v3246_v42  ;;  %3244 = vadd.xlane.f32.xlu0 %v3243_v43  ;;  %v1769_v42 = vld [vmem:[%s14278_s0 + $0xf28] sm:$0xff] }
 0x44b   : > { %v3146_v37 = vpop.xlane.xlu1 %3145  ;;  %v3143_v0 = vpop.xlane.xlu0 %3142 }
 0x44c   : > { %v6338_v5 = vrot.slane %v4453_v17, %v14312_v11  ;;  %v6343_v50 = vrot.slane %v4454_v54, %v10744_v60  ;;  %v13583_v4 = vpack.c.bf16 %v3146_v37, %v3143_v0  ;;  %8611 = vmatpush1.bf16.msra.mxu1 %v9555_v10  ;;  %8769 = vmatpush1.bf16.msra.mxu0 %v9558_v15  ;;  %v9573_v10 = vld [vmem:[%s12106_s9 + $0x2a0] ss:$8 sps:$4 sm:$0xff]   ;;  %v9576_v15 = vld [vmem:[%s12106_s9 + $0x670] ss:$8 sps:$4 sm:$0xff]   ;;  %v9581_v54 = vld [vmem:[%s12106_s9 + $0x2b4] ss:$8 sps:$4 sm:$0xff]  }
 0x44d   : > { %8612 = vmatprep.subr.bf16.mxu1 %v9563_v33  ;;  %8770 = vmatprep.subr.bf16.mxu0 %v9566_v55  ;;  %v6956_v33 = vsel %vm4636_vm1, %v6955_v46, %v6951_v63  ;;  %v9584_v37 = vld [vmem:[%s12106_s9 + $0x684] ss:$8 sps:$4 sm:$0xff]  }
 0x44e   : > { %v6339_v53 = vsel %vm4657_vm4, %v6338_v5, %v6334_v30  ;;  %2923 = vadd.xlane.f32.xlu1 %v2922_v51  ;;  %2920 = vadd.xlane.f32.xlu0 %v2919_v14  ;;  %v1642_v30 = vld [vmem:[%s14278_s0 + $0xb30] sm:$0xff]  ;;  %v4561_v55 = vunpack.c.l.b16 %v13583_v4  ;;  %v4562_v17 = vunpack.c.h.b16 %v13583_v4  ;;  %v3252_v4 = vsel %vm1796_vm0, %v1769_v42, 0.0  ;;  %v9596_v42 = vld [vmem:[%s12106_s9 + $0x6a4] ss:$8 sps:$4 sm:$0xff]  }
 0x44f   : > { %v13596_v40 = vsel %vm14319_vm5, %v6343_v50, %v6339_v53  ;;  %v3200_v52 = vpop.xlane.xlu1 %3199  ;;  %v3197_v26 = vpop.xlane.xlu0 %3196  ;;  %v2871_v18 = vsel %vm1796_vm0, %v1642_v30, 0.0  ;;  %v9582_v53 = vld [vmem:[%s12106_s9 + $0x680] ss:$8 sps:$4 sm:$0xff]  }
 0x450   : > { %v3566_v61 = vpack.c.bf16 %v3200_v52, %v3197_v26  ;;  %8613 = vmatpush1.bf16.msra.mxu1 %v9561_v16  ;;  %8771 = vmatpush1.bf16.msra.mxu0 %v9564_v1  ;;  %v1661_v16 = vld [vmem:[%s14278_s0 + $0xbc8] sm:$0xff]  ;;  %v6872_v52 = vrot.slane %v4561_v55, %v10707_v32  ;;  %v6876_v26 = vrot.slane %v4562_v17, %v10715_v38  ;;  %v1644_v17 = vld [vmem:[%s14278_s0 + $0xb40] sm:$0xff] }
 0x451   : > { %8614 = vmatprep.subr.bf16.mxu1 %v9569_v59  ;;  %8772 = vmatprep.subr.bf16.mxu0 %v9572_v8  ;;  %v1660_v59 = vld [vmem:[%s14278_s0 + $0xbc0] sm:$0xff]  ;;  %v9579_v8 = vld [vmem:[%s12106_s9 + $0x2b0] ss:$8 sps:$4 sm:$0xff]   ;;  %v2928_v46 = vsel %vm1796_vm0, %v1661_v16, 0.0  ;;  %v2877_v16 = vsel %vm1796_vm0, %v1644_v17, 0.0 }
 0x452   : > { %v4579_v31 = vunpack.c.l.b16 %v3566_v61  ;;  %v4580_v9 = vunpack.c.h.b16 %v3566_v61  ;;  %3301 = vadd.xlane.f32.xlu1 %v3300_v62  ;;  %3298 = vadd.xlane.f32.xlu0 %v3297_v36  ;;  %v9587_v62 = vld [vmem:[%s12106_s9 + $0x2c4] ss:$8 sps:$4 sm:$0xff]   ;;  %v9590_v36 = vld [vmem:[%s12106_s9 + $0x694] ss:$8 sps:$4 sm:$0xff]  }
 0x453   : > { %v2774_v20 = vpop.xlane.xlu1 %2773  ;;  %v2771_v47 = vpop.xlane.xlu0 %2770  ;;  %v1647_v17 = vld [vmem:[%s14278_s0 + $0xb58] sm:$0xff] }
 0x454   : > { %v6960_v43 = vrot.slane %v4579_v31, %v14310_v7  ;;  %v6965_v49 = vrot.slane %v4580_v9, %v14311_v29  ;;  %v3495_v44 = vpack.c.bf16 %v2774_v20, %v2771_v47  ;;  %8615 = vmatpush1.bf16.msra.mxu1 %v9567_v57  ;;  %8773 = vmatpush1.bf16.msra.mxu0 %v9570_v41  ;;  %v1786_v9 = vld [vmem:[%s14278_s0 + $0xfb0] sm:$0xff]  ;;  %v9585_v20 = vld [vmem:[%s12106_s9 + $0x2c0] ss:$8 sps:$4 sm:$0xff]  }
 0x455   : > { %8616 = vmatprep.subr.bf16.mxu1 %v9575_v23  ;;  %8774 = vmatprep.subr.bf16.mxu0 %v9578_v39  ;;  %v2925_v23 = vsel %vm1796_vm0, %v1660_v59, 0.0  ;;  %v9588_v47 = vld [vmem:[%s12106_s9 + $0x690] ss:$8 sps:$4 sm:$0xff]  }
 0x456   : > { %v6961_v0 = vsel %vm4643_vm2, %v6960_v43, %v6956_v33  ;;  %v4437_v51 = vunpack.c.l.b16 %v3495_v44  ;;  %v4438_v14 = vunpack.c.h.b16 %v3495_v44  ;;  %2875 = vadd.xlane.f32.xlu1 %v2874_v35  ;;  %2872 = vadd.xlane.f32.xlu0 %v2871_v18  ;;  %v6877_v35 = vsel %vm4636_vm1, %v6876_v26, %v6872_v52  ;;  %v9593_v18 = vld [vmem:[%s12106_s9 + $0x2d4] ss:$8 sps:$4 sm:$0xff]   ;;  %v1645_v33 = vld [vmem:[%s14278_s0 + $0xb48] sm:$0xff] }
 0x457   : > { %v13631_v58 = vsel %vm4650_vm3, %v6965_v49, %v6961_v0  ;;  %v3152_v5 = vpop.xlane.xlu1 %3151  ;;  %v3149_v50 = vpop.xlane.xlu0 %3148  ;;  %v9599_v0 = vld [vmem:[%s12106_s9 + $0x2e4] ss:$8 sps:$4 sm:$0xff]   ;;  %v1770_v59 = vld [vmem:[%s14278_s0 + $0xf30] sm:$0xff] }
 0x458   : > { %v6259_v1 = vrot.slane %v4437_v51, %v14312_v11  ;;  %v6264_v22 = vrot.slane %v4438_v14, %v10744_v60  ;;  %v3558_v45 = vpack.c.bf16 %v3152_v5, %v3149_v50  ;;  %8617 = vmatpush1.bf16.msra.mxu1 %v9573_v10  ;;  %8775 = vmatpush1.bf16.msra.mxu0 %v9576_v15  ;;  %v3303_v15 = vsel %vm1796_vm0, %v1786_v9, 0.0  ;;  %v9602_v51 = vld [vmem:[%s12106_s9 + $0x6b4] ss:$8 sps:$4 sm:$0xff]   ;;  %v9608_v26 = vld [vmem:[%s12106_s9 + $0x6c4] ss:$8 sps:$4 sm:$0xff]  }
 0x459   : > { %8618 = vmatprep.subr.bf16.mxu1 %v9581_v54  ;;  %8776 = vmatprep.subr.bf16.mxu0 %v9584_v37  ;;  %v9591_v54 = vld [vmem:[%s12106_s9 + $0x2d0] ss:$8 sps:$4 sm:$0xff]   ;;  %v9594_v37 = vld [vmem:[%s12106_s9 + $0x6a0] ss:$8 sps:$4 sm:$0xff]   ;;  %v9605_v52 = vld [vmem:[%s12106_s9 + $0x2f4] ss:$8 sps:$4 sm:$0xff]  }
 0x45a   : > { %v6260_v34 = vsel %vm4657_vm4, %v6259_v1, %v13562_v6  ;;  %v4563_v61 = vunpack.c.l.b16 %v3558_v45  ;;  %v4564_v30 = vunpack.c.h.b16 %v3558_v45  ;;  %3253 = vadd.xlane.f32.xlu1 %v3252_v4  ;;  %3250 = vadd.xlane.f32.xlu0 %v3249_v25  ;;  %v1787_v6 = vld [vmem:[%s14278_s0 + $0xfb8] sm:$0xff]  ;;  %v2880_v25 = vsel %vm1796_vm0, %v1645_v33, 0.0 }
 0x45b   : > { %v13652_v57 = vsel %vm14319_vm5, %v6264_v22, %v6260_v34  ;;  %v13654_v41 = vpop.xlane.xlu1 %2827  ;;  %v13656_v63 = vpop.xlane.xlu0 %2824  ;;  %v3306_v10 = vsel %vm1796_vm0, %v1787_v6, 0.0  ;;  %v1771_v1 = vld [vmem:[%s14278_s0 + $0xf38] sm:$0xff] }
 0x45c   : > { %v6881_v39 = vrot.slane %v4563_v61, %v14310_v7  ;;  %v6886_v31 = vrot.slane %v4564_v30, %v14311_v29  ;;  %8619 = vmatpush1.bf16.msra.mxu1 %v9579_v8  ;;  %8777 = vmatpush1.bf16.msra.mxu0 %v9582_v53  ;;  %v9597_v8 = vld [vmem:[%s12106_s9 + $0x2e0] ss:$8 sps:$4 sm:$0xff]   ;;  %v9600_v53 = vld [vmem:[%s12106_s9 + $0x6b0] ss:$8 sps:$4 sm:$0xff]   ;;  %v3258_v30 = vsel %vm1796_vm0, %v1771_v1, 0.0 }
 0x45d   : > { %8620 = vmatprep.subr.bf16.mxu1 %v9587_v62  ;;  %8778 = vmatprep.subr.bf16.mxu0 %v9590_v36  ;;  %v9603_v6 = vld [vmem:[%s12106_s9 + $0x2f0] ss:$8 sps:$4 sm:$0xff]   ;;  %v1772_v1 = vld [vmem:[%s14278_s0 + $0xf40] sm:$0xff] }
 0x45e   : > { %v6882_v43 = vsel %vm4643_vm2, %v6881_v39, %v6877_v35  ;;  %2929 = vadd.xlane.f32.xlu1 %v2928_v46  ;;  %2926 = vadd.xlane.f32.xlu0 %v2925_v23  ;;  %v3255_v46 = vsel %vm1796_vm0, %v1770_v59, 0.0  ;;  %v1663_v23 = vld [vmem:[%s14278_s0 + $0xbd8] sm:$0xff]  ;;  %v9606_v39 = vld [vmem:[%s12106_s9 + $0x6c0] ss:$8 sps:$4 sm:$0xff]  }
 0x45f   : > { %v13675_v49 = vsel %vm4650_vm3, %v6886_v31, %v6882_v43  ;;  %v3206_v44 = vpop.xlane.xlu1 %3205  ;;  %v3203_v24 = vpop.xlane.xlu0 %3202  ;;  %v9611_v31 = vld [vmem:[%s12106_s9 + $0x6d4] ss:$8 sps:$4 sm:$0xff]   ;;  %v9609_v43 = vld [vmem:[%s12106_s9 + $0x6d0] ss:$8 sps:$4 sm:$0xff]  }
 0x460   : > { %v3567_v55 = vpack.c.bf16 %v3206_v44, %v3203_v24  ;;  %8621 = vmatpush1.bf16.msra.mxu1 %v9585_v20  ;;  %8779 = vmatpush1.bf16.msra.mxu0 %v9588_v47  ;;  %v2934_v47 = vsel %vm1796_vm0, %v1663_v23, 0.0  ;;  %v9614_v44 = vld [vmem:[%s12106_s9 + $0x6e4] ss:$8 sps:$4 sm:$0xff]  }
 0x461   : > { %8622 = vmatprep.subr.bf16.mxu1 %v9593_v18  ;;  %8780 = vmatprep.subr.bf16.mxu0 %v9596_v42  ;;  %v1789_v18 = vld [vmem:[%s14278_s0 + $0xfc8] sm:$0xff]  ;;  %v1788_v42 = vld [vmem:[%s14278_s0 + $0xfc0] sm:$0xff] }
 0x462   : > { %v4581_v14 = vunpack.c.l.b16 %v3567_v55  ;;  %v4582_v5 = vunpack.c.h.b16 %v3567_v55  ;;  %3307 = vadd.xlane.f32.xlu1 %v3306_v10  ;;  %3304 = vadd.xlane.f32.xlu0 %v3303_v15  ;;  %v9620_v24 = vld [vmem:[%s12106_s9 + $0x304] ss:$8 sps:$4 sm:$0xff]   ;;  %v3312_v33 = vsel %vm1796_vm0, %v1789_v18, 0.0  ;;  %v3309_v55 = vsel %vm1796_vm0, %v1788_v42, 0.0 }
 0x463   : > { %v13689_v50 = vpop.xlane.xlu1 %2779  ;;  %v13691_v4 = vpop.xlane.xlu0 %2776  ;;  %v1649_v42 = vld [vmem:[%s14278_s0 + $0xb68] sm:$0xff] }
 0x464   : > { %v6970_v22 = vrot.slane %v4581_v14, %v14312_v11  ;;  %v6975_v45 = vrot.slane %v4582_v5, %v10744_v60  ;;  %8623 = vmatpush1.bf16.msra.mxu1 %v9591_v54  ;;  %8781 = vmatpush1.bf16.msra.mxu0 %v9594_v37  ;;  %v1646_v54 = vld [vmem:[%s14278_s0 + $0xb50] sm:$0xff]  ;;  %v9612_v37 = vld [vmem:[%s12106_s9 + $0x6e0] ss:$8 sps:$4 sm:$0xff]   ;;  %v2886_v5 = vsel %vm1796_vm0, %v1647_v17, 0.0 }
 0x465   : > { %8624 = vmatprep.subr.bf16.mxu1 %v9599_v0  ;;  %8782 = vmatprep.subr.bf16.mxu0 %v9602_v51  ;;  %v9617_v0 = vld [vmem:[%s12106_s9 + $0x6f4] ss:$8 sps:$4 sm:$0xff]  }
 0x466   : > { %v6971_v62 = vsel %vm4657_vm4, %v6970_v22, %v13631_v58  ;;  %2881 = vadd.xlane.f32.xlu1 %v2880_v25  ;;  %2878 = vadd.xlane.f32.xlu0 %v2877_v16  ;;  %v1662_v58 = vld [vmem:[%s14278_s0 + $0xbd0] sm:$0xff]  ;;  %v2883_v25 = vsel %vm1796_vm0, %v1646_v54, 0.0  ;;  %v1773_v16 = vld [vmem:[%s14278_s0 + $0xf48] sm:$0xff]  ;;  %v1775_v54 = vld [vmem:[%s14278_s0 + $0xf58] sm:$0xff] }
 0x467   : > { %v13710_v36 = vsel %vm14319_vm5, %v6975_v45, %v6971_v62  ;;  %v13712_v34 = vpop.xlane.xlu1 %3157  ;;  %v13714_v61 = vpop.xlane.xlu0 %3154  ;;  %v2931_v35 = vsel %vm1796_vm0, %v1662_v58, 0.0  ;;  %v9615_v22 = vld [vmem:[%s12106_s9 + $0x6f0] ss:$8 sps:$4 sm:$0xff]   ;;  %v9632_v62 = vld [vmem:[%s12106_s9 + $0x704] ss:$8 sps:$4 sm:$0xff]  }
 0x468   : > { %8625 = vmatpush1.bf16.msra.mxu1 %v9597_v8  ;;  %8783 = vmatpush1.bf16.msra.mxu0 %v9600_v53  ;;  %v3264_v8 = vsel %vm1796_vm0, %v1773_v16, 0.0  ;;  %v3261_v53 = vsel %vm1796_vm0, %v1772_v1, 0.0  ;;  %v3270_v16 = vsel %vm1796_vm0, %v1775_v54, 0.0 }
 0x469   : > { %8626 = vmatprep.subr.bf16.mxu1 %v9605_v52  ;;  %8784 = vmatprep.subr.bf16.mxu0 %v9608_v26  ;;  %v1665_v52 = vld [vmem:[%s14278_s0 + $0xbe8] sm:$0xff]  ;;  %v1664_v26 = vld [vmem:[%s14278_s0 + $0xbe0] sm:$0xff] }
 0x46a   : > { %3259 = vadd.xlane.f32.xlu1 %v3258_v30  ;;  %3256 = vadd.xlane.f32.xlu0 %v3255_v46  ;;  %v2940_v23 = vsel %vm1796_vm0, %v1665_v52, 0.0  ;;  %v2937_v58 = vsel %vm1796_vm0, %v1664_v26, 0.0 }
 0x46b   : > { %v13727_v9 = vpop.xlane.xlu1 %2833  ;;  %v13729_v20 = vpop.xlane.xlu0 %2830 }
 0x46c   : > { %8627 = vmatpush1.bf16.msra.mxu1 %v9603_v6  ;;  %8785 = vmatpush1.bf16.msra.mxu0 %v9606_v39  ;;  %v1791_v6 = vld [vmem:[%s14278_s0 + $0xfd8] sm:$0xff]  ;;  %v1790_v39 = vld [vmem:[%s14278_s0 + $0xfd0] sm:$0xff] }
 0x46d   : > { %8786 = vmatprep.subr.bf16.mxu0 %v9611_v31  ;;  %8637 = vmatprep.subr.bf16.mxu1 %v9620_v24  ;;  %v3315_v18 = vsel %vm1796_vm0, %v1790_v39, 0.0 }
 0x46e   : > { %2935 = vadd.xlane.f32.xlu1 %v2934_v47  ;;  %2932 = vadd.xlane.f32.xlu0 %v2931_v35  ;;  %v3318_v35 = vsel %vm1796_vm0, %v1791_v6, 0.0 }
 0x46f   : > { %v13742_v10 = vpop.xlane.xlu1 %3211  ;;  %v13744_v15 = vpop.xlane.xlu0 %3208 }
 0x470   : > { %8787 = vmatpush1.bf16.msra.mxu0 %v9609_v43  ;;  %v1648_v43 = vld [vmem:[%s14278_s0 + $0xb60] sm:$0xff] }
 0x471   : > { %8788 = vmatprep.subr.bf16.mxu0 %v9614_v44  ;;  %v3504_v44 = vpack.c.bf16 %v13654_v41, %v13656_v63  ;;  %v2889_v17 = vsel %vm1796_vm0, %v1648_v43, 0.0  ;;  %v3496_v41 = vpack.c.bf16 %v13689_v50, %v13691_v4  ;;  %v3559_v63 = vpack.c.bf16 %v13712_v34, %v13714_v61  ;;  %v1666_v50 = vld [vmem:[%s14278_s0 + $0xbf0] sm:$0xff]  ;;  %v1793_v34 = vld [vmem:[%s14278_s0 + $0xfe8] sm:$0xff]  ;;  %v1792_v61 = vld [vmem:[%s14278_s0 + $0xfe0] sm:$0xff] }
 0x472   : > { %3313 = vadd.xlane.f32.xlu1 %v3312_v33  ;;  %3310 = vadd.xlane.f32.xlu0 %v3309_v55  ;;  %v2892_v55 = vsel %vm1796_vm0, %v1649_v42, 0.0  ;;  %v3568_v4 = vpack.c.bf16 %v13742_v10, %v13744_v15  ;;  %v1650_v10 = vld [vmem:[%s14278_s0 + $0xb70] sm:$0xff]  ;;  %v3324_v39 = vsel %vm1796_vm0, %v1793_v34, 0.0 }
 0x473   : > { %v13756_v51 = vpop.xlane.xlu1 %2785  ;;  %v13758_v14 = vpop.xlane.xlu0 %2782  ;;  %v4439_v15 = vunpack.c.l.b16 %v3496_v41  ;;  %v4565_v52 = vunpack.c.l.b16 %v3559_v63 }
 0x474   : > { %8789 = vmatpush1.bf16.msra.mxu0 %v9612_v37  ;;  %v1774_v37 = vld [vmem:[%s14278_s0 + $0xf50] sm:$0xff]  ;;  %v13855_v42 = vpack.c.bf16 %v13756_v51, %v13758_v14  ;;  %v1776_v51 = vld [vmem:[%s14278_s0 + $0xf60] sm:$0xff]  ;;  %v1795_v14 = vld [vmem:[%s14278_s0 + $0xff8] sm:$0xff] }
 0x475   : > { %8790 = vmatprep.subr.bf16.mxu0 %v9617_v0  ;;  %v4455_v0 = vunpack.c.l.b16 %v3504_v44  ;;  %v3267_v1 = vsel %vm1796_vm0, %v1774_v37, 0.0  ;;  %v4440_v37 = vunpack.c.h.b16 %v3496_v41 }
 0x476   : > { %2887 = vadd.xlane.f32.xlu1 %v2886_v5  ;;  %2884 = vadd.xlane.f32.xlu0 %v2883_v25 }
 0x477   : > { %v13769_v45 = vpop.xlane.xlu1 %3163  ;;  %v13771_v59 = vpop.xlane.xlu0 %3160 }
 0x478   : > { %8791 = vmatpush1.bf16.msra.mxu0 %v9615_v22  ;;  %v3505_v22 = vpack.c.bf16 %v13727_v9, %v13729_v20  ;;  %v4456_v9 = vunpack.c.h.b16 %v3504_v44  ;;  %v6348_v20 = vrot.slane %v4455_v0, %v10761_v12  ;;  %v2895_v44 = vsel %vm1796_vm0, %v1650_v10, 0.0 }
 0x479   : > { %8801 = vmatprep.subr.bf16.mxu0 %v9632_v62  ;;  %v3560_v34 = vpack.c.bf16 %v13769_v45, %v13771_v59  ;;  %v6274_v10 = vrot.slane %v4440_v37, %v10764_v13 }
 0x47a   : > { %3265 = vadd.xlane.f32.xlu1 %v3264_v8  ;;  %3262 = vadd.xlane.f32.xlu0 %v3261_v53  ;;  %v1667_v8 = vld [vmem:[%s14278_s0 + $0xbf8] sm:$0xff]  ;;  %v4457_v6 = vunpack.c.l.b16 %v3505_v22  ;;  %v6353_v54 = vrot.slane %v4456_v9, %v10764_v13 }
 0x47b   : > { %v2840_v30 = vpop.xlane.xlu1 %2839  ;;  %v2837_v46 = vpop.xlane.xlu0 %2836  ;;  %v1651_v53 = vld [vmem:[%s14278_s0 + $0xb78] sm:$0xff] }
 0x47c   : > { %v2898_v43 = vsel %vm1796_vm0, %v1651_v53, 0.0  ;;  %v3506_v0 = vpack.c.bf16 %v2840_v30, %v2837_v46  ;;  %v6358_v30 = vrot.slane %v4457_v6, %v10770_v21  ;;  %v4584_v46 = vunpack.c.h.b16 %v3568_v4 }
 0x47e   : > { %2941 = vadd.xlane.f32.xlu1 %v2940_v23  ;;  %2938 = vadd.xlane.f32.xlu0 %v2937_v58  ;;  %v2946_v23 = vsel %vm1796_vm0, %v1667_v8, 0.0  ;;  %v2943_v58 = vsel %vm1796_vm0, %v1666_v50, 0.0  ;;  %v6891_v8 = vrot.slane %v4565_v52, %v14312_v11 }
 0x47f   : > { %v13790_v31 = vpop.xlane.xlu1 %3217  ;;  %v13792_v47 = vpop.xlane.xlu0 %3214 }
 0x480   : > { %v6892_v59 = vsel %vm4657_vm4, %v6891_v8, %v13675_v49 }
 0x482   : > { %3319 = vadd.xlane.f32.xlu1 %v3318_v35  ;;  %3316 = vadd.xlane.f32.xlu0 %v3315_v18  ;;  %v3321_v35 = vsel %vm1796_vm0, %v1792_v61, 0.0  ;;  %v4583_v18 = vunpack.c.l.b16 %v3568_v4 }
 0x483   : > { %v13804_v24 = vpop.xlane.xlu1 %2791  ;;  %v13806_v33 = vpop.xlane.xlu0 %2788 }
 0x484   : > { %v6980_v9 = vrot.slane %v4583_v18, %v10761_v12  ;;  %v1794_v18 = vld [vmem:[%s14278_s0 + $0xff0] sm:$0xff]  ;;  %v3498_v49 = vpack.c.bf16 %v13804_v24, %v13806_v33  ;;  %v4568_v33 = vunpack.c.h.b16 %v3560_v34 }
 0x486   : > { %2893 = vadd.xlane.f32.xlu1 %v2892_v55  ;;  %2890 = vadd.xlane.f32.xlu0 %v2889_v17  ;;  %v1777_v55 = vld [vmem:[%s14278_s0 + $0xf68] sm:$0xff]  ;;  %v6349_v17 = vsel %vm4671_vm6, %v6348_v20, %v13596_v40  ;;  %v4458_v40 = vunpack.c.h.b16 %v3505_v22  ;;  %v4441_v20 = vunpack.c.l.b16 %v13855_v42  ;;  %v13885_v22 = vsel %vm1796_vm0, %v1795_v14, 0.0 }
 0x487   : > { %v13820_v5 = vpop.xlane.xlu1 %3169  ;;  %v13822_v25 = vpop.xlane.xlu0 %3166  ;;  %v3276_v61 = vsel %vm1796_vm0, %v1777_v55, 0.0  ;;  %v6354_v53 = vsel %vm4678_vm7, %v6353_v54, %v6349_v17  ;;  %v4442_v55 = vunpack.c.h.b16 %v13855_v42  ;;  %v4460_v54 = vunpack.c.h.b16 %v3506_v0 }
 0x488   : > { %v6279_v17 = vrot.slane %v4441_v20, %v10770_v21  ;;  %v3327_v14 = vsel %vm1796_vm0, %v1794_v18, 0.0 }
 0x48a   : > { %3271 = vadd.xlane.f32.xlu1 %v3270_v16  ;;  %3268 = vadd.xlane.f32.xlu0 %v3267_v1  ;;  %v6269_v16 = vrot.slane %v4439_v15, %v10761_v12  ;;  %v4566_v1 = vunpack.c.h.b16 %v3559_v63  ;;  %v3273_v63 = vsel %vm1796_vm0, %v1776_v51, 0.0  ;;  %v4459_v15 = vunpack.c.l.b16 %v3506_v0  ;;  %v1778_v0 = vld [vmem:[%s14278_s0 + $0xf70] sm:$0xff] }
 0x48b   : > { %v2846_v26 = vpop.xlane.xlu1 %2845  ;;  %v2843_v62 = vpop.xlane.xlu0 %2842 }
 0x48c   : > { %v3507_v4 = vpack.c.bf16 %v2846_v26, %v2843_v62  ;;  %v6270_v45 = vsel %vm4671_vm6, %v6269_v16, %v13652_v57  ;;  %v6896_v52 = vrot.slane %v4566_v1, %v10744_v60  ;;  %v1779_v26 = vld [vmem:[%s14278_s0 + $0xf78] sm:$0xff]  ;;  %v6359_v62 = vsel %vm4685_vm8, %v6358_v30, %v6354_v53 }
 0x48d   : > { %v6985_v57 = vrot.slane %v4584_v46, %v10764_v13  ;;  %v6368_v37 = vrot.slane %v4459_v15, %v10796_v48  ;;  %v3282_v16 = vsel %vm1796_vm0, %v1779_v26, 0.0  ;;  %v6275_v1 = vsel %vm4678_vm7, %v6274_v10, %v6270_v45 }
 0x48e   : > { %2947 = vadd.xlane.f32.xlu1 %v2946_v23  ;;  %2944 = vadd.xlane.f32.xlu0 %v2943_v58  ;;  %v6363_v23 = vrot.slane %v4458_v40, %v10778_v27  ;;  %v4461_v51 = vunpack.c.l.b16 %v3507_v4  ;;  %v6897_v24 = vsel %vm14319_vm5, %v6896_v52, %v6892_v59  ;;  %v4443_v30 = vunpack.c.l.b16 %v3498_v49 }
 0x48f   : > { %v13873_v50 = vpop.xlane.xlu1 %3223  ;;  %v13875_v41 = vpop.xlane.xlu0 %3220  ;;  %v6280_v46 = vsel %vm4685_vm8, %v6279_v17, %v6275_v1  ;;  %v3279_v10 = vsel %vm1796_vm0, %v1778_v0, 0.0  ;;  %v6906_v15 = vrot.slane %v4568_v33, %v10764_v13  ;;  %v3561_v52 = vpack.c.bf16 %v13820_v5, %v13822_v25 }
 0x490   : > { %v6378_v20 = vrot.slane %v4461_v51, %v10813_v2  ;;  %v4444_v26 = vunpack.c.h.b16 %v3498_v49  ;;  %vm14321_vm0 = vcmask 1041409  }
 0x491   : > { %vm14323_vm5 = vmmov %vm14321_vm0 }
 0x492   : > { %3325 = vadd.xlane.f32.xlu1 %v3324_v39  ;;  %3322 = vadd.xlane.f32.xlu0 %v3321_v35  ;;  %v4567_v39 = vunpack.c.l.b16 %v3560_v34  ;;  %v6981_v35 = vsel %vm4671_vm6, %v6980_v9, %v13710_v36  ;;  %v3569_v36 = vpack.c.bf16 %v13790_v31, %v13792_v47  ;;  %v6284_v34 = vrot.slane %v4442_v55, %v10778_v27 }
 0x493   : > { %v2798_v58 = vpop.xlane.xlu1 %2797  ;;  %v2795_v6 = vpop.xlane.xlu0 %2794  ;;  %v6373_v9 = vrot.slane %v4460_v54, %v10806_v56  ;;  %v4462_v31 = vunpack.c.h.b16 %v3507_v4  ;;  %v4569_v54 = vunpack.c.l.b16 %v3561_v52 }
 0x494   : > { %v6901_v40 = vrot.slane %v4567_v39, %v10761_v12  ;;  %v3499_v53 = vpack.c.bf16 %v2798_v58, %v2795_v6  ;;  %v4585_v45 = vunpack.c.l.b16 %v3569_v36  ;;  %v4586_v59 = vunpack.c.h.b16 %v3569_v36 }
 0x495   : > { %v6383_v58 = vrot.slane %v4462_v31, %v10816_v3  ;;  %v3570_v6 = vpack.c.bf16 %v13873_v50, %v13875_v41  ;;  %v6294_v50 = vrot.slane %v4444_v26, %v10806_v56 }
 0x496   : > { %2899 = vadd.xlane.f32.xlu1 %v2898_v43  ;;  %2896 = vadd.xlane.f32.xlu0 %v2895_v44  ;;  %v6364_v43 = vsel %vm4692_vm9, %v6363_v23, %v6359_v62  ;;  %v6986_v44 = vsel %vm4678_vm7, %v6985_v57, %v6981_v35  ;;  %v6902_v4 = vsel %vm4671_vm6, %v6901_v40, %v6897_v24  ;;  %v4445_v5 = vunpack.c.l.b16 %v3499_v53 }
 0x497   : > { %v3176_v42 = vpop.xlane.xlu1 %3175  ;;  %v3173_v8 = vpop.xlane.xlu0 %3172  ;;  %v6369_v47 = vsel %vm4699_vm10, %v6368_v37, %v6364_v43  ;;  %v6289_v62 = vrot.slane %v4443_v30, %v10796_v48  ;;  %v6907_v49 = vsel %vm4678_vm7, %v6906_v15, %v6902_v4  ;;  %v6990_v55 = vrot.slane %v4585_v45, %v10770_v21 }
 0x498   : > { %v6995_v17 = vrot.slane %v4586_v59, %v10778_v27  ;;  %v4446_v33 = vunpack.c.h.b16 %v3499_v53  ;;  %v3562_v36 = vpack.c.bf16 %v3176_v42, %v3173_v8  ;;  %v6299_v0 = vrot.slane %v4445_v5, %v10813_v2  ;;  %v14320_v8 = vld [vmem:[#allocation13_spill] sm:$0xff] }
 0x499   : > { %v4570_v30 = vunpack.c.h.b16 %v3561_v52 }
 0x49a   : > { %3277 = vadd.xlane.f32.xlu1 %v3276_v61  ;;  %3274 = vadd.xlane.f32.xlu0 %v3273_v63  ;;  %v6285_v61 = vsel %vm4692_vm9, %v6284_v34, %v6280_v46  ;;  %v6374_v63 = vsel %vm4706_vm11, %v6373_v9, %v6369_v47  ;;  %v6911_v46 = vrot.slane %v4569_v54, %v10770_v21  ;;  %v4588_v34 = vunpack.c.h.b16 %v3570_v6 }
 0x49b   : > { %v2852_v23 = vpop.xlane.xlu1 %2851  ;;  %v2849_v18 = vpop.xlane.xlu0 %2848  ;;  %v6379_v39 = vsel %vm4713_vm12, %v6378_v20, %v6374_v63  ;;  %v6290_v1 = vsel %vm4699_vm10, %v6289_v62, %v6285_v61  ;;  %v6991_v20 = vsel %vm4685_vm8, %v6990_v55, %v6986_v44  ;;  %v4571_v45 = vunpack.c.l.b16 %v3562_v36 }
 0x49c   : > { %v3508_v57 = vpack.c.bf16 %v2852_v23, %v2849_v18  ;;  %v6295_v53 = vsel %vm4706_vm11, %v6294_v50, %v6290_v1  ;;  %v6996_v26 = vsel %vm4692_vm9, %v6995_v17, %v6991_v20  ;;  %v6912_v44 = vsel %vm4685_vm8, %v6911_v46, %v6907_v49 }
 0x49d   : > { %v6300_v52 = vsel %vm4713_vm12, %v6299_v0, %v6295_v53  ;;  %v6916_v62 = vrot.slane %v4570_v30, %v10778_v27  ;;  %v6921_v49 = vrot.slane %v4571_v45, %v10796_v48  ;;  %v9618_v0 = vld [vmem:[%s12106_s9 + $0x300] ss:$8 sps:$4 sm:$0xff]  }
 0x49e   : > { %v4463_v25 = vunpack.c.l.b16 %v3508_v57  ;;  %v4464_v35 = vunpack.c.h.b16 %v3508_v57  ;;  %3331 = vadd.xlane.f32.xlu1 %v13885_v22  ;;  %3328 = vadd.xlane.f32.xlu0 %v3327_v14  ;;  %v6384_v22 = vsel %vm4720_vm13, %v6383_v58, %v6379_v39  ;;  %v4587_v14 = vunpack.c.l.b16 %v3570_v6 }
 0x49f   : > { %v3230_v37 = vpop.xlane.xlu1 %3229  ;;  %v3227_v51 = vpop.xlane.xlu0 %3226  ;;  %v7005_v57 = vrot.slane %v4588_v34, %v10806_v56  ;;  %v4572_v58 = vunpack.c.h.b16 %v3562_v36  ;;  %v9623_v34 = vld [vmem:[%s12106_s9 + $0x314] ss:$8 sps:$4 sm:$0xff]  }
 0x4a0   : > { %v6388_v41 = vrot.slane %v4463_v25, %v10831_v19  ;;  %v6393_v24 = vrot.slane %v4464_v35, %v10838_v28  ;;  %v3571_v43 = vpack.c.bf16 %v3230_v37, %v3227_v51  ;;  %v6917_v51 = vsel %vm4692_vm9, %v6916_v62, %v6912_v44 }
 0x4a2   : > { %3283 = vadd.xlane.f32.xlu1 %v3282_v16  ;;  %3280 = vadd.xlane.f32.xlu0 %v3279_v10  ;;  %v6389_v40 = vsel %vm4727_vm14, %v6388_v41, %v6384_v22  ;;  %v7000_v16 = vrot.slane %v4587_v14, %v10796_v48  ;;  %v6304_v10 = vrot.slane %v4446_v33, %v10816_v3  ;;  %v4589_v23 = vunpack.c.l.b16 %v3571_v43  ;;  %v14322_v33 = vld [vmem:[#allocation12_spill] sm:$0xff] }
 0x4a3   : > { %v2804_v9 = vpop.xlane.xlu1 %2803  ;;  %v2801_v31 = vpop.xlane.xlu0 %2800  ;;  %v6394_v47 = vsel %vm4734_vm15, %v6393_v24, %v6389_v40  ;;  %v4590_v55 = vunpack.c.h.b16 %v3571_v43  ;;  %v6926_v22 = vrot.slane %v4572_v58, %v10806_v56  ;;  %v6922_v43 = vsel %vm4699_vm10, %v6921_v49, %v6917_v51 }
 0x4a4   : > { %v3500_v42 = vpack.c.bf16 %v2804_v9, %v2801_v31  ;;  %v7191_v15 = vsel %vm14321_vm0, %v6394_v47, %v14320_v8  ;;  %v7001_v25 = vsel %vm4699_vm10, %v7000_v16, %v6996_v26  ;;  %v6305_v35 = vsel %vm4720_vm13, %v6304_v10, %v6300_v52  ;;  %v9621_v10 = vld [vmem:[%s12106_s9 + $0x310] ss:$8 sps:$4 sm:$0xff]  }
 0x4a5   : > { %v7207_v59 = vpack.c.b16 %v7191_v15, %v7191_v15  ;;  %v7010_v17 = vrot.slane %v4589_v23, %v10813_v2  ;;  %v7006_v24 = vsel %vm4706_vm11, %v7005_v57, %v7001_v25  ;;  %v7015_v40 = vrot.slane %v4590_v55, %v10816_v3  ;;  %v9626_v23 = vld [vmem:[%s12106_s9 + $0x324] ss:$8 sps:$4 sm:$0xff]   ;;  %v9624_v25 = vld [vmem:[%s12106_s9 + $0x320] ss:$8 sps:$4 sm:$0xff]   ;;  %v9629_v55 = vld [vmem:[%s12106_s9 + $0x334] ss:$8 sps:$4 sm:$0xff]  }
 0x4a6   : > { %v4447_v18 = vunpack.c.l.b16 %v3500_v42  ;;  %v4448_v4 = vunpack.c.h.b16 %v3500_v42  ;;  %v6927_v45 = vsel %vm4706_vm11, %v6926_v22, %v6922_v43  ;;  %v9630_v22 = vld [vmem:[%s12106_s9 + $0x700] ss:$8 sps:$4 sm:$0xff]   ;;  %v9638_v43 = vld [vmem:[%s12106_s9 + $0x714] ss:$8 sps:$4 sm:$0xff]  }
 0x4a7   : > { %v3182_v61 = vpop.xlane.xlu1 %3181  ;;  %v3179_v63 = vpop.xlane.xlu0 %3178  ;;  %8628 = vmatprep.mubr.bf16.mxu1 %v7207_v59  ;;  %v7011_v9 = vsel %vm4713_vm12, %v7010_v17, %v7006_v24  ;;  %v9627_v24 = vld [vmem:[%s12106_s9 + $0x330] ss:$8 sps:$4 sm:$0xff]  }
 0x4a8   : > { %v6309_v6 = vrot.slane %v4447_v18, %v10831_v19  ;;  %v6314_v39 = vrot.slane %v4448_v4, %v10838_v28  ;;  %v3563_v5 = vpack.c.bf16 %v3182_v61, %v3179_v63  ;;  %v7016_v59 = vsel %vm4720_vm13, %v7015_v40, %v7011_v9  ;;  %v9636_v9 = vld [vmem:[%s12106_s9 + $0x710] ss:$8 sps:$4 sm:$0xff]  }
 0x4aa   : > { %v6310_v54 = vsel %vm4727_vm14, %v6309_v6, %v6305_v35  ;;  %v4573_v37 = vunpack.c.l.b16 %v3563_v5  ;;  %v4574_v30 = vunpack.c.h.b16 %v3563_v5 }
 0x4ab   : > { %v6315_v1 = vsel %vm4734_vm15, %v6314_v39, %v6310_v54  ;;  %v3236_v50 = vpop.xlane.xlu1 %3235  ;;  %v3233_v41 = vpop.xlane.xlu0 %3232  ;;  %v14324_v39 = vld [vmem:[#allocation19_spill] sm:$0xff] }
 0x4ac   : > { %v3572_v14 = vpack.c.bf16 %v3236_v50, %v3233_v41  ;;  %v7190_v36 = vsel %vm14323_vm5, %v6315_v1, %v14322_v33  ;;  %v6931_v31 = vrot.slane %v4573_v37, %v10813_v2  ;;  %v6936_v52 = vrot.slane %v4574_v30, %v10816_v3  ;;  %v14325_v50 = vld [vmem:[#allocation18_spill] sm:$0xff]  ;;  %vm14326_vm5 = vmmov %vm14321_vm0 }
 0x4ad   : > { %v7206_v46 = vpack.c.b16 %v7190_v36, %v7190_v36 }
 0x4ae   : > { %v4591_v47 = vunpack.c.l.b16 %v3572_v14  ;;  %v4592_v20 = vunpack.c.h.b16 %v3572_v14  ;;  %v6932_v18 = vsel %vm4713_vm12, %v6931_v31, %v6927_v45 }
 0x4af   : > { %v3188_v53 = vpop.xlane.xlu1 %3187  ;;  %v3185_v42 = vpop.xlane.xlu0 %3184  ;;  %8629 = vmatmul.mubr.bf16.vlgmr.msra.gmra.mrb[0].mxu1 %v7206_v46  ;;  %v6937_v35 = vsel %vm4720_vm13, %v6936_v52, %v6932_v18  ;;  %v9639_v18 = vld [vmem:[%s12106_s9 + $0x350] ss:$8 sps:$4 sm:$0xff]  }
 0x4b0   : > { %v7020_v8 = vrot.slane %v4591_v47, %v10831_v19  ;;  %v7025_v15 = vrot.slane %v4592_v20, %v10838_v28  ;;  %v3564_v16 = vpack.c.bf16 %v3188_v53, %v3185_v42  ;;  %8638 = vmatpush1.bf16.msra.mxu1 %v9618_v0  ;;  %v9635_v0 = vld [vmem:[%s12106_s9 + $0x344] ss:$8 sps:$4 sm:$0xff]   ;;  %v9641_v42 = vld [vmem:[%s12106_s9 + $0x354] ss:$8 sps:$4 sm:$0xff]  }
 0x4b1   : > { %8639 = vmatprep.subr.bf16.mxu1 %v9623_v34  ;;  %v9633_v34 = vld [vmem:[%s12106_s9 + $0x340] ss:$8 sps:$4 sm:$0xff]  }
 0x4b2   : > { %v4575_v4 = vunpack.c.l.b16 %v3564_v16  ;;  %v4576_v26 = vunpack.c.h.b16 %v3564_v16  ;;  %v7021_v44 = vsel %vm4727_vm14, %v7020_v8, %v7016_v59  ;;  %v9644_v8 = vld [vmem:[%s12106_s9 + $0x724] ss:$8 sps:$4 sm:$0xff]  }
 0x4b3   : > { %v2906_v62 = vpop.xlane.xlu1 %2905  ;;  %v2903_v57 = vpop.xlane.xlu0 %2902  ;;  %v7026_v61 = vsel %vm4734_vm15, %v7025_v15, %v7021_v44 }
 0x4b4   : > { %v6941_v63 = vrot.slane %v4575_v4, %v10831_v19  ;;  %v6946_v58 = vrot.slane %v4576_v26, %v10838_v28  ;;  %v3517_v6 = vpack.c.bf16 %v2906_v62, %v2903_v57  ;;  %v7199_v5 = vsel %vm14321_vm0, %v7026_v61, %v14324_v39  ;;  %8640 = vmatpush1.bf16.msra.mxu1 %v9621_v10  ;;  %v9642_v4 = vld [vmem:[%s12106_s9 + $0x720] ss:$8 sps:$4 sm:$0xff]   ;;  %v9647_v57 = vld [vmem:[%s12106_s9 + $0x364] ss:$8 sps:$4 sm:$0xff]   ;;  %v9650_v61 = vld [vmem:[%s12106_s9 + $0x734] ss:$8 sps:$4 sm:$0xff]  }
 0x4b5   : > { %v7215_v49 = vpack.c.b16 %v7199_v5, %v7199_v5  ;;  %8641 = vmatprep.subr.bf16.mxu1 %v9626_v23  ;;  %vm14327_vm0 = vcmask 392512  }
 0x4b6   : > { %v6942_v17 = vsel %vm4727_vm14, %v6941_v63, %v6937_v35  ;;  %v4481_v14 = vunpack.c.l.b16 %v3517_v6  ;;  %v4482_v33 = vunpack.c.h.b16 %v3517_v6 }
 0x4b7   : > { %v6947_v54 = vsel %vm4734_vm15, %v6946_v58, %v6942_v17  ;;  %v2858_v37 = vpop.xlane.xlu1 %2857  ;;  %v2855_v51 = vpop.xlane.xlu0 %2854  ;;  %8792 = vmatprep.mubr.bf16.mxu0 %v7215_v49  ;;  %v9645_v17 = vld [vmem:[%s12106_s9 + $0x360] ss:$8 sps:$4 sm:$0xff]  }
 0x4b8   : > { %v3509_v1 = vpack.c.bf16 %v2858_v37, %v2855_v51  ;;  %v7198_v41 = vsel %vm14326_vm5, %v6947_v54, %v14325_v50  ;;  %8642 = vmatpush1.bf16.msra.mxu1 %v9624_v25  ;;  %v6477_v31 = vrot.slane %v4481_v14, %v10707_v32  ;;  %v6481_v47 = vrot.slane %v4482_v33, %v10715_v38  ;;  %v9648_v54 = vld [vmem:[%s12106_s9 + $0x730] ss:$8 sps:$4 sm:$0xff]   ;;  %v9653_v51 = vld [vmem:[%s12106_s9 + $0x374] ss:$8 sps:$4 sm:$0xff]   ;;  %vm14328_vm5 = vmmov %vm14327_vm0 }
 0x4b9   : > { %v7214_v36 = vpack.c.b16 %v7198_v41, %v7198_v41  ;;  %8643 = vmatprep.subr.bf16.mxu1 %v9629_v55  ;;  %v9651_v33 = vld [vmem:[%s12106_s9 + $0x370] ss:$8 sps:$4 sm:$0xff]  }
 0x4ba   : > { %v4465_v20 = vunpack.c.l.b16 %v3509_v1  ;;  %v4466_v53 = vunpack.c.h.b16 %v3509_v1  ;;  %v6482_v26 = vsel %vm4636_vm1, %v6481_v47, %v6477_v31  ;;  %v9656_v1 = vld [vmem:[%s12106_s9 + $0x744] ss:$8 sps:$4 sm:$0xff]  }
 0x4bb   : > { %v2912_v40 = vpop.xlane.xlu1 %2911  ;;  %v2909_v30 = vpop.xlane.xlu0 %2908  ;;  %8793 = vmatmul.mubr.bf16.vlgmr.msra.gmra.mrb[0].mxu0 %v7214_v36  ;;  %v9654_v36 = vld [vmem:[%s12106_s9 + $0x740] ss:$8 sps:$4 sm:$0xff]  }
 0x4bc   : > { %v3518_v46 = vpack.c.bf16 %v2912_v40, %v2909_v30  ;;  %8644 = vmatpush1.bf16.msra.mxu1 %v9627_v24  ;;  %8802 = vmatpush1.bf16.msra.mxu0 %v9630_v22  ;;  %v6398_v44 = vrot.slane %v4465_v20, %v10707_v32  ;;  %v6402_v62 = vrot.slane %v4466_v53, %v10715_v38  ;;  %v9657_v20 = vld [vmem:[%s12106_s9 + $0x380] ss:$8 sps:$4 sm:$0xff]   ;;  %v9660_v53 = vld [vmem:[%s12106_s9 + $0x750] ss:$8 sps:$4 sm:$0xff]  }
 0x4bd   : > { %8645 = vmatprep.subr.bf16.mxu1 %v9635_v0  ;;  %8803 = vmatprep.subr.bf16.mxu0 %v9638_v43  ;;  %v9659_v0 = vld [vmem:[%s12106_s9 + $0x384] ss:$8 sps:$4 sm:$0xff]   ;;  %v9662_v43 = vld [vmem:[%s12106_s9 + $0x754] ss:$8 sps:$4 sm:$0xff]  }
 0x4be   : > { %v4483_v15 = vunpack.c.l.b16 %v3518_v46  ;;  %v4484_v16 = vunpack.c.h.b16 %v3518_v46  ;;  %v6403_v37 = vsel %vm4636_vm1, %v6402_v62, %v6398_v44  ;;  %v9671_v62 = vld [vmem:[%s12106_s9 + $0x3a4] ss:$8 sps:$4 sm:$0xff]  }
 0x4bf   : > { %v2864_v10 = vpop.xlane.xlu1 %2863  ;;  %v2861_v45 = vpop.xlane.xlu0 %2860 }
 0x4c0   : > { %v6486_v59 = vrot.slane %v4483_v15, %v14310_v7  ;;  %v6491_v52 = vrot.slane %v4484_v16, %v14311_v29  ;;  %v3510_v23 = vpack.c.bf16 %v2864_v10, %v2861_v45  ;;  %8646 = vmatpush1.bf16.msra.mxu1 %v9633_v34  ;;  %8804 = vmatpush1.bf16.msra.mxu0 %v9636_v9  ;;  %v9665_v15 = vld [vmem:[%s12106_s9 + $0x394] ss:$8 sps:$4 sm:$0xff]   ;;  %v9668_v16 = vld [vmem:[%s12106_s9 + $0x764] ss:$8 sps:$4 sm:$0xff]  }
 0x4c1   : > { %8647 = vmatprep.subr.bf16.mxu1 %v9641_v42  ;;  %8805 = vmatprep.subr.bf16.mxu0 %v9644_v8 }
 0x4c2   : > { %v6487_v63 = vsel %vm4643_vm2, %v6486_v59, %v6482_v26  ;;  %v4467_v58 = vunpack.c.l.b16 %v3510_v23  ;;  %v4468_v6 = vunpack.c.h.b16 %v3510_v23 }
 0x4c3   : > { %v6492_v39 = vsel %vm4650_vm3, %v6491_v52, %v6487_v63  ;;  %v3290_v5 = vpop.xlane.xlu1 %3289  ;;  %v3287_v25 = vpop.xlane.xlu0 %3286 }
 0x4c4   : > { %v6407_v35 = vrot.slane %v4467_v58, %v14310_v7  ;;  %v6412_v49 = vrot.slane %v4468_v6, %v14311_v29  ;;  %v3581_v55 = vpack.c.bf16 %v3290_v5, %v3287_v25  ;;  %8648 = vmatpush1.bf16.msra.mxu1 %v9639_v18  ;;  %8806 = vmatpush1.bf16.msra.mxu0 %v9642_v4  ;;  %v9663_v18 = vld [vmem:[%s12106_s9 + $0x390] ss:$8 sps:$4 sm:$0xff]   ;;  %v9666_v4 = vld [vmem:[%s12106_s9 + $0x760] ss:$8 sps:$4 sm:$0xff]  }
 0x4c5   : > { %8649 = vmatprep.subr.bf16.mxu1 %v9647_v57  ;;  %8807 = vmatprep.subr.bf16.mxu0 %v9650_v61  ;;  %v9674_v57 = vld [vmem:[%s12106_s9 + $0x774] ss:$8 sps:$4 sm:$0xff]  }
 0x4c6   : > { %v6408_v50 = vsel %vm4643_vm2, %v6407_v35, %v6403_v37  ;;  %v4609_v42 = vunpack.c.l.b16 %v3581_v55  ;;  %v4610_v8 = vunpack.c.h.b16 %v3581_v55  ;;  %v9669_v35 = vld [vmem:[%s12106_s9 + $0x3a0] ss:$8 sps:$4 sm:$0xff]   ;;  %v9677_v37 = vld [vmem:[%s12106_s9 + $0x3b4] ss:$8 sps:$4 sm:$0xff]  }
 0x4c7   : > { %v14033_v41 = vsel %vm4650_vm3, %v6412_v49, %v6408_v50  ;;  %v2918_v24 = vpop.xlane.xlu1 %2917  ;;  %v2915_v22 = vpop.xlane.xlu0 %2914  ;;  %v9672_v49 = vld [vmem:[%s12106_s9 + $0x770] ss:$8 sps:$4 sm:$0xff]  }
 0x4c8   : > { %v3519_v14 = vpack.c.bf16 %v2918_v24, %v2915_v22  ;;  %8650 = vmatpush1.bf16.msra.mxu1 %v9645_v17  ;;  %8808 = vmatpush1.bf16.msra.mxu0 %v9648_v54  ;;  %v7109_v26 = vrot.slane %v4609_v42, %v10707_v32  ;;  %v7113_v44 = vrot.slane %v4610_v8, %v10715_v38 }
 0x4c9   : > { %8651 = vmatprep.subr.bf16.mxu1 %v9653_v51  ;;  %8809 = vmatprep.subr.bf16.mxu0 %v9656_v1  ;;  %v9680_v51 = vld [vmem:[%s12106_s9 + $0x784] ss:$8 sps:$4 sm:$0xff]  }
 0x4ca   : > { %v4485_v40 = vunpack.c.l.b16 %v3519_v14  ;;  %v4486_v30 = vunpack.c.h.b16 %v3519_v14  ;;  %v7114_v55 = vsel %vm4636_vm1, %v7113_v44, %v7109_v26  ;;  %v9687_v26 = vld [vmem:[%s12106_s9 + $0x3d0] ss:$8 sps:$4 sm:$0xff]   ;;  %v9690_v44 = vld [vmem:[%s12106_s9 + $0x7a0] ss:$8 sps:$4 sm:$0xff]  }
 0x4cb   : > { %v3242_v46 = vpop.xlane.xlu1 %3241  ;;  %v3239_v34 = vpop.xlane.xlu0 %3238 }
 0x4cc   : > { %v6496_v9 = vrot.slane %v4485_v40, %v14312_v11  ;;  %v6501_v31 = vrot.slane %v4486_v30, %v10744_v60  ;;  %v3573_v47 = vpack.c.bf16 %v3242_v46, %v3239_v34  ;;  %8652 = vmatpush1.bf16.msra.mxu1 %v9651_v33  ;;  %8810 = vmatpush1.bf16.msra.mxu0 %v9654_v36  ;;  %v9675_v40 = vld [vmem:[%s12106_s9 + $0x3b0] ss:$8 sps:$4 sm:$0xff]   ;;  %v9678_v30 = vld [vmem:[%s12106_s9 + $0x780] ss:$8 sps:$4 sm:$0xff]  }
 0x4cd   : > { %8653 = vmatprep.subr.bf16.mxu1 %v9659_v0  ;;  %8811 = vmatprep.subr.bf16.mxu0 %v9662_v43 }
 0x4ce   : > { %v6497_v10 = vsel %vm4657_vm4, %v6496_v9, %v6492_v39  ;;  %v4593_v17 = vunpack.c.l.b16 %v3573_v47  ;;  %v4594_v54 = vunpack.c.h.b16 %v3573_v47  ;;  %v9683_v9 = vld [vmem:[%s12106_s9 + $0x3c4] ss:$8 sps:$4 sm:$0xff]  }
 0x4cf   : > { %v14047_v45 = vsel %vm14327_vm0, %v6501_v31, %v6497_v10  ;;  %v3296_v59 = vpop.xlane.xlu1 %3295  ;;  %v3293_v52 = vpop.xlane.xlu0 %3292  ;;  %v9686_v31 = vld [vmem:[%s12106_s9 + $0x794] ss:$8 sps:$4 sm:$0xff]  }
 0x4d0   : > { %v3582_v23 = vpack.c.bf16 %v3296_v59, %v3293_v52  ;;  %8654 = vmatpush1.bf16.msra.mxu1 %v9657_v20  ;;  %8812 = vmatpush1.bf16.msra.mxu0 %v9660_v53  ;;  %v7030_v46 = vrot.slane %v4593_v17, %v10707_v32  ;;  %v7034_v34 = vrot.slane %v4594_v54, %v10715_v38  ;;  %v9689_v59 = vld [vmem:[%s12106_s9 + $0x3d4] ss:$8 sps:$4 sm:$0xff]   ;;  %v9692_v52 = vld [vmem:[%s12106_s9 + $0x7a4] ss:$8 sps:$4 sm:$0xff]  }
 0x4d1   : > { %8655 = vmatprep.subr.bf16.mxu1 %v9665_v15  ;;  %8813 = vmatprep.subr.bf16.mxu0 %v9668_v16  ;;  %v9681_v16 = vld [vmem:[%s12106_s9 + $0x3c0] ss:$8 sps:$4 sm:$0xff]  }
 0x4d2   : > { %v4611_v61 = vunpack.c.l.b16 %v3582_v23  ;;  %v4612_v63 = vunpack.c.h.b16 %v3582_v23  ;;  %v7035_v10 = vsel %vm4636_vm1, %v7034_v34, %v7030_v46  ;;  %vm14329_vm1 = vmmov %vm14327_vm0 }
 0x4d3   : > { %v2870_v58 = vpop.xlane.xlu1 %2869  ;;  %v2867_v6 = vpop.xlane.xlu0 %2866 }
 0x4d4   : > { %v7118_v39 = vrot.slane %v4611_v61, %v14310_v7  ;;  %v7123_v5 = vrot.slane %v4612_v63, %v14311_v29  ;;  %v3511_v25 = vpack.c.bf16 %v2870_v58, %v2867_v6  ;;  %8656 = vmatpush1.bf16.msra.mxu1 %v9663_v18  ;;  %8814 = vmatpush1.bf16.msra.mxu0 %v9666_v4 }
 0x4d5   : > { %8657 = vmatprep.subr.bf16.mxu1 %v9671_v62  ;;  %8815 = vmatprep.subr.bf16.mxu0 %v9674_v57  ;;  %v9695_v62 = vld [vmem:[%s12106_s9 + $0x3e4] ss:$8 sps:$4 sm:$0xff]   ;;  %v9698_v57 = vld [vmem:[%s12106_s9 + $0x7b4] ss:$8 sps:$4 sm:$0xff]  }
 0x4d6   : > { %v7119_v1 = vsel %vm4643_vm2, %v7118_v39, %v7114_v55  ;;  %v4469_v50 = vunpack.c.l.b16 %v3511_v25  ;;  %v4470_v24 = vunpack.c.h.b16 %v3511_v25  ;;  %v9693_v25 = vld [vmem:[%s12106_s9 + $0x3e0] ss:$8 sps:$4 sm:$0xff]   ;;  %v9704_v55 = vld [vmem:[%s12106_s9 + $0x7c4] ss:$8 sps:$4 sm:$0xff]  }
 0x4d7   : > { %v7124_v22 = vsel %vm4650_vm3, %v7123_v5, %v7119_v1  ;;  %v3248_v14 = vpop.xlane.xlu1 %3247  ;;  %v3245_v33 = vpop.xlane.xlu0 %3244  ;;  %v9699_v1 = vld [vmem:[%s12106_s9 + $0x3f0] ss:$8 sps:$4 sm:$0xff]  }
 0x4d8   : > { %v6417_v36 = vrot.slane %v4469_v50, %v14312_v11  ;;  %v6422_v0 = vrot.slane %v4470_v24, %v10744_v60  ;;  %v3574_v43 = vpack.c.bf16 %v3248_v14, %v3245_v33  ;;  %8658 = vmatpush1.bf16.msra.mxu1 %v9669_v35  ;;  %8816 = vmatpush1.bf16.msra.mxu0 %v9672_v49  ;;  %v9696_v35 = vld [vmem:[%s12106_s9 + $0x7b0] ss:$8 sps:$4 sm:$0xff]   ;;  %v9701_v49 = vld [vmem:[%s12106_s9 + $0x3f4] ss:$8 sps:$4 sm:$0xff]   ;;  %v9702_v50 = vld [vmem:[%s12106_s9 + $0x7c0] ss:$8 sps:$4 sm:$0xff]  }
 0x4d9   : > { %8659 = vmatprep.subr.bf16.mxu1 %v9677_v37  ;;  %8817 = vmatprep.subr.bf16.mxu0 %v9680_v51  ;;  %v9707_v24 = vld [vmem:[%s12106_s9 + $0x7d4] ss:$8 sps:$4 sm:$0xff]  }
 0x4da   : > { %v6418_v47 = vsel %vm4657_vm4, %v6417_v36, %v14033_v41  ;;  %v4595_v20 = vunpack.c.l.b16 %v3574_v43  ;;  %v4596_v53 = vunpack.c.h.b16 %v3574_v43  ;;  %v9684_v41 = vld [vmem:[%s12106_s9 + $0x790] ss:$8 sps:$4 sm:$0xff]   ;;  %v9710_v36 = vld [vmem:[%s12106_s9 + $0x7e4] ss:$8 sps:$4 sm:$0xff]  }
 0x4db   : > { %v14075_v42 = vsel %vm14328_vm5, %v6422_v0, %v6418_v47  ;;  %v14077_v8 = vpop.xlane.xlu1 %2923  ;;  %v14079_v32 = vpop.xlane.xlu0 %2920 }
 0x4dc   : > { %v7039_v38 = vrot.slane %v4595_v20, %v14310_v7  ;;  %v7044_v15 = vrot.slane %v4596_v53, %v14311_v29  ;;  %8660 = vmatpush1.bf16.msra.mxu1 %v9675_v40  ;;  %8818 = vmatpush1.bf16.msra.mxu0 %v9678_v30  ;;  %v9708_v40 = vld [vmem:[%s12106_s9 + $0x7e0] ss:$8 sps:$4 sm:$0xff]   ;;  %v9713_v30 = vld [vmem:[%s12106_s9 + $0x7f4] ss:$8 sps:$4 sm:$0xff]  }
 0x4dd   : > { %8661 = vmatprep.subr.bf16.mxu1 %v9683_v9  ;;  %8819 = vmatprep.subr.bf16.mxu0 %v9686_v31  ;;  %v9711_v9 = vld [vmem:[%s12106_s9 + $0x7f0] ss:$8 sps:$4 sm:$0xff]  }
 0x4de   : > { %v7040_v23 = vsel %vm4643_vm2, %v7039_v38, %v7035_v10  ;;  %v3520_v10 = vpack.c.bf16 %v14077_v8, %v14079_v32  ;;  %vm14330_vm2 = vmmov %vm14327_vm0 }
 0x4df   : > { %v14090_v7 = vsel %vm4650_vm3, %v7044_v15, %v7040_v23  ;;  %v3302_v29 = vpop.xlane.xlu1 %3301  ;;  %v3299_v18 = vpop.xlane.xlu0 %3298  ;;  %vm14332_vm3 = vcmask 1041409  }
 0x4e0   : > { %v3583_v4 = vpack.c.bf16 %v3302_v29, %v3299_v18  ;;  %8662 = vmatpush1.bf16.msra.mxu1 %v9681_v16  ;;  %8820 = vmatpush1.bf16.msra.mxu0 %v9684_v41  ;;  %v4487_v29 = vunpack.c.l.b16 %v3520_v10 }
 0x4e1   : > { %8663 = vmatprep.subr.bf16.mxu1 %v9689_v59  ;;  %8821 = vmatprep.subr.bf16.mxu0 %v9692_v52 }
 0x4e2   : > { %v4613_v61 = vunpack.c.l.b16 %v3583_v4  ;;  %v4614_v63 = vunpack.c.h.b16 %v3583_v4 }
 0x4e3   : > { %v2876_v58 = vpop.xlane.xlu1 %2875  ;;  %v2873_v6 = vpop.xlane.xlu0 %2872 }
 0x4e4   : > { %v7128_v39 = vrot.slane %v4613_v61, %v14312_v11  ;;  %v7133_v5 = vrot.slane %v4614_v63, %v10744_v60  ;;  %8664 = vmatpush1.bf16.msra.mxu1 %v9687_v26  ;;  %8822 = vmatpush1.bf16.msra.mxu0 %v9690_v44  ;;  %v3512_v59 = vpack.c.bf16 %v2876_v58, %v2873_v6  ;;  %v4488_v44 = vunpack.c.h.b16 %v3520_v10 }
 0x4e5   : > { %8665 = vmatprep.subr.bf16.mxu1 %v9695_v62  ;;  %8823 = vmatprep.subr.bf16.mxu0 %v9698_v57  ;;  %v6506_v63 = vrot.slane %v4487_v29, %v10761_v12 }
 0x4e6   : > { %v7129_v17 = vsel %vm4657_vm4, %v7128_v39, %v7124_v22  ;;  %v9705_v22 = vld [vmem:[%s12106_s9 + $0x7d0] ss:$8 sps:$4 sm:$0xff]   ;;  %v4471_v62 = vunpack.c.l.b16 %v3512_v59  ;;  %v6511_v8 = vrot.slane %v4488_v44, %v10764_v13  ;;  %v4472_v32 = vunpack.c.h.b16 %v3512_v59  ;;  %s8982_s9 = sshll.u32 %s9784_s15, 1  ;;  %s9794_s15 = smov [#allocation3]  }
 0x4e7   : > { %v14104_v54 = vsel %vm14329_vm1, %v7133_v5, %v7129_v17  ;;  %v3254_v37 = vpop.xlane.xlu1 %3253  ;;  %v3251_v51 = vpop.xlane.xlu0 %3250  ;;  %v6507_v17 = vsel %vm4671_vm6, %v6506_v63, %v14047_v45  ;;  %p1279_p0 = scmp.lt.s32.totalorder %s8982_s9, 3  ;;  %s9718_s23 = sshll.u32 %s9794_s15, 4  ;;  %s9719_s23 = int_to_ptr.vmem [resolvable:$false] %s9718_s23 }
 0x4e8   : > { %8666 = vmatpush1.bf16.msra.mxu1 %v9693_v25  ;;  %8824 = vmatpush1.bf16.msra.mxu0 %v9696_v35  ;;  %v3575_v18 = vpack.c.bf16 %v3254_v37, %v3251_v51  ;;  %v6427_v58 = vrot.slane %v4471_v62, %v10761_v12  ;;  %s9720_s27 = scalar_lea.vmem %s9719_s23, 128  ;;  %p9721_p4 = scmp.lt.s32.totalorder %s14231_s8, %s9719_s23 }
 0x4e9   : > { %8667 = vmatprep.subr.bf16.mxu1 %v9701_v49  ;;  %8825 = vmatprep.subr.bf16.mxu0 %v9704_v55  ;;  %s14348_s9 = smov (!%p1279_p0, %s8982_s9), 3  ;;  %p9722_p6 = scmp.lt.s32.totalorder %s9720_s27, %s9714_s21 }
 0x4ea   : > { %v4597_v39 = vunpack.c.l.b16 %v3575_v18  ;;  %v4598_v37 = vunpack.c.h.b16 %v3575_v18  ;;  %s1281_s4 = scalar_lea.vmem %s14280_s2, %s14348_s9 }
 0x4eb   : > { %v2930_v14 = vpop.xlane.xlu1 %2929  ;;  %v2927_v33 = vpop.xlane.xlu0 %2926  ;;  %p9723_p7 = por %p9722_p6, %p9721_p4 }
 0x4ec   : > { %8668 = vmatpush1.bf16.msra.mxu1 %v9699_v1  ;;  %8826 = vmatpush1.bf16.msra.mxu0 %v9702_v50  ;;  %v3521_v4 = vpack.c.bf16 %v2930_v14, %v2927_v33  ;;  %v7049_v51 = vrot.slane %v4597_v39, %v14312_v11 }
 0x4ed   : > { %8827 = vmatprep.subr.bf16.mxu0 %v9707_v24  ;;  %p9724_p8 = pnand %p9723_p7, %p9717_p3 }
 0x4ee   : > { %v4489_v5 = vunpack.c.l.b16 %v3521_v4  ;;  %v4490_v50 = vunpack.c.h.b16 %v3521_v4  ;;  %v7050_v11 = vsel %vm4657_vm4, %v7049_v51, %v14090_v7  ;;  %vm14334_vm4 = vmmov %vm14332_vm3 }
 0x4ef   : > { %v3308_v0 = vpop.xlane.xlu1 %3307  ;;  %v3305_v43 = vpop.xlane.xlu0 %3304 }
 0x4f0   : > { %8828 = vmatpush1.bf16.msra.mxu0 %v9705_v22  ;;  %v3584_v26 = vpack.c.bf16 %v3308_v0, %v3305_v43  ;;  %v6516_v24 = vrot.slane %v4489_v5, %v10770_v21  ;;  %v6512_v0 = vsel %vm4678_vm7, %v6511_v8, %v6507_v17  ;;  %v6428_v43 = vsel %vm4671_vm6, %v6427_v58, %v14075_v42 }
 0x4f1   : > { %8829 = vmatprep.subr.bf16.mxu0 %v9710_v36 }
 0x4f2   : > { %v4615_v25 = vunpack.c.l.b16 %v3584_v26  ;;  %v4616_v14 = vunpack.c.h.b16 %v3584_v26 }
 0x4f3   : > { %v2882_v46 = vpop.xlane.xlu1 %2881  ;;  %v2879_v34 = vpop.xlane.xlu0 %2878 }
 0x4f4   : > { %8830 = vmatpush1.bf16.msra.mxu0 %v9708_v40  ;;  %v3513_v6 = vpack.c.bf16 %v2882_v46, %v2879_v34  ;;  %v7138_v33 = vrot.slane %v4615_v25, %v10761_v12  ;;  %v6432_v40 = vrot.slane %v4472_v32, %v10764_v13  ;;  %v7054_v34 = vrot.slane %v4598_v37, %v10744_v60 }
 0x4f5   : > { %8831 = vmatprep.subr.bf16.mxu0 %v9713_v30 }
 0x4f6   : > { %v4473_v45 = vunpack.c.l.b16 %v3513_v6  ;;  %v7139_v42 = vsel %vm4671_vm6, %v7138_v33, %v14104_v54  ;;  %v4474_v59 = vunpack.c.h.b16 %v3513_v6  ;;  %v7055_v44 = vsel %vm14330_vm2, %v7054_v34, %v7050_v11 }
 0x4f7   : > { %v3260_v31 = vpop.xlane.xlu1 %3259  ;;  %v3257_v47 = vpop.xlane.xlu0 %3256 }
 0x4f8   : > { %8832 = vmatpush1.bf16.msra.mxu0 %v9711_v9  ;;  %v3576_v1 = vpack.c.bf16 %v3260_v31, %v3257_v47  ;;  %v6517_v47 = vsel %vm4685_vm8, %v6516_v24, %v6512_v0  ;;  %v6437_v7 = vrot.slane %v4473_v45, %v10770_v21  ;;  %v6442_v5 = vrot.slane %v4474_v59, %v10778_v27 }
 0x4fa   : > { %v4599_v9 = vunpack.c.l.b16 %v3576_v1  ;;  %v4600_v4 = vunpack.c.h.b16 %v3576_v1 }
 0x4fb   : > { %v2936_v20 = vpop.xlane.xlu1 %2935  ;;  %v2933_v53 = vpop.xlane.xlu0 %2932 }
 0x4fc   : > { %v3522_v35 = vpack.c.bf16 %v2936_v20, %v2933_v53  ;;  %v6521_v20 = vrot.slane %v4490_v50, %v10778_v27  ;;  %v7143_v53 = vrot.slane %v4616_v14, %v10764_v13  ;;  %v7059_v62 = vrot.slane %v4599_v9, %v10761_v12 }
 0x4fd   : > { %v7064_v8 = vrot.slane %v4600_v4, %v10764_v13 }
 0x4fe   : > { %v4491_v22 = vunpack.c.l.b16 %v3522_v35  ;;  %v4492_v10 = vunpack.c.h.b16 %v3522_v35  ;;  %v7144_v54 = vsel %vm4678_vm7, %v7143_v53, %v7139_v42  ;;  %v7060_v17 = vsel %vm4671_vm6, %v7059_v62, %v7055_v44  ;;  %vm14336_vm6 = vmmov %vm14332_vm3 }
 0x4ff   : > { %v3314_v38 = vpop.xlane.xlu1 %3313  ;;  %v3311_v15 = vpop.xlane.xlu0 %3310 }
 0x500   : > { %v6526_v29 = vrot.slane %v4491_v22, %v10796_v48  ;;  %v3585_v60 = vpack.c.bf16 %v3314_v38, %v3311_v15  ;;  %v6531_v63 = vrot.slane %v4492_v10, %v10806_v56 }
 0x502   : > { %v4617_v12 = vunpack.c.l.b16 %v3585_v60  ;;  %v4618_v24 = vunpack.c.h.b16 %v3585_v60 }
 0x503   : > { %v2888_v16 = vpop.xlane.xlu1 %2887  ;;  %v2885_v41 = vpop.xlane.xlu0 %2884 }
 0x504   : > { %v3514_v31 = vpack.c.bf16 %v2888_v16, %v2885_v41  ;;  %v6433_v41 = vsel %vm4678_vm7, %v6432_v40, %v6428_v43  ;;  %v7148_v43 = vrot.slane %v4617_v12, %v10770_v21 }
 0x505   : > { %v6438_v35 = vsel %vm4685_vm8, %v6437_v7, %v6433_v41 }
 0x506   : > { %v4476_v37 = vunpack.c.h.b16 %v3514_v31  ;;  %v7149_v41 = vsel %vm4685_vm8, %v7148_v43, %v7144_v54 }
 0x507   : > { %v14116_v52 = vpop.xlane.xlu1 %3265  ;;  %v14118_v23 = vpop.xlane.xlu0 %3262 }
 0x508   : > { %v3577_v32 = vpack.c.bf16 %v14116_v52, %v14118_v23  ;;  %v6443_v52 = vsel %vm4692_vm9, %v6442_v5, %v6438_v35  ;;  %v7065_v23 = vsel %vm4678_vm7, %v7064_v8, %v7060_v17  ;;  %v6452_v11 = vrot.slane %v4476_v37, %v10806_v56  ;;  %vm14338_vm7 = vmmov %vm14332_vm3 }
 0x50a   : > { %v4601_v40 = vunpack.c.l.b16 %v3577_v32  ;;  %v4602_v59 = vunpack.c.h.b16 %v3577_v32 }
 0x50b   : > { %v2942_v57 = vpop.xlane.xlu1 %2941  ;;  %v2939_v61 = vpop.xlane.xlu0 %2938 }
 0x50c   : > { %v3523_v36 = vpack.c.bf16 %v2942_v57, %v2939_v61  ;;  %v4475_v57 = vunpack.c.l.b16 %v3514_v31  ;;  %v6522_v61 = vsel %vm4692_vm9, %v6521_v20, %v6517_v47  ;;  %v7153_v20 = vrot.slane %v4618_v24, %v10778_v27 }
 0x50d   : > { %v6527_v38 = vsel %vm4699_vm10, %v6526_v29, %v6522_v61  ;;  %v7069_v29 = vrot.slane %v4601_v40, %v10770_v21  ;;  %v7074_v35 = vrot.slane %v4602_v59, %v10778_v27  ;;  %v14333_v40 = vld [vmem:[#allocation14_spill] sm:$0xff] }
 0x50e   : > { %v4493_v18 = vunpack.c.l.b16 %v3523_v36  ;;  %v4494_v39 = vunpack.c.h.b16 %v3523_v36  ;;  %v6447_v51 = vrot.slane %v4475_v57, %v10796_v48  ;;  %v6532_v50 = vsel %vm4706_vm11, %v6531_v63, %v6527_v38 }
 0x50f   : > { %v3320_v49 = vpop.xlane.xlu1 %3319  ;;  %v3317_v55 = vpop.xlane.xlu0 %3316  ;;  %v7070_v54 = vsel %vm4685_vm8, %v7069_v29, %v7065_v23 }
 0x510   : > { %v6536_v15 = vrot.slane %v4493_v18, %v10813_v2  ;;  %v6541_v14 = vrot.slane %v4494_v39, %v10816_v3  ;;  %v3586_v33 = vpack.c.bf16 %v3320_v49, %v3317_v55 }
 0x512   : > { %v6537_v13 = vsel %vm4713_vm12, %v6536_v15, %v6532_v50  ;;  %v4619_v9 = vunpack.c.l.b16 %v3586_v33  ;;  %v4620_v18 = vunpack.c.h.b16 %v3586_v33 }
 0x513   : > { %v2894_v30 = vpop.xlane.xlu1 %2893  ;;  %v2891_v46 = vpop.xlane.xlu0 %2890  ;;  %v6542_v34 = vsel %vm4720_vm13, %v6541_v14, %v6537_v13  ;;  %v7075_v13 = vsel %vm4692_vm9, %v7074_v35, %v7070_v54 }
 0x514   : > { %v3515_v25 = vpack.c.bf16 %v2894_v30, %v2891_v46  ;;  %v6448_v46 = vsel %vm4699_vm10, %v6447_v51, %v6443_v52  ;;  %v7158_v57 = vrot.slane %v4619_v9, %v10796_v48  ;;  %v7163_v8 = vrot.slane %v4620_v18, %v10806_v56 }
 0x515   : > { %v6453_v44 = vsel %vm4706_vm11, %v6452_v11, %v6448_v46 }
 0x516   : > { %v4477_v22 = vunpack.c.l.b16 %v3515_v25  ;;  %v4478_v31 = vunpack.c.h.b16 %v3515_v25  ;;  %v7154_v25 = vsel %vm4692_vm9, %v7153_v20, %v7149_v41 }
 0x517   : > { %v3272_v26 = vpop.xlane.xlu1 %3271  ;;  %v3269_v16 = vpop.xlane.xlu0 %3268  ;;  %v7159_v51 = vsel %vm4699_vm10, %v7158_v57, %v7154_v25  ;;  %v3845_v25 = vld [vmem:[%s1281_s4] sm:$0x3] }
 0x518   : > { %v3578_v47 = vpack.c.bf16 %v3272_v26, %v3269_v16  ;;  %v6457_v53 = vrot.slane %v4477_v22, %v10813_v2  ;;  %v14331_v16 = vld [vmem:[#allocation15_spill] sm:$0xff]  ;;  %v6462_v61 = vrot.slane %v4478_v31, %v10816_v3  ;;  %v7164_v52 = vsel %vm4706_vm11, %v7163_v8, %v7159_v51 }
 0x51a   : > { %v4603_v63 = vunpack.c.l.b16 %v3578_v47  ;;  %v6458_v21 = vsel %vm4713_vm12, %v6457_v53, %v6453_v44  ;;  %v14335_v44 = vld [vmem:[#allocation21_spill] sm:$0xff] }
 0x51b   : > { %v2948_v58 = vpop.xlane.xlu1 %2947  ;;  %v2945_v6 = vpop.xlane.xlu0 %2944 }
 0x51c   : > { %v3524_v1 = vpack.c.bf16 %v2948_v58, %v2945_v6  ;;  %v4604_v58 = vunpack.c.h.b16 %v3578_v47  ;;  %v7079_v50 = vrot.slane %v4603_v63, %v10796_v48 }
 0x51e   : > { %v4495_v36 = vunpack.c.l.b16 %v3524_v1  ;;  %v4496_v0 = vunpack.c.h.b16 %v3524_v1  ;;  %v6463_v1 = vsel %vm4720_vm13, %v6462_v61, %v6458_v21  ;;  %v7084_v23 = vrot.slane %v4604_v58, %v10806_v56  ;;  %v14337_v61 = vld [vmem:[#allocation20_spill] sm:$0xff] }
 0x51f   : > { %v3326_v45 = vpop.xlane.xlu1 %3325  ;;  %v3323_v30 = vpop.xlane.xlu0 %3322 }
 0x520   : > { %v6546_v49 = vrot.slane %v4495_v36, %v10831_v19  ;;  %v6551_v55 = vrot.slane %v4496_v0, %v10838_v28  ;;  %v3587_v10 = vpack.c.bf16 %v3326_v45, %v3323_v30  ;;  %v7080_v45 = vsel %vm4699_vm10, %v7079_v50, %v7075_v13 }
 0x522   : > { %v6547_v42 = vsel %vm4727_vm14, %v6546_v49, %v6542_v34  ;;  %v4621_v5 = vunpack.c.l.b16 %v3587_v10  ;;  %v4622_v24 = vunpack.c.h.b16 %v3587_v10  ;;  %v7085_v10 = vsel %vm4706_vm11, %v7084_v23, %v7080_v45 }
 0x523   : > { %v2900_v7 = vpop.xlane.xlu1 %2899  ;;  %v2897_v4 = vpop.xlane.xlu0 %2896  ;;  %v6552_v60 = vsel %vm4734_vm15, %v6551_v55, %v6547_v42 }
 0x524   : > { %v3516_v26 = vpack.c.bf16 %v2900_v7, %v2897_v4  ;;  %v7193_v62 = vsel %vm14332_vm3, %v6552_v60, %v14331_v16  ;;  %v7168_v27 = vrot.slane %v4621_v5, %v10813_v2  ;;  %v7173_v30 = vrot.slane %v4622_v24, %v10816_v3  ;;  %v14339_v5 = vld [vmem:[#allocation6_spill] sm:$0xff] }
 0x525   : > { %v7209_v39 = vpack.c.b16 %v7193_v62, %v7193_v62  ;;  %v3853_v54 = vsub.s32 1, %v14339_v5 }
 0x526   : > { %v4479_v38 = vunpack.c.l.b16 %v3516_v26  ;;  %v4480_v15 = vunpack.c.h.b16 %v3516_v26  ;;  %v7169_v49 = vsel %vm4713_vm12, %v7168_v27, %v7164_v52 }
 0x527   : > { %v3278_v12 = vpop.xlane.xlu1 %3277  ;;  %v3275_v32 = vpop.xlane.xlu0 %3274  ;;  %8669 = vmatprep.mubr.bf16.mxu1 %v7209_v39  ;;  %v7174_v42 = vsel %vm4720_vm13, %v7173_v30, %v7169_v49  ;;  %v3854_v8 = vrot.slane %v3845_v25, %v3853_v54 }
 0x528   : > { %v6467_v6 = vrot.slane %v4479_v38, %v10831_v19  ;;  %v6472_v17 = vrot.slane %v4480_v15, %v10838_v28  ;;  %v3579_v37 = vpack.c.bf16 %v3278_v12, %v3275_v32  ;;  %v3849_v38 = vsub.s32 0, %v14339_v5 }
 0x52a   : > { %v6468_v14 = vsel %vm4727_vm14, %v6467_v6, %v6463_v1  ;;  %v4605_v33 = vunpack.c.l.b16 %v3579_v37  ;;  %v4606_v46 = vunpack.c.h.b16 %v3579_v37  ;;  %v3850_v35 = vrot.slane %v3845_v25, %v3849_v38 }
 0x52b   : > { %v6473_v22 = vsel %vm4734_vm15, %v6472_v17, %v6468_v14  ;;  %v3332_v36 = vpop.xlane.xlu1 %3331  ;;  %v3329_v0 = vpop.xlane.xlu0 %3328 }
 0x52c   : > { %v3588_v43 = vpack.c.bf16 %v3332_v36, %v3329_v0  ;;  %v7192_v48 = vsel %vm14334_vm4, %v6473_v22, %v14333_v40  ;;  %v7089_v55 = vrot.slane %v4605_v33, %v10813_v2  ;;  %v7094_v59 = vrot.slane %v4606_v46, %v10816_v3 }
 0x52d   : > { %v7208_v11 = vpack.c.b16 %v7192_v48, %v7192_v48 }
 0x52e   : > { %v4623_v34 = vunpack.c.l.b16 %v3588_v43  ;;  %v4624_v9 = vunpack.c.h.b16 %v3588_v43  ;;  %v7090_v29 = vsel %vm4713_vm12, %v7089_v55, %v7085_v10 }
 0x52f   : > { %v3284_v31 = vpop.xlane.xlu1 %3283  ;;  %v3281_v47 = vpop.xlane.xlu0 %3280  ;;  %8670 = vmatmul.mubr.bf16.vlgmr.msra.gmra.mrb[0].mxu1 %v7208_v11  ;;  %v7095_v16 = vsel %vm4720_vm13, %v7094_v59, %v7090_v29 }
 0x530   : > { %v7178_v56 = vrot.slane %v4623_v34, %v10831_v19  ;;  %v7183_v20 = vrot.slane %v4624_v9, %v10838_v28  ;;  %v3580_v53 = vpack.c.bf16 %v3284_v31, %v3281_v47 }
 0x532   : > { %v4607_v2 = vunpack.c.l.b16 %v3580_v53  ;;  %v4608_v18 = vunpack.c.h.b16 %v3580_v53  ;;  %v7179_v7 = vsel %vm4727_vm14, %v7178_v56, %v7174_v42 }
 0x533   : > { %v7184_v4 = vsel %vm4734_vm15, %v7183_v20, %v7179_v7 }
 0x534   : > { %v7099_v60 = vrot.slane %v4607_v2, %v10831_v19  ;;  %v7104_v41 = vrot.slane %v4608_v18, %v10838_v28  ;;  %v7201_v26 = vsel %vm14336_vm6, %v7184_v4, %v14335_v44 }
 0x535   : > { %v7217_v62 = vpack.c.b16 %v7201_v26, %v7201_v26 }
 0x536   : > { %v7100_v3 = vsel %vm4727_vm14, %v7099_v60, %v7095_v16 }
 0x537   : > { %v7105_v57 = vsel %vm4734_vm15, %v7104_v41, %v7100_v3  ;;  %8833 = vmatprep.mubr.bf16.mxu0 %v7217_v62 }
 0x538   : > { %v7200_v63 = vsel %vm14338_vm7, %v7105_v57, %v14337_v61 }
 0x539   : > { %v7216_v39 = vpack.c.b16 %v7200_v63, %v7200_v63 }
 0x53b   : > { %8834 = vmatmul.mubr.bf16.vlgmr.msra.gmra.mrb[0].mxu0 %v7216_v39 }
 0x602   : > { %v8671_v19 = vpop.f32.mrb[0].mxu1 }
 0x603   : > { %v8673_v28 = vpop.f32.mrb[1].mxu1  ;;  %v9247_v12 = vadd.f32 %v8671_v19, %v3850_v35 }
 0x604   : > { %v8675_v21 = vpop.f32.mrb[2].mxu1  ;;  %v9249_v32 = vadd.f32 %v8673_v28, %v3854_v8 }
 0x605   : > { %v8676_v15 = vpop.f32.mrb[3].mxu1 }
 0x60e   : > { %v8835_v58 = vpop.f32.mrb[0].mxu0 }
 0x60f   : > { %v9248_v6 = vadd.f32 %v9247_v12, %v8835_v58  ;;  %v8837_v17 = vpop.f32.mrb[1].mxu0 }
 0x610   : > { %v9250_v37 = vadd.f32 %v9249_v32, %v8837_v17  ;;  %v8839_v51 = vpop.f32.mrb[2].mxu0 }
 0x611   : > { %v8840_v1 = vpop.f32.mrb[3].mxu0 }
 0x612   : > { %v8844_v50 = vcombine.low %v9248_v6, %v9250_v37 }
 0x614   : > { %9239 = vst.sshfl [vmem:[%s1269_s7] sm:$0x33 pattern:$0x76325410] %v8844_v50 }
 0x615   : > { %9727 = shalt.err (!%p9724_p8)
}
 0x616   : > { %s9728_s26 = scalar_lea.hbm %s14229_s18, 64  ;;  %s9732_s29 = scalar_lea.hbm %s14281_s3, 128 }
 0x617   : > { %p9729_p11 = scmp.ne.s32.totalorder %s14229_s18, %s9728_s26  ;;  %p9733_p0 = scmp.lt.u32.totalorder %s14229_s18, %s14281_s3 }
 0x618   : > { %p9734_p1 = scmp.lt.u32.totalorder %s9732_s29, %s9728_s26  ;;  %p9736_p3 = scmp.lt.u32.totalorder %s9728_s26, %s14229_s18 }
 0x619   : > { %p9730_p12 = pnand %p9729_p11, %p9854_p5 }
 0x61a   : > { %p9735_p2 = por %p9734_p1, %p9733_p0 }
 0x61b   : > { %p9731_p13 = pneg %p9730_p12 }
 0x61c   : > { %p9737_p4 = por %p9736_p3, %p9735_p2 }
 0x61e   : > { %p9738_p6 = pnand %p9737_p4, %p9731_p13 }
 0x620   : > { %9741 = shalt.err (!%p9738_p6)
}
 0x621   : > { %9275 = dma.vmem_to_hbm [thread:$0]  (%p9854_p5), %s14231_s8, 64, %s14229_s18, %s8855_s19  }
 0x622 PF: > { %s8883_s5 = sand.u32 1, %s9772_s12   ;;  %p9278_p7 = pnand %p8975_p10, %p9865_p9 }
 0x623   : > { %s8884_s6 = scalar_lea.sflag [#allocation4], %s8883_s5 }
 0x624   : > { %9767 = dma.done.wait (!%p9278_p7), %s8884_s6, 64  }
 0x625   : > { %9769 = vsyncadd (!%p9278_p7), %s8884_s6, 4294967232  ;;  %s16_s17 = sadd.s32 1, %s9792_s17   ;;  %s14340_s12 = smov %s9776_s13 }
 0x626   : > { %p13_p8 = scmp.ge.s32.totalorder %s16_s17, 4   ;;  %s14341_s13 = smov %s9780_s14 }
 0x627   : > { %s14342_s14 = smov %s9863_s24  ;;  %s14343_s15 = smov %s9788_s16 }
 0x628   : > { %s14344_s16 = smov %s14346_s20  ;;  %15 = sbr.rel (!%p13_p8) target bundleno = 4 (0x4), region = 116 }
 0x62f   :  { %8889 = vsyncpa [#allocation4], 1 }
 0x630   :  { %8891 = vsyncpa [#allocation4 + $0x1], 1 }

</bundles_post_ra>
